<compile_context>
chip_gen: v7x
topology: tpu7x:2x2x1
jax: 0.10.0
libtpu: 0.0.40
codegen_flags: <defaults>
</compile_context>

<pallas_src>
import functools

import jax
import jax.numpy as jnp
from jax.experimental import pallas as pl
from jax.experimental.pallas import tpu as pltpu

_BN_EPS = 1e-5
_LANE = 128


def _round_up(x, m):
    return (x + m - 1) // m * m


# ---------------------------------------------------------------------------
# Fused DoubleConv kernel: one grid step == one batch element.
# ---------------------------------------------------------------------------
def _double_conv_kernel(x_ref, w1_ref, s1_ref, w2_ref, s2_ref, *rest, H, W, residual):
    """
    x_ref     : (H+2, W+2, Cin_p)   bf16  zero-padded NHWC input (one image)
    w*_ref    : (9, C, Cout_p)      bf16  3x3 weights, BN scale folded in, tap-major (dy*3+dx)
    s*_ref    : (1, Cout_p)         f32   BN shift
    o_ref     : (H*W, Cout_p)       f32   output rows (lane-dense)
    h1pad_ref : (H+2, W+2, Cout_p)  bf16  scratch: zero-padded intermediate activation
    acc_ref   : (H*W, Cout_p)       f32   scratch: matmul accumulator
    """
    if residual:
        ws_ref, ss_ref, o_ref, h1pad_ref, acc_ref = rest
    else:
        o_ref, h1pad_ref, acc_ref = rest
        ws_ref = ss_ref = None

    cout_p = o_ref.shape[-1]

    def conv3x3(src_ref, w_ref, s_ref, relu):
        # 3x3, stride 1, pad 1 conv as 9 shifted matmuls accumulated in f32.
        acc_ref[...] = jnp.zeros_like(acc_ref)
        for dy in range(3):
            for dx in range(3):
                patch = src_ref[pl.ds(dy, H), pl.ds(dx, W), :]          # (H, W, C) bf16
                patch = patch.reshape(H * W, patch.shape[-1])           # lane-dense (M, C)
                acc_ref[...] += jnp.dot(patch, w_ref[dy * 3 + dx],
                                        preferred_element_type=jnp.float32)
        y = acc_ref[...] + s_ref[...]                                   # folded BN shift
        if relu:
            y = jnp.maximum(y, 0.0)
        return y                                                        # (H*W, Cout_p) f32

    # conv1 -> BN -> ReLU, stored (bf16) into the interior of the zero-padded scratch.
    h1pad_ref[...] = jnp.zeros_like(h1pad_ref)
    y1 = conv3x3(x_ref, w1_ref, s1_ref, relu=True)
    h1pad_ref[pl.ds(1, H), pl.ds(1, W), :] = (
        y1.reshape(H, W, cout_p).astype(h1pad_ref.dtype))
    # Dropout: eval-mode identity (p=0 in the demo).
    # TODO(synk): stochastic dropout (training mode) not implemented.

    if residual:
        # Skip branch: conv(+bias) -> BN (no ReLU); parked in the output block.
        o_ref[...] = conv3x3(x_ref, ws_ref, ss_ref, relu=False)

    # conv2 -> BN -> ReLU (+ skip)
    y2 = conv3x3(h1pad_ref, w2_ref, s2_ref, relu=True)
    if residual:
        o_ref[...] = y2 + o_ref[...]
    else:
        o_ref[...] = y2


def _double_conv_pallas(x_pad, w1, s1, w2, s2, ws, ss, *, H, W, residual):
    """x_pad: (N, H+2, W+2, Cin_p) bf16; weights (9, C, Cout_p) bf16; shifts (1, Cout_p) f32."""
    N, Hp2, Wp2, cin_p = x_pad.shape
    cout_p = w1.shape[-1]
    M = H * W

    # Rough VMEM footprint guard (double-buffered input/output + resident weights + scratch).
    est_bytes = (2 * Hp2 * Wp2 * cin_p * 2
                 + w1.size * 2 + w2.size * 2 + (ws.size * 2 if residual else 0)
                 + 2 * M * cout_p * 4
                 + Hp2 * Wp2 * cout_p * 2 + M * cout_p * 4)
    if est_bytes > 48 * 1024 * 1024:
        # TODO(synk): spatial (row-block + halo) tiling for images that do not fit VMEM.
        raise NotImplementedError("image too large for the fused single-tile kernel")

    in_specs = [
        pl.BlockSpec((None, Hp2, Wp2, cin_p), lambda n: (n, 0, 0, 0)),   # input image
        pl.BlockSpec((9, cin_p, cout_p), lambda n: (0, 0, 0)),           # w1 (resident)
        pl.BlockSpec((1, cout_p), lambda n: (0, 0)),                     # shift1
        pl.BlockSpec((9, cout_p, cout_p), lambda n: (0, 0, 0)),          # w2 (resident)
        pl.BlockSpec((1, cout_p), lambda n: (0, 0)),                     # shift2
    ]
    args = [x_pad, w1, s1, w2, s2]
    if residual:
        in_specs += [
            pl.BlockSpec((9, cin_p, cout_p), lambda n: (0, 0, 0)),       # w_skip (resident)
            pl.BlockSpec((1, cout_p), lambda n: (0, 0)),                 # shift_skip
        ]
        args += [ws, ss]

    kernel = functools.partial(_double_conv_kernel, H=H, W=W, residual=residual)

    return pl.pallas_call(
        kernel,
        out_shape=jax.ShapeDtypeStruct((N, M, cout_p), jnp.float32),
        grid_spec=pltpu.PrefetchScalarGridSpec(
            num_scalar_prefetch=0,
            grid=(N,),
            in_specs=in_specs,
            out_specs=pl.BlockSpec((None, M, cout_p), lambda n: (n, 0, 0)),
            scratch_shapes=[
                pltpu.VMEM((Hp2, Wp2, cout_p), jnp.bfloat16),   # padded intermediate h1
                pltpu.VMEM((M, cout_p), jnp.float32),           # matmul accumulator
            ],
        ),
        compiler_params=pltpu.CompilerParams(
            dimension_semantics=("parallel",),   # grid over batch -> both v7x TCs get work
            vmem_limit_bytes=64 * 1024 * 1024,
        ),
    )(*args)


# ---------------------------------------------------------------------------
# Glue: BN folding, weight/input padding (plain JAX, one-time constant work)
# ---------------------------------------------------------------------------
def _prep_conv(w_oihw, gamma, beta, mean, var, conv_bias, cin_p, cout_p):
    cout, cin = w_oihw.shape[0], w_oihw.shape[1]
    scale = gamma / jnp.sqrt(var + _BN_EPS)
    shift = beta - mean * scale
    if conv_bias is not None:
        shift = shift + conv_bias * scale
    # (Cout, Cin, 3, 3) -> (3, 3, Cin, Cout); fold BN scale into the weights.
    w = jnp.transpose(w_oihw, (2, 3, 1, 0)) * scale[None, None, None, :]
    w = jnp.pad(w, ((0, 0), (0, 0), (0, cin_p - cin), (0, cout_p - cout)))
    w = w.reshape(9, cin_p, cout_p).astype(jnp.bfloat16)
    shift = jnp.pad(shift, (0, cout_p - cout)).reshape(1, cout_p).astype(jnp.float32)
    return w, shift


def _prep_input(x_nchw, cin_p):
    N, C, H, W = x_nchw.shape
    x = jnp.transpose(x_nchw, (0, 2, 3, 1))                       # NCHW -> NHWC
    x = jnp.pad(x, ((0, 0), (1, 1), (1, 1), (0, cin_p - C)))      # spatial + channel pad
    return x.astype(jnp.bfloat16)


# ---------------------------------------------------------------------------
# DoubleConv module (deterministic synthetic parameters)
# ---------------------------------------------------------------------------
class DoubleConvPallas:
    def __init__(self, in_channels, out_channels, dropout=0.0, residual=False, down=False, key=None):
        self.residual = residual
        self.down = down          # stored but unused in forward (same as the PyTorch module)
        self.dropout = dropout    # eval-mode identity

        if key is None:
            key = jax.random.PRNGKey(0)
        ks = jax.random.split(key, 16)

        def bn_params(k0, k1, k2, k3, c):
            gamma = 1.0 + 0.1 * jax.random.normal(ks[k0], (c,), jnp.float32)
            beta = 0.1 * jax.random.normal(ks[k1], (c,), jnp.float32)
            mean = 0.1 * jax.random.normal(ks[k2], (c,), jnp.float32)
            var = 0.5 + jax.random.uniform(ks[k3], (c,), jnp.float32)
            return gamma, beta, mean, var

        # conv path: conv3x3(no bias) -> BN -> ReLU -> Dropout -> conv3x3(no bias) -> BN -> ReLU
        self.w1 = 0.1 * jax.random.normal(ks[0], (out_channels, in_channels, 3, 3), jnp.float32)
        self.bn1 = bn_params(1, 2, 3, 4, out_channels)
        self.w2 = 0.1 * jax.random.normal(ks[5], (out_channels, out_channels, 3, 3), jnp.float32)
        self.bn2 = bn_params(6, 7, 8, 9, out_channels)
        # skip path: conv3x3(with bias) -> BN
        self.ws = 0.1 * jax.random.normal(ks[10], (out_channels, in_channels, 3, 3), jnp.float32)
        self.bs = 0.1 * jax.random.normal(ks[11], (out_channels,), jnp.float32)
        self.bns = bn_params(12, 13, 14, 15, out_channels)

    def _prepared(self, in_channels):
        out_channels = self.w1.shape[0]
        cin_p = _round_up(in_channels, _LANE)
        cout_p = _round_up(out_channels, _LANE)
        w1, s1 = _prep_conv(self.w1, *self.bn1, None, cin_p, cout_p)
        w2, s2 = _prep_conv(self.w2, *self.bn2, None, cout_p, cout_p)
        if self.residual:
            ws, ss = _prep_conv(self.ws, *self.bns, self.bs, cin_p, cout_p)
        else:
            ws = ss = None
        return cin_p, cout_p, w1, s1, w2, s2, ws, ss

    def __call__(self, x_nchw):
        N, Cin, H, W = x_nchw.shape
        Cout = self.w1.shape[0]
        cin_p, cout_p, w1, s1, w2, s2, ws, ss = self._prepared(Cin)

        x_pad = _prep_input(x_nchw, cin_p)
        out = _double_conv_pallas(x_pad, w1, s1, w2, s2, ws, ss,
                                  H=H, W=W, residual=self.residual)      # (N, H*W, Cout_p)
        out = out.reshape(N, H, W, cout_p)[..., :Cout]
        return jnp.transpose(out, (0, 3, 1, 2))                          # NHWC -> NCHW

    # Pure-JAX reference (lax.conv) mirroring the kernel's bf16/f32 numerics.
    def reference(self, x_nchw):
        N, Cin, H, W = x_nchw.shape
        Cout = self.w1.shape[0]
        cin_p, cout_p, w1, s1, w2, s2, ws, ss = self._prepared(Cin)
        xp = _prep_input(x_nchw, cin_p)

        def conv(inp, w9, shift, relu):
            w_hwio = w9.reshape(3, 3, w9.shape[1], w9.shape[2]).astype(jnp.float32)
            y = jax.lax.conv_general_dilated(
                inp.astype(jnp.float32), w_hwio,
                window_strides=(1, 1), padding="VALID",
                dimension_numbers=("NHWC", "HWIO", "NHWC"))
            y = y + shift.reshape(1, 1, 1, -1)
            return jnp.maximum(y, 0.0) if relu else y

        h1 = conv(xp, w1, s1, True).astype(jnp.bfloat16)                 # (N, H, W, Cout_p)
        h1p = jnp.pad(h1, ((0, 0), (1, 1), (1, 1), (0, 0)))
        y = conv(h1p, w2, s2, True)
        if self.residual:
            y = y + conv(xp, ws, ss, False)
        return jnp.transpose(y[..., :Cout], (0, 3, 1, 2))


if __name__ == "__main__":
    key = jax.random.PRNGKey(0)
    kx, kp = jax.random.split(key)

    N, Cin, Cout, H, W = 2, 4, 8, 16, 16
    x = jax.random.normal(kx, (N, Cin, H, W), jnp.float32)

    # Residual variant.
    model = DoubleConvPallas(Cin, Cout, dropout=0.0, residual=True, key=kp)
    out = jax.block_until_ready(model(x))
    assert out.shape == (N, Cout, H, W)
    err = float(jnp.max(jnp.abs(out - model.reference(x))))
    assert err < 1e-2, err

    # Plain (non-residual) variant.
    model2 = DoubleConvPallas(Cin, Cout, dropout=0.0, residual=False, key=kp)
    out2 = jax.block_until_ready(model2(x))
    assert out2.shape == (N, Cout, H, W)
    err2 = float(jnp.max(jnp.abs(out2 - model2.reference(x))))
    assert err2 < 1e-2, err2

    print("KERNEL_OK")
</pallas_src>

<mosaic_0001>
module attributes {stable_mosaic.version = 11 : i64} {
  func.func @_double_conv_kernel(%arg0: i32, %arg1: memref<1x18x18x128xbf16, #tpu.memory_space<vmem>>, %arg2: memref<9x128x128xbf16, #tpu.memory_space<vmem>>, %arg3: memref<1x128xf32, #tpu.memory_space<vmem>>, %arg4: memref<9x128x128xbf16, #tpu.memory_space<vmem>>, %arg5: memref<1x128xf32, #tpu.memory_space<vmem>>, %arg6: memref<9x128x128xbf16, #tpu.memory_space<vmem>>, %arg7: memref<1x128xf32, #tpu.memory_space<vmem>>, %arg8: memref<1x256x128xf32, #tpu.memory_space<vmem>>, %arg9: memref<18x18x128xbf16, #tpu.memory_space<vmem>>, %arg10: memref<256x128xf32, #tpu.memory_space<vmem>>) attributes {dimension_semantics = [#tpu.dimension_semantics<parallel>], iteration_bounds = array<i64: 2>, scalar_prefetch = 0 : i64, scratch_operands = 2 : i64, tpu.core_type = #tpu.core_type<tc>, window_params = [{transform_indices = @transform_0, window_bounds = array<i64: 1, 18, 18, 128>}, {pipeline_mode = #tpu.pipeline_mode<synchronous>, transform_indices = @transform_1, window_bounds = array<i64: 9, 128, 128>}, {pipeline_mode = #tpu.pipeline_mode<synchronous>, transform_indices = @transform_2, window_bounds = array<i64: 1, 128>}, {pipeline_mode = #tpu.pipeline_mode<synchronous>, transform_indices = @transform_3, window_bounds = array<i64: 9, 128, 128>}, {pipeline_mode = #tpu.pipeline_mode<synchronous>, transform_indices = @transform_4, window_bounds = array<i64: 1, 128>}, {pipeline_mode = #tpu.pipeline_mode<synchronous>, transform_indices = @transform_5, window_bounds = array<i64: 9, 128, 128>}, {pipeline_mode = #tpu.pipeline_mode<synchronous>, transform_indices = @transform_6, window_bounds = array<i64: 1, 128>}, {transform_indices = @transform_7, window_bounds = array<i64: 1, 256, 128>}]} {
    %cst = arith.constant 0.000000e+00 : bf16
    %0 = vector.broadcast %cst : bf16 to vector<18x18x128xbf16>
    %c0 = arith.constant 0 : index
    %c0_0 = arith.constant 0 : index
    %c0_1 = arith.constant 0 : index
    %1 = vector.load %arg9[%c0, %c0_0, %c0_1] : memref<18x18x128xbf16, #tpu.memory_space<vmem>>, vector<18x18x128xbf16>
    tpu.vector_store %arg9[%c0, %c0_0, %c0_1], %0 {strides = array<i32>} : memref<18x18x128xbf16, #tpu.memory_space<vmem>>, vector<18x18x128xbf16>,
    %cst_2 = arith.constant 0.000000e+00 : f32
    %2 = vector.broadcast %cst_2 : f32 to vector<256x128xf32>
    %c0_3 = arith.constant 0 : index
    %c0_4 = arith.constant 0 : index
    %3 = vector.load %arg10[%c0_3, %c0_4] : memref<256x128xf32, #tpu.memory_space<vmem>>, vector<256x128xf32>
    tpu.vector_store %arg10[%c0_3, %c0_4], %2 {strides = array<i32>} : memref<256x128xf32, #tpu.memory_space<vmem>>, vector<256x128xf32>,
    %c0_5 = arith.constant 0 : index
    %c0_6 = arith.constant 0 : index
    %c0_7 = arith.constant 0 : index
    %c0_8 = arith.constant 0 : index
    %4 = vector.load %arg1[%c0_5, %c0_6, %c0_7, %c0_8] : memref<1x18x18x128xbf16, #tpu.memory_space<vmem>>, vector<1x16x16x128xbf16>
    %5 = vector.shape_cast %4 : vector<1x16x16x128xbf16> to vector<16x16x128xbf16>
    %6 = vector.shape_cast %5 : vector<16x16x128xbf16> to vector<256x128xbf16>
    %c0_9 = arith.constant 0 : index
    %c0_10 = arith.constant 0 : index
    %7 = vector.load %arg10[%c0_9, %c0_10] : memref<256x128xf32, #tpu.memory_space<vmem>>, vector<256x128xf32>
    %c0_11 = arith.constant 0 : index
    %c0_12 = arith.constant 0 : index
    %c0_13 = arith.constant 0 : index
    %8 = vector.load %arg2[%c0_11, %c0_12, %c0_13] : memref<9x128x128xbf16, #tpu.memory_space<vmem>>, vector<1x128x128xbf16>
    %9 = vector.shape_cast %8 : vector<1x128x128xbf16> to vector<128x128xbf16>
    %cst_14 = arith.constant dense<0.000000e+00> : vector<256x128xf32>
    %10 = tpu.matmul %6, %9, %cst_14 {dimension_numbers = #tpu.dot_dimension_numbers<[1], [0], [0], [1], [0, 0, 1, 1], [], []>} : vector<256x128xbf16>, vector<128x128xbf16>, vector<256x128xf32> -> vector<256x128xf32>
    %11 = arith.addf %7, %10 : vector<256x128xf32>
    %c0_15 = arith.constant 0 : index
    %c0_16 = arith.constant 0 : index
    %12 = vector.load %arg10[%c0_15, %c0_16] : memref<256x128xf32, #tpu.memory_space<vmem>>, vector<256x128xf32>
    tpu.vector_store %arg10[%c0_15, %c0_16], %11 {strides = array<i32>} : memref<256x128xf32, #tpu.memory_space<vmem>>, vector<256x128xf32>,
    %c0_17 = arith.constant 0 : index
    %c0_18 = arith.constant 0 : index
    %c1 = arith.constant 1 : index
    %c0_19 = arith.constant 0 : index
    %13 = vector.load %arg1[%c0_17, %c0_18, %c1, %c0_19] : memref<1x18x18x128xbf16, #tpu.memory_space<vmem>>, vector<1x16x16x128xbf16>
    %14 = vector.shape_cast %13 : vector<1x16x16x128xbf16> to vector<16x16x128xbf16>
    %15 = vector.shape_cast %14 : vector<16x16x128xbf16> to vector<256x128xbf16>
    %c0_20 = arith.constant 0 : index
    %c0_21 = arith.constant 0 : index
    %16 = vector.load %arg10[%c0_20, %c0_21] : memref<256x128xf32, #tpu.memory_space<vmem>>, vector<256x128xf32>
    %c1_22 = arith.constant 1 : index
    %c0_23 = arith.constant 0 : index
    %c0_24 = arith.constant 0 : index
    %17 = vector.load %arg2[%c1_22, %c0_23, %c0_24] : memref<9x128x128xbf16, #tpu.memory_space<vmem>>, vector<1x128x128xbf16>
    %18 = vector.shape_cast %17 : vector<1x128x128xbf16> to vector<128x128xbf16>
    %cst_25 = arith.constant dense<0.000000e+00> : vector<256x128xf32>
    %19 = tpu.matmul %15, %18, %cst_25 {dimension_numbers = #tpu.dot_dimension_numbers<[1], [0], [0], [1], [0, 0, 1, 1], [], []>} : vector<256x128xbf16>, vector<128x128xbf16>, vector<256x128xf32> -> vector<256x128xf32>
    %20 = arith.addf %16, %19 : vector<256x128xf32>
    %c0_26 = arith.constant 0 : index
    %c0_27 = arith.constant 0 : index
    %21 = vector.load %arg10[%c0_26, %c0_27] : memref<256x128xf32, #tpu.memory_space<vmem>>, vector<256x128xf32>
    tpu.vector_store %arg10[%c0_26, %c0_27], %20 {strides = array<i32>} : memref<256x128xf32, #tpu.memory_space<vmem>>, vector<256x128xf32>,
    %c0_28 = arith.constant 0 : index
    %c0_29 = arith.constant 0 : index
    %c2 = arith.constant 2 : index
    %c0_30 = arith.constant 0 : index
    %22 = vector.load %arg1[%c0_28, %c0_29, %c2, %c0_30] : memref<1x18x18x128xbf16, #tpu.memory_space<vmem>>, vector<1x16x16x128xbf16>
    %23 = vector.shape_cast %22 : vector<1x16x16x128xbf16> to vector<16x16x128xbf16>
    %24 = vector.shape_cast %23 : vector<16x16x128xbf16> to vector<256x128xbf16>
    %c0_31 = arith.constant 0 : index
    %c0_32 = arith.constant 0 : index
    %25 = vector.load %arg10[%c0_31, %c0_32] : memref<256x128xf32, #tpu.memory_space<vmem>>, vector<256x128xf32>
    %c2_33 = arith.constant 2 : index
    %c0_34 = arith.constant 0 : index
    %c0_35 = arith.constant 0 : index
    %26 = vector.load %arg2[%c2_33, %c0_34, %c0_35] : memref<9x128x128xbf16, #tpu.memory_space<vmem>>, vector<1x128x128xbf16>
    %27 = vector.shape_cast %26 : vector<1x128x128xbf16> to vector<128x128xbf16>
    %cst_36 = arith.constant dense<0.000000e+00> : vector<256x128xf32>
    %28 = tpu.matmul %24, %27, %cst_36 {dimension_numbers = #tpu.dot_dimension_numbers<[1], [0], [0], [1], [0, 0, 1, 1], [], []>} : vector<256x128xbf16>, vector<128x128xbf16>, vector<256x128xf32> -> vector<256x128xf32>
    %29 = arith.addf %25, %28 : vector<256x128xf32>
    %c0_37 = arith.constant 0 : index
    %c0_38 = arith.constant 0 : index
    %30 = vector.load %arg10[%c0_37, %c0_38] : memref<256x128xf32, #tpu.memory_space<vmem>>, vector<256x128xf32>
    tpu.vector_store %arg10[%c0_37, %c0_38], %29 {strides = array<i32>} : memref<256x128xf32, #tpu.memory_space<vmem>>, vector<256x128xf32>,
    %c0_39 = arith.constant 0 : index
    %c1_40 = arith.constant 1 : index
    %c0_41 = arith.constant 0 : index
    %c0_42 = arith.constant 0 : index
    %31 = vector.load %arg1[%c0_39, %c1_40, %c0_41, %c0_42] : memref<1x18x18x128xbf16, #tpu.memory_space<vmem>>, vector<1x16x16x128xbf16>
    %32 = vector.shape_cast %31 : vector<1x16x16x128xbf16> to vector<16x16x128xbf16>
    %33 = vector.shape_cast %32 : vector<16x16x128xbf16> to vector<256x128xbf16>
    %c0_43 = arith.constant 0 : index
    %c0_44 = arith.constant 0 : index
    %34 = vector.load %arg10[%c0_43, %c0_44] : memref<256x128xf32, #tpu.memory_space<vmem>>, vector<256x128xf32>
    %c3 = arith.constant 3 : index
    %c0_45 = arith.constant 0 : index
    %c0_46 = arith.constant 0 : index
    %35 = vector.load %arg2[%c3, %c0_45, %c0_46] : memref<9x128x128xbf16, #tpu.memory_space<vmem>>, vector<1x128x128xbf16>
    %36 = vector.shape_cast %35 : vector<1x128x128xbf16> to vector<128x128xbf16>
    %cst_47 = arith.constant dense<0.000000e+00> : vector<256x128xf32>
    %37 = tpu.matmul %33, %36, %cst_47 {dimension_numbers = #tpu.dot_dimension_numbers<[1], [0], [0], [1], [0, 0, 1, 1], [], []>} : vector<256x128xbf16>, vector<128x128xbf16>, vector<256x128xf32> -> vector<256x128xf32>
    %38 = arith.addf %34, %37 : vector<256x128xf32>
    %c0_48 = arith.constant 0 : index
    %c0_49 = arith.constant 0 : index
    %39 = vector.load %arg10[%c0_48, %c0_49] : memref<256x128xf32, #tpu.memory_space<vmem>>, vector<256x128xf32>
    tpu.vector_store %arg10[%c0_48, %c0_49], %38 {strides = array<i32>} : memref<256x128xf32, #tpu.memory_space<vmem>>, vector<256x128xf32>,
    %c0_50 = arith.constant 0 : index
    %c1_51 = arith.constant 1 : index
    %c1_52 = arith.constant 1 : index
    %c0_53 = arith.constant 0 : index
    %40 = vector.load %arg1[%c0_50, %c1_51, %c1_52, %c0_53] : memref<1x18x18x128xbf16, #tpu.memory_space<vmem>>, vector<1x16x16x128xbf16>
    %41 = vector.shape_cast %40 : vector<1x16x16x128xbf16> to vector<16x16x128xbf16>
    %42 = vector.shape_cast %41 : vector<16x16x128xbf16> to vector<256x128xbf16>
    %c0_54 = arith.constant 0 : index
    %c0_55 = arith.constant 0 : index
    %43 = vector.load %arg10[%c0_54, %c0_55] : memref<256x128xf32, #tpu.memory_space<vmem>>, vector<256x128xf32>
    %c4 = arith.constant 4 : index
    %c0_56 = arith.constant 0 : index
    %c0_57 = arith.constant 0 : index
    %44 = vector.load %arg2[%c4, %c0_56, %c0_57] : memref<9x128x128xbf16, #tpu.memory_space<vmem>>, vector<1x128x128xbf16>
    %45 = vector.shape_cast %44 : vector<1x128x128xbf16> to vector<128x128xbf16>
    %cst_58 = arith.constant dense<0.000000e+00> : vector<256x128xf32>
    %46 = tpu.matmul %42, %45, %cst_58 {dimension_numbers = #tpu.dot_dimension_numbers<[1], [0], [0], [1], [0, 0, 1, 1], [], []>} : vector<256x128xbf16>, vector<128x128xbf16>, vector<256x128xf32> -> vector<256x128xf32>
    %47 = arith.addf %43, %46 : vector<256x128xf32>
    %c0_59 = arith.constant 0 : index
    %c0_60 = arith.constant 0 : index
    %48 = vector.load %arg10[%c0_59, %c0_60] : memref<256x128xf32, #tpu.memory_space<vmem>>, vector<256x128xf32>
    tpu.vector_store %arg10[%c0_59, %c0_60], %47 {strides = array<i32>} : memref<256x128xf32, #tpu.memory_space<vmem>>, vector<256x128xf32>,
    %c0_61 = arith.constant 0 : index
    %c1_62 = arith.constant 1 : index
    %c2_63 = arith.constant 2 : index
    %c0_64 = arith.constant 0 : index
    %49 = vector.load %arg1[%c0_61, %c1_62, %c2_63, %c0_64] : memref<1x18x18x128xbf16, #tpu.memory_space<vmem>>, vector<1x16x16x128xbf16>
    %50 = vector.shape_cast %49 : vector<1x16x16x128xbf16> to vector<16x16x128xbf16>
    %51 = vector.shape_cast %50 : vector<16x16x128xbf16> to vector<256x128xbf16>
    %c0_65 = arith.constant 0 : index
    %c0_66 = arith.constant 0 : index
    %52 = vector.load %arg10[%c0_65, %c0_66] : memref<256x128xf32, #tpu.memory_space<vmem>>, vector<256x128xf32>
    %c5 = arith.constant 5 : index
    %c0_67 = arith.constant 0 : index
    %c0_68 = arith.constant 0 : index
    %53 = vector.load %arg2[%c5, %c0_67, %c0_68] : memref<9x128x128xbf16, #tpu.memory_space<vmem>>, vector<1x128x128xbf16>
    %54 = vector.shape_cast %53 : vector<1x128x128xbf16> to vector<128x128xbf16>
    %cst_69 = arith.constant dense<0.000000e+00> : vector<256x128xf32>
    %55 = tpu.matmul %51, %54, %cst_69 {dimension_numbers = #tpu.dot_dimension_numbers<[1], [0], [0], [1], [0, 0, 1, 1], [], []>} : vector<256x128xbf16>, vector<128x128xbf16>, vector<256x128xf32> -> vector<256x128xf32>
    %56 = arith.addf %52, %55 : vector<256x128xf32>
    %c0_70 = arith.constant 0 : index
    %c0_71 = arith.constant 0 : index
    %57 = vector.load %arg10[%c0_70, %c0_71] : memref<256x128xf32, #tpu.memory_space<vmem>>, vector<256x128xf32>
    tpu.vector_store %arg10[%c0_70, %c0_71], %56 {strides = array<i32>} : memref<256x128xf32, #tpu.memory_space<vmem>>, vector<256x128xf32>,
    %c0_72 = arith.constant 0 : index
    %c2_73 = arith.constant 2 : index
    %c0_74 = arith.constant 0 : index
    %c0_75 = arith.constant 0 : index
    %58 = vector.load %arg1[%c0_72, %c2_73, %c0_74, %c0_75] : memref<1x18x18x128xbf16, #tpu.memory_space<vmem>>, vector<1x16x16x128xbf16>
    %59 = vector.shape_cast %58 : vector<1x16x16x128xbf16> to vector<16x16x128xbf16>
    %60 = vector.shape_cast %59 : vector<16x16x128xbf16> to vector<256x128xbf16>
    %c0_76 = arith.constant 0 : index
    %c0_77 = arith.constant 0 : index
    %61 = vector.load %arg10[%c0_76, %c0_77] : memref<256x128xf32, #tpu.memory_space<vmem>>, vector<256x128xf32>
    %c6 = arith.constant 6 : index
    %c0_78 = arith.constant 0 : index
    %c0_79 = arith.constant 0 : index
    %62 = vector.load %arg2[%c6, %c0_78, %c0_79] : memref<9x128x128xbf16, #tpu.memory_space<vmem>>, vector<1x128x128xbf16>
    %63 = vector.shape_cast %62 : vector<1x128x128xbf16> to vector<128x128xbf16>
    %cst_80 = arith.constant dense<0.000000e+00> : vector<256x128xf32>
    %64 = tpu.matmul %60, %63, %cst_80 {dimension_numbers = #tpu.dot_dimension_numbers<[1], [0], [0], [1], [0, 0, 1, 1], [], []>} : vector<256x128xbf16>, vector<128x128xbf16>, vector<256x128xf32> -> vector<256x128xf32>
    %65 = arith.addf %61, %64 : vector<256x128xf32>
    %c0_81 = arith.constant 0 : index
    %c0_82 = arith.constant 0 : index
    %66 = vector.load %arg10[%c0_81, %c0_82] : memref<256x128xf32, #tpu.memory_space<vmem>>, vector<256x128xf32>
    tpu.vector_store %arg10[%c0_81, %c0_82], %65 {strides = array<i32>} : memref<256x128xf32, #tpu.memory_space<vmem>>, vector<256x128xf32>,
    %c0_83 = arith.constant 0 : index
    %c2_84 = arith.constant 2 : index
    %c1_85 = arith.constant 1 : index
    %c0_86 = arith.constant 0 : index
    %67 = vector.load %arg1[%c0_83, %c2_84, %c1_85, %c0_86] : memref<1x18x18x128xbf16, #tpu.memory_space<vmem>>, vector<1x16x16x128xbf16>
    %68 = vector.shape_cast %67 : vector<1x16x16x128xbf16> to vector<16x16x128xbf16>
    %69 = vector.shape_cast %68 : vector<16x16x128xbf16> to vector<256x128xbf16>
    %c0_87 = arith.constant 0 : index
    %c0_88 = arith.constant 0 : index
    %70 = vector.load %arg10[%c0_87, %c0_88] : memref<256x128xf32, #tpu.memory_space<vmem>>, vector<256x128xf32>
    %c7 = arith.constant 7 : index
    %c0_89 = arith.constant 0 : index
    %c0_90 = arith.constant 0 : index
    %71 = vector.load %arg2[%c7, %c0_89, %c0_90] : memref<9x128x128xbf16, #tpu.memory_space<vmem>>, vector<1x128x128xbf16>
    %72 = vector.shape_cast %71 : vector<1x128x128xbf16> to vector<128x128xbf16>
    %cst_91 = arith.constant dense<0.000000e+00> : vector<256x128xf32>
    %73 = tpu.matmul %69, %72, %cst_91 {dimension_numbers = #tpu.dot_dimension_numbers<[1], [0], [0], [1], [0, 0, 1, 1], [], []>} : vector<256x128xbf16>, vector<128x128xbf16>, vector<256x128xf32> -> vector<256x128xf32>
    %74 = arith.addf %70, %73 : vector<256x128xf32>
    %c0_92 = arith.constant 0 : index
    %c0_93 = arith.constant 0 : index
    %75 = vector.load %arg10[%c0_92, %c0_93] : memref<256x128xf32, #tpu.memory_space<vmem>>, vector<256x128xf32>
    tpu.vector_store %arg10[%c0_92, %c0_93], %74 {strides = array<i32>} : memref<256x128xf32, #tpu.memory_space<vmem>>, vector<256x128xf32>,
    %c0_94 = arith.constant 0 : index
    %c2_95 = arith.constant 2 : index
    %c2_96 = arith.constant 2 : index
    %c0_97 = arith.constant 0 : index
    %76 = vector.load %arg1[%c0_94, %c2_95, %c2_96, %c0_97] : memref<1x18x18x128xbf16, #tpu.memory_space<vmem>>, vector<1x16x16x128xbf16>
    %77 = vector.shape_cast %76 : vector<1x16x16x128xbf16> to vector<16x16x128xbf16>
    %78 = vector.shape_cast %77 : vector<16x16x128xbf16> to vector<256x128xbf16>
    %c0_98 = arith.constant 0 : index
    %c0_99 = arith.constant 0 : index
    %79 = vector.load %arg10[%c0_98, %c0_99] : memref<256x128xf32, #tpu.memory_space<vmem>>, vector<256x128xf32>
    %c8 = arith.constant 8 : index
    %c0_100 = arith.constant 0 : index
    %c0_101 = arith.constant 0 : index
    %80 = vector.load %arg2[%c8, %c0_100, %c0_101] : memref<9x128x128xbf16, #tpu.memory_space<vmem>>, vector<1x128x128xbf16>
    %81 = vector.shape_cast %80 : vector<1x128x128xbf16> to vector<128x128xbf16>
    %cst_102 = arith.constant dense<0.000000e+00> : vector<256x128xf32>
    %82 = tpu.matmul %78, %81, %cst_102 {dimension_numbers = #tpu.dot_dimension_numbers<[1], [0], [0], [1], [0, 0, 1, 1], [], []>} : vector<256x128xbf16>, vector<128x128xbf16>, vector<256x128xf32> -> vector<256x128xf32>
    %83 = arith.addf %79, %82 : vector<256x128xf32>
    %c0_103 = arith.constant 0 : index
    %c0_104 = arith.constant 0 : index
    %84 = vector.load %arg10[%c0_103, %c0_104] : memref<256x128xf32, #tpu.memory_space<vmem>>, vector<256x128xf32>
    tpu.vector_store %arg10[%c0_103, %c0_104], %83 {strides = array<i32>} : memref<256x128xf32, #tpu.memory_space<vmem>>, vector<256x128xf32>,
    %c0_105 = arith.constant 0 : index
    %c0_106 = arith.constant 0 : index
    %85 = vector.load %arg10[%c0_105, %c0_106] : memref<256x128xf32, #tpu.memory_space<vmem>>, vector<256x128xf32>
    %c0_107 = arith.constant 0 : index
    %c0_108 = arith.constant 0 : index
    %86 = vector.load %arg3[%c0_107, %c0_108] : memref<1x128xf32, #tpu.memory_space<vmem>>, vector<1x128xf32>
    %87 = vector.broadcast %86 : vector<1x128xf32> to vector<256x128xf32>
    %88 = arith.addf %85, %87 : vector<256x128xf32>
    %cst_109 = arith.constant 0.000000e+00 : f32
    %89 = vector.broadcast %cst_109 : f32 to vector<256x128xf32>
    %90 = arith.maximumf %88, %89 : vector<256x128xf32>
    %91 = vector.shape_cast %90 : vector<256x128xf32> to vector<16x16x128xf32>
    %92 = arith.truncf %91 : vector<16x16x128xf32> to vector<16x16x128xbf16>
    %c1_110 = arith.constant 1 : index
    %c1_111 = arith.constant 1 : index
    %c0_112 = arith.constant 0 : index
    %93 = vector.load %arg9[%c1_110, %c1_111, %c0_112] : memref<18x18x128xbf16, #tpu.memory_space<vmem>>, vector<16x16x128xbf16>
    tpu.vector_store %arg9[%c1_110, %c1_111, %c0_112], %92 {strides = array<i32>} : memref<18x18x128xbf16, #tpu.memory_space<vmem>>, vector<16x16x128xbf16>,
    %cst_113 = arith.constant 0.000000e+00 : f32
    %94 = vector.broadcast %cst_113 : f32 to vector<256x128xf32>
    %c0_114 = arith.constant 0 : index
    %c0_115 = arith.constant 0 : index
    %95 = vector.load %arg10[%c0_114, %c0_115] : memref<256x128xf32, #tpu.memory_space<vmem>>, vector<256x128xf32>
    tpu.vector_store %arg10[%c0_114, %c0_115], %94 {strides = array<i32>} : memref<256x128xf32, #tpu.memory_space<vmem>>, vector<256x128xf32>,
    %c0_116 = arith.constant 0 : index
    %c0_117 = arith.constant 0 : index
    %c0_118 = arith.constant 0 : index
    %c0_119 = arith.constant 0 : index
    %96 = vector.load %arg1[%c0_116, %c0_117, %c0_118, %c0_119] : memref<1x18x18x128xbf16, #tpu.memory_space<vmem>>, vector<1x16x16x128xbf16>
    %97 = vector.shape_cast %96 : vector<1x16x16x128xbf16> to vector<16x16x128xbf16>
    %98 = vector.shape_cast %97 : vector<16x16x128xbf16> to vector<256x128xbf16>
    %c0_120 = arith.constant 0 : index
    %c0_121 = arith.constant 0 : index
    %99 = vector.load %arg10[%c0_120, %c0_121] : memref<256x128xf32, #tpu.memory_space<vmem>>, vector<256x128xf32>
    %c0_122 = arith.constant 0 : index
    %c0_123 = arith.constant 0 : index
    %c0_124 = arith.constant 0 : index
    %100 = vector.load %arg6[%c0_122, %c0_123, %c0_124] : memref<9x128x128xbf16, #tpu.memory_space<vmem>>, vector<1x128x128xbf16>
    %101 = vector.shape_cast %100 : vector<1x128x128xbf16> to vector<128x128xbf16>
    %cst_125 = arith.constant dense<0.000000e+00> : vector<256x128xf32>
    %102 = tpu.matmul %98, %101, %cst_125 {dimension_numbers = #tpu.dot_dimension_numbers<[1], [0], [0], [1], [0, 0, 1, 1], [], []>} : vector<256x128xbf16>, vector<128x128xbf16>, vector<256x128xf32> -> vector<256x128xf32>
    %103 = arith.addf %99, %102 : vector<256x128xf32>
    %c0_126 = arith.constant 0 : index
    %c0_127 = arith.constant 0 : index
    %104 = vector.load %arg10[%c0_126, %c0_127] : memref<256x128xf32, #tpu.memory_space<vmem>>, vector<256x128xf32>
    tpu.vector_store %arg10[%c0_126, %c0_127], %103 {strides = array<i32>} : memref<256x128xf32, #tpu.memory_space<vmem>>, vector<256x128xf32>,
    %c0_128 = arith.constant 0 : index
    %c0_129 = arith.constant 0 : index
    %c1_130 = arith.constant 1 : index
    %c0_131 = arith.constant 0 : index
    %105 = vector.load %arg1[%c0_128, %c0_129, %c1_130, %c0_131] : memref<1x18x18x128xbf16, #tpu.memory_space<vmem>>, vector<1x16x16x128xbf16>
    %106 = vector.shape_cast %105 : vector<1x16x16x128xbf16> to vector<16x16x128xbf16>
    %107 = vector.shape_cast %106 : vector<16x16x128xbf16> to vector<256x128xbf16>
    %c0_132 = arith.constant 0 : index
    %c0_133 = arith.constant 0 : index
    %108 = vector.load %arg10[%c0_132, %c0_133] : memref<256x128xf32, #tpu.memory_space<vmem>>, vector<256x128xf32>
    %c1_134 = arith.constant 1 : index
    %c0_135 = arith.constant 0 : index
    %c0_136 = arith.constant 0 : index
    %109 = vector.load %arg6[%c1_134, %c0_135, %c0_136] : memref<9x128x128xbf16, #tpu.memory_space<vmem>>, vector<1x128x128xbf16>
    %110 = vector.shape_cast %109 : vector<1x128x128xbf16> to vector<128x128xbf16>
    %cst_137 = arith.constant dense<0.000000e+00> : vector<256x128xf32>
    %111 = tpu.matmul %107, %110, %cst_137 {dimension_numbers = #tpu.dot_dimension_numbers<[1], [0], [0], [1], [0, 0, 1, 1], [], []>} : vector<256x128xbf16>, vector<128x128xbf16>, vector<256x128xf32> -> vector<256x128xf32>
    %112 = arith.addf %108, %111 : vector<256x128xf32>
    %c0_138 = arith.constant 0 : index
    %c0_139 = arith.constant 0 : index
    %113 = vector.load %arg10[%c0_138, %c0_139] : memref<256x128xf32, #tpu.memory_space<vmem>>, vector<256x128xf32>
    tpu.vector_store %arg10[%c0_138, %c0_139], %112 {strides = array<i32>} : memref<256x128xf32, #tpu.memory_space<vmem>>, vector<256x128xf32>,
    %c0_140 = arith.constant 0 : index
    %c0_141 = arith.constant 0 : index
    %c2_142 = arith.constant 2 : index
    %c0_143 = arith.constant 0 : index
    %114 = vector.load %arg1[%c0_140, %c0_141, %c2_142, %c0_143] : memref<1x18x18x128xbf16, #tpu.memory_space<vmem>>, vector<1x16x16x128xbf16>
    %115 = vector.shape_cast %114 : vector<1x16x16x128xbf16> to vector<16x16x128xbf16>
    %116 = vector.shape_cast %115 : vector<16x16x128xbf16> to vector<256x128xbf16>
    %c0_144 = arith.constant 0 : index
    %c0_145 = arith.constant 0 : index
    %117 = vector.load %arg10[%c0_144, %c0_145] : memref<256x128xf32, #tpu.memory_space<vmem>>, vector<256x128xf32>
    %c2_146 = arith.constant 2 : index
    %c0_147 = arith.constant 0 : index
    %c0_148 = arith.constant 0 : index
    %118 = vector.load %arg6[%c2_146, %c0_147, %c0_148] : memref<9x128x128xbf16, #tpu.memory_space<vmem>>, vector<1x128x128xbf16>
    %119 = vector.shape_cast %118 : vector<1x128x128xbf16> to vector<128x128xbf16>
    %cst_149 = arith.constant dense<0.000000e+00> : vector<256x128xf32>
    %120 = tpu.matmul %116, %119, %cst_149 {dimension_numbers = #tpu.dot_dimension_numbers<[1], [0], [0], [1], [0, 0, 1, 1], [], []>} : vector<256x128xbf16>, vector<128x128xbf16>, vector<256x128xf32> -> vector<256x128xf32>
    %121 = arith.addf %117, %120 : vector<256x128xf32>
    %c0_150 = arith.constant 0 : index
    %c0_151 = arith.constant 0 : index
    %122 = vector.load %arg10[%c0_150, %c0_151] : memref<256x128xf32, #tpu.memory_space<vmem>>, vector<256x128xf32>
    tpu.vector_store %arg10[%c0_150, %c0_151], %121 {strides = array<i32>} : memref<256x128xf32, #tpu.memory_space<vmem>>, vector<256x128xf32>,
    %c0_152 = arith.constant 0 : index
    %c1_153 = arith.constant 1 : index
    %c0_154 = arith.constant 0 : index
    %c0_155 = arith.constant 0 : index
    %123 = vector.load %arg1[%c0_152, %c1_153, %c0_154, %c0_155] : memref<1x18x18x128xbf16, #tpu.memory_space<vmem>>, vector<1x16x16x128xbf16>
    %124 = vector.shape_cast %123 : vector<1x16x16x128xbf16> to vector<16x16x128xbf16>
    %125 = vector.shape_cast %124 : vector<16x16x128xbf16> to vector<256x128xbf16>
    %c0_156 = arith.constant 0 : index
    %c0_157 = arith.constant 0 : index
    %126 = vector.load %arg10[%c0_156, %c0_157] : memref<256x128xf32, #tpu.memory_space<vmem>>, vector<256x128xf32>
    %c3_158 = arith.constant 3 : index
    %c0_159 = arith.constant 0 : index
    %c0_160 = arith.constant 0 : index
    %127 = vector.load %arg6[%c3_158, %c0_159, %c0_160] : memref<9x128x128xbf16, #tpu.memory_space<vmem>>, vector<1x128x128xbf16>
    %128 = vector.shape_cast %127 : vector<1x128x128xbf16> to vector<128x128xbf16>
    %cst_161 = arith.constant dense<0.000000e+00> : vector<256x128xf32>
    %129 = tpu.matmul %125, %128, %cst_161 {dimension_numbers = #tpu.dot_dimension_numbers<[1], [0], [0], [1], [0, 0, 1, 1], [], []>} : vector<256x128xbf16>, vector<128x128xbf16>, vector<256x128xf32> -> vector<256x128xf32>
    %130 = arith.addf %126, %129 : vector<256x128xf32>
    %c0_162 = arith.constant 0 : index
    %c0_163 = arith.constant 0 : index
    %131 = vector.load %arg10[%c0_162, %c0_163] : memref<256x128xf32, #tpu.memory_space<vmem>>, vector<256x128xf32>
    tpu.vector_store %arg10[%c0_162, %c0_163], %130 {strides = array<i32>} : memref<256x128xf32, #tpu.memory_space<vmem>>, vector<256x128xf32>,
    %c0_164 = arith.constant 0 : index
    %c1_165 = arith.constant 1 : index
    %c1_166 = arith.constant 1 : index
    %c0_167 = arith.constant 0 : index
    %132 = vector.load %arg1[%c0_164, %c1_165, %c1_166, %c0_167] : memref<1x18x18x128xbf16, #tpu.memory_space<vmem>>, vector<1x16x16x128xbf16>
    %133 = vector.shape_cast %132 : vector<1x16x16x128xbf16> to vector<16x16x128xbf16>
    %134 = vector.shape_cast %133 : vector<16x16x128xbf16> to vector<256x128xbf16>
    %c0_168 = arith.constant 0 : index
    %c0_169 = arith.constant 0 : index
    %135 = vector.load %arg10[%c0_168, %c0_169] : memref<256x128xf32, #tpu.memory_space<vmem>>, vector<256x128xf32>
    %c4_170 = arith.constant 4 : index
    %c0_171 = arith.constant 0 : index
    %c0_172 = arith.constant 0 : index
    %136 = vector.load %arg6[%c4_170, %c0_171, %c0_172] : memref<9x128x128xbf16, #tpu.memory_space<vmem>>, vector<1x128x128xbf16>
    %137 = vector.shape_cast %136 : vector<1x128x128xbf16> to vector<128x128xbf16>
    %cst_173 = arith.constant dense<0.000000e+00> : vector<256x128xf32>
    %138 = tpu.matmul %134, %137, %cst_173 {dimension_numbers = #tpu.dot_dimension_numbers<[1], [0], [0], [1], [0, 0, 1, 1], [], []>} : vector<256x128xbf16>, vector<128x128xbf16>, vector<256x128xf32> -> vector<256x128xf32>
    %139 = arith.addf %135, %138 : vector<256x128xf32>
    %c0_174 = arith.constant 0 : index
    %c0_175 = arith.constant 0 : index
    %140 = vector.load %arg10[%c0_174, %c0_175] : memref<256x128xf32, #tpu.memory_space<vmem>>, vector<256x128xf32>
    tpu.vector_store %arg10[%c0_174, %c0_175], %139 {strides = array<i32>} : memref<256x128xf32, #tpu.memory_space<vmem>>, vector<256x128xf32>,
    %c0_176 = arith.constant 0 : index
    %c1_177 = arith.constant 1 : index
    %c2_178 = arith.constant 2 : index
    %c0_179 = arith.constant 0 : index
    %141 = vector.load %arg1[%c0_176, %c1_177, %c2_178, %c0_179] : memref<1x18x18x128xbf16, #tpu.memory_space<vmem>>, vector<1x16x16x128xbf16>
    %142 = vector.shape_cast %141 : vector<1x16x16x128xbf16> to vector<16x16x128xbf16>
    %143 = vector.shape_cast %142 : vector<16x16x128xbf16> to vector<256x128xbf16>
    %c0_180 = arith.constant 0 : index
    %c0_181 = arith.constant 0 : index
    %144 = vector.load %arg10[%c0_180, %c0_181] : memref<256x128xf32, #tpu.memory_space<vmem>>, vector<256x128xf32>
    %c5_182 = arith.constant 5 : index
    %c0_183 = arith.constant 0 : index
    %c0_184 = arith.constant 0 : index
    %145 = vector.load %arg6[%c5_182, %c0_183, %c0_184] : memref<9x128x128xbf16, #tpu.memory_space<vmem>>, vector<1x128x128xbf16>
    %146 = vector.shape_cast %145 : vector<1x128x128xbf16> to vector<128x128xbf16>
    %cst_185 = arith.constant dense<0.000000e+00> : vector<256x128xf32>
    %147 = tpu.matmul %143, %146, %cst_185 {dimension_numbers = #tpu.dot_dimension_numbers<[1], [0], [0], [1], [0, 0, 1, 1], [], []>} : vector<256x128xbf16>, vector<128x128xbf16>, vector<256x128xf32> -> vector<256x128xf32>
    %148 = arith.addf %144, %147 : vector<256x128xf32>
    %c0_186 = arith.constant 0 : index
    %c0_187 = arith.constant 0 : index
    %149 = vector.load %arg10[%c0_186, %c0_187] : memref<256x128xf32, #tpu.memory_space<vmem>>, vector<256x128xf32>
    tpu.vector_store %arg10[%c0_186, %c0_187], %148 {strides = array<i32>} : memref<256x128xf32, #tpu.memory_space<vmem>>, vector<256x128xf32>,
    %c0_188 = arith.constant 0 : index
    %c2_189 = arith.constant 2 : index
    %c0_190 = arith.constant 0 : index
    %c0_191 = arith.constant 0 : index
    %150 = vector.load %arg1[%c0_188, %c2_189, %c0_190, %c0_191] : memref<1x18x18x128xbf16, #tpu.memory_space<vmem>>, vector<1x16x16x128xbf16>
    %151 = vector.shape_cast %150 : vector<1x16x16x128xbf16> to vector<16x16x128xbf16>
    %152 = vector.shape_cast %151 : vector<16x16x128xbf16> to vector<256x128xbf16>
    %c0_192 = arith.constant 0 : index
    %c0_193 = arith.constant 0 : index
    %153 = vector.load %arg10[%c0_192, %c0_193] : memref<256x128xf32, #tpu.memory_space<vmem>>, vector<256x128xf32>
    %c6_194 = arith.constant 6 : index
    %c0_195 = arith.constant 0 : index
    %c0_196 = arith.constant 0 : index
    %154 = vector.load %arg6[%c6_194, %c0_195, %c0_196] : memref<9x128x128xbf16, #tpu.memory_space<vmem>>, vector<1x128x128xbf16>
    %155 = vector.shape_cast %154 : vector<1x128x128xbf16> to vector<128x128xbf16>
    %cst_197 = arith.constant dense<0.000000e+00> : vector<256x128xf32>
    %156 = tpu.matmul %152, %155, %cst_197 {dimension_numbers = #tpu.dot_dimension_numbers<[1], [0], [0], [1], [0, 0, 1, 1], [], []>} : vector<256x128xbf16>, vector<128x128xbf16>, vector<256x128xf32> -> vector<256x128xf32>
    %157 = arith.addf %153, %156 : vector<256x128xf32>
    %c0_198 = arith.constant 0 : index
    %c0_199 = arith.constant 0 : index
    %158 = vector.load %arg10[%c0_198, %c0_199] : memref<256x128xf32, #tpu.memory_space<vmem>>, vector<256x128xf32>
    tpu.vector_store %arg10[%c0_198, %c0_199], %157 {strides = array<i32>} : memref<256x128xf32, #tpu.memory_space<vmem>>, vector<256x128xf32>,
    %c0_200 = arith.constant 0 : index
    %c2_201 = arith.constant 2 : index
    %c1_202 = arith.constant 1 : index
    %c0_203 = arith.constant 0 : index
    %159 = vector.load %arg1[%c0_200, %c2_201, %c1_202, %c0_203] : memref<1x18x18x128xbf16, #tpu.memory_space<vmem>>, vector<1x16x16x128xbf16>
    %160 = vector.shape_cast %159 : vector<1x16x16x128xbf16> to vector<16x16x128xbf16>
    %161 = vector.shape_cast %160 : vector<16x16x128xbf16> to vector<256x128xbf16>
    %c0_204 = arith.constant 0 : index
    %c0_205 = arith.constant 0 : index
    %162 = vector.load %arg10[%c0_204, %c0_205] : memref<256x128xf32, #tpu.memory_space<vmem>>, vector<256x128xf32>
    %c7_206 = arith.constant 7 : index
    %c0_207 = arith.constant 0 : index
    %c0_208 = arith.constant 0 : index
    %163 = vector.load %arg6[%c7_206, %c0_207, %c0_208] : memref<9x128x128xbf16, #tpu.memory_space<vmem>>, vector<1x128x128xbf16>
    %164 = vector.shape_cast %163 : vector<1x128x128xbf16> to vector<128x128xbf16>
    %cst_209 = arith.constant dense<0.000000e+00> : vector<256x128xf32>
    %165 = tpu.matmul %161, %164, %cst_209 {dimension_numbers = #tpu.dot_dimension_numbers<[1], [0], [0], [1], [0, 0, 1, 1], [], []>} : vector<256x128xbf16>, vector<128x128xbf16>, vector<256x128xf32> -> vector<256x128xf32>
    %166 = arith.addf %162, %165 : vector<256x128xf32>
    %c0_210 = arith.constant 0 : index
    %c0_211 = arith.constant 0 : index
    %167 = vector.load %arg10[%c0_210, %c0_211] : memref<256x128xf32, #tpu.memory_space<vmem>>, vector<256x128xf32>
    tpu.vector_store %arg10[%c0_210, %c0_211], %166 {strides = array<i32>} : memref<256x128xf32, #tpu.memory_space<vmem>>, vector<256x128xf32>,
    %c0_212 = arith.constant 0 : index
    %c2_213 = arith.constant 2 : index
    %c2_214 = arith.constant 2 : index
    %c0_215 = arith.constant 0 : index
    %168 = vector.load %arg1[%c0_212, %c2_213, %c2_214, %c0_215] : memref<1x18x18x128xbf16, #tpu.memory_space<vmem>>, vector<1x16x16x128xbf16>
    %169 = vector.shape_cast %168 : vector<1x16x16x128xbf16> to vector<16x16x128xbf16>
    %170 = vector.shape_cast %169 : vector<16x16x128xbf16> to vector<256x128xbf16>
    %c0_216 = arith.constant 0 : index
    %c0_217 = arith.constant 0 : index
    %171 = vector.load %arg10[%c0_216, %c0_217] : memref<256x128xf32, #tpu.memory_space<vmem>>, vector<256x128xf32>
    %c8_218 = arith.constant 8 : index
    %c0_219 = arith.constant 0 : index
    %c0_220 = arith.constant 0 : index
    %172 = vector.load %arg6[%c8_218, %c0_219, %c0_220] : memref<9x128x128xbf16, #tpu.memory_space<vmem>>, vector<1x128x128xbf16>
    %173 = vector.shape_cast %172 : vector<1x128x128xbf16> to vector<128x128xbf16>
    %cst_221 = arith.constant dense<0.000000e+00> : vector<256x128xf32>
    %174 = tpu.matmul %170, %173, %cst_221 {dimension_numbers = #tpu.dot_dimension_numbers<[1], [0], [0], [1], [0, 0, 1, 1], [], []>} : vector<256x128xbf16>, vector<128x128xbf16>, vector<256x128xf32> -> vector<256x128xf32>
    %175 = arith.addf %171, %174 : vector<256x128xf32>
    %c0_222 = arith.constant 0 : index
    %c0_223 = arith.constant 0 : index
    %176 = vector.load %arg10[%c0_222, %c0_223] : memref<256x128xf32, #tpu.memory_space<vmem>>, vector<256x128xf32>
    tpu.vector_store %arg10[%c0_222, %c0_223], %175 {strides = array<i32>} : memref<256x128xf32, #tpu.memory_space<vmem>>, vector<256x128xf32>,
    %c0_224 = arith.constant 0 : index
    %c0_225 = arith.constant 0 : index
    %177 = vector.load %arg10[%c0_224, %c0_225] : memref<256x128xf32, #tpu.memory_space<vmem>>, vector<256x128xf32>
    %c0_226 = arith.constant 0 : index
    %c0_227 = arith.constant 0 : index
    %178 = vector.load %arg7[%c0_226, %c0_227] : memref<1x128xf32, #tpu.memory_space<vmem>>, vector<1x128xf32>
    %179 = vector.broadcast %178 : vector<1x128xf32> to vector<256x128xf32>
    %180 = arith.addf %177, %179 : vector<256x128xf32>
    %c0_228 = arith.constant 0 : index
    %c0_229 = arith.constant 0 : index
    %c0_230 = arith.constant 0 : index
    %181 = vector.load %arg8[%c0_228, %c0_229, %c0_230] : memref<1x256x128xf32, #tpu.memory_space<vmem>>, vector<1x256x128xf32>
    %182 = vector.shape_cast %181 : vector<1x256x128xf32> to vector<256x128xf32>
    %183 = vector.shape_cast %180 : vector<256x128xf32> to vector<1x256x128xf32>
    tpu.vector_store %arg8[%c0_228, %c0_229, %c0_230], %183 {strides = array<i32>} : memref<1x256x128xf32, #tpu.memory_space<vmem>>, vector<1x256x128xf32>,
    %cst_231 = arith.constant 0.000000e+00 : f32
    %184 = vector.broadcast %cst_231 : f32 to vector<256x128xf32>
    %c0_232 = arith.constant 0 : index
    %c0_233 = arith.constant 0 : index
    %185 = vector.load %arg10[%c0_232, %c0_233] : memref<256x128xf32, #tpu.memory_space<vmem>>, vector<256x128xf32>
    tpu.vector_store %arg10[%c0_232, %c0_233], %184 {strides = array<i32>} : memref<256x128xf32, #tpu.memory_space<vmem>>, vector<256x128xf32>,
    %c0_234 = arith.constant 0 : index
    %c0_235 = arith.constant 0 : index
    %c0_236 = arith.constant 0 : index
    %186 = vector.load %arg9[%c0_234, %c0_235, %c0_236] : memref<18x18x128xbf16, #tpu.memory_space<vmem>>, vector<16x16x128xbf16>
    %187 = vector.shape_cast %186 : vector<16x16x128xbf16> to vector<256x128xbf16>
    %c0_237 = arith.constant 0 : index
    %c0_238 = arith.constant 0 : index
    %188 = vector.load %arg10[%c0_237, %c0_238] : memref<256x128xf32, #tpu.memory_space<vmem>>, vector<256x128xf32>
    %c0_239 = arith.constant 0 : index
    %c0_240 = arith.constant 0 : index
    %c0_241 = arith.constant 0 : index
    %189 = vector.load %arg4[%c0_239, %c0_240, %c0_241] : memref<9x128x128xbf16, #tpu.memory_space<vmem>>, vector<1x128x128xbf16>
    %190 = vector.shape_cast %189 : vector<1x128x128xbf16> to vector<128x128xbf16>
    %cst_242 = arith.constant dense<0.000000e+00> : vector<256x128xf32>
    %191 = tpu.matmul %187, %190, %cst_242 {dimension_numbers = #tpu.dot_dimension_numbers<[1], [0], [0], [1], [0, 0, 1, 1], [], []>} : vector<256x128xbf16>, vector<128x128xbf16>, vector<256x128xf32> -> vector<256x128xf32>
    %192 = arith.addf %188, %191 : vector<256x128xf32>
    %c0_243 = arith.constant 0 : index
    %c0_244 = arith.constant 0 : index
    %193 = vector.load %arg10[%c0_243, %c0_244] : memref<256x128xf32, #tpu.memory_space<vmem>>, vector<256x128xf32>
    tpu.vector_store %arg10[%c0_243, %c0_244], %192 {strides = array<i32>} : memref<256x128xf32, #tpu.memory_space<vmem>>, vector<256x128xf32>,
    %c0_245 = arith.constant 0 : index
    %c1_246 = arith.constant 1 : index
    %c0_247 = arith.constant 0 : index
    %194 = vector.load %arg9[%c0_245, %c1_246, %c0_247] : memref<18x18x128xbf16, #tpu.memory_space<vmem>>, vector<16x16x128xbf16>
    %195 = vector.shape_cast %194 : vector<16x16x128xbf16> to vector<256x128xbf16>
    %c0_248 = arith.constant 0 : index
    %c0_249 = arith.constant 0 : index
    %196 = vector.load %arg10[%c0_248, %c0_249] : memref<256x128xf32, #tpu.memory_space<vmem>>, vector<256x128xf32>
    %c1_250 = arith.constant 1 : index
    %c0_251 = arith.constant 0 : index
    %c0_252 = arith.constant 0 : index
    %197 = vector.load %arg4[%c1_250, %c0_251, %c0_252] : memref<9x128x128xbf16, #tpu.memory_space<vmem>>, vector<1x128x128xbf16>
    %198 = vector.shape_cast %197 : vector<1x128x128xbf16> to vector<128x128xbf16>
    %cst_253 = arith.constant dense<0.000000e+00> : vector<256x128xf32>
    %199 = tpu.matmul %195, %198, %cst_253 {dimension_numbers = #tpu.dot_dimension_numbers<[1], [0], [0], [1], [0, 0, 1, 1], [], []>} : vector<256x128xbf16>, vector<128x128xbf16>, vector<256x128xf32> -> vector<256x128xf32>
    %200 = arith.addf %196, %199 : vector<256x128xf32>
    %c0_254 = arith.constant 0 : index
    %c0_255 = arith.constant 0 : index
    %201 = vector.load %arg10[%c0_254, %c0_255] : memref<256x128xf32, #tpu.memory_space<vmem>>, vector<256x128xf32>
    tpu.vector_store %arg10[%c0_254, %c0_255], %200 {strides = array<i32>} : memref<256x128xf32, #tpu.memory_space<vmem>>, vector<256x128xf32>,
    %c0_256 = arith.constant 0 : index
    %c2_257 = arith.constant 2 : index
    %c0_258 = arith.constant 0 : index
    %202 = vector.load %arg9[%c0_256, %c2_257, %c0_258] : memref<18x18x128xbf16, #tpu.memory_space<vmem>>, vector<16x16x128xbf16>
    %203 = vector.shape_cast %202 : vector<16x16x128xbf16> to vector<256x128xbf16>
    %c0_259 = arith.constant 0 : index
    %c0_260 = arith.constant 0 : index
    %204 = vector.load %arg10[%c0_259, %c0_260] : memref<256x128xf32, #tpu.memory_space<vmem>>, vector<256x128xf32>
    %c2_261 = arith.constant 2 : index
    %c0_262 = arith.constant 0 : index
    %c0_263 = arith.constant 0 : index
    %205 = vector.load %arg4[%c2_261, %c0_262, %c0_263] : memref<9x128x128xbf16, #tpu.memory_space<vmem>>, vector<1x128x128xbf16>
    %206 = vector.shape_cast %205 : vector<1x128x128xbf16> to vector<128x128xbf16>
    %cst_264 = arith.constant dense<0.000000e+00> : vector<256x128xf32>
    %207 = tpu.matmul %203, %206, %cst_264 {dimension_numbers = #tpu.dot_dimension_numbers<[1], [0], [0], [1], [0, 0, 1, 1], [], []>} : vector<256x128xbf16>, vector<128x128xbf16>, vector<256x128xf32> -> vector<256x128xf32>
    %208 = arith.addf %204, %207 : vector<256x128xf32>
    %c0_265 = arith.constant 0 : index
    %c0_266 = arith.constant 0 : index
    %209 = vector.load %arg10[%c0_265, %c0_266] : memref<256x128xf32, #tpu.memory_space<vmem>>, vector<256x128xf32>
    tpu.vector_store %arg10[%c0_265, %c0_266], %208 {strides = array<i32>} : memref<256x128xf32, #tpu.memory_space<vmem>>, vector<256x128xf32>,
    %c1_267 = arith.constant 1 : index
    %c0_268 = arith.constant 0 : index
    %c0_269 = arith.constant 0 : index
    %210 = vector.load %arg9[%c1_267, %c0_268, %c0_269] : memref<18x18x128xbf16, #tpu.memory_space<vmem>>, vector<16x16x128xbf16>
    %211 = vector.shape_cast %210 : vector<16x16x128xbf16> to vector<256x128xbf16>
    %c0_270 = arith.constant 0 : index
    %c0_271 = arith.constant 0 : index
    %212 = vector.load %arg10[%c0_270, %c0_271] : memref<256x128xf32, #tpu.memory_space<vmem>>, vector<256x128xf32>
    %c3_272 = arith.constant 3 : index
    %c0_273 = arith.constant 0 : index
    %c0_274 = arith.constant 0 : index
    %213 = vector.load %arg4[%c3_272, %c0_273, %c0_274] : memref<9x128x128xbf16, #tpu.memory_space<vmem>>, vector<1x128x128xbf16>
    %214 = vector.shape_cast %213 : vector<1x128x128xbf16> to vector<128x128xbf16>
    %cst_275 = arith.constant dense<0.000000e+00> : vector<256x128xf32>
    %215 = tpu.matmul %211, %214, %cst_275 {dimension_numbers = #tpu.dot_dimension_numbers<[1], [0], [0], [1], [0, 0, 1, 1], [], []>} : vector<256x128xbf16>, vector<128x128xbf16>, vector<256x128xf32> -> vector<256x128xf32>
    %216 = arith.addf %212, %215 : vector<256x128xf32>
    %c0_276 = arith.constant 0 : index
    %c0_277 = arith.constant 0 : index
    %217 = vector.load %arg10[%c0_276, %c0_277] : memref<256x128xf32, #tpu.memory_space<vmem>>, vector<256x128xf32>
    tpu.vector_store %arg10[%c0_276, %c0_277], %216 {strides = array<i32>} : memref<256x128xf32, #tpu.memory_space<vmem>>, vector<256x128xf32>,
    %c1_278 = arith.constant 1 : index
    %c1_279 = arith.constant 1 : index
    %c0_280 = arith.constant 0 : index
    %218 = vector.load %arg9[%c1_278, %c1_279, %c0_280] : memref<18x18x128xbf16, #tpu.memory_space<vmem>>, vector<16x16x128xbf16>
    %219 = vector.shape_cast %218 : vector<16x16x128xbf16> to vector<256x128xbf16>
    %c0_281 = arith.constant 0 : index
    %c0_282 = arith.constant 0 : index
    %220 = vector.load %arg10[%c0_281, %c0_282] : memref<256x128xf32, #tpu.memory_space<vmem>>, vector<256x128xf32>
    %c4_283 = arith.constant 4 : index
    %c0_284 = arith.constant 0 : index
    %c0_285 = arith.constant 0 : index
    %221 = vector.load %arg4[%c4_283, %c0_284, %c0_285] : memref<9x128x128xbf16, #tpu.memory_space<vmem>>, vector<1x128x128xbf16>
    %222 = vector.shape_cast %221 : vector<1x128x128xbf16> to vector<128x128xbf16>
    %cst_286 = arith.constant dense<0.000000e+00> : vector<256x128xf32>
    %223 = tpu.matmul %219, %222, %cst_286 {dimension_numbers = #tpu.dot_dimension_numbers<[1], [0], [0], [1], [0, 0, 1, 1], [], []>} : vector<256x128xbf16>, vector<128x128xbf16>, vector<256x128xf32> -> vector<256x128xf32>
    %224 = arith.addf %220, %223 : vector<256x128xf32>
    %c0_287 = arith.constant 0 : index
    %c0_288 = arith.constant 0 : index
    %225 = vector.load %arg10[%c0_287, %c0_288] : memref<256x128xf32, #tpu.memory_space<vmem>>, vector<256x128xf32>
    tpu.vector_store %arg10[%c0_287, %c0_288], %224 {strides = array<i32>} : memref<256x128xf32, #tpu.memory_space<vmem>>, vector<256x128xf32>,
    %c1_289 = arith.constant 1 : index
    %c2_290 = arith.constant 2 : index
    %c0_291 = arith.constant 0 : index
    %226 = vector.load %arg9[%c1_289, %c2_290, %c0_291] : memref<18x18x128xbf16, #tpu.memory_space<vmem>>, vector<16x16x128xbf16>
    %227 = vector.shape_cast %226 : vector<16x16x128xbf16> to vector<256x128xbf16>
    %c0_292 = arith.constant 0 : index
    %c0_293 = arith.constant 0 : index
    %228 = vector.load %arg10[%c0_292, %c0_293] : memref<256x128xf32, #tpu.memory_space<vmem>>, vector<256x128xf32>
    %c5_294 = arith.constant 5 : index
    %c0_295 = arith.constant 0 : index
    %c0_296 = arith.constant 0 : index
    %229 = vector.load %arg4[%c5_294, %c0_295, %c0_296] : memref<9x128x128xbf16, #tpu.memory_space<vmem>>, vector<1x128x128xbf16>
    %230 = vector.shape_cast %229 : vector<1x128x128xbf16> to vector<128x128xbf16>
    %cst_297 = arith.constant dense<0.000000e+00> : vector<256x128xf32>
    %231 = tpu.matmul %227, %230, %cst_297 {dimension_numbers = #tpu.dot_dimension_numbers<[1], [0], [0], [1], [0, 0, 1, 1], [], []>} : vector<256x128xbf16>, vector<128x128xbf16>, vector<256x128xf32> -> vector<256x128xf32>
    %232 = arith.addf %228, %231 : vector<256x128xf32>
    %c0_298 = arith.constant 0 : index
    %c0_299 = arith.constant 0 : index
    %233 = vector.load %arg10[%c0_298, %c0_299] : memref<256x128xf32, #tpu.memory_space<vmem>>, vector<256x128xf32>
    tpu.vector_store %arg10[%c0_298, %c0_299], %232 {strides = array<i32>} : memref<256x128xf32, #tpu.memory_space<vmem>>, vector<256x128xf32>,
    %c2_300 = arith.constant 2 : index
    %c0_301 = arith.constant 0 : index
    %c0_302 = arith.constant 0 : index
    %234 = vector.load %arg9[%c2_300, %c0_301, %c0_302] : memref<18x18x128xbf16, #tpu.memory_space<vmem>>, vector<16x16x128xbf16>
    %235 = vector.shape_cast %234 : vector<16x16x128xbf16> to vector<256x128xbf16>
    %c0_303 = arith.constant 0 : index
    %c0_304 = arith.constant 0 : index
    %236 = vector.load %arg10[%c0_303, %c0_304] : memref<256x128xf32, #tpu.memory_space<vmem>>, vector<256x128xf32>
    %c6_305 = arith.constant 6 : index
    %c0_306 = arith.constant 0 : index
    %c0_307 = arith.constant 0 : index
    %237 = vector.load %arg4[%c6_305, %c0_306, %c0_307] : memref<9x128x128xbf16, #tpu.memory_space<vmem>>, vector<1x128x128xbf16>
    %238 = vector.shape_cast %237 : vector<1x128x128xbf16> to vector<128x128xbf16>
    %cst_308 = arith.constant dense<0.000000e+00> : vector<256x128xf32>
    %239 = tpu.matmul %235, %238, %cst_308 {dimension_numbers = #tpu.dot_dimension_numbers<[1], [0], [0], [1], [0, 0, 1, 1], [], []>} : vector<256x128xbf16>, vector<128x128xbf16>, vector<256x128xf32> -> vector<256x128xf32>
    %240 = arith.addf %236, %239 : vector<256x128xf32>
    %c0_309 = arith.constant 0 : index
    %c0_310 = arith.constant 0 : index
    %241 = vector.load %arg10[%c0_309, %c0_310] : memref<256x128xf32, #tpu.memory_space<vmem>>, vector<256x128xf32>
    tpu.vector_store %arg10[%c0_309, %c0_310], %240 {strides = array<i32>} : memref<256x128xf32, #tpu.memory_space<vmem>>, vector<256x128xf32>,
    %c2_311 = arith.constant 2 : index
    %c1_312 = arith.constant 1 : index
    %c0_313 = arith.constant 0 : index
    %242 = vector.load %arg9[%c2_311, %c1_312, %c0_313] : memref<18x18x128xbf16, #tpu.memory_space<vmem>>, vector<16x16x128xbf16>
    %243 = vector.shape_cast %242 : vector<16x16x128xbf16> to vector<256x128xbf16>
    %c0_314 = arith.constant 0 : index
    %c0_315 = arith.constant 0 : index
    %244 = vector.load %arg10[%c0_314, %c0_315] : memref<256x128xf32, #tpu.memory_space<vmem>>, vector<256x128xf32>
    %c7_316 = arith.constant 7 : index
    %c0_317 = arith.constant 0 : index
    %c0_318 = arith.constant 0 : index
    %245 = vector.load %arg4[%c7_316, %c0_317, %c0_318] : memref<9x128x128xbf16, #tpu.memory_space<vmem>>, vector<1x128x128xbf16>
    %246 = vector.shape_cast %245 : vector<1x128x128xbf16> to vector<128x128xbf16>
    %cst_319 = arith.constant dense<0.000000e+00> : vector<256x128xf32>
    %247 = tpu.matmul %243, %246, %cst_319 {dimension_numbers = #tpu.dot_dimension_numbers<[1], [0], [0], [1], [0, 0, 1, 1], [], []>} : vector<256x128xbf16>, vector<128x128xbf16>, vector<256x128xf32> -> vector<256x128xf32>
    %248 = arith.addf %244, %247 : vector<256x128xf32>
    %c0_320 = arith.constant 0 : index
    %c0_321 = arith.constant 0 : index
    %249 = vector.load %arg10[%c0_320, %c0_321] : memref<256x128xf32, #tpu.memory_space<vmem>>, vector<256x128xf32>
    tpu.vector_store %arg10[%c0_320, %c0_321], %248 {strides = array<i32>} : memref<256x128xf32, #tpu.memory_space<vmem>>, vector<256x128xf32>,
    %c2_322 = arith.constant 2 : index
    %c2_323 = arith.constant 2 : index
    %c0_324 = arith.constant 0 : index
    %250 = vector.load %arg9[%c2_322, %c2_323, %c0_324] : memref<18x18x128xbf16, #tpu.memory_space<vmem>>, vector<16x16x128xbf16>
    %251 = vector.shape_cast %250 : vector<16x16x128xbf16> to vector<256x128xbf16>
    %c0_325 = arith.constant 0 : index
    %c0_326 = arith.constant 0 : index
    %252 = vector.load %arg10[%c0_325, %c0_326] : memref<256x128xf32, #tpu.memory_space<vmem>>, vector<256x128xf32>
    %c8_327 = arith.constant 8 : index
    %c0_328 = arith.constant 0 : index
    %c0_329 = arith.constant 0 : index
    %253 = vector.load %arg4[%c8_327, %c0_328, %c0_329] : memref<9x128x128xbf16, #tpu.memory_space<vmem>>, vector<1x128x128xbf16>
    %254 = vector.shape_cast %253 : vector<1x128x128xbf16> to vector<128x128xbf16>
    %cst_330 = arith.constant dense<0.000000e+00> : vector<256x128xf32>
    %255 = tpu.matmul %251, %254, %cst_330 {dimension_numbers = #tpu.dot_dimension_numbers<[1], [0], [0], [1], [0, 0, 1, 1], [], []>} : vector<256x128xbf16>, vector<128x128xbf16>, vector<256x128xf32> -> vector<256x128xf32>
    %256 = arith.addf %252, %255 : vector<256x128xf32>
    %c0_331 = arith.constant 0 : index
    %c0_332 = arith.constant 0 : index
    %257 = vector.load %arg10[%c0_331, %c0_332] : memref<256x128xf32, #tpu.memory_space<vmem>>, vector<256x128xf32>
    tpu.vector_store %arg10[%c0_331, %c0_332], %256 {strides = array<i32>} : memref<256x128xf32, #tpu.memory_space<vmem>>, vector<256x128xf32>,
    %c0_333 = arith.constant 0 : index
    %c0_334 = arith.constant 0 : index
    %258 = vector.load %arg10[%c0_333, %c0_334] : memref<256x128xf32, #tpu.memory_space<vmem>>, vector<256x128xf32>
    %c0_335 = arith.constant 0 : index
    %c0_336 = arith.constant 0 : index
    %259 = vector.load %arg5[%c0_335, %c0_336] : memref<1x128xf32, #tpu.memory_space<vmem>>, vector<1x128xf32>
    %260 = vector.broadcast %259 : vector<1x128xf32> to vector<256x128xf32>
    %261 = arith.addf %258, %260 : vector<256x128xf32>
    %cst_337 = arith.constant 0.000000e+00 : f32
    %262 = vector.broadcast %cst_337 : f32 to vector<256x128xf32>
    %263 = arith.maximumf %261, %262 : vector<256x128xf32>
    %c0_338 = arith.constant 0 : index
    %c0_339 = arith.constant 0 : index
    %c0_340 = arith.constant 0 : index
    %264 = vector.load %arg8[%c0_338, %c0_339, %c0_340] : memref<1x256x128xf32, #tpu.memory_space<vmem>>, vector<1x256x128xf32>
    %265 = vector.shape_cast %264 : vector<1x256x128xf32> to vector<256x128xf32>
    %266 = arith.addf %263, %265 : vector<256x128xf32>
    %c0_341 = arith.constant 0 : index
    %c0_342 = arith.constant 0 : index
    %c0_343 = arith.constant 0 : index
    %267 = vector.load %arg8[%c0_341, %c0_342, %c0_343] : memref<1x256x128xf32, #tpu.memory_space<vmem>>, vector<1x256x128xf32>
    %268 = vector.shape_cast %267 : vector<1x256x128xf32> to vector<256x128xf32>
    %269 = vector.shape_cast %266 : vector<256x128xf32> to vector<1x256x128xf32>
    tpu.vector_store %arg8[%c0_341, %c0_342, %c0_343], %269 {strides = array<i32>} : memref<1x256x128xf32, #tpu.memory_space<vmem>>, vector<1x256x128xf32>,
    return
  }
  func.func @transform_0(%arg0: i32) -> (i32, i32, i32, i32) {
    %c0_i32 = arith.constant 0 : i32
    %c0_i32_0 = arith.constant 0 : i32
    %c0_i32_1 = arith.constant 0 : i32
    %c0_i32_2 = arith.constant 0 : i32
    return %arg0, %c0_i32, %c0_i32_0, %c0_i32_1 : i32, i32, i32, i32
  }
  func.func @transform_1(%arg0: i32) -> (i32, i32, i32) {
    %c0_i32 = arith.constant 0 : i32
    %c0_i32_0 = arith.constant 0 : i32
    %c0_i32_1 = arith.constant 0 : i32
    %c0_i32_2 = arith.constant 0 : i32
    return %c0_i32, %c0_i32_0, %c0_i32_1 : i32, i32, i32
  }
  func.func @transform_2(%arg0: i32) -> (i32, i32) {
    %c0_i32 = arith.constant 0 : i32
    %c0_i32_0 = arith.constant 0 : i32
    %c0_i32_1 = arith.constant 0 : i32
    return %c0_i32, %c0_i32_0 : i32, i32
  }
  func.func @transform_3(%arg0: i32) -> (i32, i32, i32) {
    %c0_i32 = arith.constant 0 : i32
    %c0_i32_0 = arith.constant 0 : i32
    %c0_i32_1 = arith.constant 0 : i32
    %c0_i32_2 = arith.constant 0 : i32
    return %c0_i32, %c0_i32_0, %c0_i32_1 : i32, i32, i32
  }
  func.func @transform_4(%arg0: i32) -> (i32, i32) {
    %c0_i32 = arith.constant 0 : i32
    %c0_i32_0 = arith.constant 0 : i32
    %c0_i32_1 = arith.constant 0 : i32
    return %c0_i32, %c0_i32_0 : i32, i32
  }
  func.func @transform_5(%arg0: i32) -> (i32, i32, i32) {
    %c0_i32 = arith.constant 0 : i32
    %c0_i32_0 = arith.constant 0 : i32
    %c0_i32_1 = arith.constant 0 : i32
    %c0_i32_2 = arith.constant 0 : i32
    return %c0_i32, %c0_i32_0, %c0_i32_1 : i32, i32, i32
  }
  func.func @transform_6(%arg0: i32) -> (i32, i32) {
    %c0_i32 = arith.constant 0 : i32
    %c0_i32_0 = arith.constant 0 : i32
    %c0_i32_1 = arith.constant 0 : i32
    return %c0_i32, %c0_i32_0 : i32, i32
  }
  func.func @transform_7(%arg0: i32) -> (i32, i32, i32) {
    %c0_i32 = arith.constant 0 : i32
    %c0_i32_0 = arith.constant 0 : i32
    %c0_i32_1 = arith.constant 0 : i32
    return %arg0, %c0_i32, %c0_i32_0 : i32, i32, i32
  }
}

</mosaic_0001>

<bundles_post_ra>
// kernel: tpu_custom_call.1
= control target key start
LH: loop header
LB: loop body
LE: loop exit
PB: predicated region body
PF: predicated region fallthrough
CT: control target
= control target key end

     0   :  { %s27054_s0 = inlined_call_operand.hbm [shape: bf16[2,18,18,128], index: 0, kind: input, shape index: {}]   ;;  %s27055_s1 = inlined_call_operand.hbm [shape: bf16[9,128,128], index: 1, kind: input, shape index: {}]   ;;  %s27056_s2 = inlined_call_operand.hbm [shape: f32[1,128], index: 2, kind: input, shape index: {}]   ;;  %s27057_s3 = inlined_call_operand.hbm [shape: bf16[9,128,128], index: 3, kind: input, shape index: {}]   ;;  %s27058_s4 = inlined_call_operand.hbm [shape: f32[1,128], index: 4, kind: input, shape index: {}]   ;;  %s27059_s5 = inlined_call_operand.hbm [shape: bf16[9,128,128], index: 5, kind: input, shape index: {}]   ;;  %s27060_s6 = inlined_call_operand.hbm [shape: f32[1,128], index: 6, kind: input, shape index: {}]   ;;  %s27061_s7 = inlined_call_operand.hbm [shape: f32[2,256,128], index: 7, kind: output, shape index: {}]  }
   0x1   :  { %27076 = sst [smem:[#allocation28_spill]] %s27055_s1 }
   0x2   :  { %12 = vsyncpa [#allocation5], 0 }
   0x3   :  { %14 = vsyncpa [#allocation5 + $0x1], 0 }
   0x4   :  { %15 = vsyncpa [#allocation8], 0 }
   0x5   :  { %16 = vsyncpa [#allocation11], 0 }
   0x6   :  { %17 = vsyncpa [#allocation14], 0 }
   0x7   :  { %18 = vsyncpa [#allocation6], 0 }
   0x8   :  { %20 = vsyncpa [#allocation6 + $0x1], 0  ;;  %s23320_s24 = smov 0   ;;  %s23322_s25 = smov 0  }
   0x9   :  { %s23324_s26 = smov 0   ;;  %s23326_s27 = smov 0  }
   0xa LB: > { %s23267_s28 = smov [#allocation7]   ;;  %s23341_s30 = sadd.s32 4294967295, %s23265_s27   ;;  %s23265_s27 = sphi %s23326_s27, %s27168_s27   ;;  %s23261_s26 = sphi %s23324_s26, %s27167_s26   ;;  %s23257_s25 = sphi %s23322_s25, %s27166_s25   ;;  %s23253_s24 = sphi %s23320_s24, %s27165_s24  }
   0xb   : > { %s221_s29 = sshll.u32 %s23267_s28, 4  ;;  %p18380_p0 = scmp.ge.s32.totalorder %s23265_s27, 1  ;;  %s23346_s29 = int_to_ptr.vmem [resolvable:$true] %s221_s29 }
   0xc   : > { %p27062_p1 = scmp.eq.s32.totalorder %s23341_s30, 0  ;;  %p209_p2 = scmp.lt.s32.totalorder %s23265_s27, 3 }
   0xd   : > { %s23268_s9 = smov [#allocation10]   ;;  %s23269_s12 = smov [#allocation13]  }
   0xe   : > { %p23348_p3 = pnand %p18380_p0, %p209_p2  ;;  %s245_s10 = sshll.u32 %s23268_s9, 4  ;;  %s23361_s10 = int_to_ptr.vmem [resolvable:$true] %s245_s10 }
   0xf   : > { %s269_s13 = sshll.u32 %s23269_s12, 4  ;;  %s27079_s1 = sld [smem:[#allocation28_spill]]  ;;  %s23363_s13 = int_to_ptr.vmem [resolvable:$true] %s269_s13 }
  0x10   : > { %s27077_s8 = scalar_select %p23348_p3, 1, 0 }
  0x11   : > { %p22533_p5 = pneg %p23348_p3 }
  0x13   : > { %p23357_p6 = pnand %p22533_p5, %p27062_p1 }
  0x15   : > { %s22989_s16 = scalar_lea.hbm %s27079_s1, 9216  ;;  %p23373_p8 = pneg %p23357_p6 }
  0x16   : > { %p22990_p7 = scmp.ne.s32.totalorder %s27079_s1, %s22989_s16  ;;  %p22996_p11 = scmp.lt.u32.totalorder %s22989_s16, %s27079_s1 }
  0x18   : > { %p22992_p9 = pnand %p23373_p8, %p22990_p7 }
  0x1a   : > { %p22993_p10 = pneg %p22992_p9 }
  0x1c   : > { %p22998_p12 = pnand %p22996_p11, %p22993_p10 }
  0x1e   : > { %23001 = shalt.err (!%p22998_p12)
}
  0x1f   : > { %s23002_s22 = scalar_lea.vmem %s23346_s29, 9216  ;;  %p23010_p5 = scmp.lt.s32.totalorder %s23346_s29, %s23346_s29 }
  0x20   : > { %p23003_p13 = scmp.ne.s32.totalorder %s23346_s29, %s23002_s22  ;;  %p23011_p4 = scmp.lt.s32.totalorder %s23002_s22, %s23002_s22 }
  0x22   : > { %p23005_p0 = pnand %p23003_p13, %p23373_p8  ;;  %p23012_p7 = por %p23011_p4, %p23010_p5 }
  0x24   : > { %p23006_p2 = pneg %p23005_p0 }
  0x26   : > { %p23013_p9 = pnand %p23012_p7, %p23006_p2 }
  0x28   : > { %23016 = shalt.err (!%p23013_p9)
}
  0x29   : > { %s27064_s23 = smov 64   ;;  %s27065_s28 = smov 4  }
  0x2a   : > { %22536 = dma.hbm_to_vmem [thread:$0]  (!%p23357_p6), %s27079_s1, 9216, %s23346_s29, [#allocation8], %s27064_s23, %s27064_s23, %s27065_s28  }
  0x2b   : > { %s23017_s16 = scalar_lea.hbm %s27057_s3, 9216 }
  0x2c   : > { %p23018_p4 = scmp.ne.s32.totalorder %s27057_s3, %s23017_s16  ;;  %p23024_p12 = scmp.lt.u32.totalorder %s23017_s16, %s27057_s3 }
  0x2e   : > { %p23020_p10 = pnand %p23018_p4, %p23373_p8 }
  0x30   : > { %p23021_p11 = pneg %p23020_p10 }
  0x32   : > { %p23026_p13 = pnand %p23024_p12, %p23021_p11 }
  0x34   : > { %23029 = shalt.err (!%p23026_p13)
}
  0x35   : > { %s23030_s29 = scalar_lea.vmem %s23361_s10, 9216  ;;  %p23038_p7 = scmp.lt.s32.totalorder %s23361_s10, %s23361_s10 }
  0x36   : > { %p23031_p0 = scmp.ne.s32.totalorder %s23361_s10, %s23030_s29  ;;  %p23039_p9 = scmp.lt.s32.totalorder %s23030_s29, %s23030_s29 }
  0x38   : > { %p23033_p2 = pnand %p23031_p0, %p23373_p8  ;;  %p23040_p4 = por %p23039_p9, %p23038_p7 }
  0x3a   : > { %p23034_p5 = pneg %p23033_p2 }
  0x3c   : > { %p23041_p10 = pnand %p23040_p4, %p23034_p5 }
  0x3e   : > { %23044 = shalt.err (!%p23041_p10)
}
  0x3f   : > { %22542 = dma.hbm_to_vmem [thread:$0]  (!%p23357_p6), %s27057_s3, 9216, %s23361_s10, [#allocation11], %s27064_s23, %s27064_s23, %s27065_s28  }
  0x40   : > { %s23045_s15 = scalar_lea.hbm %s27059_s5, 9216 }
  0x41   : > { %p23046_p11 = scmp.ne.s32.totalorder %s27059_s5, %s23045_s15  ;;  %p23052_p0 = scmp.lt.u32.totalorder %s23045_s15, %s27059_s5 }
  0x43   : > { %p23048_p12 = pnand %p23046_p11, %p23373_p8 }
  0x45   : > { %p23049_p13 = pneg %p23048_p12 }
  0x47   : > { %p23054_p2 = pnand %p23052_p0, %p23049_p13 }
  0x49   : > { %23057 = shalt.err (!%p23054_p2)
}
  0x4a   : > { %s23058_s10 = scalar_lea.vmem %s23363_s13, 9216  ;;  %p23066_p4 = scmp.lt.s32.totalorder %s23363_s13, %s23363_s13 }
  0x4b   : > { %p23059_p5 = scmp.ne.s32.totalorder %s23363_s13, %s23058_s10  ;;  %p23067_p10 = scmp.lt.s32.totalorder %s23058_s10, %s23058_s10 }
  0x4d   : > { %p23061_p7 = pnand %p23059_p5, %p23373_p8  ;;  %p23068_p11 = por %p23067_p10, %p23066_p4 }
  0x4f   : > { %p23062_p9 = pneg %p23061_p7 }
  0x51   : > { %p23069_p12 = pnand %p23068_p11, %p23062_p9 }
  0x53   : > { %23072 = shalt.err (!%p23069_p12)
}
  0x54   : > { %22548 = dma.hbm_to_vmem [thread:$0]  (!%p23357_p6), %s27059_s5, 9216, %s23363_s13, [#allocation14], %s27064_s23, %s27064_s23, %s27065_s28  }
  0x55   : > { %s23272_s22 = smov [#allocation9]   ;;  %s23273_s12 = smov [#allocation12]  }
  0x56   : > { %s235_s9 = sshll.u32 %s23272_s22, 4  ;;  %s259_s14 = sshll.u32 %s23273_s12, 4  ;;  %s236_s9 = int_to_ptr.vmem [resolvable:$true] %s235_s9  ;;  %s260_s14 = int_to_ptr.vmem [resolvable:$true] %s259_s14 }
  0x57   : > { %s23073_s17 = scalar_lea.hbm %s27056_s2, 16 }
  0x58   : > { %p23074_p13 = scmp.ne.s32.totalorder %s27056_s2, %s23073_s17  ;;  %p23080_p5 = scmp.lt.u32.totalorder %s23073_s17, %s27056_s2 }
  0x5a   : > { %p23076_p0 = pnand %p23074_p13, %p23373_p8 }
  0x5c   : > { %p23077_p2 = pneg %p23076_p0 }
  0x5e   : > { %p23082_p7 = pnand %p23080_p5, %p23077_p2 }
  0x60   : > { %23085 = shalt.err (!%p23082_p7)
}
  0x61   : > { %s23086_s13 = scalar_lea.vmem %s236_s9, 16  ;;  %s23093_s29 = scalar_lea.vmem %s236_s9, 32 }
  0x62   : > { %p23087_p9 = scmp.ne.s32.totalorder %s236_s9, %s23086_s13  ;;  %p23094_p11 = scmp.lt.s32.totalorder %s236_s9, %s236_s9 }
  0x63   : > { %p23095_p12 = scmp.lt.s32.totalorder %s23093_s29, %s23086_s13 }
  0x64   : > { %p23089_p4 = pnand %p23087_p9, %p23373_p8 }
  0x65   : > { %p23096_p1 = por %p23095_p12, %p23094_p11 }
  0x66   : > { %p23090_p10 = pneg %p23089_p4 }
  0x68   : > { %p23097_p3 = pnand %p23096_p1, %p23090_p10 }
  0x6a   : > { %23100 = shalt.err (!%p23097_p3)
}
  0x6b   : > { %22539 = dma.hbm_to_vmem [thread:$0]  (!%p23357_p6), %s27056_s2, 16, %s236_s9, [#allocation8]  }
  0x6c   : > { %s23101_s17 = scalar_lea.hbm %s27058_s4, 16 }
  0x6d   : > { %p23102_p13 = scmp.ne.s32.totalorder %s27058_s4, %s23101_s17  ;;  %p23108_p3 = scmp.lt.u32.totalorder %s23101_s17, %s27058_s4 }
  0x6f   : > { %p23104_p0 = pnand %p23102_p13, %p23373_p8 }
  0x71   : > { %p23105_p1 = pneg %p23104_p0 }
  0x73   : > { %p23110_p2 = pnand %p23108_p3, %p23105_p1 }
  0x75   : > { %23113 = shalt.err (!%p23110_p2)
}
  0x76   : > { %s23114_s13 = scalar_lea.vmem %s260_s14, 16  ;;  %s23121_s9 = scalar_lea.vmem %s260_s14, 32 }
  0x77   : > { %p23115_p5 = scmp.ne.s32.totalorder %s260_s14, %s23114_s13  ;;  %p23122_p4 = scmp.lt.s32.totalorder %s260_s14, %s260_s14 }
  0x78   : > { %p23123_p10 = scmp.lt.s32.totalorder %s23121_s9, %s23114_s13 }
  0x79   : > { %p23117_p7 = pnand %p23115_p5, %p23373_p8 }
  0x7a   : > { %p23124_p11 = por %p23123_p10, %p23122_p4 }
  0x7b   : > { %p23118_p9 = pneg %p23117_p7 }
  0x7d   : > { %p23125_p12 = pnand %p23124_p11, %p23118_p9 }
  0x7f   : > { %23128 = shalt.err (!%p23125_p12)
}
  0x80   : > { %22545 = dma.hbm_to_vmem [thread:$0]  (!%p23357_p6), %s27058_s4, 16, %s260_s14, [#allocation11]  }
  0x81   : > { %s23274_s12 = smov [#allocation15]   ;;  %s23129_s18 = scalar_lea.hbm %s27060_s6, 16 }
  0x82   : > { %s283_s15 = sshll.u32 %s23274_s12, 4  ;;  %p23130_p13 = scmp.ne.s32.totalorder %s27060_s6, %s23129_s18  ;;  %s284_s15 = int_to_ptr.vmem [resolvable:$true] %s283_s15 }
  0x83   : > { %p23136_p3 = scmp.lt.u32.totalorder %s23129_s18, %s27060_s6 }
  0x84   : > { %p23132_p0 = pnand %p23130_p13, %p23373_p8 }
  0x86   : > { %p23133_p1 = pneg %p23132_p0 }
  0x88   : > { %p23138_p2 = pnand %p23136_p3, %p23133_p1 }
  0x8a   : > { %23141 = shalt.err (!%p23138_p2)
}
  0x8b   : > { %s23142_s14 = scalar_lea.vmem %s284_s15, 16  ;;  %s23149_s9 = scalar_lea.vmem %s284_s15, 32 }
  0x8c   : > { %p23143_p5 = scmp.ne.s32.totalorder %s284_s15, %s23142_s14  ;;  %p23150_p4 = scmp.lt.s32.totalorder %s284_s15, %s284_s15 }
  0x8d   : > { %p23151_p10 = scmp.lt.s32.totalorder %s23149_s9, %s23142_s14 }
  0x8e   : > { %p23145_p7 = pnand %p23143_p5, %p23373_p8 }
  0x8f   : > { %p23152_p11 = por %p23151_p10, %p23150_p4 }
  0x90   : > { %p23146_p9 = pneg %p23145_p7 }
  0x92   : > { %p23153_p12 = pnand %p23152_p11, %p23146_p9 }
  0x94   : > { %23156 = shalt.err (!%p23153_p12)
}
  0x95   : > { %22551 = dma.hbm_to_vmem [thread:$0]  (!%p23357_p6), %s27060_s6, 16, %s284_s15, [#allocation14]  }
  0x96   : > { %s18379_s19 = sadd.s32 4294967294, %s23265_s27   ;;  %s23505_s11 = sadd.s32 1, %s23265_s27  }
  0x97   : > { %s30_s12 = ssub.s32 %s23265_s27, %s23505_s11  ;;  %s33_s16 = sadd.s32 1, %s23261_s26 }
  0x98   : > { %p31_p8 = scmp.eq.s32.totalorder %s30_s12, 0  ;;  %p40_p13 = scmp.ne.s32.totalorder %s23261_s26, %s23257_s25 }
  0x99   : > { %p41_p0 = scmp.eq.s32.totalorder %s23265_s27, 0  ;;  %p46_p1 = scmp.ne.s32.totalorder %s23257_s25, %s23253_s24 }
  0x9a   : > { %s23516_s17 = scalar_select %p31_p8, %s23261_s26, %s33_s16  }
  0x9b   : > { %p42_p3 = por %p41_p0, %p40_p13  ;;  %p27081_p2 = scmp.eq.s32.totalorder %s23341_s30, 0 }
  0x9c   : > { %p196_p6 = scmp.eq.s32.totalorder %s23341_s30, 1  ;;  %p202_p7 = scmp.eq.s32.totalorder %s18379_s19, 1 }
  0x9d   : > { %p23520_p5 = por %p27081_p2, %p46_p1  ;;  %p22566_p9 = scmp.lt.s32.totalorder %s23265_s27, 2 }
  0x9e   : > { %s294_s15 = sand.u32 1, %s23261_s26   ;;  %p23527_p4 = por %p196_p6, %p40_p13 }
  0x9f   : > { %p23531_p10 = por %p202_p7, %p46_p1  ;;  %s22502_s21 = smul.u32 216, %s294_s15 }
  0xa0   : > { %s27083_s20 = scalar_select %p23527_p4, 1, 0 }
  0xa1   : > { %s27084_s10 = scalar_select %p23531_p10, 1, 0 }
  0xa2   : > { %s22503_s13 = smul.u32 3456, %s23265_s27  ;;  %p23536_p11 = pnand %p22566_p9, %p42_p3 }
  0xa3   : > { %s298_s19 = scalar_lea.vmem [#allocation4], %s22502_s21  ;;  %s23547_s16 = scalar_lea.sflag [#allocation5], %s294_s15 }
  0xa4   : > { %s23543_s22 = scalar_lea.hbm %s27054_s0, %s22503_s13  ;;  %s305_s12 = sshll.u32 %s298_s19, 4  ;;  %s23545_s12 = int_to_ptr.vmem [resolvable:$true] %s305_s12 }
  0xa5   : > { %s23157_s23 = scalar_lea.hbm %s23543_s22, 3456  ;;  %p23159_p8 = pneg %p23536_p11 }
  0xa6   : > { %p23158_p12 = scmp.ne.s32.totalorder %s23543_s22, %s23157_s23  ;;  %s23162_s29 = scalar_lea.hbm %s27054_s0, 6912 }
  0xa7   : > { %p23163_p1 = scmp.lt.u32.totalorder %s23543_s22, %s27054_s0  ;;  %p23164_p3 = scmp.lt.u32.totalorder %s23162_s29, %s23157_s23 }
  0xa8   : > { %p23160_p13 = pnand %p23159_p8, %p23158_p12  ;;  %p23166_p6 = scmp.lt.u32.totalorder %s23157_s23, %s23543_s22 }
  0xa9   : > { %p23165_p2 = por %p23164_p3, %p23163_p1 }
  0xaa   : > { %p23161_p0 = pneg %p23160_p13 }
  0xab   : > { %p23167_p7 = por %p23166_p6, %p23165_p2 }
  0xad   : > { %p23168_p9 = pnand %p23167_p7, %p23161_p0 }
  0xaf   : > { %23171 = shalt.err (!%p23168_p9)
}
  0xb0   : > { %s23172_s15 = scalar_lea.vmem %s23545_s12, 3456  ;;  %s23275_s21 = smov [#allocation4]  }
  0xb1   : > { %p23173_p12 = scmp.ne.s32.totalorder %s23545_s12, %s23172_s15  ;;  %s23177_s19 = sshll.u32 %s23275_s21, 4  ;;  %s23178_s19 = int_to_ptr.vmem [resolvable:$false] %s23177_s19 }
  0xb2   : > { %s23179_s1 = scalar_lea.vmem %s23178_s19, 6912  ;;  %p23180_p4 = scmp.lt.s32.totalorder %s23545_s12, %s23178_s19 }
  0xb3   : > { %p23175_p13 = pnand %p23173_p12, %p23159_p8  ;;  %p23181_p1 = scmp.lt.s32.totalorder %s23179_s1, %s23172_s15 }
  0xb5   : > { %p23176_p10 = pneg %p23175_p13  ;;  %p23182_p3 = por %p23181_p1, %p23180_p4 }
  0xb7   : > { %p23183_p2 = pnand %p23182_p3, %p23176_p10 }
  0xb9   : > { %23186 = shalt.err (!%p23183_p2)
}
  0xba   : > { %s27086_s23 = smov 4   ;;  %s27087_s28 = smov 64  }
  0xbb   : > { %22555 = dma.hbm_to_vmem [thread:$0]  (!%p23536_p11), %s23543_s22, 3456, %s23545_s12, %s23547_s16, %s27087_s28, %s27087_s28, %s27086_s23  }
  0xbc   : > { %p27088_p8 = scmp.ne.s32.totalorder %s27077_s8, 0 }
  0xbe   : > { %317 = sbr.rel (%p27088_p8) target bundleno = 1591 (0x637), region = 48 }
  0xc5   : > { %s23581_s13 = sand.u32 1, %s23257_s25  }
  0xc6   : > { %s22504_s9 = smul.u32 216, %s23581_s13  ;;  %s320_s29 = scalar_lea.sflag [#allocation5], %s23581_s13 }
  0xc8   : > { %s23585_s15 = scalar_lea.vmem [#allocation4], %s22504_s9 }
  0xc9   : > { %23232 = dma.done.wait (%p23520_p5), %s320_s29, 3456  }
  0xca   : > { %23234 = vsyncadd (%p23520_p5), %s320_s29, 4294963840  ;;  %p27089_p4 = scmp.eq.s32.totalorder %s23341_s30, 0 }
  0xcc   : > { %23236 = dma.done.wait (%p27089_p4), [#allocation8], 9232   ;;  %p27090_p10 = pmov %p27089_p4 }
  0xcd   : > { %p27091_p11 = pmov %p27089_p4 }
  0xce   : > { %23238 = vsyncadd (%p27090_p10), [#allocation8], 4294958064 }
  0xcf   : > { %23240 = dma.done.wait (%p27091_p11), [#allocation11], 9232   ;;  %p27092_p0 = pmov %p27089_p4 }
  0xd1   : > { %23242 = vsyncadd (%p27092_p0), [#allocation11], 4294958064  ;;  %p27093_p6 = pmov %p27092_p0 }
  0xd2   : > { %p27094_p7 = pmov %p27092_p0 }
  0xd3   : > { %23244 = dma.done.wait (%p27093_p6), [#allocation14], 9232  }
  0xd4   : > { %23246 = vsyncadd (%p27094_p7), [#allocation14], 4294958064  ;;  %v22617_v0 = vld [vmem:[#allocation7] sm:$0xff]   ;;  %v22619_v2 = vld [vmem:[#allocation7 + $0x8] sm:$0xff]   ;;  %vm962_vm0 = vsmask.f32 3328 }
  0xd5   : > { %v22618_v1 = vld [vmem:[#allocation7 + $0x100] sm:$0xff]   ;;  %20422 = vmatprep.subr.bf16.mxu1 %v22617_v0  ;;  %v22620_v3 = vld [vmem:[#allocation7 + $0x108] sm:$0xff]   ;;  %v22621_v4 = vld [vmem:[#allocation7 + $0x10] sm:$0xff]   ;;  %vm963_vm1 = vsmask.f32 7440  ;;  %vm1831_vm3 = vcmask 1042432  }
  0xd6   : > { %20614 = vmatprep.subr.bf16.mxu0 %v22618_v1  ;;  %20423 = vmatpush3.bf16.msra.mxu1 %v22617_v0  ;;  %v22622_v5 = vld [vmem:[#allocation7 + $0x110] sm:$0xff]   ;;  %v22623_v6 = vld [vmem:[#allocation7 + $0x18] sm:$0xff]   ;;  %v22625_v8 = vld [vmem:[#allocation7 + $0x20] sm:$0xff]   ;;  %vm1832_vm4 = vcmask 1046532   ;;  %vm6581_vm6 = vcmask 1043456   ;;  %vm6588_vm10 = vcmask 1040384  }
  0xd7   : > { %20615 = vmatpush3.bf16.msra.mxu0 %v22618_v1  ;;  %20424 = vmatprep.subr.bf16.mxu1 %v22619_v2  ;;  %v22624_v7 = vld [vmem:[#allocation7 + $0x118] sm:$0xff]   ;;  %v22626_v9 = vld [vmem:[#allocation7 + $0x120] sm:$0xff]   ;;  %v22627_v10 = vld [vmem:[#allocation7 + $0x28] sm:$0xff]   ;;  %vm6582_vm7 = vsmask.f32 7938  ;;  %s18396_s8 = sshll.u32 %s23581_s13, 8 }
  0xd8   : > { %20616 = vmatprep.subr.bf16.mxu0 %v22620_v3  ;;  %v22628_v11 = vld [vmem:[#allocation7 + $0x128] sm:$0xff]   ;;  %v18541_v13 = vld [vmem:[%s23585_s15 + $0xc] sm:$0xf]  ;;  %v18542_v14 = vld [vmem:[%s23585_s15 + $0x10] sm:$0xf]  ;;  %s26885_s18 = scalar_lea.vmem [#allocation16], %s18396_s8 }
  0xd9   : > { %v22633_v12 = vld [vmem:[%s23585_s15] sm:$0xff]   ;;  %v18543_v15 = vld [vmem:[%s23585_s15 + $0x14] sm:$0x1]  ;;  %v2832_v16 = vshrl.u32 %v18541_v13, 16  ;;  %v2835_v17 = vshll.u32 %v18541_v13, 16  ;;  %v2841_v18 = vshll.u32 %v18542_v14, 16  ;;  %vm23612_vm2 = vmor %vm962_vm0, %vm963_vm1 }
  0xda   : > { %20425 = vmatpush3.bf16.msra.mxu1 %v22619_v2  ;;  %20438 = vmatprep.mubr.bf16.mxu1 %v22633_v12  ;;  %v2845_v19 = vshrl.u32 %v18542_v14, 16  ;;  %v22629_v20 = vld [vmem:[#allocation7 + $0x30] sm:$0xff]   ;;  %v2851_v21 = vshll.u32 %v18543_v15, 16  ;;  %v18544_v28 = vld [vmem:[%s23585_s15 + $0x18] sm:$0xf]  ;;  %v22631_v35 = vld [vmem:[#allocation7 + $0x38] sm:$0xff]  }
  0xdb   : > { %20617 = vmatpush3.bf16.msra.mxu0 %v22620_v3  ;;  %20426 = vmatprep.subr.bf16.mxu1 %v22621_v4  ;;  %v2834_v22 = vrot.slane %v2832_v16, 4  ;;  %v2837_v23 = vrot.slane %v2835_v17, 5  ;;  %v2843_v24 = vrot.slane %v2841_v18, 5  ;;  %v22630_v26 = vld [vmem:[#allocation7 + $0x130] sm:$0xff]   ;;  %v18545_v29 = vld [vmem:[%s23585_s15 + $0x1c] sm:$0xf]  ;;  %vm23669_vm5 = vmor %vm1831_vm3, %vm1832_vm4 }
  0xdc   : > { %20618 = vmatprep.subr.bf16.mxu0 %v22622_v5  ;;  %v2847_v25 = vrot.slane %v2845_v19, 4  ;;  %v2853_v27 = vrot.slane %v2851_v21, 5  ;;  %v18546_v32 = vld [vmem:[%s23585_s15 + $0x20] sm:$0x1]  ;;  %v2856_v33 = vshrl.u32 %v18544_v28, 16  ;;  %v2859_v34 = vshll.u32 %v18544_v28, 16  ;;  %vm25342_vm11 = vmand %vm6581_vm6, %vm6582_vm7 }
  0xdd   : > { %v2838_v30 = vor.u32 %v2837_v23, %v2834_v22  ;;  %v2865_v37 = vshll.u32 %v18545_v29, 16  ;;  %v2869_v38 = vshrl.u32 %v18545_v29, 16  ;;  %v2875_v39 = vshll.u32 %v18546_v32, 16  ;;  %v22632_v44 = vld [vmem:[#allocation7 + $0x138] sm:$0xff]   ;;  %v22635_v49 = vld [vmem:[#allocation7 + $0x40] sm:$0xff]   ;;  %v22640_v19 = vld [vmem:[#allocation7 + $0x48] sm:$0xff]  }
  0xde   : > { %20427 = vmatpush3.bf16.msra.mxu1 %v22621_v4  ;;  %v2848_v31 = vor.u32 %v2847_v25, %v2843_v24  ;;  %v2858_v42 = vrot.slane %v2856_v33, 4  ;;  %v2861_v43 = vrot.slane %v2859_v34, 5  ;;  %v18547_v54 = vld [vmem:[%s23585_s15 + $0x24] sm:$0xf]  ;;  %v18548_v55 = vld [vmem:[%s23585_s15 + $0x28] sm:$0xf] }
  0xdf   : > { %20619 = vmatpush3.bf16.msra.mxu0 %v22622_v5  ;;  %20428 = vmatprep.subr.bf16.mxu1 %v22623_v6  ;;  %v2839_v40 = vrot.slane %v2838_v30, 4  ;;  %v2867_v45 = vrot.slane %v2865_v37, 5  ;;  %v2871_v46 = vrot.slane %v2869_v38, 4  ;;  %v2877_v51 = vrot.slane %v2875_v39, 5  ;;  %v18549_v56 = vld [vmem:[%s23585_s15 + $0x2c] sm:$0x1] }
  0xe0   : > { %20620 = vmatprep.subr.bf16.mxu0 %v22624_v7  ;;  %v2849_v41 = vrot.slane %v2848_v31, 4  ;;  %v2862_v50 = vor.u32 %v2861_v43, %v2858_v42  ;;  %v22634_v57 = vld [vmem:[%s23585_s15 + $0xc] sm:$0xff]   ;;  %v2880_v59 = vshrl.u32 %v18547_v54, 16  ;;  %v2883_v60 = vshll.u32 %v18547_v54, 16  ;;  %v22638_v3 = vld [vmem:[%s23585_s15 + $0x18] sm:$0xff]   ;;  %v22639_v30 = vld [vmem:[%s23585_s15 + $0x24] sm:$0xff]  }
  0xe1   : > { %v2844_v47 = vsel %vm23612_vm2, %v2839_v40, %v2843_v24  ;;  %v2872_v53 = vor.u32 %v2871_v46, %v2867_v45  ;;  %v2889_v61 = vshll.u32 %v18548_v55, 16  ;;  %v22636_v63 = vld [vmem:[#allocation7 + $0x140] sm:$0xff]   ;;  %v2893_v0 = vshrl.u32 %v18548_v55, 16  ;;  %v18554_v38 = vld [vmem:[%s23585_s15 + $0x40] sm:$0xf]  ;;  %s19773_s14 = sshll.u32 %s23341_s30, 12 }
  0xe2   : > { %20429 = vmatpush3.bf16.msra.mxu1 %v22623_v6  ;;  %v2854_v48 = vsel %vm23612_vm2, %v2849_v41, %v2853_v27  ;;  %v2863_v58 = vrot.slane %v2862_v50, 4  ;;  %v2899_v1 = vshll.u32 %v18549_v56, 16  ;;  %v2882_v4 = vrot.slane %v2880_v59, 4  ;;  %v18551_v14 = vld [vmem:[%s23585_s15 + $0x34] sm:$0xf]  ;;  %s18249_s22 = sshll.u32 %s26885_s18, 4  ;;  %s27005_s21 = scalar_lea.hbm %s27061_s7, %s19773_s14  ;;  %s27007_s22 = int_to_ptr.vmem [resolvable:$true] %s18249_s22 }
  0xe3   : > { %20621 = vmatpush3.bf16.msra.mxu0 %v22624_v7  ;;  %20430 = vmatprep.subr.bf16.mxu1 %v22625_v8  ;;  %v18589_v52 = vcombine.low %v2844_v47, %v2854_v48  ;;  %v2873_v62 = vrot.slane %v2872_v53, 4  ;;  %v2885_v5 = vrot.slane %v2883_v60, 5  ;;  %v2891_v6 = vrot.slane %v2889_v61, 5  ;;  %v18552_v15 = vld [vmem:[%s23585_s15 + $0x38] sm:$0x1]  ;;  %v22643_v41 = vld [vmem:[%s23585_s15 + $0x30] sm:$0xff]  }
  0xe4   : > { %20622 = vmatprep.subr.bf16.mxu0 %v22626_v9  ;;  %v2868_v2 = vsel %vm23612_vm2, %v2863_v58, %v2867_v45  ;;  %v2917_v21 = vshrl.u32 %v18551_v14, 16  ;;  %v2923_v22 = vshll.u32 %v18552_v15, 16  ;;  %v18553_v37 = vld [vmem:[%s23585_s15 + $0x3c] sm:$0xf]  ;;  %v18555_v42 = vld [vmem:[%s23585_s15 + $0x44] sm:$0x1] }
  0xe5   : > { %20630 = vmatprep.mubr.bf16.mxu0 %v18589_v52  ;;  %v2878_v7 = vsel %vm23612_vm2, %v2873_v62, %v2877_v51  ;;  %v2886_v13 = vor.u32 %v2885_v5, %v2882_v4  ;;  %v2928_v43 = vshrl.u32 %v18553_v37, 16  ;;  %v2937_v46 = vshll.u32 %v18554_v38, 16  ;;  %v22642_v50 = vld [vmem:[#allocation7 + $0x158] sm:$0xff]   ;;  %v22644_v4 = vld [vmem:[%s23585_s15 + $0x3c] sm:$0xff]   ;;  %s18236_s30 = scalar_lea.sflag [#allocation6], %s23581_s13  ;;  %s23187_s19 = scalar_lea.vmem %s27007_s22, 4096 }
  0xe6   : > { %20431 = vmatpush3.bf16.msra.mxu1 %v22625_v8  ;;  %v22637_v8 = vld [vmem:[#allocation7 + $0x148] sm:$0xff]   ;;  %v18590_v12 = vcombine.low %v2868_v2, %v2878_v7  ;;  %v2919_v28 = vrot.slane %v2917_v21, 4  ;;  %v2925_v34 = vrot.slane %v2923_v22, 5  ;;  %v2941_v47 = vshrl.u32 %v18554_v38, 16  ;;  %v18556_v60 = vld [vmem:[%s23585_s15 + $0x48] sm:$0xf]  ;;  %p23188_p5 = scmp.ne.s32.totalorder %s27007_s22, %s23187_s19 }
  0xe7   : > { %20623 = vmatpush3.bf16.msra.mxu0 %v22626_v9  ;;  %20432 = vmatprep.subr.bf16.mxu1 %v22627_v10  ;;  %v2895_v9 = vrot.slane %v2893_v0, 4  ;;  %v2887_v23 = vrot.slane %v2886_v13, 4  ;;  %v2947_v48 = vshll.u32 %v18555_v42, 16  ;;  %v2930_v51 = vrot.slane %v2928_v43, 4  ;;  %v18557_v61 = vld [vmem:[%s23585_s15 + $0x4c] sm:$0xf] }
  0xe8   : > { %20624 = vmatprep.subr.bf16.mxu0 %v22628_v11  ;;  %v2939_v54 = vrot.slane %v2937_v46, 5  ;;  %v2943_v55 = vrot.slane %v2941_v47, 4  ;;  %v18558_v62 = vld [vmem:[%s23585_s15 + $0x50] sm:$0x1]  ;;  %v2952_v0 = vshrl.u32 %v18556_v60, 16  ;;  %v2961_v2 = vshll.u32 %v18557_v61, 16 }
  0xe9   : > { %v2896_v18 = vor.u32 %v2895_v9, %v2891_v6  ;;  %v2892_v29 = vsel %vm23612_vm2, %v2887_v23, %v2891_v6  ;;  %v2949_v56 = vrot.slane %v2947_v48, 5  ;;  %v2965_v5 = vshrl.u32 %v18557_v61, 16  ;;  %v22646_v13 = vld [vmem:[#allocation7 + $0x160] sm:$0xff]   ;;  %v22650_v38 = vld [vmem:[#allocation7 + $0x58] sm:$0xff]   ;;  %v18562_v42 = vld [vmem:[%s23585_s15 + $0x60] sm:$0xf] }
  0xea   : > { %20433 = vmatpush3.bf16.msra.mxu1 %v22627_v10  ;;  %v2901_v10 = vrot.slane %v2899_v1, 5  ;;  %v2955_v1 = vshll.u32 %v18556_v60, 16  ;;  %v2971_v6 = vshll.u32 %v18558_v62, 16  ;;  %v18560_v21 = vld [vmem:[%s23585_s15 + $0x58] sm:$0xf]  ;;  %v3000_v47 = vshrl.u32 %v18562_v42, 16 }
  0xeb   : > { %20625 = vmatpush3.bf16.msra.mxu0 %v22628_v11  ;;  %20434 = vmatprep.subr.bf16.mxu1 %v22629_v20  ;;  %v18550_v11 = vld [vmem:[%s23585_s15 + $0x30] sm:$0xf]  ;;  %v18561_v22 = vld [vmem:[%s23585_s15 + $0x5c] sm:$0x1]  ;;  %v18563_v43 = vld [vmem:[%s23585_s15 + $0x64] sm:$0xf] }
  0xec   : > { %20626 = vmatprep.subr.bf16.mxu0 %v22630_v26  ;;  %v2904_v16 = vshrl.u32 %v18550_v11, 16  ;;  %v2907_v17 = vshll.u32 %v18550_v11, 16  ;;  %v2957_v9 = vrot.slane %v2955_v1, 5  ;;  %v18564_v46 = vld [vmem:[%s23585_s15 + $0x68] sm:$0x1]  ;;  %v3003_v48 = vshll.u32 %v18562_v42, 16 }
  0xed   : > { %v22652_v60 = vld [vmem:[#allocation7 + $0x178] sm:$0xff]   ;;  %v22653_v1 = vld [vmem:[%s23585_s15 + $0x60] sm:$0xff]   ;;  %vm6257_vm8 = vsmask.f32 256  ;;  %vm6258_vm9 = vsmask.f32 4368 }
  0xee   : > { %20435 = vmatpush3.bf16.msra.mxu1 %v22629_v20  ;;  %v2913_v20 = vshll.u32 %v18551_v14, 16  ;;  %v2906_v24 = vrot.slane %v2904_v16, 4  ;;  %v2909_v25 = vrot.slane %v2907_v17, 5  ;;  %v2973_v16 = vrot.slane %v2971_v6, 5  ;;  %v22648_v17 = vld [vmem:[%s23585_s15 + $0x48] sm:$0xff]   ;;  %vm25352_vm12 = vmor %vm6257_vm8, %vm6258_vm9  ;;  %p27162_p9 = scmp.ne.s32.totalorder %s27083_s20, 0 }
  0xef   : > { %20627 = vmatpush3.bf16.msra.mxu0 %v22630_v26  ;;  %20436 = vmatprep.subr.bf16.mxu1 %v22631_v35  ;;  %v2897_v26 = vrot.slane %v2896_v18, 4  ;;  %v18559_v18 = vld [vmem:[%s23585_s15 + $0x54] sm:$0xf]  ;;  %v18622_v42 = vld [vmem:[%s23585_s15 + $0x30] sm:$0xe]  ;;  %vm25361_vm13 = vmand %vm6588_vm10, %vm6257_vm8  ;;  %s23277_s1 = smov [#allocation16]  }
  0xf0   : > { %20628 = vmatprep.subr.bf16.mxu0 %v22632_v44  ;;  %v2915_v27 = vrot.slane %v2913_v20, 5  ;;  %v2910_v31 = vor.u32 %v2909_v25, %v2906_v24  ;;  %v2976_v23 = vshrl.u32 %v18559_v18, 16  ;;  %v2979_v24 = vshll.u32 %v18559_v18, 16  ;;  %v18615_v6 = vld [vmem:[%s23585_s15 + $0x14] sm:$0x1]  ;;  %p23189_p12 = pnand %p23188_p5, %p27162_p9  ;;  %s23191_s23 = sshll.u32 %s23277_s1, 4  ;;  %s23192_s23 = int_to_ptr.vmem [resolvable:$false] %s23191_s23 }
  0xf1   : > { %v2902_v32 = vsel %vm23612_vm2, %v2897_v26, %v2901_v10  ;;  %v2963_v10 = vrot.slane %v2961_v2, 5  ;;  %v2985_v26 = vshll.u32 %v18560_v21, 16  ;;  %s23193_s28 = scalar_lea.vmem %s23192_s23, 8192  ;;  %p23194_p1 = scmp.lt.s32.totalorder %s27007_s22, %s23192_s23 }
  0xf2   : > { %20437 = vmatpush3.bf16.msra.mxu1 %v22631_v35  ;;  %v2920_v33 = vor.u32 %v2919_v28, %v2915_v27  ;;  %v22641_v35 = vld [vmem:[#allocation7 + $0x150] sm:$0xff]   ;;  %v18591_v39 = vcombine.low %v2892_v29, %v2902_v32  ;;  %v2911_v40 = vrot.slane %v2910_v31, 4  ;;  %v2995_v28 = vshll.u32 %v18561_v22, 16  ;;  %v22656_v22 = vld [vmem:[#allocation7 + $0x180] sm:$0xff]   ;;  %p23190_p13 = pneg %p23189_p12  ;;  %p23195_p3 = scmp.lt.s32.totalorder %s23193_s28, %s23187_s19 }
  0xf3   : > { %20629 = vmatpush3.bf16.msra.mxu0 %v22632_v44  ;;  %20470 = vmatprep.subr.bf16.mxu1 %v22635_v49  ;;  %v2931_v44 = vshll.u32 %v18553_v37, 16  ;;  %v2978_v31 = vrot.slane %v2976_v23, 4  ;;  %v2981_v32 = vrot.slane %v2979_v24, 5 }
  0xf4   : > { %20662 = vmatprep.subr.bf16.mxu0 %v22636_v63  ;;  %v2921_v45 = vrot.slane %v2920_v33, 4  ;;  %v2997_v37 = vrot.slane %v2995_v28, 5  ;;  %v22657_v28 = vld [vmem:[%s23585_s15 + $0x78] sm:$0xff]   ;;  %p23196_p2 = por %p23195_p3, %p23194_p1 }
  0xf5   : > { %20439 = vmatmul.mubr.bf16.vlgmr.msra.gmra.mrb[0].mxu1 %v22634_v57  ;;  %v2933_v52 = vrot.slane %v2931_v44, 5  ;;  %v22645_v57 = vld [vmem:[#allocation7 + $0x50] sm:$0xff]  }
  0xf6   : > { %20631 = vmatmul.mubr.bf16.vlgmr.msra.gmra.mrb[0].mxu0 %v18590_v12  ;;  %20471 = vmatpush3.bf16.msra.mxu1 %v22635_v49  ;;  %v2916_v49 = vsel %vm23612_vm2, %v2911_v40, %v2915_v27  ;;  %v2926_v53 = vsel %vm23612_vm2, %v2921_v45, %v2925_v34  ;;  %v2967_v12 = vrot.slane %v2965_v5, 4  ;;  %v2989_v27 = vshrl.u32 %v18560_v21, 16  ;;  %v18614_v5 = vld [vmem:[%s23585_s15 + $0x10] sm:$0xf]  ;;  %p23197_p8 = pnand %p23196_p2, %p23190_p13 }
  0xf7   : > { %20663 = vmatpush3.bf16.msra.mxu0 %v22636_v63  ;;  %20442 = vmatprep.mubr.bf16.mxu1 %v22638_v3  ;;  %v18592_v58 = vcombine.low %v2916_v49, %v2926_v53  ;;  %v2934_v59 = vor.u32 %v2933_v52, %v2930_v51  ;;  %v2944_v63 = vor.u32 %v2943_v55, %v2939_v54  ;;  %v2987_v34 = vrot.slane %v2985_v26, 5 }
  0xf8   : > { %20664 = vmatprep.subr.bf16.mxu0 %v22637_v8  ;;  %20472 = vmatprep.subr.bf16.mxu1 %v22640_v19  ;;  %v2968_v20 = vor.u32 %v2967_v12, %v2963_v10  ;;  %v2982_v40 = vor.u32 %v2981_v32, %v2978_v31  ;;  %v3013_v51 = vshrl.u32 %v18563_v43, 16  ;;  %v3019_v52 = vshll.u32 %v18564_v46, 16  ;;  %v18620_v31 = vld [vmem:[%s23585_s15 + $0x28] sm:$0xf]  ;;  %v18624_v46 = vld [vmem:[%s23585_s15 + $0x38] sm:$0x1] }
  0xf9   : > { %20634 = vmatprep.mubr.bf16.mxu0 %v18591_v39  ;;  %v2935_v3 = vrot.slane %v2934_v59, 4  ;;  %v2945_v7 = vrot.slane %v2944_v63, 4  ;;  %v3005_v55 = vrot.slane %v3003_v48, 5  ;;  %v22660_v48 = vld [vmem:[#allocation7 + $0x188] sm:$0xff]  }
  0xfa   : > { %20473 = vmatpush3.bf16.msra.mxu1 %v22640_v19  ;;  %v2969_v29 = vrot.slane %v2968_v20, 4  ;;  %v2983_v49 = vrot.slane %v2982_v40, 4  ;;  %v3015_v59 = vrot.slane %v3013_v51, 4  ;;  %v18618_v20 = vld [vmem:[%s23585_s15 + $0x20] sm:$0x1]  ;;  %v3723_v51 = vrot.slane %v18624_v46, 5 }
  0xfb   : > { %20665 = vmatpush3.bf16.msra.mxu0 %v22637_v8  ;;  %20474 = vmatprep.subr.bf16.mxu1 %v22645_v57  ;;  %v2954_v8 = vrot.slane %v2952_v0, 4  ;;  %v2940_v11 = vsel %vm23612_vm2, %v2935_v3, %v2939_v54  ;;  %v2950_v14 = vsel %vm23612_vm2, %v2945_v7, %v2949_v56  ;;  %v3002_v54 = vrot.slane %v3000_v47, 4  ;;  %v22651_v56 = vld [vmem:[#allocation7 + $0x170] sm:$0xff]  }
  0xfc   : > { %20666 = vmatprep.subr.bf16.mxu0 %v22641_v35  ;;  %v18593_v19 = vcombine.low %v2940_v11, %v2950_v14  ;;  %v2974_v39 = vsel %vm23612_vm2, %v2969_v29, %v2973_v16  ;;  %v3021_v0 = vrot.slane %v3019_v52, 5  ;;  %v22655_v16 = vld [vmem:[#allocation7 + $0x60] sm:$0xff]   ;;  %v3709_v26 = vrot.slane %v18618_v20, 5 }
  0xfd   : > { %20443 = vmatmul.mubr.bf16.gmra.mrb[4].mxu1 %v22639_v30  ;;  %v2958_v15 = vor.u32 %v2957_v9, %v2954_v8  ;;  %v22647_v30 = vld [vmem:[#allocation7 + $0x168] sm:$0xff]   ;;  %v3006_v63 = vor.u32 %v3005_v55, %v3002_v54  ;;  %v3699_v9 = vrot.slane %v18614_v5, 5  ;;  %v18664_v47 = vrot.slane %v18622_v42, 9  ;;  %v22661_v52 = vld [vmem:[%s23585_s15 + $0x90] sm:$0xff]  }
  0xfe   : > { %20446 = vmatprep.mubr.bf16.mxu1 %v22643_v41  ;;  %20635 = vmatmul.mubr.bf16.gmra.mrb[4].mxu0 %v18592_v58  ;;  %v22649_v41 = vld [vmem:[%s23585_s15 + $0x54] sm:$0xff]   ;;  %v18625_v54 = vld [vmem:[%s23585_s15 + $0x3c] sm:$0xe]  ;;  %v18630_v5 = vld [vmem:[%s23585_s15 + $0x50] sm:$0x1] }
  0xff   : > { %20475 = vmatpush3.bf16.msra.mxu1 %v22645_v57  ;;  %20667 = vmatpush3.bf16.msra.mxu0 %v22641_v35  ;;  %v2959_v25 = vrot.slane %v2958_v15, 4  ;;  %v2991_v35 = vrot.slane %v2989_v27, 4  ;;  %v2988_v57 = vsel %vm23612_vm2, %v2983_v49, %v2987_v34  ;;  %v3007_v7 = vrot.slane %v3006_v63, 4  ;;  %v22654_v15 = vld [vmem:[%s23585_s15 + $0x6c] sm:$0xff]   ;;  %v915_v42 = vld [vmem:[%s23585_s15 + $0x4] sm:$0xf] }
 0x100   : > { %20668 = vmatprep.subr.bf16.mxu0 %v22642_v50  ;;  %20638 = vmatprep.mubr.bf16.mxu0 %v18593_v19  ;;  %v3701_v14 = vrot.slane %v3699_v9, 4  ;;  %v18617_v19 = vld [vmem:[%s23585_s15 + $0x1c] sm:$0xf]  ;;  %v975_v46 = vshll.u32 %v915_v42, 16 }
 0x101   : > { %v2964_v33 = vsel %vm23612_vm2, %v2959_v25, %v2963_v10  ;;  %v2992_v45 = vor.u32 %v2991_v35, %v2987_v34  ;;  %20476 = vmatprep.subr.bf16.mxu1 %v22650_v38  ;;  %v3702_v10 = vrot.slane %v18615_v6, 5  ;;  %v3706_v25 = vrot.slane %v18617_v19, 5 }
 0x102   : > { %v18594_v44 = vcombine.low %v2964_v33, %v2974_v39  ;;  %v18621_v33 = vld [vmem:[%s23585_s15 + $0x2c] sm:$0x1]  ;;  %v3713_v35 = vrot.slane %v18620_v31, 5  ;;  %v22659_v39 = vld [vmem:[#allocation7 + $0x68] sm:$0xff]  }
 0x103   : > { %20669 = vmatpush3.bf16.msra.mxu0 %v22642_v50  ;;  %v3009_v50 = vshll.u32 %v18563_v43, 16  ;;  %20477 = vmatpush3.bf16.msra.mxu1 %v22650_v38  ;;  %v2993_v53 = vrot.slane %v2992_v45, 4  ;;  %v3703_v24 = vsel %vm23669_vm5, %v3701_v14, %v3702_v10  ;;  %v3708_v29 = vrot.slane %v3706_v25, 4  ;;  %v18623_v45 = vld [vmem:[%s23585_s15 + $0x34] sm:$0xf] }
 0x104   : > { %20670 = vmatprep.subr.bf16.mxu0 %v22646_v13  ;;  %20478 = vmatprep.subr.bf16.mxu1 %v22655_v16  ;;  %v3716_v38 = vrot.slane %v18621_v33, 5  ;;  %v3737_v14 = vrot.slane %v18630_v5, 5  ;;  %v919_v5 = vld [vmem:[%s23585_s15 + $0x14] sm:$0x1] }
 0x105   : > { %20447 = vmatmul.mubr.bf16.gmra.mrb[8].mxu1 %v22644_v4  ;;  %v3011_v58 = vrot.slane %v3009_v50, 5  ;;  %v2998_v62 = vsel %vm23612_vm2, %v2993_v53, %v2997_v37  ;;  %v18613_v4 = vld [vmem:[%s23585_s15 + $0xc] sm:$0xe]  ;;  %v3710_v37 = vsel %vm23669_vm5, %v3708_v29, %v3709_v26  ;;  %v3720_v50 = vrot.slane %v18623_v45, 5 }
 0x106   : > { %20450 = vmatprep.mubr.bf16.mxu1 %v22648_v17  ;;  %20639 = vmatmul.mubr.bf16.gmra.mrb[8].mxu0 %v18594_v44  ;;  %v18595_v2 = vcombine.low %v2988_v57, %v2998_v62  ;;  %v18661_v8 = vrot.slane %v18613_v4, 9  ;;  %v18616_v17 = vld [vmem:[%s23585_s15 + $0x18] sm:$0xe]  ;;  %v22658_v44 = vld [vmem:[%s23585_s15 + $0x84] sm:$0xff]   ;;  %v18629_v4 = vld [vmem:[%s23585_s15 + $0x4c] sm:$0xf] }
 0x107   : > { %20671 = vmatpush3.bf16.msra.mxu0 %v22646_v13  ;;  %v3016_v3 = vor.u32 %v3015_v59, %v3011_v58  ;;  %v3012_v12 = vsel %vm23612_vm2, %v3007_v7, %v3011_v58  ;;  %v18662_v21 = vrot.slane %v18616_v17, 9  ;;  %20479 = vmatpush3.bf16.msra.mxu1 %v22655_v16  ;;  %v3722_v55 = vrot.slane %v3720_v50, 4  ;;  %v18627_v57 = vld [vmem:[%s23585_s15 + $0x44] sm:$0x1]  ;;  %v22665_v16 = vld [vmem:[%s23585_s15 + $0xa8] sm:$0xff]  }
 0x108   : > { %20672 = vmatprep.subr.bf16.mxu0 %v22647_v30  ;;  %20642 = vmatprep.mubr.bf16.mxu0 %v18595_v2  ;;  %v3700_v13 = vsel %vm23669_vm5, %v18661_v8, %v3699_v9  ;;  %v18665_v58 = vrot.slane %v18625_v54, 9  ;;  %v3721_v62 = vsel %vm23669_vm5, %v18664_v47, %v3720_v50  ;;  %v22663_v2 = vld [vmem:[#allocation7 + $0x70] sm:$0xff]   ;;  %v3734_v6 = vrot.slane %v18629_v4, 5  ;;  %v18632_v17 = vld [vmem:[%s23585_s15 + $0x58] sm:$0xf]  ;;  %v22668_v29 = vld [vmem:[#allocation7 + $0x198] sm:$0xff]  }
 0x109   : > { %v3017_v11 = vrot.slane %v3016_v3, 4  ;;  %v18677_v27 = vcombine.low %v3700_v13, %v3703_v24  ;;  %v3707_v32 = vsel %vm23669_vm5, %v18662_v21, %v3706_v25  ;;  %20480 = vmatprep.subr.bf16.mxu1 %v22659_v39  ;;  %v3724_v63 = vsel %vm23669_vm5, %v3722_v55, %v3723_v51  ;;  %v18628_v3 = vld [vmem:[%s23585_s15 + $0x48] sm:$0xe]  ;;  %v22662_v9 = vld [vmem:[%s23585_s15 + $0x9c] sm:$0xff]  }
 0x10a   : > { %v18678_v43 = vcombine.low %v3707_v32, %v3710_v37  ;;  %v18680_v7 = vcombine.low %v3721_v62, %v3724_v63  ;;  %v18666_v10 = vrot.slane %v18628_v3, 9  ;;  %v3736_v13 = vrot.slane %v3734_v6, 4  ;;  %v23739_v37 = vld [vmem:[#allocation7 + $0x80] sm:$0xff]  }
 0x10b   : > { %20673 = vmatpush3.bf16.msra.mxu0 %v22647_v30  ;;  %v3022_v18 = vsel %vm23612_vm2, %v3017_v11, %v3021_v0  ;;  %v18619_v30 = vld [vmem:[%s23585_s15 + $0x24] sm:$0xe]  ;;  %20481 = vmatpush3.bf16.msra.mxu1 %v22659_v39  ;;  %v3741_v20 = vrot.slane %v18632_v17, 5  ;;  %v979_v47 = vshrl.u32 %v915_v42, 16 }
 0x10c   : > { %20674 = vmatprep.subr.bf16.mxu0 %v22651_v56  ;;  %v18596_v23 = vcombine.low %v3012_v12, %v3022_v18  ;;  %v18663_v34 = vrot.slane %v18619_v30, 9  ;;  %20482 = vmatprep.subr.bf16.mxu1 %v22663_v2  ;;  %v22664_v11 = vld [vmem:[#allocation7 + $0x190] sm:$0xff]   ;;  %v18633_v18 = vld [vmem:[%s23585_s15 + $0x5c] sm:$0x1]  ;;  %v3738_v24 = vsel %vm23669_vm5, %v3736_v13, %v3737_v14 }
 0x10d   : > { %20451 = vmatmul.mubr.bf16.gmra.mrb[12].mxu1 %v22649_v41  ;;  %v3715_v41 = vrot.slane %v3713_v35, 4  ;;  %v3744_v21 = vrot.slane %v18633_v18, 5  ;;  %v3743_v26 = vrot.slane %v3741_v20, 4  ;;  %v18636_v30 = vld [vmem:[%s23585_s15 + $0x68] sm:$0x1] }
 0x10e   : > { %20454 = vmatprep.mubr.bf16.mxu1 %v22653_v1  ;;  %20643 = vmatmul.mubr.bf16.gmra.mrb[12].mxu0 %v18596_v23  ;;  %v3714_v40 = vsel %vm23669_vm5, %v18663_v34, %v3713_v35  ;;  %v3735_v23 = vsel %vm23669_vm5, %v18666_v10, %v3734_v6  ;;  %v3751_v34 = vrot.slane %v18636_v30, 5  ;;  %v914_v35 = vld [vmem:[%s23585_s15] sm:$0xf] }
 0x10f   : > { %20675 = vmatpush3.bf16.msra.mxu0 %v22651_v56  ;;  %20678 = vmatprep.mubr.bf16.mxu0 %v18677_v27  ;;  %v3717_v49 = vsel %vm23669_vm5, %v3715_v41, %v3716_v38  ;;  %v18626_v56 = vld [vmem:[%s23585_s15 + $0x40] sm:$0xf]  ;;  %v3745_v33 = vsel %vm23669_vm5, %v3743_v26, %v3744_v21  ;;  %v18682_v38 = vcombine.low %v3735_v23, %v3738_v24  ;;  %v969_v45 = vshll.u32 %v914_v35, 16  ;;  %v18641_v21 = vld [vmem:[%s23585_s15 + $0x7c] sm:$0xf] }
 0x110   : > { %20676 = vmatprep.subr.bf16.mxu0 %v22652_v60  ;;  %v18679_v53 = vcombine.low %v3714_v40, %v3717_v49  ;;  %v3727_v59 = vrot.slane %v18626_v56, 5  ;;  %20483 = vmatpush3.bf16.msra.mxu1 %v22663_v2  ;;  %v18634_v27 = vld [vmem:[%s23585_s15 + $0x60] sm:$0xe]  ;;  %v22666_v40 = vld [vmem:[%s23585_s15 + $0xb4] sm:$0xff]   ;;  %v18637_v49 = vld [vmem:[%s23585_s15 + $0x6c] sm:$0xe] }
 0x111   : > { %v18668_v31 = vrot.slane %v18634_v27, 9  ;;  %v18669_v54 = vrot.slane %v18637_v49, 9  ;;  %v971_v56 = vrot.slane %v969_v45, 5  ;;  %v920_v27 = vld [vmem:[%s23585_s15 + $0x18] sm:$0xf] }
 0x112   : > { %v3728_v0 = vsel %vm23669_vm5, %v18665_v58, %v3727_v59  ;;  %v3729_v1 = vrot.slane %v3727_v59, 4  ;;  %v981_v58 = vrot.slane %v979_v47, 4  ;;  %v917_v59 = vld [vmem:[%s23585_s15 + $0xc] sm:$0xf]  ;;  %v18644_v49 = vld [vmem:[%s23585_s15 + $0x88] sm:$0xf] }
 0x113   : > { %20677 = vmatpush3.bf16.msra.mxu0 %v22652_v60  ;;  %v3730_v60 = vrot.slane %v18627_v57, 5  ;;  %v977_v57 = vrot.slane %v975_v46, 5  ;;  %v990_v2 = vshrl.u32 %v917_v59, 16  ;;  %v993_v6 = vshll.u32 %v917_v59, 16 }
 0x114   : > { %20710 = vmatprep.subr.bf16.mxu0 %v22656_v22 }
 0x115   : > { %20455 = vmatmul.mubr.bf16.gmra.mrb[16].mxu1 %v22654_v15  ;;  %v3731_v8 = vsel %vm23669_vm5, %v3729_v1, %v3730_v60  ;;  %v18631_v15 = vld [vmem:[%s23585_s15 + $0x54] sm:$0xe]  ;;  %v918_v1 = vld [vmem:[%s23585_s15 + $0x10] sm:$0xf]  ;;  %v982_v4 = vor.u32 %v981_v58, %v977_v57  ;;  %v992_v10 = vrot.slane %v990_v2, 4  ;;  %v995_v14 = vrot.slane %v993_v6, 5 }
 0x116   : > { %20458 = vmatprep.mubr.bf16.mxu1 %v22657_v28  ;;  %20679 = vmatmul.mubr.bf16.vlgmr.msra.gmra.mrb[0].mxu0 %v18678_v43  ;;  %v18681_v12 = vcombine.low %v3728_v0, %v3731_v8  ;;  %v18667_v19 = vrot.slane %v18631_v15, 9  ;;  %v18635_v28 = vld [vmem:[%s23585_s15 + $0x64] sm:$0xf]  ;;  %v916_v43 = vld [vmem:[%s23585_s15 + $0x8] sm:$0x1]  ;;  %v22670_v60 = vld [vmem:[#allocation7 + $0x1a0] sm:$0xff]  }
 0x117   : > { %20711 = vmatpush3.bf16.msra.mxu0 %v22656_v22  ;;  %20682 = vmatprep.mubr.bf16.mxu0 %v18679_v53  ;;  %v22667_v22 = vld [vmem:[#allocation7 + $0x78] sm:$0xff]   ;;  %v3748_v32 = vrot.slane %v18635_v28, 5  ;;  %v983_v13 = vrot.slane %v982_v4, 4  ;;  %v996_v26 = vor.u32 %v995_v14, %v992_v10 }
 0x118   : > { %20712 = vmatprep.subr.bf16.mxu0 %v22660_v48  ;;  %v3742_v25 = vsel %vm23669_vm5, %v18667_v19, %v3741_v20  ;;  %20484 = vmatprep.subr.bf16.mxu1 %v22667_v22  ;;  %v18639_v53 = vld [vmem:[%s23585_s15 + $0x74] sm:$0x1]  ;;  %v1009_v20 = vshll.u32 %v919_v5, 16  ;;  %v925_v4 = vld [vmem:[%s23585_s15 + $0x2c] sm:$0x1] }
 0x119   : > { %v18683_v39 = vcombine.low %v3742_v25, %v3745_v33  ;;  %v3750_v41 = vrot.slane %v3748_v32, 4  ;;  %20485 = vmatpush3.bf16.msra.mxu1 %v22667_v22  ;;  %v3749_v50 = vsel %vm23669_vm5, %v18668_v31, %v3748_v32  ;;  %v3758_v0 = vrot.slane %v18639_v53, 5  ;;  %v18642_v22 = vld [vmem:[%s23585_s15 + $0x80] sm:$0x1]  ;;  %v921_v32 = vld [vmem:[%s23585_s15 + $0x1c] sm:$0xf] }
 0x11a   : > { %20518 = vmatprep.subr.bf16.mxu1 %v23739_v37  ;;  %v1011_v30 = vrot.slane %v1009_v20, 5  ;;  %v997_v33 = vrot.slane %v996_v26, 4  ;;  %v1023_v42 = vshll.u32 %v921_v32, 16  ;;  %v18647_v10 = vld [vmem:[%s23585_s15 + $0x94] sm:$0xf] }
 0x11b   : > { %20713 = vmatpush3.bf16.msra.mxu0 %v22660_v48  ;;  %v985_v48 = vshll.u32 %v916_v43, 16  ;;  %v3752_v55 = vsel %vm23669_vm5, %v3750_v41, %v3751_v34  ;;  %v3762_v34 = vrot.slane %v18641_v21, 5  ;;  %v1017_v41 = vshll.u32 %v920_v27, 16 }
 0x11c   : > { %20714 = vmatprep.subr.bf16.mxu0 %v22664_v11  ;;  %v18684_v17 = vcombine.low %v3749_v50, %v3752_v55  ;;  %v1027_v43 = vshrl.u32 %v921_v32, 16  ;;  %v18645_v50 = vld [vmem:[%s23585_s15 + $0x8c] sm:$0x1] }
 0x11d   : > { %20459 = vmatmul.mubr.bf16.gmra.mrb[20].mxu1 %v22658_v44  ;;  %v966_v44 = vshrl.u32 %v914_v35, 16  ;;  %v987_v62 = vrot.slane %v985_v48, 5  ;;  %v3765_v35 = vrot.slane %v18642_v22, 5  ;;  %v3764_v47 = vrot.slane %v3762_v34, 4  ;;  %v22676_v32 = vld [vmem:[#allocation7 + $0x1b8] sm:$0xff]  }
 0x11e   : > { %20462 = vmatprep.mubr.bf16.mxu1 %v22661_v52  ;;  %20683 = vmatmul.mubr.bf16.gmra.mrb[4].mxu0 %v18680_v7  ;;  %v18638_v52 = vld [vmem:[%s23585_s15 + $0x70] sm:$0xf]  ;;  %v999_v7 = vshll.u32 %v918_v1, 16  ;;  %v1019_v53 = vrot.slane %v1017_v41, 5  ;;  %v1029_v55 = vrot.slane %v1027_v43, 4  ;;  %v3772_v6 = vrot.slane %v18645_v50, 5 }
 0x11f   : > { %20686 = vmatprep.mubr.bf16.mxu0 %v18681_v12  ;;  %20715 = vmatpush3.bf16.msra.mxu0 %v22664_v11  ;;  %v968_v51 = vrot.slane %v966_v44, 4  ;;  %v3755_v63 = vrot.slane %v18638_v52, 5  ;;  %v1003_v11 = vshrl.u32 %v918_v1, 16  ;;  %v988_v24 = vsel %vm23612_vm2, %v983_v13, %v987_v62  ;;  %v18643_v44 = vld [vmem:[%s23585_s15 + $0x84] sm:$0xe] }
 0x120   : > { %20716 = vmatprep.subr.bf16.mxu0 %v22668_v29  ;;  %v1001_v15 = vrot.slane %v999_v7, 5  ;;  %v3766_v59 = vsel %vm23669_vm5, %v3764_v47, %v3765_v35  ;;  %v18671_v62 = vrot.slane %v18643_v44, 9  ;;  %v18649_v44 = vld [vmem:[%s23585_s15 + $0x9c] sm:$0xe]  ;;  %v18651_v50 = vld [vmem:[%s23585_s15 + $0xa4] sm:$0x1] }
 0x121   : > { %v972_v3 = vor.u32 %v971_v56, %v968_v51  ;;  %v3756_v8 = vsel %vm23669_vm5, %v18669_v54, %v3755_v63  ;;  %v1005_v19 = vrot.slane %v1003_v11, 4  ;;  %v22671_v51 = vld [vmem:[#allocation7 + $0x88] sm:$0xff]   ;;  %v1025_v54 = vrot.slane %v1023_v42, 5 }
 0x122   : > { %v1002_v45 = vsel %vm23612_vm2, %v997_v33, %v1001_v15  ;;  %v923_v56 = vld [vmem:[%s23585_s15 + $0x24] sm:$0xf] }
 0x123   : > { %20717 = vmatpush3.bf16.msra.mxu0 %v22668_v29  ;;  %v973_v12 = vrot.slane %v972_v3, 4  ;;  %v1006_v29 = vor.u32 %v1005_v19, %v1001_v15  ;;  %v1030_v2 = vor.u32 %v1029_v55, %v1025_v54  ;;  %v3769_v3 = vrot.slane %v18644_v49, 5  ;;  %v18648_v15 = vld [vmem:[%s23585_s15 + $0x98] sm:$0x1]  ;;  %v18650_v49 = vld [vmem:[%s23585_s15 + $0xa0] sm:$0xf] }
 0x124   : > { %20718 = vmatprep.subr.bf16.mxu0 %v22670_v60  ;;  %v1038_v7 = vshrl.u32 %v923_v56, 16  ;;  %v3779_v41 = vrot.slane %v18648_v15, 5  ;;  %v929_v55 = vld [vmem:[%s23585_s15 + $0x3c] sm:$0xf] }
 0x125   : > { %20463 = vmatmul.mubr.bf16.gmra.mrb[24].mxu1 %v22662_v9  ;;  %v3757_v9 = vrot.slane %v3755_v63, 4  ;;  %v978_v23 = vsel %vm23612_vm2, %v973_v12, %v977_v57  ;;  %v22672_v57 = vld [vmem:[#allocation7 + $0x1a8] sm:$0xff]   ;;  %v924_v63 = vld [vmem:[%s23585_s15 + $0x28] sm:$0xf]  ;;  %v1031_v12 = vrot.slane %v1030_v2, 4  ;;  %v3770_v13 = vsel %vm23669_vm5, %v18671_v62, %v3769_v3  ;;  %v22678_v62 = vld [vmem:[#allocation7 + $0xa0] sm:$0xff]  }
 0x126   : > { %20466 = vmatprep.mubr.bf16.mxu1 %v22665_v16  ;;  %20687 = vmatmul.mubr.bf16.gmra.mrb[8].mxu0 %v18682_v38  ;;  %v18640_v16 = vld [vmem:[%s23585_s15 + $0x78] sm:$0xe]  ;;  %v18421_v28 = vcombine.low %v978_v23, %v988_v24  ;;  %v922_v38 = vld [vmem:[%s23585_s15 + $0x20] sm:$0x1]  ;;  %v3771_v14 = vrot.slane %v3769_v3, 4  ;;  %v1047_v19 = vshll.u32 %v924_v63, 16 }
 0x127   : > { %20690 = vmatprep.mubr.bf16.mxu0 %v18683_v39  ;;  %20719 = vmatpush3.bf16.msra.mxu0 %v22670_v60  ;;  %v3759_v18 = vsel %vm23669_vm5, %v3757_v9, %v3758_v0  ;;  %v18670_v31 = vrot.slane %v18640_v16, 9  ;;  %v1014_v39 = vshrl.u32 %v920_v27, 16  ;;  %v1033_v60 = vshll.u32 %v922_v38, 16  ;;  %v18646_v9 = vld [vmem:[%s23585_s15 + $0x90] sm:$0xe]  ;;  %v22674_v16 = vld [vmem:[#allocation7 + $0x1b0] sm:$0xff]  }
 0x128   : > { %v18685_v25 = vcombine.low %v3756_v8, %v3759_v18  ;;  %20720 = vmatprep.subr.bf16.mxu0 %v22672_v57  ;;  %v1041_v8 = vshll.u32 %v923_v56, 16  ;;  %v1051_v20 = vshrl.u32 %v924_v63, 16  ;;  %v3773_v22 = vsel %vm23669_vm5, %v3771_v14, %v3772_v6  ;;  %v926_v24 = vld [vmem:[%s23585_s15 + $0x30] sm:$0xf] }
 0x129   : > { %v3763_v46 = vsel %vm23669_vm5, %v18670_v31, %v3762_v34  ;;  %v1016_v48 = vrot.slane %v1014_v39, 4  ;;  %v1035_v5 = vrot.slane %v1033_v60, 5  ;;  %v1057_v23 = vshll.u32 %v925_v4, 16  ;;  %v22675_v31 = vld [vmem:[#allocation7 + $0x98] sm:$0xff]   ;;  %v928_v39 = vld [vmem:[%s23585_s15 + $0x38] sm:$0x1] }
 0x12a   : > { %v18686_v0 = vcombine.low %v3763_v46, %v3766_v59  ;;  %v1043_v18 = vrot.slane %v1041_v8, 5  ;;  %v18687_v27 = vcombine.low %v3770_v13, %v3773_v22  ;;  %v1053_v33 = vrot.slane %v1051_v20, 4  ;;  %v930_v60 = vld [vmem:[%s23585_s15 + $0x40] sm:$0xf]  ;;  %v18653_v13 = vld [vmem:[%s23585_s15 + $0xac] sm:$0xf] }
 0x12b   : > { %v1020_v1 = vor.u32 %v1019_v53, %v1016_v48  ;;  %20721 = vmatpush3.bf16.msra.mxu0 %v22672_v57  ;;  %v1059_v34 = vrot.slane %v1057_v23, 5  ;;  %v18672_v35 = vrot.slane %v18646_v9, 9  ;;  %v3776_v38 = vrot.slane %v18647_v10, 5 }
 0x12c   : > { %20722 = vmatprep.subr.bf16.mxu0 %v22674_v16  ;;  %v1062_v42 = vshrl.u32 %v926_v24, 16  ;;  %v1065_v43 = vshll.u32 %v926_v24, 16  ;;  %v1081_v59 = vshll.u32 %v928_v39, 16  ;;  %v18673_v2 = vrot.slane %v18649_v44, 9 }
 0x12d   : > { %20467 = vmatmul.mubr.bf16.gmra.mrb[28].mxu1 %v22666_v40  ;;  %v1007_v40 = vrot.slane %v1006_v29, 4  ;;  %v1021_v11 = vrot.slane %v1020_v1, 4  ;;  %v1049_v29 = vrot.slane %v1047_v19, 5  ;;  %v3777_v46 = vsel %vm23669_vm5, %v18672_v35, %v3776_v38  ;;  %v23817_v19 = vld [vmem:[#allocation7 + $0x1c0] sm:$0xff]  }
 0x12e   : > { %20691 = vmatmul.mubr.bf16.gmra.mrb[12].mxu0 %v18684_v17  ;;  %20486 = vmatprep.mubr.bf16.mxu1 %v18421_v28  ;;  %v1040_v17 = vrot.slane %v1038_v7, 4  ;;  %v3778_v47 = vrot.slane %v3776_v38, 4  ;;  %v1067_v53 = vrot.slane %v1065_v43, 5  ;;  %v1083_v4 = vrot.slane %v1081_v59, 5  ;;  %v931_v7 = vld [vmem:[%s23585_s15 + $0x44] sm:$0x1] }
 0x12f   : > { %20694 = vmatprep.mubr.bf16.mxu0 %v18685_v25  ;;  %v1012_v52 = vsel %vm23612_vm2, %v1007_v40, %v1011_v30  ;;  %v1026_v21 = vsel %vm23612_vm2, %v1021_v11, %v1025_v54  ;;  %v22673_v25 = vld [vmem:[#allocation7 + $0x90] sm:$0xff]   ;;  %v927_v30 = vld [vmem:[%s23585_s15 + $0x34] sm:$0xf]  ;;  %20723 = vmatpush3.bf16.msra.mxu0 %v22674_v16  ;;  %v3786_v6 = vrot.slane %v18651_v50, 5  ;;  %v1086_v11 = vshrl.u32 %v929_v55, 16 }
 0x130   : > { %v18422_v58 = vcombine.low %v1002_v45, %v1012_v52  ;;  %v1044_v28 = vor.u32 %v1043_v18, %v1040_v17  ;;  %v1054_v45 = vor.u32 %v1053_v33, %v1049_v29  ;;  %v1071_v48 = vshll.u32 %v927_v30, 16  ;;  %20724 = vmatprep.subr.bf16.mxu0 %v22676_v32  ;;  %v18654_v18 = vld [vmem:[%s23585_s15 + $0xb0] sm:$0x1]  ;;  %v933_v33 = vld [vmem:[%s23585_s15 + $0x4c] sm:$0xf] }
 0x131   : > { %v1064_v52 = vrot.slane %v1062_v42, 4  ;;  %v1075_v54 = vshrl.u32 %v927_v30, 16  ;;  %v3780_v57 = vsel %vm23669_vm5, %v3778_v47, %v3779_v41  ;;  %v1089_v16 = vshll.u32 %v929_v55, 16 }
 0x132   : > { %v1045_v40 = vrot.slane %v1044_v28, 4  ;;  %v1055_v56 = vrot.slane %v1054_v45, 4  ;;  %v18688_v63 = vcombine.low %v3777_v46, %v3780_v57  ;;  %v1095_v17 = vshll.u32 %v930_v60, 16  ;;  %v22682_v28 = vld [vmem:[#allocation7 + $0xa8] sm:$0xff]   ;;  %v18655_v45 = vld [vmem:[%s23585_s15 + $0xb4] sm:$0xe] }
 0x133   : > { %20725 = vmatpush3.bf16.msra.mxu0 %v22676_v32  ;;  %v1077_v1 = vrot.slane %v1075_v54, 4  ;;  %v1099_v22 = vshrl.u32 %v930_v60, 16  ;;  %v1091_v24 = vrot.slane %v1089_v16, 5  ;;  %v3790_v39 = vrot.slane %v18653_v13, 5  ;;  %v18656_v46 = vld [vmem:[%s23585_s15 + $0xb8] sm:$0xf] }
 0x134   : > { %v1060_v3 = vsel %vm23612_vm2, %v1055_v56, %v1059_v34  ;;  %20758 = vmatprep.subr.bf16.mxu0 %v23817_v19  ;;  %v3793_v42 = vrot.slane %v18654_v18, 5  ;;  %v1119_v50 = vshll.u32 %v933_v33, 16  ;;  %v1123_v55 = vshrl.u32 %v933_v33, 16  ;;  %v935_v56 = vld [vmem:[%s23585_s15 + $0x54] sm:$0xf] }
 0x135   : > { %20487 = vmatmul.mubr.bf16.vlgmr.msra.gmra.mrb[0].mxu1 %v18422_v58  ;;  %v1073_v58 = vrot.slane %v1071_v48, 5  ;;  %v1134_v13 = vshrl.u32 %v935_v56, 16 }
 0x136   : > { %20519 = vmatpush3.bf16.msra.mxu1 %v23739_v37  ;;  %20695 = vmatmul.mubr.bf16.gmra.mrb[16].mxu0 %v18686_v0  ;;  %v1036_v37 = vsel %vm23612_vm2, %v1031_v12, %v1035_v5  ;;  %v1068_v0 = vor.u32 %v1067_v53, %v1064_v52  ;;  %v3783_v5 = vrot.slane %v18650_v49, 5  ;;  %v18652_v12 = vld [vmem:[%s23585_s15 + $0xa8] sm:$0xe]  ;;  %v3792_v49 = vrot.slane %v3790_v39, 4 }
 0x137   : > { %20520 = vmatprep.subr.bf16.mxu1 %v22671_v51  ;;  %v18423_v26 = vcombine.low %v1026_v21, %v1036_v37  ;;  %20698 = vmatprep.mubr.bf16.mxu0 %v18687_v27  ;;  %v1078_v10 = vor.u32 %v1077_v1, %v1073_v58  ;;  %v1088_v37 = vrot.slane %v1086_v11, 4  ;;  %v932_v27 = vld [vmem:[%s23585_s15 + $0x48] sm:$0xf]  ;;  %v18674_v32 = vrot.slane %v18652_v12, 9 }
 0x138   : > { %v1069_v9 = vrot.slane %v1068_v0, 4  ;;  %v3784_v14 = vsel %vm23669_vm5, %v18673_v2, %v3783_v5  ;;  %v3785_v15 = vrot.slane %v3783_v5, 4  ;;  %v1110_v43 = vshrl.u32 %v932_v27, 16 }
 0x139   : > { %20490 = vmatprep.mubr.bf16.mxu1 %v18423_v26  ;;  %v1079_v21 = vrot.slane %v1078_v10, 4  ;;  %v1105_v26 = vshll.u32 %v931_v7, 16  ;;  %v1092_v35 = vor.u32 %v1091_v24, %v1088_v37  ;;  %v1113_v44 = vshll.u32 %v932_v27, 16 }
 0x13a   : > { %20521 = vmatpush3.bf16.msra.mxu1 %v22671_v51  ;;  %v1050_v51 = vsel %vm23612_vm2, %v1045_v40, %v1049_v29  ;;  %v1074_v20 = vsel %vm23612_vm2, %v1069_v9, %v1073_v58  ;;  %v3787_v23 = vsel %vm23669_vm5, %v3785_v15, %v3786_v6  ;;  %v934_v40 = vld [vmem:[%s23585_s15 + $0x50] sm:$0x1]  ;;  %v3791_v48 = vsel %vm23669_vm5, %v18674_v32, %v3790_v39  ;;  %v22686_v9 = vld [vmem:[#allocation7 + $0xb0] sm:$0xff]  }
 0x13b   : > { %20522 = vmatprep.subr.bf16.mxu1 %v22673_v25  ;;  %v18424_v8 = vcombine.low %v1050_v51, %v1060_v3  ;;  %v1084_v29 = vsel %vm23612_vm2, %v1079_v21, %v1083_v4  ;;  %v18689_v30 = vcombine.low %v3784_v14, %v3787_v23  ;;  %v1107_v38 = vrot.slane %v1105_v26, 5  ;;  %v18657_v51 = vld [vmem:[%s23585_s15 + $0xbc] sm:$0x1]  ;;  %v18659_v14 = vld [vmem:[%s23585_s15 + $0xc4] sm:$0xf] }
 0x13c   : > { %v18425_v34 = vcombine.low %v1074_v20, %v1084_v29  ;;  %v1093_v47 = vrot.slane %v1092_v35, 4  ;;  %v1112_v53 = vrot.slane %v1110_v43, 4  ;;  %v1115_v54 = vrot.slane %v1113_v44, 5  ;;  %v937_v3 = vld [vmem:[%s23585_s15 + $0x5c] sm:$0x1]  ;;  %v22690_v29 = vld [vmem:[#allocation7 + $0xb8] sm:$0xff]  }
 0x13d   : > { %20491 = vmatmul.mubr.bf16.gmra.mrb[4].mxu1 %v18424_v8  ;;  %v3794_v58 = vsel %vm23669_vm5, %v3792_v49, %v3793_v42  ;;  %v1121_v59 = vrot.slane %v1119_v50, 5  ;;  %v1129_v60 = vshll.u32 %v934_v40, 16  ;;  %v1125_v2 = vrot.slane %v1123_v55, 4  ;;  %v18658_v8 = vld [vmem:[%s23585_s15 + $0xc0] sm:$0xe] }
 0x13e   : > { %20523 = vmatpush3.bf16.msra.mxu1 %v22673_v25  ;;  %20699 = vmatmul.mubr.bf16.gmra.mrb[20].mxu0 %v18688_v63  ;;  %v1097_v25 = vrot.slane %v1095_v17, 5  ;;  %v18690_v0 = vcombine.low %v3791_v48, %v3794_v58  ;;  %v1116_v1 = vor.u32 %v1115_v54, %v1112_v53  ;;  %v18675_v6 = vrot.slane %v18655_v45, 9  ;;  %v18660_v20 = vld [vmem:[%s23585_s15 + $0xc8] sm:$0x1] }
 0x13f   : > { %20524 = vmatprep.subr.bf16.mxu1 %v22675_v31  ;;  %20702 = vmatprep.mubr.bf16.mxu0 %v18689_v30  ;;  %v1131_v5 = vrot.slane %v1129_v60, 5  ;;  %v3797_v7 = vrot.slane %v18656_v46, 5  ;;  %v1126_v11 = vor.u32 %v1125_v2, %v1121_v59  ;;  %v3800_v12 = vrot.slane %v18657_v51, 5  ;;  %v940_v35 = vld [vmem:[%s23585_s15 + $0x68] sm:$0x1]  ;;  %v22677_v51 = vld [vmem:[%s23585_s15 + $0x18] sm:$0xff]  }
 0x140   : > { %20494 = vmatprep.mubr.bf16.mxu1 %v18425_v34  ;;  %v1098_v57 = vsel %vm23612_vm2, %v1093_v47, %v1097_v25  ;;  %v1117_v10 = vrot.slane %v1116_v1, 4  ;;  %v1137_v17 = vshll.u32 %v935_v56, 16  ;;  %v1153_v27 = vshll.u32 %v937_v3, 16  ;;  %v939_v34 = vld [vmem:[%s23585_s15 + $0x64] sm:$0xf] }
 0x141   : > { %v3798_v15 = vsel %vm23669_vm5, %v18675_v6, %v3797_v7  ;;  %v3799_v16 = vrot.slane %v3797_v7, 4  ;;  %v1127_v37 = vrot.slane %v1126_v11, 4  ;;  %v18676_v33 = vrot.slane %v18658_v8, 9  ;;  %v941_v46 = vld [vmem:[%s23585_s15 + $0x6c] sm:$0xf]  ;;  %v23869_v7 = vld [vmem:[#allocation7 + $0xc0] sm:$0xff]  }
 0x142   : > { %20525 = vmatpush3.bf16.msra.mxu1 %v22675_v31  ;;  %v1101_v31 = vrot.slane %v1099_v22, 4  ;;  %v1122_v21 = vsel %vm23612_vm2, %v1117_v10, %v1121_v59  ;;  %v1136_v22 = vrot.slane %v1134_v13, 4  ;;  %v1155_v40 = vrot.slane %v1153_v27, 5  ;;  %v22681_v27 = vld [vmem:[%s23585_s15 + $0x30] sm:$0xff]  }
 0x143   : > { %20526 = vmatprep.subr.bf16.mxu1 %v22678_v62  ;;  %v3801_v24 = vsel %vm23669_vm5, %v3799_v16, %v3800_v12  ;;  %v1132_v30 = vsel %vm23612_vm2, %v1127_v37, %v1131_v5  ;;  %v3807_v43 = vrot.slane %v18660_v20, 5  ;;  %v1167_v50 = vshll.u32 %v939_v34, 16  ;;  %v945_v37 = vld [vmem:[%s23585_s15 + $0x7c] sm:$0xf] }
 0x144   : > { %v1102_v41 = vor.u32 %v1101_v31, %v1097_v25  ;;  %v1139_v25 = vrot.slane %v1137_v17, 5  ;;  %v18691_v31 = vcombine.low %v3798_v15, %v3801_v24  ;;  %v1171_v56 = vshrl.u32 %v939_v34, 16  ;;  %v944_v15 = vld [vmem:[%s23585_s15 + $0x78] sm:$0xf]  ;;  %v946_v24 = vld [vmem:[%s23585_s15 + $0x80] sm:$0x1] }
 0x145   : > { %v1169_v60 = vrot.slane %v1167_v50, 5  ;;  %v1182_v5 = vshrl.u32 %v941_v46, 16  ;;  %v1185_v6 = vshll.u32 %v941_v46, 16 }
 0x146   : > { %20527 = vmatpush3.bf16.msra.mxu1 %v22678_v62  ;;  %v1103_v52 = vrot.slane %v1102_v41, 4  ;;  %v936_v62 = vld [vmem:[%s23585_s15 + $0x58] sm:$0xf]  ;;  %20703 = vmatmul.mubr.bf16.gmra.mrb[24].mxu0 %v18690_v0  ;;  %v1140_v39 = vor.u32 %v1139_v25, %v1136_v22  ;;  %v3804_v41 = vrot.slane %v18659_v14, 5  ;;  %v1173_v2 = vrot.slane %v1171_v56, 4 }
 0x147   : > { %20528 = vmatprep.subr.bf16.mxu1 %v22682_v28  ;;  %v1143_v18 = vshll.u32 %v936_v62, 16  ;;  %v1147_v23 = vshrl.u32 %v936_v62, 16  ;;  %20706 = vmatprep.mubr.bf16.mxu0 %v18691_v31  ;;  %v1177_v62 = vshll.u32 %v940_v35, 16  ;;  %v1184_v12 = vrot.slane %v1182_v5, 4 }
 0x148   : > { %v1108_v63 = vsel %vm23612_vm2, %v1103_v52, %v1107_v38  ;;  %v18427_v38 = vcombine.low %v1122_v21, %v1132_v30  ;;  %v1141_v47 = vrot.slane %v1140_v39, 4  ;;  %v3805_v48 = vsel %vm23669_vm5, %v18676_v33, %v3804_v41  ;;  %v942_v52 = vld [vmem:[%s23585_s15 + $0x70] sm:$0xf]  ;;  %v22679_v21 = vld [vmem:[%s23585_s15 + $0x24] sm:$0xff]  }
 0x149   : > { %v18426_v4 = vcombine.low %v1098_v57, %v1108_v63  ;;  %v1145_v26 = vrot.slane %v1143_v18, 5  ;;  %v1149_v32 = vrot.slane %v1147_v23, 4  ;;  %v3806_v49 = vrot.slane %v3804_v41, 4  ;;  %v943_v57 = vld [vmem:[%s23585_s15 + $0x74] sm:$0x1]  ;;  %v22684_v39 = vld [vmem:[#allocation7 + $0x1c8] sm:$0xff]  }
 0x14a   : > { %20529 = vmatpush3.bf16.msra.mxu1 %v22682_v28  ;;  %v938_v28 = vld [vmem:[%s23585_s15 + $0x60] sm:$0xf]  ;;  %v1191_v10 = vshll.u32 %v942_v52, 16  ;;  %v1195_v11 = vshrl.u32 %v942_v52, 16  ;;  %v1187_v13 = vrot.slane %v1185_v6, 5  ;;  %v1201_v14 = vshll.u32 %v943_v57, 16 }
 0x14b   : > { %20495 = vmatmul.mubr.bf16.gmra.mrb[8].mxu1 %v18426_v4  ;;  %20530 = vmatprep.subr.bf16.mxu1 %v22686_v9  ;;  %v1150_v42 = vor.u32 %v1149_v32, %v1145_v26  ;;  %v1158_v44 = vshrl.u32 %v938_v28, 16  ;;  %v1161_v45 = vshll.u32 %v938_v28, 16  ;;  %v1146_v58 = vsel %vm23612_vm2, %v1141_v47, %v1145_v26  ;;  %v949_v47 = vld [vmem:[%s23585_s15 + $0x8c] sm:$0x1]  ;;  %v22683_v6 = vld [vmem:[%s23585_s15 + $0x3c] sm:$0xff]  }
 0x14c   : > { %20498 = vmatprep.mubr.bf16.mxu1 %v18427_v38  ;;  %v3808_v59 = vsel %vm23669_vm5, %v3806_v49, %v3807_v43  ;;  %v1179_v4 = vrot.slane %v1177_v62, 5  ;;  %v1193_v18 = vrot.slane %v1191_v10, 5  ;;  %v1197_v20 = vrot.slane %v1195_v11, 4  ;;  %v947_v38 = vld [vmem:[%s23585_s15 + $0x84] sm:$0xf] }
 0x14d   : > { %v1151_v53 = vrot.slane %v1150_v42, 4  ;;  %v1160_v54 = vrot.slane %v1158_v44, 4  ;;  %v1163_v55 = vrot.slane %v1161_v45, 5  ;;  %v18692_v0 = vcombine.low %v3805_v48, %v3808_v59  ;;  %v948_v44 = vld [vmem:[%s23585_s15 + $0x88] sm:$0xf] }
 0x14e   : > { %20531 = vmatpush3.bf16.msra.mxu1 %v22686_v9  ;;  %v1174_v9 = vor.u32 %v1173_v2, %v1169_v60  ;;  %v1188_v22 = vor.u32 %v1187_v13, %v1184_v12  ;;  %v1203_v23 = vrot.slane %v1201_v14, 5  ;;  %v1206_v25 = vshrl.u32 %v944_v15, 16  ;;  %v950_v2 = vld [vmem:[%s23585_s15 + $0x90] sm:$0xf]  ;;  %v22685_v14 = vld [vmem:[%s23585_s15 + $0x48] sm:$0xff]  }
 0x14f   : > { %20532 = vmatprep.subr.bf16.mxu1 %v22690_v29  ;;  %v1156_v63 = vsel %vm23612_vm2, %v1151_v53, %v1155_v40  ;;  %v1164_v1 = vor.u32 %v1163_v55, %v1160_v54  ;;  %20707 = vmatmul.mubr.bf16.gmra.mrb[28].mxu0 %v18692_v0  ;;  %v1209_v26 = vshll.u32 %v944_v15, 16  ;;  %v1215_v30 = vshll.u32 %v945_v37, 16 }
 0x150   : > { %v18428_v3 = vcombine.low %v1146_v58, %v1156_v63  ;;  %20726 = vmatprep.mubr.bf16.mxu0 %v22677_v51  ;;  %v1175_v17 = vrot.slane %v1174_v9, 4  ;;  %v1219_v31 = vshrl.u32 %v945_v37, 16  ;;  %v1189_v33 = vrot.slane %v1188_v22, 4  ;;  %v22688_v58 = vld [vmem:[#allocation7 + $0x1d0] sm:$0xff]  }
 0x151   : > { %v1165_v8 = vrot.slane %v1164_v1, 4  ;;  %v1208_v34 = vrot.slane %v1206_v25, 4  ;;  %v1211_v35 = vrot.slane %v1209_v26, 5  ;;  %v1217_v41 = vrot.slane %v1215_v30, 5 }
 0x152   : > { %20533 = vmatpush3.bf16.msra.mxu1 %v22690_v29  ;;  %v1180_v28 = vsel %vm23612_vm2, %v1175_v17, %v1179_v4  ;;  %v1198_v29 = vor.u32 %v1197_v20, %v1193_v18  ;;  %v1221_v42 = vrot.slane %v1219_v31, 4  ;;  %v1225_v43 = vshll.u32 %v946_v24, 16  ;;  %v22692_v20 = vld [vmem:[#allocation7 + $0x1d8] sm:$0xff]   ;;  %v954_v24 = vld [vmem:[%s23585_s15 + $0xa0] sm:$0xf] }
 0x153   : > { %20499 = vmatmul.mubr.bf16.gmra.mrb[12].mxu1 %v18428_v3  ;;  %v1170_v16 = vsel %vm23612_vm2, %v1165_v8, %v1169_v60  ;;  %20566 = vmatprep.subr.bf16.mxu1 %v23869_v7  ;;  %v1194_v45 = vsel %vm23612_vm2, %v1189_v33, %v1193_v18  ;;  %v1212_v46 = vor.u32 %v1211_v35, %v1208_v34  ;;  %v1230_v48 = vshrl.u32 %v947_v38, 16  ;;  %v952_v8 = vld [vmem:[%s23585_s15 + $0x98] sm:$0x1] }
 0x154   : > { %v18429_v32 = vcombine.low %v1170_v16, %v1180_v28  ;;  %v1199_v40 = vrot.slane %v1198_v29, 4  ;;  %v1233_v49 = vshll.u32 %v947_v38, 16  ;;  %v1222_v51 = vor.u32 %v1221_v42, %v1217_v41  ;;  %v955_v28 = vld [vmem:[%s23585_s15 + $0xa4] sm:$0x1]  ;;  %v22696_v34 = vld [vmem:[#allocation7 + $0x1e0] sm:$0xff]  }
 0x155   : > { %v1227_v52 = vrot.slane %v1225_v43, 5  ;;  %v1239_v53 = vshll.u32 %v948_v44, 16  ;;  %v1213_v55 = vrot.slane %v1212_v46, 4  ;;  %v1232_v56 = vrot.slane %v1230_v48, 4 }
 0x156   : > { %20502 = vmatprep.mubr.bf16.mxu1 %v18429_v32  ;;  %v1204_v50 = vsel %vm23612_vm2, %v1199_v40, %v1203_v23  ;;  %v1235_v57 = vrot.slane %v1233_v49, 5  ;;  %v1223_v59 = vrot.slane %v1222_v51, 4  ;;  %v1243_v62 = vshrl.u32 %v948_v44, 16  ;;  %v953_v23 = vld [vmem:[%s23585_s15 + $0x9c] sm:$0xf]  ;;  %v22689_v49 = vld [vmem:[%s23585_s15 + $0x60] sm:$0xff]  }
 0x157   : > { %20727 = vmatmul.mubr.bf16.vlgmr.msra.gmra.mrb[0].mxu0 %v22679_v21  ;;  %v18430_v54 = vcombine.low %v1194_v45, %v1204_v50  ;;  %v1241_v60 = vrot.slane %v1239_v53, 5  ;;  %v1249_v63 = vshll.u32 %v949_v47, 16  ;;  %v1218_v0 = vsel %vm23612_vm2, %v1213_v55, %v1217_v41  ;;  %v22687_v45 = vld [vmem:[%s23585_s15 + $0x54] sm:$0xff]   ;;  %v957_v53 = vld [vmem:[%s23585_s15 + $0xac] sm:$0xf] }
 0x158   : > { %20759 = vmatpush3.bf16.msra.mxu0 %v23817_v19  ;;  %20730 = vmatprep.mubr.bf16.mxu0 %v22681_v27  ;;  %v1236_v1 = vor.u32 %v1235_v57, %v1232_v56  ;;  %v951_v19 = vld [vmem:[%s23585_s15 + $0x94] sm:$0xf]  ;;  %v1228_v3 = vsel %vm23612_vm2, %v1223_v59, %v1227_v52  ;;  %v1245_v4 = vrot.slane %v1243_v62, 4  ;;  %v1254_v9 = vshrl.u32 %v950_v2, 16  ;;  %v956_v52 = vld [vmem:[%s23585_s15 + $0xa8] sm:$0xf] }
 0x159   : > { %20760 = vmatprep.subr.bf16.mxu0 %v22684_v39  ;;  %v1251_v5 = vrot.slane %v1249_v63, 5  ;;  %v18431_v10 = vcombine.low %v1218_v0, %v1228_v3  ;;  %v1257_v12 = vshll.u32 %v950_v2, 16  ;;  %v1263_v13 = vshll.u32 %v951_v19, 16  ;;  %v958_v56 = vld [vmem:[%s23585_s15 + $0xb0] sm:$0x1]  ;;  %v22700_v0 = vld [vmem:[#allocation7 + $0x1e8] sm:$0xff]  }
 0x15a   : > { %v1237_v11 = vrot.slane %v1236_v1, 4  ;;  %v1246_v15 = vor.u32 %v1245_v4, %v1241_v60  ;;  %v1256_v16 = vrot.slane %v1254_v9, 4  ;;  %v1267_v17 = vshrl.u32 %v951_v19, 16  ;;  %v959_v4 = vld [vmem:[%s23585_s15 + $0xb4] sm:$0xf] }
 0x15b   : > { %20503 = vmatmul.mubr.bf16.gmra.mrb[16].mxu1 %v18430_v54  ;;  %v1273_v18 = vshll.u32 %v952_v8, 16  ;;  %v1259_v37 = vrot.slane %v1257_v12, 5  ;;  %v1265_v22 = vrot.slane %v1263_v13, 5  ;;  %v1278_v29 = vshrl.u32 %v953_v23, 16  ;;  %v960_v9 = vld [vmem:[%s23585_s15 + $0xb8] sm:$0xf] }
 0x15c   : > { %20761 = vmatpush3.bf16.msra.mxu0 %v22684_v39  ;;  %20506 = vmatprep.mubr.bf16.mxu1 %v18431_v10  ;;  %v1242_v21 = vsel %vm23612_vm2, %v1237_v11, %v1241_v60  ;;  %v1247_v25 = vrot.slane %v1246_v15, 4  ;;  %v1269_v26 = vrot.slane %v1267_v17, 4  ;;  %v1281_v31 = vshll.u32 %v953_v23, 16  ;;  %v961_v10 = vld [vmem:[%s23585_s15 + $0xbc] sm:$0x1]  ;;  %v22704_v11 = vld [vmem:[#allocation7 + $0x1f0] sm:$0xff]  }
 0x15d   : > { %20762 = vmatprep.subr.bf16.mxu0 %v22688_v58  ;;  %v1275_v27 = vrot.slane %v1273_v18, 5  ;;  %v1260_v30 = vor.u32 %v1259_v37, %v1256_v16  ;;  %v1287_v32 = vshll.u32 %v954_v24, 16  ;;  %v1291_v33 = vshrl.u32 %v954_v24, 16  ;;  %v22691_v16 = vld [vmem:[%s23585_s15 + $0x6c] sm:$0xff]  }
 0x15e   : > { %v1252_v35 = vsel %vm23612_vm2, %v1247_v25, %v1251_v5  ;;  %v1270_v38 = vor.u32 %v1269_v26, %v1265_v22  ;;  %v1280_v39 = vrot.slane %v1278_v29, 4  ;;  %v1297_v40 = vshll.u32 %v955_v28, 16  ;;  %v22693_v28 = vld [vmem:[%s23585_s15 + $0x78] sm:$0xff]  }
 0x15f   : > { %20731 = vmatmul.mubr.bf16.gmra.mrb[4].mxu0 %v22683_v6  ;;  %v18432_v41 = vcombine.low %v1242_v21, %v1252_v35  ;;  %v1261_v42 = vrot.slane %v1260_v30, 4  ;;  %v1283_v43 = vrot.slane %v1281_v31, 5  ;;  %v1289_v44 = vrot.slane %v1287_v32, 5  ;;  %v1735_v31 = vld [vmem:[%s23585_s15] sm:$0xe] }
 0x160   : > { %20734 = vmatprep.mubr.bf16.mxu0 %v22685_v14  ;;  %20763 = vmatpush3.bf16.msra.mxu0 %v22688_v58  ;;  %v1271_v46 = vrot.slane %v1270_v38, 4  ;;  %v1293_v47 = vrot.slane %v1291_v33, 4  ;;  %v1299_v48 = vrot.slane %v1297_v40, 5  ;;  %v1302_v57 = vshrl.u32 %v956_v52, 16  ;;  %v1736_v32 = vld [vmem:[%s23585_s15 + $0x4] sm:$0xf] }
 0x161   : > { %20764 = vmatprep.subr.bf16.mxu0 %v22692_v20  ;;  %v1266_v50 = vsel %vm23612_vm2, %v1261_v42, %v1265_v22  ;;  %v1284_v51 = vor.u32 %v1283_v43, %v1280_v39  ;;  %v1305_v58 = vshll.u32 %v956_v52, 16  ;;  %v1311_v62 = vshll.u32 %v957_v53, 16  ;;  %v22708_v33 = vld [vmem:[#allocation7 + $0x1f8] sm:$0xff]  }
 0x162   : > { %v1276_v54 = vsel %vm23612_vm2, %v1271_v46, %v1275_v27  ;;  %v1294_v55 = vor.u32 %v1293_v47, %v1289_v44  ;;  %v1315_v63 = vshrl.u32 %v957_v53, 16  ;;  %v1304_v2 = vrot.slane %v1302_v57, 4  ;;  %v1737_v38 = vld [vmem:[%s23585_s15 + $0x8] sm:$0x1] }
 0x163   : > { %20507 = vmatmul.mubr.bf16.gmra.mrb[20].mxu1 %v18432_v41  ;;  %v18433_v59 = vcombine.low %v1266_v50, %v1276_v54  ;;  %v1285_v60 = vrot.slane %v1284_v51, 4  ;;  %v1307_v19 = vrot.slane %v1305_v58, 5  ;;  %v1321_v3 = vshll.u32 %v958_v56, 16  ;;  %v1740_v50 = vld [vmem:[%s23585_s15 + $0x14] sm:$0x1] }
 0x164   : > { %20765 = vmatpush3.bf16.msra.mxu0 %v22692_v20  ;;  %v1295_v1 = vrot.slane %v1294_v55, 4  ;;  %v1313_v6 = vrot.slane %v1311_v62, 5  ;;  %v1317_v8 = vrot.slane %v1315_v63, 4  ;;  %v1326_v15 = vshrl.u32 %v959_v4, 16  ;;  %v22695_v55 = vld [vmem:[%s23585_s15 + $0x84] sm:$0xff]   ;;  %v22697_v58 = vld [vmem:[%s23585_s15 + $0x90] sm:$0xff]  }
 0x165   : > { %20766 = vmatprep.subr.bf16.mxu0 %v22696_v34  ;;  %20510 = vmatprep.mubr.bf16.mxu1 %v18433_v59  ;;  %v1290_v5 = vsel %vm23612_vm2, %v1285_v60, %v1289_v44  ;;  %v1308_v13 = vor.u32 %v1307_v19, %v1304_v2  ;;  %v1323_v14 = vrot.slane %v1321_v3, 5  ;;  %v1329_v20 = vshll.u32 %v959_v4, 16  ;;  %v23943_v63 = vld [vmem:[#allocation7 + $0x200] sm:$0xff]   ;;  %v1743_v19 = vld [vmem:[%s23585_s15 + $0x20] sm:$0x1] }
 0x166   : > { %v1300_v12 = vsel %vm23612_vm2, %v1295_v1, %v1299_v48  ;;  %v1318_v18 = vor.u32 %v1317_v8, %v1313_v6  ;;  %v1335_v21 = vshll.u32 %v960_v9, 16  ;;  %v1328_v22 = vrot.slane %v1326_v15, 4  ;;  %v1741_v1 = vld [vmem:[%s23585_s15 + $0x18] sm:$0xe]  ;;  %v1742_v2 = vld [vmem:[%s23585_s15 + $0x1c] sm:$0xf] }
 0x167   : > { %20735 = vmatmul.mubr.bf16.gmra.mrb[8].mxu0 %v22687_v45  ;;  %v18434_v17 = vcombine.low %v1290_v5, %v1300_v12  ;;  %v1309_v37 = vrot.slane %v1308_v13, 4  ;;  %v1339_v23 = vshrl.u32 %v960_v9, 16  ;;  %v1345_v24 = vshll.u32 %v961_v10, 16  ;;  %v1738_v45 = vld [vmem:[%s23585_s15 + $0xc] sm:$0xe] }
 0x168   : > { %20738 = vmatprep.mubr.bf16.mxu0 %v22689_v49  ;;  %20767 = vmatpush3.bf16.msra.mxu0 %v22696_v34  ;;  %v1319_v25 = vrot.slane %v1318_v18, 4  ;;  %v1331_v26 = vrot.slane %v1329_v20, 5  ;;  %v1337_v27 = vrot.slane %v1335_v21, 5  ;;  %v18445_v39 = vrot.slane %v1735_v31, 9  ;;  %v1739_v49 = vld [vmem:[%s23585_s15 + $0x10] sm:$0xf] }
 0x169   : > { %20768 = vmatprep.subr.bf16.mxu0 %v22700_v0  ;;  %v1314_v29 = vsel %vm23612_vm2, %v1309_v37, %v1313_v6  ;;  %v1341_v30 = vrot.slane %v1339_v23, 4  ;;  %v1836_v40 = vrot.slane %v1736_v32, 5  ;;  %v1347_v43 = vrot.slane %v1345_v24, 5  ;;  %v1744_v6 = vld [vmem:[%s23585_s15 + $0x24] sm:$0xe]  ;;  %v22699_v21 = vld [vmem:[%s23585_s15 + $0x9c] sm:$0xff]  }
 0x16a   : > { %v1324_v34 = vsel %vm23612_vm2, %v1319_v25, %v1323_v14  ;;  %v1332_v35 = vor.u32 %v1331_v26, %v1328_v22  ;;  %v1839_v44 = vrot.slane %v1737_v38, 5  ;;  %v18446_v52 = vrot.slane %v1738_v45, 9  ;;  %v1745_v8 = vld [vmem:[%s23585_s15 + $0x28] sm:$0xf]  ;;  %v1746_v12 = vld [vmem:[%s23585_s15 + $0x2c] sm:$0x1] }
 0x16b   : > { %20511 = vmatmul.mubr.bf16.gmra.mrb[24].mxu1 %v18434_v17  ;;  %v18435_v41 = vcombine.low %v1314_v29, %v1324_v34  ;;  %v1342_v42 = vor.u32 %v1341_v30, %v1337_v27  ;;  %v1837_v47 = vsel %vm23669_vm5, %v18445_v39, %v1836_v40  ;;  %v1838_v48 = vrot.slane %v1836_v40, 4  ;;  %v22698_v20 = vld [vmem:[#allocation7 + $0xc8] sm:$0xff]   ;;  %v1747_v37 = vld [vmem:[%s23585_s15 + $0x30] sm:$0xe]  ;;  %v1748_v24 = vld [vmem:[%s23585_s15 + $0x34] sm:$0xf] }
 0x16c   : > { %20769 = vmatpush3.bf16.msra.mxu0 %v22700_v0  ;;  %v1333_v46 = vrot.slane %v1332_v35, 4  ;;  %v1843_v53 = vrot.slane %v1739_v49, 5  ;;  %v1846_v54 = vrot.slane %v1740_v50, 5  ;;  %v18447_v3 = vrot.slane %v1741_v1, 9  ;;  %v1749_v25 = vld [vmem:[%s23585_s15 + $0x38] sm:$0x1] }
 0x16d   : > { %20770 = vmatprep.subr.bf16.mxu0 %v22704_v11  ;;  %20514 = vmatprep.mubr.bf16.mxu1 %v18435_v41  ;;  %v1343_v51 = vrot.slane %v1342_v42, 4  ;;  %v1840_v57 = vsel %vm23669_vm5, %v1838_v48, %v1839_v44  ;;  %v1850_v4 = vrot.slane %v1742_v2, 5  ;;  %v1853_v5 = vrot.slane %v1743_v19, 5  ;;  %v1750_v30 = vld [vmem:[%s23585_s15 + $0x3c] sm:$0xe]  ;;  %v22702_v40 = vld [vmem:[#allocation7 + $0xd0] sm:$0xff]  }
 0x16e   : > { %v1338_v56 = vsel %vm23612_vm2, %v1333_v46, %v1337_v27  ;;  %v18461_v60 = vcombine.low %v1837_v47, %v1840_v57  ;;  %v1845_v62 = vrot.slane %v1843_v53, 4  ;;  %v1844_v9 = vsel %vm23669_vm5, %v18446_v52, %v1843_v53  ;;  %v22701_v27 = vld [vmem:[%s23585_s15 + $0xa8] sm:$0xff]   ;;  %v1751_v31 = vld [vmem:[%s23585_s15 + $0x40] sm:$0xf]  ;;  %v1752_v32 = vld [vmem:[%s23585_s15 + $0x44] sm:$0x1] }
 0x16f   : > { %20739 = vmatmul.mubr.bf16.gmra.mrb[12].mxu0 %v22691_v16  ;;  %v1348_v59 = vsel %vm23612_vm2, %v1343_v51, %v1347_v43  ;;  %v1857_v13 = vrot.slane %v1745_v8, 5  ;;  %v1851_v14 = vsel %vm23669_vm5, %v18447_v3, %v1850_v4  ;;  %v18448_v16 = vrot.slane %v1744_v6, 9  ;;  %v1753_v44 = vld [vmem:[%s23585_s15 + $0x48] sm:$0xe]  ;;  %v1754_v45 = vld [vmem:[%s23585_s15 + $0x4c] sm:$0xf] }
 0x170   : > { %20742 = vmatprep.mubr.bf16.mxu0 %v22693_v28  ;;  %20771 = vmatpush3.bf16.msra.mxu0 %v22704_v11  ;;  %v18436_v0 = vcombine.low %v1338_v56, %v1348_v59  ;;  %v1847_v10 = vsel %vm23669_vm5, %v1845_v62, %v1846_v54  ;;  %v1852_v11 = vrot.slane %v1850_v4, 4  ;;  %v1860_v17 = vrot.slane %v1746_v12, 5  ;;  %v22703_v47 = vld [vmem:[%s23585_s15 + $0xb4] sm:$0xff]   ;;  %v1755_v48 = vld [vmem:[%s23585_s15 + $0x50] sm:$0x1]  ;;  %v22705_v53 = vld [vmem:[%s23585_s15 + $0xc0] sm:$0xff]  }
 0x171   : > { %20772 = vmatprep.subr.bf16.mxu0 %v22708_v33  ;;  %v18462_v18 = vcombine.low %v1844_v9, %v1847_v10  ;;  %v1859_v23 = vrot.slane %v1857_v13, 4  ;;  %v18449_v26 = vrot.slane %v1747_v37, 9  ;;  %v1864_v28 = vrot.slane %v1748_v24, 5  ;;  %v1756_v54 = vld [vmem:[%s23585_s15 + $0x54] sm:$0xe] }
 0x172   : > { %v1854_v15 = vsel %vm23669_vm5, %v1852_v11, %v1853_v5  ;;  %v1867_v29 = vrot.slane %v1749_v25, 5  ;;  %v1871_v34 = vrot.slane %v1751_v31, 5  ;;  %v1858_v35 = vsel %vm23669_vm5, %v18448_v16, %v1857_v13  ;;  %v1757_v56 = vld [vmem:[%s23585_s15 + $0x58] sm:$0xf]  ;;  %v1758_v57 = vld [vmem:[%s23585_s15 + $0x5c] sm:$0x1] }
 0x173   : > { %20515 = vmatmul.mubr.bf16.gmra.mrb[28].mxu1 %v18436_v0  ;;  %v18463_v22 = vcombine.low %v1851_v14, %v1854_v15  ;;  %v1861_v38 = vsel %vm23669_vm5, %v1859_v23, %v1860_v17  ;;  %v18450_v39 = vrot.slane %v1750_v30, 9  ;;  %v1865_v41 = vsel %vm23669_vm5, %v18449_v26, %v1864_v28  ;;  %v1759_v4 = vld [vmem:[%s23585_s15 + $0x60] sm:$0xe]  ;;  %v1760_v5 = vld [vmem:[%s23585_s15 + $0x64] sm:$0xf]  ;;  %v22709_v9 = vld [vmem:[#allocation7 + $0xe0] sm:$0xff]  }
 0x174   : > { %20773 = vmatpush3.bf16.msra.mxu0 %v22708_v33  ;;  %20534 = vmatprep.mubr.bf16.mxu1 %v18461_v60  ;;  %v1866_v33 = vrot.slane %v1864_v28, 4  ;;  %v1873_v42 = vrot.slane %v1871_v34, 4  ;;  %v1874_v43 = vrot.slane %v1752_v32, 5  ;;  %v18464_v46 = vcombine.low %v1858_v35, %v1861_v38  ;;  %v1761_v6 = vld [vmem:[%s23585_s15 + $0x68] sm:$0x1]  ;;  %v22711_v32 = vld [vmem:[#allocation7 + $0xe8] sm:$0xff]  }
 0x175   : > { %20806 = vmatprep.subr.bf16.mxu0 %v23943_v63  ;;  %v18451_v49 = vrot.slane %v1753_v44, 9  ;;  %v1878_v50 = vrot.slane %v1754_v45, 5  ;;  %v1881_v52 = vrot.slane %v1755_v48, 5  ;;  %v18452_v59 = vrot.slane %v1756_v54, 9  ;;  %v18757_v14 = vld [vmem:[%s23585_s15 + $0x18] sm:$0xf] }
 0x176   : > { %v1885_v60 = vrot.slane %v1757_v56, 5  ;;  %v1872_v62 = vsel %vm23669_vm5, %v18450_v39, %v1871_v34  ;;  %v1875_v0 = vsel %vm23669_vm5, %v1873_v42, %v1874_v43  ;;  %v1888_v3 = vrot.slane %v1758_v57, 5  ;;  %v18758_v15 = vld [vmem:[%s23585_s15 + $0x1c] sm:$0xf]  ;;  %v18759_v17 = vld [vmem:[%s23585_s15 + $0x20] sm:$0x1] }
 0x177   : > { %20743 = vmatmul.mubr.bf16.gmra.mrb[16].mxu0 %v22695_v55  ;;  %v1880_v55 = vrot.slane %v1878_v50, 4  ;;  %v1879_v1 = vsel %vm23669_vm5, %v18451_v49, %v1878_v50  ;;  %v18453_v8 = vrot.slane %v1759_v4, 9  ;;  %v18466_v10 = vcombine.low %v1872_v62, %v1875_v0  ;;  %v1762_v26 = vld [vmem:[%s23585_s15 + $0x6c] sm:$0xe]  ;;  %v1763_v31 = vld [vmem:[%s23585_s15 + $0x70] sm:$0xf] }
 0x178   : > { %20746 = vmatprep.mubr.bf16.mxu0 %v22697_v58  ;;  %v22706_v58 = vld [vmem:[#allocation7 + $0xd8] sm:$0xff]   ;;  %v1887_v19 = vrot.slane %v1885_v60, 4  ;;  %v1892_v12 = vrot.slane %v1760_v5, 5  ;;  %v1895_v13 = vrot.slane %v1761_v6, 5  ;;  %v24000_v16 = vsel %vm23669_vm5, %v18452_v59, %v1885_v60  ;;  %v22713_v42 = vld [vmem:[#allocation7 + $0xf0] sm:$0xff]  }
 0x179   : > { %v1882_v2 = vsel %vm23669_vm5, %v1880_v55, %v1881_v52  ;;  %v4708_v24 = vshrl.u32 %v18758_v15, 16  ;;  %v4714_v25 = vshll.u32 %v18759_v17, 16  ;;  %v1764_v35 = vld [vmem:[%s23585_s15 + $0x74] sm:$0x1]  ;;  %v18454_v38 = vrot.slane %v1762_v26, 9 }
 0x17a   : > { %v18467_v11 = vcombine.low %v1879_v1, %v1882_v2  ;;  %v24005_v37 = vsel %vm23669_vm5, %v1887_v19, %v1888_v3  ;;  %v1894_v23 = vrot.slane %v1892_v12, 4  ;;  %v1899_v39 = vrot.slane %v1763_v31, 5  ;;  %v18761_v48 = vld [vmem:[%s23585_s15 + $0x28] sm:$0xf]  ;;  %v18762_v50 = vld [vmem:[%s23585_s15 + $0x2c] sm:$0x1] }
 0x17b   : > { %20535 = vmatmul.mubr.bf16.vlgmr.msra.gmra.mrb[0].mxu1 %v18462_v18  ;;  %v4695_v18 = vshrl.u32 %v18757_v14, 16  ;;  %v4710_v34 = vrot.slane %v4708_v24, 4  ;;  %v4716_v45 = vrot.slane %v4714_v25, 5  ;;  %v4732_v56 = vshrl.u32 %v18761_v48, 16  ;;  %v1765_v0 = vld [vmem:[%s23585_s15 + $0x78] sm:$0xe] }
 0x17c   : > { %20567 = vmatpush3.bf16.msra.mxu1 %v23869_v7  ;;  %20538 = vmatprep.mubr.bf16.mxu1 %v18463_v22  ;;  %v1868_v7 = vsel %vm23669_vm5, %v1866_v33, %v1867_v29  ;;  %v22707_v22 = vld [vmem:[%s23585_s15 + $0xcc] sm:$0xff]   ;;  %v1896_v33 = vsel %vm23669_vm5, %v1894_v23, %v1895_v13  ;;  %v24025_v55 = vsel %vm23669_vm5, %v18454_v38, %v1899_v39  ;;  %v4738_v57 = vshll.u32 %v18762_v50, 16  ;;  %v1766_v4 = vld [vmem:[%s23585_s15 + $0x7c] sm:$0xf]  ;;  %v18765_v17 = vld [vmem:[%s23585_s15 + $0x38] sm:$0x1] }
 0x17d   : > { %20568 = vmatprep.subr.bf16.mxu1 %v22698_v20  ;;  %v18465_v51 = vcombine.low %v1865_v41, %v1868_v7  ;;  %v4697_v28 = vrot.slane %v4695_v18, 4  ;;  %v1902_v7 = vrot.slane %v1764_v35, 5  ;;  %v4734_v19 = vrot.slane %v4732_v56, 4  ;;  %v22715_v5 = vld [vmem:[#allocation7 + $0xf8] sm:$0xff]   ;;  %v1768_v23 = vld [vmem:[%s23585_s15 + $0x84] sm:$0xe] }
 0x17e   : > { %v4740_v3 = vrot.slane %v4738_v57, 5 }
 0x17f   : > { %20747 = vmatmul.mubr.bf16.gmra.mrb[20].mxu0 %v22699_v21  ;;  %v4704_v21 = vshll.u32 %v18758_v15, 16 }
 0x180   : > { %20750 = vmatprep.mubr.bf16.mxu0 %v22701_v27  ;;  %20569 = vmatpush3.bf16.msra.mxu1 %v22698_v20  ;;  %v4698_v20 = vshll.u32 %v18757_v14, 16  ;;  %v24011_v27 = vsel %vm23669_vm5, %v18453_v8, %v1892_v12  ;;  %v18763_v12 = vld [vmem:[%s23585_s15 + $0x30] sm:$0xf] }
 0x181   : > { %20570 = vmatprep.subr.bf16.mxu1 %v22702_v40  ;;  %v4706_v30 = vrot.slane %v4704_v21, 5  ;;  %v18469_v43 = vcombine.low %v24011_v27, %v1896_v33  ;;  %v4743_v18 = vshrl.u32 %v18763_v12, 16  ;;  %v1770_v33 = vld [vmem:[%s23585_s15 + $0x8c] sm:$0x1] }
 0x182   : > { %v4700_v29 = vrot.slane %v4698_v20, 5 }
 0x183   : > { %20539 = vmatmul.mubr.bf16.gmra.mrb[4].mxu1 %v18464_v46  ;;  %v4711_v44 = vor.u32 %v4710_v34, %v4706_v30  ;;  %v1901_v46 = vrot.slane %v1899_v39, 4  ;;  %v4745_v25 = vrot.slane %v4743_v18, 4  ;;  %v22712_v34 = vld [vmem:[#allocation7 + $0x208] sm:$0xff]  }
 0x184   : > { %20542 = vmatprep.mubr.bf16.mxu1 %v18465_v51  ;;  %20571 = vmatpush3.bf16.msra.mxu1 %v22702_v40  ;;  %v18468_v40 = vcombine.low %v24000_v16, %v24005_v37  ;;  %v4701_v41 = vor.u32 %v4700_v29, %v4697_v28  ;;  %v18764_v16 = vld [vmem:[%s23585_s15 + $0x34] sm:$0xf]  ;;  %v1769_v28 = vld [vmem:[%s23585_s15 + $0x88] sm:$0xf] }
 0x185   : > { %20572 = vmatprep.subr.bf16.mxu1 %v22706_v58  ;;  %v4712_v54 = vrot.slane %v4711_v44, 4  ;;  %v24031_v59 = vsel %vm23669_vm5, %v1901_v46, %v1902_v7  ;;  %v4752_v26 = vshll.u32 %v18764_v16, 16  ;;  %v4756_v27 = vshrl.u32 %v18764_v16, 16  ;;  %v18768_v46 = vld [vmem:[%s23585_s15 + $0x44] sm:$0x1]  ;;  %v22716_v16 = vld [vmem:[#allocation7 + $0x218] sm:$0xff]  }
 0x186   : > { %v4702_v49 = vrot.slane %v4701_v41, 4  ;;  %v18470_v13 = vcombine.low %v24025_v55, %v24031_v59  ;;  %v18766_v41 = vld [vmem:[%s23585_s15 + $0x3c] sm:$0xf]  ;;  %v18456_v44 = vrot.slane %v1768_v23, 9 }
 0x187   : > { %20751 = vmatmul.mubr.bf16.gmra.mrb[24].mxu0 %v22703_v47  ;;  %v18760_v47 = vld [vmem:[%s23585_s15 + $0x24] sm:$0xf]  ;;  %v4717_v1 = vsel %vm23612_vm2, %v4712_v54, %v4716_v45  ;;  %v4754_v39 = vrot.slane %v4752_v26, 5  ;;  %v18767_v45 = vld [vmem:[%s23585_s15 + $0x40] sm:$0xf]  ;;  %v4767_v50 = vshrl.u32 %v18766_v41, 16 }
 0x188   : > { %20754 = vmatprep.mubr.bf16.mxu0 %v22705_v53  ;;  %20573 = vmatpush3.bf16.msra.mxu1 %v22706_v58  ;;  %v4719_v51 = vshrl.u32 %v18760_v47, 16  ;;  %v4722_v52 = vshll.u32 %v18760_v47, 16  ;;  %v4728_v53 = vshll.u32 %v18761_v48, 16  ;;  %v4707_v58 = vsel %vm23612_vm2, %v4702_v49, %v4706_v30  ;;  %v24057_v55 = vld [vmem:[#allocation7 + $0x100] sm:$0xff]  }
 0x189   : > { %20574 = vmatprep.subr.bf16.mxu1 %v22709_v9  ;;  %v18805_v6 = vcombine.low %v4707_v58, %v4717_v1  ;;  %v1913_v48 = vrot.slane %v1769_v28, 5  ;;  %v1916_v49 = vrot.slane %v1770_v33, 5  ;;  %v4780_v54 = vshrl.u32 %v18767_v45, 16 }
 0x18a   : > { %v4721_v60 = vrot.slane %v4719_v51, 4  ;;  %v4724_v62 = vrot.slane %v4722_v52, 5  ;;  %v4730_v2 = vrot.slane %v4728_v53, 5  ;;  %v4770_v52 = vshll.u32 %v18766_v41, 16 }
 0x18b   : > { %20543 = vmatmul.mubr.bf16.gmra.mrb[8].mxu1 %v18466_v10  ;;  %v18455_v10 = vrot.slane %v1765_v0, 9  ;;  %v4776_v53 = vshll.u32 %v18767_v45, 16  ;;  %v1914_v57 = vsel %vm23669_vm5, %v18456_v44, %v1913_v48  ;;  %v1915_v58 = vrot.slane %v1913_v48, 4 }
 0x18c   : > { %20546 = vmatprep.mubr.bf16.mxu1 %v18467_v11  ;;  %20575 = vmatpush3.bf16.msra.mxu1 %v22709_v9  ;;  %v4725_v8 = vor.u32 %v4724_v62, %v4721_v60  ;;  %v1767_v9 = vld [vmem:[%s23585_s15 + $0x80] sm:$0x1]  ;;  %v1906_v11 = vrot.slane %v1766_v4, 5  ;;  %v4735_v14 = vor.u32 %v4734_v19, %v4730_v2  ;;  %v4769_v59 = vrot.slane %v4767_v50, 4  ;;  %v1771_v60 = vld [vmem:[%s23585_s15 + $0x90] sm:$0xe] }
 0x18d   : > { %20576 = vmatprep.subr.bf16.mxu1 %v22711_v32  ;;  %v1909_v15 = vrot.slane %v1767_v9, 5  ;;  %v4772_v0 = vrot.slane %v4770_v52, 5  ;;  %v4778_v1 = vrot.slane %v4776_v53, 5  ;;  %v22714_v19 = vld [vmem:[#allocation7 + $0x210] sm:$0xff]   ;;  %v1917_v4 = vsel %vm23669_vm5, %v1915_v58, %v1916_v49 }
 0x18e   : > { %v4726_v20 = vrot.slane %v4725_v8, 4  ;;  %v1907_v21 = vsel %vm23669_vm5, %v18455_v10, %v1906_v11  ;;  %v1908_v37 = vrot.slane %v1906_v11, 4  ;;  %v4736_v24 = vrot.slane %v4735_v14, 4  ;;  %v18769_v9 = vld [vmem:[%s23585_s15 + $0x48] sm:$0xf] }
 0x18f   : > { %20755 = vmatmul.mubr.bf16.gmra.mrb[28].mxu0 %v22707_v22  ;;  %v4746_v22 = vshll.u32 %v18763_v12, 16  ;;  %v18457_v8 = vrot.slane %v1771_v60, 9  ;;  %v18472_v11 = vcombine.low %v1914_v57, %v1917_v4  ;;  %v4773_v12 = vor.u32 %v4772_v0, %v4769_v59  ;;  %v18770_v14 = vld [vmem:[%s23585_s15 + $0x4c] sm:$0xf]  ;;  %v1777_v58 = vld [vmem:[%s23585_s15 + $0xa8] sm:$0xe] }
 0x190   : > { %20577 = vmatpush3.bf16.msra.mxu1 %v22711_v32  ;;  %20774 = vmatprep.mubr.bf16.mxu0 %v18805_v6  ;;  %v4731_v29 = vsel %vm23612_vm2, %v4726_v20, %v4730_v2  ;;  %v1910_v30 = vsel %vm23669_vm5, %v1908_v37, %v1909_v15  ;;  %v4762_v32 = vshll.u32 %v18765_v17, 16  ;;  %v4741_v35 = vsel %vm23612_vm2, %v4736_v24, %v4740_v3  ;;  %v1773_v6 = vld [vmem:[%s23585_s15 + $0x98] sm:$0x1]  ;;  %v18771_v15 = vld [vmem:[%s23585_s15 + $0x50] sm:$0x1] }
 0x191   : > { %20578 = vmatprep.subr.bf16.mxu1 %v22713_v42  ;;  %v4748_v31 = vrot.slane %v4746_v22, 5  ;;  %v18471_v38 = vcombine.low %v1907_v21, %v1910_v30  ;;  %v18806_v7 = vcombine.low %v4731_v29, %v4741_v35  ;;  %v4782_v2 = vrot.slane %v4780_v54, 4  ;;  %v1774_v37 = vld [vmem:[%s23585_s15 + $0x9c] sm:$0xe]  ;;  %v1775_v22 = vld [vmem:[%s23585_s15 + $0xa0] sm:$0xf] }
 0x192   : > { %v1923_v20 = vrot.slane %v1773_v6, 5  ;;  %v4791_v21 = vshrl.u32 %v18769_v9, 16  ;;  %v4774_v23 = vrot.slane %v4773_v12, 4  ;;  %v4800_v26 = vshll.u32 %v18770_v14, 16  ;;  %v1779_v4 = vld [vmem:[%s23585_s15 + $0xb0] sm:$0x1] }
 0x193   : > { %20547 = vmatmul.mubr.bf16.gmra.mrb[12].mxu1 %v18468_v40  ;;  %v4758_v40 = vrot.slane %v4756_v27, 4  ;;  %v1776_v27 = vld [vmem:[%s23585_s15 + $0xa4] sm:$0x1] }
 0x194   : > { %20550 = vmatprep.mubr.bf16.mxu1 %v18469_v43  ;;  %20579 = vmatpush3.bf16.msra.mxu1 %v22713_v42  ;;  %v4749_v42 = vor.u32 %v4748_v31, %v4745_v25  ;;  %v4764_v43 = vrot.slane %v4762_v32, 5  ;;  %v4794_v25 = vshll.u32 %v18769_v9, 16  ;;  %v4793_v30 = vrot.slane %v4791_v21, 4  ;;  %v22722_v12 = vld [vmem:[#allocation7 + $0x228] sm:$0xff]  }
 0x195   : > { %20580 = vmatprep.subr.bf16.mxu1 %v22715_v5  ;;  %v4759_v47 = vor.u32 %v4758_v40, %v4754_v39  ;;  %v4804_v31 = vshrl.u32 %v18770_v14, 16  ;;  %v4779_v32 = vsel %vm23612_vm2, %v4774_v23, %v4778_v1  ;;  %v4802_v35 = vrot.slane %v4800_v26, 5  ;;  %v22725_v23 = vld [vmem:[#allocation7 + $0x230] sm:$0xff]  }
 0x196   : > { %v4750_v51 = vrot.slane %v4749_v42, 4  ;;  %v18773_v42 = vld [vmem:[%s23585_s15 + $0x58] sm:$0xf]  ;;  %v1930_v50 = vrot.slane %v1776_v27, 5 }
 0x197   : > { %20775 = vmatmul.mubr.bf16.vlgmr.msra.gmra.mrb[0].mxu0 %v18806_v7  ;;  %v4760_v56 = vrot.slane %v4759_v47, 4  ;;  %v4806_v41 = vrot.slane %v4804_v31, 4  ;;  %v4810_v7 = vshll.u32 %v18771_v15, 16  ;;  %v1927_v47 = vrot.slane %v1775_v22, 5 }
 0x198   : > { %20581 = vmatpush3.bf16.msra.mxu1 %v22715_v5  ;;  %20807 = vmatpush3.bf16.msra.mxu0 %v23943_v63  ;;  %v4755_v62 = vsel %vm23612_vm2, %v4750_v51, %v4754_v39  ;;  %v1772_v63 = vld [vmem:[%s23585_s15 + $0x94] sm:$0xf]  ;;  %v4786_v5 = vshll.u32 %v18768_v46, 16  ;;  %v18458_v46 = vrot.slane %v1774_v37, 9  ;;  %v18774_v51 = vld [vmem:[%s23585_s15 + $0x5c] sm:$0x1] }
 0x199   : > { %21718 = vmatprep.subr.bf16.mxu1 %v24057_v55  ;;  %20808 = vmatprep.subr.bf16.mxu0 %v22712_v34  ;;  %v4765_v3 = vsel %vm23612_vm2, %v4760_v56, %v4764_v43  ;;  %v1920_v18 = vrot.slane %v1772_v63, 5  ;;  %v22719_v43 = vld [vmem:[#allocation7 + $0x220] sm:$0xff]   ;;  %v4807_v48 = vor.u32 %v4806_v41, %v4802_v35  ;;  %v4812_v49 = vrot.slane %v4810_v7, 5  ;;  %v22728_v41 = vld [vmem:[#allocation7 + $0x238] sm:$0xff]  }
 0x19a   : > { %v18807_v10 = vcombine.low %v4755_v62, %v4765_v3  ;;  %v4788_v17 = vrot.slane %v4786_v5, 5  ;;  %v1928_v54 = vsel %vm23669_vm5, %v18458_v46, %v1927_v47  ;;  %v1929_v56 = vrot.slane %v1927_v47, 4  ;;  %v18775_v5 = vld [vmem:[%s23585_s15 + $0x60] sm:$0xf] }
 0x19b   : > { %20551 = vmatmul.mubr.bf16.gmra.mrb[16].mxu1 %v18470_v13  ;;  %v4783_v13 = vor.u32 %v4782_v2, %v4778_v1  ;;  %v1921_v28 = vsel %vm23669_vm5, %v18457_v8, %v1920_v18  ;;  %v1922_v29 = vrot.slane %v1920_v18, 4  ;;  %v4808_v59 = vrot.slane %v4807_v48, 4  ;;  %v1778_v1 = vld [vmem:[%s23585_s15 + $0xac] sm:$0xf]  ;;  %v1780_v18 = vld [vmem:[%s23585_s15 + $0xb4] sm:$0xe] }
 0x19c   : > { %20554 = vmatprep.mubr.bf16.mxu1 %v18471_v38  ;;  %20809 = vmatpush3.bf16.msra.mxu0 %v22712_v34  ;;  %v4796_v34 = vrot.slane %v4794_v25, 5  ;;  %v18772_v38 = vld [vmem:[%s23585_s15 + $0x54] sm:$0xf]  ;;  %v4824_v62 = vshll.u32 %v18773_v42, 16  ;;  %v4828_v0 = vshrl.u32 %v18773_v42, 16  ;;  %v1931_v63 = vsel %vm23669_vm5, %v1929_v56, %v1930_v50 }
 0x19d   : > { %20778 = vmatprep.mubr.bf16.mxu0 %v18807_v10  ;;  %v4784_v24 = vrot.slane %v4783_v13, 4  ;;  %20810 = vmatprep.subr.bf16.mxu0 %v22714_v19  ;;  %v1924_v40 = vsel %vm23669_vm5, %v1922_v29, %v1923_v20  ;;  %v4815_v52 = vshrl.u32 %v18772_v38, 16  ;;  %v4818_v57 = vshll.u32 %v18772_v38, 16 }
 0x19e   : > { %v18473_v44 = vcombine.low %v1921_v28, %v1924_v40  ;;  %v4797_v45 = vor.u32 %v4796_v34, %v4793_v30  ;;  %v4834_v3 = vshll.u32 %v18774_v51, 16  ;;  %v4813_v6 = vsel %vm23612_vm2, %v4808_v59, %v4812_v49  ;;  %v1781_v28 = vld [vmem:[%s23585_s15 + $0xb8] sm:$0xf]  ;;  %v18778_v40 = vld [vmem:[%s23585_s15 + $0x6c] sm:$0xf] }
 0x19f   : > { %v4789_v33 = vsel %vm23612_vm2, %v4784_v24, %v4788_v17  ;;  %v4817_v60 = vrot.slane %v4815_v52, 4  ;;  %v18474_v8 = vcombine.low %v1928_v54, %v1931_v63  ;;  %v4826_v9 = vrot.slane %v4824_v62, 5  ;;  %v18777_v17 = vld [vmem:[%s23585_s15 + $0x68] sm:$0x1]  ;;  %v22717_v63 = vld [vmem:[%s23585_s15 + $0xc] sm:$0xff]  }
 0x1a0   : > { %v18808_v39 = vcombine.low %v4779_v32, %v4789_v33  ;;  %20811 = vmatpush3.bf16.msra.mxu0 %v22714_v19  ;;  %v4798_v53 = vrot.slane %v4797_v45, 4  ;;  %v4820_v19 = vrot.slane %v4818_v57, 5  ;;  %v4830_v10 = vrot.slane %v4828_v0, 4  ;;  %v1782_v33 = vld [vmem:[%s23585_s15 + $0xbc] sm:$0x1] }
 0x1a1   : > { %20812 = vmatprep.subr.bf16.mxu0 %v22716_v16  ;;  %v4836_v15 = vrot.slane %v4834_v3, 5  ;;  %v1934_v21 = vrot.slane %v1778_v1, 5  ;;  %v1937_v37 = vrot.slane %v1779_v4, 5  ;;  %v4839_v22 = vshrl.u32 %v18775_v5, 16  ;;  %v18779_v45 = vld [vmem:[%s23585_s15 + $0x70] sm:$0xf] }
 0x1a2   : > { %20779 = vmatmul.mubr.bf16.gmra.mrb[4].mxu0 %v18808_v39  ;;  %v4803_v2 = vsel %vm23612_vm2, %v4798_v53, %v4802_v35  ;;  %v4821_v14 = vor.u32 %v4820_v19, %v4817_v60  ;;  %v4831_v20 = vor.u32 %v4830_v10, %v4826_v9  ;;  %v4842_v25 = vshll.u32 %v18775_v5, 16  ;;  %v18780_v53 = vld [vmem:[%s23585_s15 + $0x74] sm:$0x1]  ;;  %v18781_v60 = vld [vmem:[%s23585_s15 + $0x78] sm:$0xf] }
 0x1a3   : > { %20555 = vmatmul.mubr.bf16.gmra.mrb[20].mxu1 %v18472_v11  ;;  %v18776_v11 = vld [vmem:[%s23585_s15 + $0x64] sm:$0xf]  ;;  %v18809_v13 = vcombine.low %v4803_v2, %v4813_v6  ;;  %v1936_v31 = vrot.slane %v1934_v21, 4  ;;  %v4841_v32 = vrot.slane %v4839_v22, 4  ;;  %v1941_v51 = vrot.slane %v1781_v28, 5 }
 0x1a4   : > { %20558 = vmatprep.mubr.bf16.mxu1 %v18473_v44  ;;  %20813 = vmatpush3.bf16.msra.mxu0 %v22716_v16  ;;  %v18459_v16 = vrot.slane %v1777_v58, 9  ;;  %v4822_v24 = vrot.slane %v4821_v14, 4  ;;  %v4848_v26 = vshll.u32 %v18776_v11, 16  ;;  %v4852_v27 = vshrl.u32 %v18776_v11, 16  ;;  %v18782_v19 = vld [vmem:[%s23585_s15 + $0x7c] sm:$0xf] }
 0x1a5   : > { %20814 = vmatprep.subr.bf16.mxu0 %v22719_v43  ;;  %20782 = vmatprep.mubr.bf16.mxu0 %v18809_v13  ;;  %v4832_v29 = vrot.slane %v4831_v20, 4  ;;  %v4844_v35 = vrot.slane %v4842_v25, 5  ;;  %v1938_v42 = vsel %vm23669_vm5, %v1936_v31, %v1937_v37  ;;  %v18460_v44 = vrot.slane %v1780_v18, 9  ;;  %v18784_v13 = vld [vmem:[%s23585_s15 + $0x84] sm:$0xf] }
 0x1a6   : > { %v1935_v30 = vsel %vm23669_vm5, %v18459_v16, %v1934_v21  ;;  %v4827_v34 = vsel %vm23612_vm2, %v4822_v24, %v4826_v9  ;;  %v4850_v38 = vrot.slane %v4848_v26, 5  ;;  %v4854_v39 = vrot.slane %v4852_v27, 4  ;;  %v18785_v18 = vld [vmem:[%s23585_s15 + $0x88] sm:$0xf] }
 0x1a7   : > { %v4837_v7 = vsel %vm23612_vm2, %v4832_v29, %v4836_v15  ;;  %v18475_v47 = vcombine.low %v1935_v30, %v1938_v42  ;;  %v4845_v48 = vor.u32 %v4844_v35, %v4841_v32  ;;  %v1944_v52 = vrot.slane %v1782_v33, 5  ;;  %v18786_v35 = vld [vmem:[%s23585_s15 + $0x8c] sm:$0x1] }
 0x1a8   : > { %20815 = vmatpush3.bf16.msra.mxu0 %v22719_v43  ;;  %v4858_v43 = vshll.u32 %v18777_v17, 16  ;;  %v18810_v46 = vcombine.low %v4827_v34, %v4837_v7  ;;  %v4855_v49 = vor.u32 %v4854_v39, %v4850_v38  ;;  %v4863_v54 = vshrl.u32 %v18778_v40, 16  ;;  %v22718_v34 = vld [vmem:[%s23585_s15 + $0x18] sm:$0xff]   ;;  %v18787_v39 = vld [vmem:[%s23585_s15 + $0x90] sm:$0xf] }
 0x1a9   : > { %20816 = vmatprep.subr.bf16.mxu0 %v22722_v12  ;;  %v4846_v56 = vrot.slane %v4845_v48, 4  ;;  %v4866_v58 = vshll.u32 %v18778_v40, 16  ;;  %v4872_v59 = vshll.u32 %v18779_v45, 16  ;;  %v1942_v62 = vsel %vm23669_vm5, %v18460_v44, %v1941_v51  ;;  %v22720_v48 = vld [vmem:[%s23585_s15 + $0x24] sm:$0xff]  }
 0x1aa   : > { %v4860_v50 = vrot.slane %v4858_v43, 5  ;;  %20783 = vmatmul.mubr.bf16.gmra.mrb[8].mxu0 %v18810_v46  ;;  %v4856_v57 = vrot.slane %v4855_v49, 4  ;;  %v1943_v0 = vrot.slane %v1941_v51, 4  ;;  %v4865_v1 = vrot.slane %v4863_v54, 4  ;;  %v18788_v43 = vld [vmem:[%s23585_s15 + $0x94] sm:$0xf] }
 0x1ab   : > { %20559 = vmatmul.mubr.bf16.gmra.mrb[24].mxu1 %v18474_v8  ;;  %v4876_v2 = vshrl.u32 %v18779_v45, 16  ;;  %v4851_v3 = vsel %vm23612_vm2, %v4846_v56, %v4850_v38  ;;  %v4868_v5 = vrot.slane %v4866_v58, 5  ;;  %v4874_v6 = vrot.slane %v4872_v59, 5  ;;  %v18790_v59 = vld [vmem:[%s23585_s15 + $0x9c] sm:$0xf] }
 0x1ac   : > { %20817 = vmatpush3.bf16.msra.mxu0 %v22722_v12  ;;  %20562 = vmatprep.mubr.bf16.mxu1 %v18475_v47  ;;  %v4861_v4 = vsel %vm23612_vm2, %v4856_v57, %v4860_v50  ;;  %v1945_v9 = vsel %vm23669_vm5, %v1943_v0, %v1944_v52  ;;  %v4882_v11 = vshll.u32 %v18780_v53, 16  ;;  %v18783_v12 = vld [vmem:[%s23585_s15 + $0x80] sm:$0x1]  ;;  %v4887_v16 = vshrl.u32 %v18781_v60, 16  ;;  %v18789_v52 = vld [vmem:[%s23585_s15 + $0x98] sm:$0x1] }
 0x1ad   : > { %20818 = vmatprep.subr.bf16.mxu0 %v22725_v23  ;;  %v18811_v8 = vcombine.low %v4851_v3, %v4861_v4  ;;  %v4878_v10 = vrot.slane %v4876_v2, 4  ;;  %v18476_v14 = vcombine.low %v1942_v62, %v1945_v9  ;;  %v4869_v15 = vor.u32 %v4868_v5, %v4865_v1 }
 0x1ae   : > { %v4890_v17 = vshll.u32 %v18781_v60, 16  ;;  %v4884_v21 = vrot.slane %v4882_v11, 5  ;;  %v4896_v37 = vshll.u32 %v18782_v19, 16  ;;  %v4900_v22 = vshrl.u32 %v18782_v19, 16  ;;  %v18791_v60 = vld [vmem:[%s23585_s15 + $0xa0] sm:$0xf] }
 0x1af   : > { %20786 = vmatprep.mubr.bf16.mxu0 %v18811_v8  ;;  %v4879_v20 = vor.u32 %v4878_v10, %v4874_v6  ;;  %v4889_v24 = vrot.slane %v4887_v16, 4  ;;  %v4906_v26 = vshll.u32 %v18783_v12, 16  ;;  %v4911_v30 = vshrl.u32 %v18784_v13, 16  ;;  %v18793_v16 = vld [vmem:[%s23585_s15 + $0xa8] sm:$0xf] }
 0x1b0   : > { %20819 = vmatpush3.bf16.msra.mxu0 %v22725_v23  ;;  %v4870_v23 = vrot.slane %v4869_v15, 4  ;;  %v4892_v25 = vrot.slane %v4890_v17, 5  ;;  %v4898_v28 = vrot.slane %v4896_v37, 5  ;;  %v4902_v29 = vrot.slane %v4900_v22, 4 }
 0x1b1   : > { %20820 = vmatprep.subr.bf16.mxu0 %v22728_v41  ;;  %v4880_v27 = vrot.slane %v4879_v20, 4  ;;  %v4908_v33 = vrot.slane %v4906_v26, 5  ;;  %v4914_v38 = vshll.u32 %v18784_v13, 16  ;;  %v4913_v7 = vrot.slane %v4911_v30, 4  ;;  %v22978_v13 = vld [vmem:[#allocation7 + $0x108] sm:$0xff]  }
 0x1b2   : > { %v4875_v31 = vsel %vm23612_vm2, %v4870_v23, %v4874_v6  ;;  %v4893_v32 = vor.u32 %v4892_v25, %v4889_v24  ;;  %v4920_v42 = vshll.u32 %v18785_v18, 16  ;;  %v4924_v47 = vshrl.u32 %v18785_v18, 16  ;;  %v22721_v23 = vld [vmem:[%s23585_s15 + $0x30] sm:$0xff]   ;;  %v22723_v30 = vld [vmem:[%s23585_s15 + $0x3c] sm:$0xff]  }
 0x1b3   : > { %20563 = vmatmul.mubr.bf16.gmra.mrb[28].mxu1 %v18476_v14  ;;  %v4885_v40 = vsel %vm23612_vm2, %v4880_v27, %v4884_v21  ;;  %v4916_v46 = vrot.slane %v4914_v38, 5  ;;  %v4930_v51 = vshll.u32 %v18786_v35, 16  ;;  %v4935_v53 = vshrl.u32 %v18787_v39, 16  ;;  %v18792_v14 = vld [vmem:[%s23585_s15 + $0xa4] sm:$0x1] }
 0x1b4   : > { %20821 = vmatpush3.bf16.msra.mxu0 %v22728_v41  ;;  %20582 = vmatprep.mubr.bf16.mxu1 %v22717_v63  ;;  %v4903_v41 = vor.u32 %v4902_v29, %v4898_v28  ;;  %v18812_v44 = vcombine.low %v4875_v31, %v4885_v40  ;;  %v4894_v45 = vrot.slane %v4893_v32, 4  ;;  %v4922_v50 = vrot.slane %v4920_v42, 5  ;;  %v18794_v21 = vld [vmem:[%s23585_s15 + $0xac] sm:$0xf] }
 0x1b5   : > { %v4917_v56 = vor.u32 %v4916_v46, %v4913_v7  ;;  %v4926_v57 = vrot.slane %v4924_v47, 4  ;;  %v4938_v58 = vshll.u32 %v18787_v39, 16  ;;  %v4932_v0 = vrot.slane %v4930_v51, 5  ;;  %v22979_v38 = vld [vmem:[#allocation7 + $0x110] sm:$0xff]   ;;  %v18796_v39 = vld [vmem:[%s23585_s15 + $0xb4] sm:$0xf] }
 0x1b6   : > { %v4904_v49 = vrot.slane %v4903_v41, 4  ;;  %20787 = vmatmul.mubr.bf16.gmra.mrb[12].mxu0 %v18812_v44  ;;  %v4899_v54 = vsel %vm23612_vm2, %v4894_v45, %v4898_v28  ;;  %v4937_v1 = vrot.slane %v4935_v53, 4  ;;  %v4944_v2 = vshll.u32 %v18788_v43, 16 }
 0x1b7   : > { %v4918_v19 = vrot.slane %v4917_v56, 4  ;;  %v4927_v3 = vor.u32 %v4926_v57, %v4922_v50  ;;  %v4940_v4 = vrot.slane %v4938_v58, 5  ;;  %v4948_v6 = vshrl.u32 %v18788_v43, 16  ;;  %v18797_v43 = vld [vmem:[%s23585_s15 + $0xb8] sm:$0xf]  ;;  %v22980_v58 = vld [vmem:[#allocation7 + $0x118] sm:$0xff]  }
 0x1b8   : > { %v4909_v62 = vsel %vm23612_vm2, %v4904_v49, %v4908_v33  ;;  %v4946_v5 = vrot.slane %v4944_v2, 5  ;;  %v4954_v8 = vshll.u32 %v18789_v52, 16  ;;  %v4959_v9 = vshrl.u32 %v18790_v59, 16  ;;  %v18798_v57 = vld [vmem:[%s23585_s15 + $0xbc] sm:$0x1] }
 0x1b9   : > { %v18813_v63 = vcombine.low %v4899_v54, %v4909_v62  ;;  %v4923_v10 = vsel %vm23612_vm2, %v4918_v19, %v4922_v50  ;;  %v4928_v11 = vrot.slane %v4927_v3, 4  ;;  %v4941_v12 = vor.u32 %v4940_v4, %v4937_v1  ;;  %v22724_v62 = vld [vmem:[%s23585_s15 + $0x48] sm:$0xff]   ;;  %v18799_v2 = vld [vmem:[%s23585_s15 + $0xc0] sm:$0xf] }
 0x1ba   : > { %v4962_v15 = vshll.u32 %v18790_v59, 16  ;;  %v4956_v17 = vrot.slane %v4954_v8, 5  ;;  %v4961_v18 = vrot.slane %v4959_v9, 4  ;;  %v4968_v20 = vshll.u32 %v18791_v60, 16 }
 0x1bb   : > { %20583 = vmatmul.mubr.bf16.vlgmr.msra.gmra.mrb[0].mxu1 %v22718_v34  ;;  %20790 = vmatprep.mubr.bf16.mxu0 %v18813_v63  ;;  %v4933_v37 = vsel %vm23612_vm2, %v4928_v11, %v4932_v0  ;;  %v4942_v22 = vrot.slane %v4941_v12, 4  ;;  %v4972_v25 = vshrl.u32 %v18791_v60, 16  ;;  %v4978_v29 = vshll.u32 %v18792_v14, 16  ;;  %v18795_v34 = vld [vmem:[%s23585_s15 + $0xb0] sm:$0x1]  ;;  %v22726_v11 = vld [vmem:[%s23585_s15 + $0x54] sm:$0xff]  }
 0x1bc   : > { %21726 = vmatpush3.bf16.msra.mxu1 %v24057_v55  ;;  %20586 = vmatprep.mubr.bf16.mxu1 %v22720_v48  ;;  %v4950_v55 = vrot.slane %v4948_v6, 4  ;;  %v4964_v24 = vrot.slane %v4962_v15, 5  ;;  %v18814_v26 = vcombine.low %v4923_v10, %v4933_v37  ;;  %v4970_v28 = vrot.slane %v4968_v20, 5  ;;  %v18802_v37 = vld [vmem:[%s23585_s15 + $0xcc] sm:$0xf] }
 0x1bd   : > { %21719 = vmatprep.subr.bf16.mxu1 %v22978_v13  ;;  %v4947_v31 = vsel %vm23612_vm2, %v4942_v22, %v4946_v5  ;;  %v4974_v33 = vrot.slane %v4972_v25, 4  ;;  %v4983_v35 = vshrl.u32 %v18793_v16, 16  ;;  %v4980_v41 = vrot.slane %v4978_v29, 5  ;;  %v18803_v22 = vld [vmem:[%s23585_s15 + $0xd0] sm:$0xf] }
 0x1be   : > { %v4951_v27 = vor.u32 %v4950_v55, %v4946_v5  ;;  %v4965_v32 = vor.u32 %v4964_v24, %v4961_v18  ;;  %20791 = vmatmul.mubr.bf16.gmra.mrb[16].mxu0 %v18814_v26  ;;  %v4986_v7 = vshll.u32 %v18793_v16, 16  ;;  %v4992_v42 = vshll.u32 %v18794_v21, 16  ;;  %v18800_v5 = vld [vmem:[%s23585_s15 + $0xc4] sm:$0xf]  ;;  %v18801_v16 = vld [vmem:[%s23585_s15 + $0xc8] sm:$0x1] }
 0x1bf   : > { %v4975_v45 = vor.u32 %v4974_v33, %v4970_v28  ;;  %v4985_v46 = vrot.slane %v4983_v35, 4  ;;  %v4996_v47 = vshrl.u32 %v18794_v21, 16  ;;  %v5002_v51 = vshll.u32 %v18795_v34, 16  ;;  %v22981_v55 = vld [vmem:[#allocation7 + $0x120] sm:$0xff]  }
 0x1c0   : > { %21727 = vmatpush3.bf16.msra.mxu1 %v22978_v13  ;;  %v4952_v40 = vrot.slane %v4951_v27, 4  ;;  %v4966_v44 = vrot.slane %v4965_v32, 4  ;;  %v4988_v49 = vrot.slane %v4986_v7, 5  ;;  %v4994_v50 = vrot.slane %v4992_v42, 5  ;;  %v18829_v42 = vld [vmem:[%s23585_s15 + $0x18] sm:$0xe] }
 0x1c1   : > { %21720 = vmatprep.subr.bf16.mxu1 %v22979_v38  ;;  %v4976_v54 = vrot.slane %v4975_v45, 4  ;;  %v4998_v56 = vrot.slane %v4996_v47, 4  ;;  %v5004_v60 = vrot.slane %v5002_v51, 5  ;;  %v5007_v0 = vshrl.u32 %v18796_v39, 16  ;;  %v22727_v47 = vld [vmem:[%s23585_s15 + $0x60] sm:$0xff]  }
 0x1c2   : > { %v4957_v48 = vsel %vm23612_vm2, %v4952_v40, %v4956_v17  ;;  %v4971_v53 = vsel %vm23612_vm2, %v4966_v44, %v4970_v28  ;;  %v4989_v59 = vor.u32 %v4988_v49, %v4985_v46  ;;  %v5010_v1 = vshll.u32 %v18796_v39, 16  ;;  %v18831_v49 = vld [vmem:[%s23585_s15 + $0x20] sm:$0x1] }
 0x1c3   : > { %20587 = vmatmul.mubr.bf16.gmra.mrb[4].mxu1 %v22721_v23  ;;  %v18815_v52 = vcombine.low %v4947_v31, %v4957_v48  ;;  %v4981_v63 = vsel %vm23612_vm2, %v4976_v54, %v4980_v41  ;;  %v4999_v19 = vor.u32 %v4998_v56, %v4994_v50  ;;  %v5016_v3 = vshll.u32 %v18797_v43, 16  ;;  %v18804_v31 = vld [vmem:[%s23585_s15 + $0xd4] sm:$0x1]  ;;  %v22729_v54 = vld [vmem:[%s23585_s15 + $0x6c] sm:$0xff]  }
 0x1c4   : > { %20590 = vmatprep.mubr.bf16.mxu1 %v22723_v30  ;;  %21728 = vmatpush3.bf16.msra.mxu1 %v22979_v38  ;;  %v5020_v4 = vshrl.u32 %v18797_v43, 16  ;;  %v18816_v6 = vcombine.low %v4971_v53, %v4981_v63  ;;  %v4990_v8 = vrot.slane %v4989_v59, 4  ;;  %v5009_v9 = vrot.slane %v5007_v0, 4  ;;  %v22982_v38 = vld [vmem:[#allocation7 + $0x128] sm:$0xff]   ;;  %v18833_v63 = vld [vmem:[%s23585_s15 + $0x28] sm:$0xf] }
 0x1c5   : > { %21721 = vmatprep.subr.bf16.mxu1 %v22980_v58  ;;  %20794 = vmatprep.mubr.bf16.mxu0 %v18815_v52  ;;  %v5012_v10 = vrot.slane %v5010_v1, 5  ;;  %v5000_v12 = vrot.slane %v4999_v19, 4  ;;  %v5018_v13 = vrot.slane %v5016_v3, 5  ;;  %v5026_v15 = vshll.u32 %v18798_v57, 16  ;;  %v18830_v43 = vld [vmem:[%s23585_s15 + $0x1c] sm:$0xf] }
 0x1c6   : > { %v5022_v14 = vrot.slane %v5020_v4, 4  ;;  %20795 = vmatmul.mubr.bf16.gmra.mrb[20].mxu0 %v18816_v6  ;;  %v4995_v17 = vsel %vm23612_vm2, %v4990_v8, %v4994_v50  ;;  %v5031_v20 = vshrl.u32 %v18799_v2, 16  ;;  %v5034_v21 = vshll.u32 %v18799_v2, 16  ;;  %v18832_v2 = vld [vmem:[%s23585_s15 + $0x24] sm:$0xe] }
 0x1c7   : > { %v5013_v18 = vor.u32 %v5012_v10, %v5009_v9  ;;  %v5005_v23 = vsel %vm23612_vm2, %v5000_v12, %v5004_v60  ;;  %v5028_v25 = vrot.slane %v5026_v15, 5  ;;  %v5040_v26 = vshll.u32 %v18800_v5, 16  ;;  %v22983_v60 = vld [vmem:[#allocation7 + $0x130] sm:$0xff]  }
 0x1c8   : > { %21729 = vmatpush3.bf16.msra.mxu1 %v22980_v58  ;;  %v5023_v24 = vor.u32 %v5022_v14, %v5018_v13  ;;  %v18817_v27 = vcombine.low %v4995_v17, %v5005_v23  ;;  %v5033_v29 = vrot.slane %v5031_v20, 4  ;;  %v5036_v30 = vrot.slane %v5034_v21, 5  ;;  %v18834_v6 = vld [vmem:[%s23585_s15 + $0x2c] sm:$0x1]  ;;  %v22730_v14 = vld [vmem:[%s23585_s15 + $0x78] sm:$0xff]  }
 0x1c9   : > { %21722 = vmatprep.subr.bf16.mxu1 %v22981_v55  ;;  %v5014_v28 = vrot.slane %v5013_v18, 4  ;;  %v5042_v33 = vrot.slane %v5040_v26, 5  ;;  %v5044_v34 = vshrl.u32 %v18800_v5, 16  ;;  %v5050_v35 = vshll.u32 %v18801_v16, 16  ;;  %v18835_v16 = vld [vmem:[%s23585_s15 + $0x30] sm:$0xe] }
 0x1ca   : > { %v5024_v32 = vrot.slane %v5023_v24, 4  ;;  %20798 = vmatprep.mubr.bf16.mxu0 %v18817_v27  ;;  %v5037_v40 = vor.u32 %v5036_v30, %v5033_v29  ;;  %v5055_v41 = vshrl.u32 %v18802_v37, 16  ;;  %v5058_v7 = vshll.u32 %v18802_v37, 16  ;;  %v24201_v17 = vld [vmem:[#allocation13] sm:$0xff]  }
 0x1cb   : > { %20591 = vmatmul.mubr.bf16.gmra.mrb[8].mxu1 %v22724_v62  ;;  %v5019_v39 = vsel %vm23612_vm2, %v5014_v28, %v5018_v13  ;;  %v5046_v45 = vrot.slane %v5044_v34, 4  ;;  %v5052_v46 = vrot.slane %v5050_v35, 5  ;;  %v5064_v48 = vshll.u32 %v18803_v22, 16  ;;  %v18836_v23 = vld [vmem:[%s23585_s15 + $0x34] sm:$0xf] }
 0x1cc   : > { %20594 = vmatprep.mubr.bf16.mxu1 %v22726_v11  ;;  %21730 = vmatpush3.bf16.msra.mxu1 %v22981_v55  ;;  %v5029_v44 = vsel %vm23612_vm2, %v5024_v32, %v5028_v25  ;;  %v5038_v51 = vrot.slane %v5037_v40, 4  ;;  %v5057_v52 = vrot.slane %v5055_v41, 4  ;;  %v5060_v53 = vrot.slane %v5058_v7, 5  ;;  %v22984_v55 = vld [vmem:[#allocation7 + $0x138] sm:$0xff]   ;;  %v18837_v24 = vld [vmem:[%s23585_s15 + $0x38] sm:$0x1] }
 0x1cd   : > { %21723 = vmatprep.subr.bf16.mxu1 %v22982_v38  ;;  %v18818_v50 = vcombine.low %v5019_v39, %v5029_v44  ;;  %v5047_v56 = vor.u32 %v5046_v45, %v5042_v33  ;;  %v5066_v57 = vrot.slane %v5064_v48, 5  ;;  %v5068_v58 = vshrl.u32 %v18803_v22, 16  ;;  %v22731_v22 = vld [vmem:[%s23585_s15 + $0x84] sm:$0xff]   ;;  %v18838_v30 = vld [vmem:[%s23585_s15 + $0x3c] sm:$0xe] }
 0x1ce   : > { %v5074_v59 = vshll.u32 %v18804_v31, 16  ;;  %v5061_v62 = vor.u32 %v5060_v53, %v5057_v52  ;;  %v18877_v0 = vrot.slane %v18829_v42, 9  ;;  %v5562_v1 = vrot.slane %v18830_v43, 5  ;;  %v18839_v31 = vld [vmem:[%s23585_s15 + $0x40] sm:$0xf]  ;;  %v22732_v53 = vld [vmem:[%s23585_s15 + $0x90] sm:$0xff]  }
 0x1cf   : > { %20799 = vmatmul.mubr.bf16.gmra.mrb[24].mxu0 %v18818_v50  ;;  %v5043_v19 = vsel %vm23612_vm2, %v5038_v51, %v5042_v33  ;;  %v5048_v3 = vrot.slane %v5047_v56, 4  ;;  %v5070_v4 = vrot.slane %v5068_v58, 4  ;;  %v5565_v5 = vrot.slane %v18831_v49, 5  ;;  %v18840_v35 = vld [vmem:[%s23585_s15 + $0x44] sm:$0x1] }
 0x1d0   : > { %21731 = vmatpush3.bf16.msra.mxu1 %v22982_v38  ;;  %v5062_v8 = vrot.slane %v5061_v62, 4  ;;  %v5076_v9 = vrot.slane %v5074_v59, 5  ;;  %v5564_v10 = vrot.slane %v5562_v1, 4  ;;  %v5563_v13 = vsel %vm23669_vm5, %v18877_v0, %v5562_v1  ;;  %v18841_v7 = vld [vmem:[%s23585_s15 + $0x48] sm:$0xe] }
 0x1d1   : > { %21724 = vmatprep.subr.bf16.mxu1 %v22983_v60  ;;  %v5053_v11 = vsel %vm23612_vm2, %v5048_v3, %v5052_v46  ;;  %v5071_v12 = vor.u32 %v5070_v4, %v5066_v57  ;;  %v5569_v15 = vrot.slane %v18833_v63, 5  ;;  %v18878_v21 = vrot.slane %v18832_v2, 9  ;;  %v18842_v44 = vld [vmem:[%s23585_s15 + $0x4c] sm:$0xf]  ;;  %v18843_v45 = vld [vmem:[%s23585_s15 + $0x50] sm:$0x1] }
 0x1d2   : > { %v18819_v18 = vcombine.low %v5043_v19, %v5053_v11  ;;  %v5566_v20 = vsel %vm23669_vm5, %v5564_v10, %v5565_v5  ;;  %v5572_v37 = vrot.slane %v18834_v6, 5  ;;  %v5067_v25 = vsel %vm23612_vm2, %v5062_v8, %v5066_v57  ;;  %v18845_v56 = vld [vmem:[%s23585_s15 + $0x58] sm:$0xf]  ;;  %v18846_v58 = vld [vmem:[%s23585_s15 + $0x5c] sm:$0x1] }
 0x1d3   : > { %20595 = vmatmul.mubr.bf16.gmra.mrb[12].mxu1 %v22727_v47  ;;  %v5072_v26 = vrot.slane %v5071_v12, 4  ;;  %v18879_v27 = vrot.slane %v18835_v16, 9  ;;  %v5571_v28 = vrot.slane %v5569_v15, 4  ;;  %v5576_v29 = vrot.slane %v18836_v23, 5  ;;  %v18847_v2 = vld [vmem:[%s23585_s15 + $0x60] sm:$0xe] }
 0x1d4   : > { %20598 = vmatprep.mubr.bf16.mxu1 %v22729_v54  ;;  %21732 = vmatpush3.bf16.msra.mxu1 %v22983_v60  ;;  %v18893_v33 = vcombine.low %v5563_v13, %v5566_v20  ;;  %v5579_v34 = vrot.slane %v18837_v24, 5  ;;  %v5583_v38 = vrot.slane %v18839_v31, 5  ;;  %v18880_v41 = vrot.slane %v18838_v30, 9  ;;  %v18844_v54 = vld [vmem:[%s23585_s15 + $0x54] sm:$0xe]  ;;  %v22733_v3 = vld [vmem:[%s23585_s15 + $0x9c] sm:$0xff]  }
 0x1d5   : > { %21725 = vmatprep.subr.bf16.mxu1 %v22984_v55  ;;  %20802 = vmatprep.mubr.bf16.mxu0 %v18819_v18  ;;  %v5077_v32 = vsel %vm23612_vm2, %v5072_v26, %v5076_v9  ;;  %v5578_v40 = vrot.slane %v5576_v29, 4  ;;  %v5586_v43 = vrot.slane %v18840_v35, 5  ;;  %v18881_v46 = vrot.slane %v18841_v7, 9  ;;  %v18848_v5 = vld [vmem:[%s23585_s15 + $0x64] sm:$0xf] }
 0x1d6   : > { %v18820_v39 = vcombine.low %v5067_v25, %v5077_v32  ;;  %v5585_v42 = vrot.slane %v5583_v38, 4  ;;  %v5590_v47 = vrot.slane %v18842_v44, 5  ;;  %v5593_v48 = vrot.slane %v18843_v45, 5  ;;  %v18849_v6 = vld [vmem:[%s23585_s15 + $0x68] sm:$0x1] }
 0x1d7   : > { %v5570_v49 = vsel %vm23669_vm5, %v18878_v21, %v5569_v15  ;;  %v5573_v50 = vsel %vm23669_vm5, %v5571_v28, %v5572_v37  ;;  %v5577_v51 = vsel %vm23669_vm5, %v18879_v27, %v5576_v29  ;;  %v5580_v52 = vsel %vm23669_vm5, %v5578_v40, %v5579_v34  ;;  %v18850_v15 = vld [vmem:[%s23585_s15 + $0x6c] sm:$0xe]  ;;  %v18851_v16 = vld [vmem:[%s23585_s15 + $0x70] sm:$0xf]  ;;  %v18852_v21 = vld [vmem:[%s23585_s15 + $0x74] sm:$0x1] }
 0x1d8   : > { %21733 = vmatpush3.bf16.msra.mxu1 %v22984_v55  ;;  %20803 = vmatmul.mubr.bf16.gmra.mrb[28].mxu0 %v18820_v39  ;;  %v5592_v57 = vrot.slane %v5590_v47, 4  ;;  %v18882_v59 = vrot.slane %v18844_v54, 9  ;;  %v24233_v60 = vsel %vm23669_vm5, %v18880_v41, %v5583_v38  ;;  %v24237_v62 = vsel %vm23669_vm5, %v5585_v42, %v5586_v43  ;;  %v18566_v27 = vld [vmem:[%s23585_s15 + $0x70] sm:$0xf]  ;;  %v18567_v28 = vld [vmem:[%s23585_s15 + $0x74] sm:$0x1] }
 0x1d9   : > { %20854 = vmatprep.subr.bf16.mxu1 %v24201_v17  ;;  %20822 = vmatprep.mubr.bf16.mxu0 %v18893_v33  ;;  %v5597_v0 = vrot.slane %v18845_v56, 5  ;;  %v5600_v1 = vrot.slane %v18846_v58, 5  ;;  %v18894_v63 = vcombine.low %v5570_v49, %v5573_v50  ;;  %v18895_v19 = vcombine.low %v5577_v51, %v5580_v52  ;;  %v22734_v29 = vld [vmem:[%s23585_s15 + $0xa8] sm:$0xff]   ;;  %v18853_v34 = vld [vmem:[%s23585_s15 + $0x78] sm:$0xe] }
 0x1da   : > { %v24243_v4 = vsel %vm23669_vm5, %v18881_v46, %v5590_v47  ;;  %v18883_v8 = vrot.slane %v18847_v2, 9  ;;  %v24249_v9 = vsel %vm23669_vm5, %v5592_v57, %v5593_v48  ;;  %v5604_v12 = vrot.slane %v18848_v5, 5  ;;  %v18854_v41 = vld [vmem:[%s23585_s15 + $0x7c] sm:$0xf]  ;;  %v18855_v7 = vld [vmem:[%s23585_s15 + $0x80] sm:$0x1] }
 0x1db   : > { %20599 = vmatmul.mubr.bf16.gmra.mrb[16].mxu1 %v22730_v14  ;;  %v24253_v10 = vsel %vm23669_vm5, %v18882_v59, %v5597_v0  ;;  %v5599_v11 = vrot.slane %v5597_v0, 4  ;;  %v18896_v13 = vcombine.low %v24233_v60, %v24237_v62  ;;  %v5607_v14 = vrot.slane %v18849_v6, 5  ;;  %v18568_v46 = vld [vmem:[%s23585_s15 + $0x78] sm:$0xf]  ;;  %v18569_v52 = vld [vmem:[%s23585_s15 + $0x7c] sm:$0xf] }
 0x1dc   : > { %20602 = vmatprep.mubr.bf16.mxu1 %v22731_v22  ;;  %v24265_v18 = vsel %vm23669_vm5, %v18883_v8, %v5604_v12  ;;  %v5606_v20 = vrot.slane %v5604_v12, 4  ;;  %v18884_v37 = vrot.slane %v18850_v15, 9  ;;  %v18565_v22 = vld [vmem:[%s23585_s15 + $0x6c] sm:$0xf]  ;;  %v18897_v23 = vcombine.low %v24243_v4, %v24249_v9  ;;  %v22735_v47 = vld [vmem:[%s23585_s15 + $0xb4] sm:$0xff]  }
 0x1dd   : > { %v24261_v55 = vsel %vm23669_vm5, %v5599_v11, %v5600_v1  ;;  %v5611_v25 = vrot.slane %v18851_v16, 5  ;;  %v5614_v26 = vrot.slane %v18852_v21, 5  ;;  %v3024_v31 = vshrl.u32 %v18565_v22, 16  ;;  %v18570_v58 = vld [vmem:[%s23585_s15 + $0x80] sm:$0x1] }
 0x1de   : > { %v18898_v24 = vcombine.low %v24253_v10, %v24261_v55  ;;  %v24278_v30 = vsel %vm23669_vm5, %v5606_v20, %v5607_v14  ;;  %v3027_v32 = vshll.u32 %v18565_v22, 16  ;;  %v3033_v33 = vshll.u32 %v18566_v27, 16  ;;  %v18856_v59 = vld [vmem:[%s23585_s15 + $0x84] sm:$0xe]  ;;  %v18857_v2 = vld [vmem:[%s23585_s15 + $0x88] sm:$0xf] }
 0x1df   : > { %v18899_v35 = vcombine.low %v24265_v18, %v24278_v30  ;;  %v24285_v38 = vsel %vm23669_vm5, %v18884_v37, %v5611_v25  ;;  %v5613_v39 = vrot.slane %v5611_v25, 4  ;;  %v3037_v40 = vshrl.u32 %v18566_v27, 16  ;;  %v18571_v22 = vld [vmem:[%s23585_s15 + $0x84] sm:$0xf] }
 0x1e0   : > { %20823 = vmatmul.mubr.bf16.vlgmr.msra.gmra.mrb[0].mxu0 %v18894_v63  ;;  %v3026_v42 = vrot.slane %v3024_v31, 4  ;;  %v3029_v43 = vrot.slane %v3027_v32, 5  ;;  %v3035_v44 = vrot.slane %v3033_v33, 5  ;;  %v3043_v45 = vshll.u32 %v18567_v28, 16  ;;  %v18858_v63 = vld [vmem:[%s23585_s15 + $0x8c] sm:$0x1] }
 0x1e1   : > { %20826 = vmatprep.mubr.bf16.mxu0 %v18895_v19  ;;  %v24293_v48 = vsel %vm23669_vm5, %v5613_v39, %v5614_v26  ;;  %v3039_v49 = vrot.slane %v3037_v40, 4  ;;  %v18885_v50 = vrot.slane %v18853_v34, 9  ;;  %v5618_v51 = vrot.slane %v18854_v41, 5  ;;  %v22736_v25 = vld [vmem:[%s23585_s15 + $0xc0] sm:$0xff]   ;;  %v18573_v32 = vld [vmem:[%s23585_s15 + $0x8c] sm:$0x1] }
 0x1e2   : > { %v3030_v54 = vor.u32 %v3029_v43, %v3026_v42  ;;  %v3045_v56 = vrot.slane %v3043_v45, 5  ;;  %v5621_v57 = vrot.slane %v18855_v7, 5  ;;  %v3048_v1 = vshrl.u32 %v18568_v46, 16  ;;  %v18859_v43 = vld [vmem:[%s23585_s15 + $0x90] sm:$0xe] }
 0x1e3   : > { %20603 = vmatmul.mubr.bf16.gmra.mrb[20].mxu1 %v22732_v53  ;;  %v18900_v53 = vcombine.low %v24285_v38, %v24293_v48  ;;  %v3040_v60 = vor.u32 %v3039_v49, %v3035_v44  ;;  %v24302_v62 = vsel %vm23669_vm5, %v18885_v50, %v5618_v51  ;;  %v5620_v0 = vrot.slane %v5618_v51, 4  ;;  %v18860_v49 = vld [vmem:[%s23585_s15 + $0x94] sm:$0xf]  ;;  %v22739_v48 = vld [vmem:[#allocation13 + $0x10] sm:$0xff]  }
 0x1e4   : > { %20606 = vmatprep.mubr.bf16.mxu1 %v22733_v3  ;;  %v3031_v19 = vrot.slane %v3030_v54, 4  ;;  %v3051_v3 = vshll.u32 %v18568_v46, 16  ;;  %v3057_v4 = vshll.u32 %v18569_v52, 16  ;;  %v3061_v5 = vshrl.u32 %v18569_v52, 16 }
 0x1e5   : > { %v3041_v6 = vrot.slane %v3040_v60, 4  ;;  %v24308_v8 = vsel %vm23669_vm5, %v5620_v0, %v5621_v57  ;;  %v3050_v9 = vrot.slane %v3048_v1, 4  ;;  %v3067_v11 = vshll.u32 %v18570_v58, 16  ;;  %v18574_v57 = vld [vmem:[%s23585_s15 + $0x90] sm:$0xf] }
 0x1e6   : > { %v3036_v12 = vsel %vm23612_vm2, %v3031_v19, %v3035_v44  ;;  %v18901_v14 = vcombine.low %v24302_v62, %v24308_v8  ;;  %v3053_v15 = vrot.slane %v3051_v3, 5  ;;  %v3063_v20 = vrot.slane %v3061_v5, 4  ;;  %v18575_v1 = vld [vmem:[%s23585_s15 + $0x94] sm:$0xf]  ;;  %v18867_v8 = vld [vmem:[%s23585_s15 + $0xb0] sm:$0x1] }
 0x1e7   : > { %v3046_v16 = vsel %vm23612_vm2, %v3041_v6, %v3045_v56  ;;  %v3069_v21 = vrot.slane %v3067_v11, 5  ;;  %v18886_v37 = vrot.slane %v18856_v59, 9  ;;  %v5625_v27 = vrot.slane %v18857_v2, 5  ;;  %v18861_v56 = vld [vmem:[%s23585_s15 + $0x98] sm:$0x1] }
 0x1e8   : > { %20827 = vmatmul.mubr.bf16.gmra.mrb[4].mxu0 %v18896_v13  ;;  %v3059_v13 = vrot.slane %v3057_v4, 5  ;;  %v18597_v26 = vcombine.low %v3036_v12, %v3046_v16  ;;  %v5628_v28 = vrot.slane %v18858_v63, 5  ;;  %v3072_v33 = vshrl.u32 %v18571_v22, 16  ;;  %v18576_v63 = vld [vmem:[%s23585_s15 + $0x98] sm:$0x1] }
 0x1e9   : > { %20830 = vmatprep.mubr.bf16.mxu0 %v18897_v23  ;;  %v3054_v23 = vor.u32 %v3053_v15, %v3050_v9  ;;  %v3075_v34 = vshll.u32 %v18571_v22, 16  ;;  %v24322_v41 = vsel %vm23669_vm5, %v18886_v37, %v5625_v27  ;;  %v5627_v7 = vrot.slane %v5625_v27, 4  ;;  %v18862_v6 = vld [vmem:[%s23585_s15 + $0x9c] sm:$0xe]  ;;  %v18863_v9 = vld [vmem:[%s23585_s15 + $0xa0] sm:$0xf] }
 0x1ea   : > { %v3064_v31 = vor.u32 %v3063_v20, %v3059_v13  ;;  %v3074_v45 = vrot.slane %v3072_v33, 4  ;;  %v3091_v54 = vshll.u32 %v18573_v32, 16  ;;  %v18887_v0 = vrot.slane %v18859_v43, 9  ;;  %v18864_v11 = vld [vmem:[%s23585_s15 + $0xa4] sm:$0x1] }
 0x1eb   : > { %20607 = vmatmul.mubr.bf16.gmra.mrb[24].mxu1 %v22734_v29  ;;  %v18572_v29 = vld [vmem:[%s23585_s15 + $0x88] sm:$0xf]  ;;  %v3055_v40 = vrot.slane %v3054_v23, 4  ;;  %v3077_v46 = vrot.slane %v3075_v34, 5  ;;  %v24330_v51 = vsel %vm23669_vm5, %v5627_v7, %v5628_v28  ;;  %v5635_v3 = vrot.slane %v18861_v56, 5 }
 0x1ec   : > { %20610 = vmatprep.mubr.bf16.mxu1 %v22735_v47  ;;  %v3081_v39 = vshll.u32 %v18572_v29, 16  ;;  %v3085_v42 = vshrl.u32 %v18572_v29, 16  ;;  %v3065_v44 = vrot.slane %v3064_v31, 4  ;;  %v18902_v59 = vcombine.low %v24322_v41, %v24330_v51  ;;  %v18577_v23 = vld [vmem:[%s23585_s15 + $0x9c] sm:$0xf] }
 0x1ed   : > { %v3060_v50 = vsel %vm23612_vm2, %v3055_v40, %v3059_v13  ;;  %v3078_v60 = vor.u32 %v3077_v46, %v3074_v45  ;;  %v3093_v55 = vrot.slane %v3091_v54, 5  ;;  %v3096_v4 = vshrl.u32 %v18574_v57, 16  ;;  %v18578_v32 = vld [vmem:[%s23585_s15 + $0xa0] sm:$0xf]  ;;  %v18579_v7 = vld [vmem:[%s23585_s15 + $0xa4] sm:$0x1] }
 0x1ee   : > { %v3083_v47 = vrot.slane %v3081_v39, 5  ;;  %v3087_v52 = vrot.slane %v3085_v42, 4  ;;  %v3070_v58 = vsel %vm23612_vm2, %v3065_v44, %v3069_v21  ;;  %v3099_v5 = vshll.u32 %v18574_v57, 16  ;;  %v18865_v46 = vld [vmem:[%s23585_s15 + $0xa8] sm:$0xe] }
 0x1ef   : > { %v18598_v2 = vcombine.low %v3060_v50, %v3070_v58  ;;  %v3079_v19 = vrot.slane %v3078_v60, 4  ;;  %v3105_v30 = vshll.u32 %v18575_v1, 16  ;;  %v3098_v16 = vrot.slane %v3096_v4, 4  ;;  %v18580_v60 = vld [vmem:[%s23585_s15 + $0xa8] sm:$0xf] }
 0x1f0   : > { %20831 = vmatmul.mubr.bf16.gmra.mrb[8].mxu0 %v18898_v24  ;;  %v3088_v10 = vor.u32 %v3087_v52, %v3083_v47  ;;  %v5632_v24 = vrot.slane %v18860_v49, 5  ;;  %v3101_v20 = vrot.slane %v3099_v5, 5  ;;  %v3109_v21 = vshrl.u32 %v18575_v1, 16  ;;  %v18866_v49 = vld [vmem:[%s23585_s15 + $0xac] sm:$0xf] }
 0x1f1   : > { %20834 = vmatprep.mubr.bf16.mxu0 %v18899_v35  ;;  %v22738_v35 = vld [vmem:[#allocation13 + $0x8] sm:$0xff]   ;;  %v3084_v13 = vsel %vm23612_vm2, %v3079_v19, %v3083_v47  ;;  %v18888_v34 = vrot.slane %v18862_v6, 9  ;;  %v5639_v39 = vrot.slane %v18863_v9, 5  ;;  %v5642_v40 = vrot.slane %v18864_v11, 5  ;;  %v18582_v5 = vld [vmem:[%s23585_s15 + $0xb0] sm:$0x1] }
 0x1f2   : > { %v3089_v12 = vrot.slane %v3088_v10, 4  ;;  %v24351_v15 = vsel %vm23669_vm5, %v18887_v0, %v5632_v24  ;;  %v5634_v18 = vrot.slane %v5632_v24, 4  ;;  %v3102_v29 = vor.u32 %v3101_v20, %v3098_v16 }
 0x1f3   : > { %20611 = vmatmul.mubr.bf16.gmra.mrb[28].mxu1 %v22736_v25  ;;  %v3107_v25 = vrot.slane %v3105_v30, 5  ;;  %v3111_v31 = vrot.slane %v3109_v21, 4  ;;  %v3120_v44 = vshrl.u32 %v18577_v23, 16  ;;  %v3123_v45 = vshll.u32 %v18577_v23, 16  ;;  %v18869_v30 = vld [vmem:[%s23585_s15 + $0xb8] sm:$0xf] }
 0x1f4   : > { %20646 = vmatprep.mubr.bf16.mxu1 %v18597_v26  ;;  %v3094_v37 = vsel %vm23612_vm2, %v3089_v12, %v3093_v55  ;;  %v24359_v22 = vsel %vm23669_vm5, %v5634_v18, %v5635_v3  ;;  %v3115_v26 = vshll.u32 %v18576_v63, 16  ;;  %v3103_v42 = vrot.slane %v3102_v29, 4  ;;  %v18581_v55 = vld [vmem:[%s23585_s15 + $0xac] sm:$0xf]  ;;  %v18868_v18 = vld [vmem:[%s23585_s15 + $0xb4] sm:$0xe] }
 0x1f5   : > { %v18599_v27 = vcombine.low %v3084_v13, %v3094_v37  ;;  %v18903_v28 = vcombine.low %v24351_v15, %v24359_v22  ;;  %v3112_v43 = vor.u32 %v3111_v31, %v3107_v25  ;;  %v24376_v47 = vsel %vm23669_vm5, %v18888_v34, %v5639_v39  ;;  %v22740_v63 = vld [vmem:[#allocation13 + $0x18] sm:$0xff]  }
 0x1f6   : > { %v3117_v33 = vrot.slane %v3115_v26, 5  ;;  %v5641_v38 = vrot.slane %v5639_v39, 4  ;;  %v3108_v50 = vsel %vm23612_vm2, %v3103_v42, %v3107_v25  ;;  %v3122_v54 = vrot.slane %v3120_v44, 4  ;;  %v18583_v31 = vld [vmem:[%s23585_s15 + $0xb4] sm:$0xf] }
 0x1f7   : > { %v3113_v52 = vrot.slane %v3112_v43, 4  ;;  %v3125_v62 = vrot.slane %v3123_v45, 5  ;;  %v3139_v58 = vshll.u32 %v18579_v7, 16  ;;  %v18889_v10 = vrot.slane %v18865_v46, 9  ;;  %v18585_v42 = vld [vmem:[%s23585_s15 + $0xbc] sm:$0x1] }
 0x1f8   : > { %20835 = vmatmul.mubr.bf16.gmra.mrb[12].mxu0 %v18900_v53  ;;  %v3129_v53 = vshll.u32 %v18578_v32, 16  ;;  %v5646_v4 = vrot.slane %v18866_v49, 5  ;;  %v5649_v9 = vrot.slane %v18867_v8, 5  ;;  %v3144_v11 = vshrl.u32 %v18580_v60, 16 }
 0x1f9   : > { %20838 = vmatprep.mubr.bf16.mxu0 %v18901_v14  ;;  %v24384_v14 = vsel %vm23669_vm5, %v5641_v38, %v5642_v40  ;;  %v3118_v0 = vsel %vm23612_vm2, %v3113_v52, %v3117_v33  ;;  %v3141_v3 = vrot.slane %v3139_v58, 5  ;;  %v3147_v12 = vshll.u32 %v18580_v60, 16  ;;  %v18584_v40 = vld [vmem:[%s23585_s15 + $0xb8] sm:$0xf]  ;;  %v18871_v38 = vld [vmem:[%s23585_s15 + $0xc0] sm:$0xe] }
 0x1fa   : > { %v3131_v56 = vrot.slane %v3129_v53, 5  ;;  %v18904_v1 = vcombine.low %v24376_v47, %v24384_v14  ;;  %v18600_v24 = vcombine.low %v3108_v50, %v3118_v0  ;;  %v5647_v16 = vsel %vm23669_vm5, %v18889_v10, %v5646_v4  ;;  %v18872_v52 = vld [vmem:[%s23585_s15 + $0xc4] sm:$0xf]  ;;  %v18586_v10 = vld [vmem:[%s23585_s15 + $0xc0] sm:$0xf] }
 0x1fb   : > { %20647 = vmatmul.mubr.bf16.vlgmr.msra.gmra.mrb[16].mxu1 %v18598_v2  ;;  %v3126_v2 = vor.u32 %v3125_v62, %v3122_v54  ;;  %v5648_v20 = vrot.slane %v5646_v4, 4  ;;  %v3153_v21 = vshll.u32 %v18581_v55, 16  ;;  %v3146_v25 = vrot.slane %v3144_v11, 4  ;;  %v18588_v47 = vld [vmem:[%s23585_s15 + $0xc8] sm:$0x1] }
 0x1fc   : > { %20855 = vmatpush3.bf16.msra.mxu1 %v24201_v17  ;;  %v3133_v17 = vshrl.u32 %v18578_v32, 16  ;;  %20650 = vmatprep.mubr.bf16.mxu1 %v18599_v27  ;;  %v3149_v26 = vrot.slane %v3147_v12, 5  ;;  %v3157_v23 = vshrl.u32 %v18581_v55, 16  ;;  %v22741_v27 = vld [vmem:[#allocation13 + $0x20] sm:$0xff]   ;;  %v18890_v15 = vrot.slane %v18868_v18, 9  ;;  %v22743_v14 = vld [vmem:[#allocation13 + $0x30] sm:$0xff]  }
 0x1fd   : > { %20856 = vmatprep.subr.bf16.mxu1 %v22738_v35  ;;  %v3127_v6 = vrot.slane %v3126_v2, 4  ;;  %v5650_v41 = vsel %vm23669_vm5, %v5648_v20, %v5649_v9  ;;  %v3155_v51 = vrot.slane %v3153_v21, 5  ;;  %v5653_v22 = vrot.slane %v18869_v30, 5  ;;  %v18874_v30 = vld [vmem:[%s23585_s15 + $0xcc] sm:$0xe] }
 0x1fe   : > { %v3135_v57 = vrot.slane %v3133_v17, 4  ;;  %v18905_v33 = vcombine.low %v5647_v16, %v5650_v41  ;;  %v3150_v34 = vor.u32 %v3149_v26, %v3146_v25  ;;  %v3159_v39 = vrot.slane %v3157_v23, 4  ;;  %v22742_v17 = vld [vmem:[#allocation13 + $0x28] sm:$0xff]  }
 0x1ff   : > { %v3132_v37 = vsel %vm23612_vm2, %v3127_v6, %v3131_v56  ;;  %v3168_v45 = vshrl.u32 %v18583_v31, 16  ;;  %v3171_v46 = vshll.u32 %v18583_v31, 16  ;;  %v5655_v53 = vrot.slane %v5653_v22, 4 }
 0x200   : > { %20857 = vmatpush3.bf16.msra.mxu1 %v22738_v35  ;;  %v3136_v19 = vor.u32 %v3135_v57, %v3131_v56  ;;  %v18870_v35 = vld [vmem:[%s23585_s15 + $0xbc] sm:$0x1]  ;;  %20839 = vmatmul.mubr.bf16.gmra.mrb[16].mxu0 %v18902_v59  ;;  %v3163_v59 = vshll.u32 %v18582_v5, 16  ;;  %v3151_v43 = vrot.slane %v3150_v34, 4  ;;  %v3160_v44 = vor.u32 %v3159_v39, %v3155_v51  ;;  %v18873_v57 = vld [vmem:[%s23585_s15 + $0xc8] sm:$0x1] }
 0x201   : > { %20858 = vmatprep.subr.bf16.mxu1 %v22739_v48  ;;  %20842 = vmatprep.mubr.bf16.mxu0 %v18903_v28  ;;  %v5656_v28 = vrot.slane %v18870_v35, 5  ;;  %v3177_v49 = vshll.u32 %v18584_v40, 16  ;;  %v3181_v50 = vshrl.u32 %v18584_v40, 16  ;;  %v3170_v8 = vrot.slane %v3168_v45, 4  ;;  %v18875_v35 = vld [vmem:[%s23585_s15 + $0xd0] sm:$0xf] }
 0x202   : > { %v3137_v13 = vrot.slane %v3136_v19, 4  ;;  %v3165_v7 = vrot.slane %v3163_v59, 5  ;;  %v3156_v54 = vsel %vm23612_vm2, %v3151_v43, %v3155_v51  ;;  %v3161_v62 = vrot.slane %v3160_v44, 4  ;;  %v22744_v39 = vld [vmem:[#allocation13 + $0x38] sm:$0xff]  }
 0x203   : > { %20651 = vmatmul.mubr.bf16.gmra.mrb[20].mxu1 %v18600_v24  ;;  %v3173_v56 = vrot.slane %v3171_v46, 5  ;;  %v5657_v58 = vsel %vm23669_vm5, %v5655_v53, %v5656_v28  ;;  %v3179_v60 = vrot.slane %v3177_v49, 5  ;;  %v3183_v0 = vrot.slane %v3181_v50, 4  ;;  %v22774_v43 = vld [vmem:[#allocation10] sm:$0xff]  }
 0x204   : > { %20859 = vmatpush3.bf16.msra.mxu1 %v22739_v48  ;;  %v3142_v29 = vsel %vm23612_vm2, %v3137_v13, %v3141_v3  ;;  %v24416_v48 = vsel %vm23669_vm5, %v18890_v15, %v5653_v22  ;;  %v3187_v2 = vshll.u32 %v18585_v42, 16  ;;  %v3166_v55 = vsel %vm23612_vm2, %v3161_v62, %v3165_v7  ;;  %v18587_v3 = vld [vmem:[%s23585_s15 + $0xc4] sm:$0xf]  ;;  %v18876_v13 = vld [vmem:[%s23585_s15 + $0xd4] sm:$0x1]  ;;  %21286 = vmatprep.subr.bf16.mxu0 %v22774_v43  ;;  %v22747_v62 = vld [vmem:[%s23585_s15 + $0x18] sm:$0xff]  }
 0x205   : > { %20860 = vmatprep.subr.bf16.mxu1 %v22740_v63  ;;  %v18601_v32 = vcombine.low %v3132_v37, %v3142_v29  ;;  %v18906_v24 = vcombine.low %v24416_v48, %v5657_v58  ;;  %v18891_v19 = vrot.slane %v18871_v38, 9  ;;  %v18602_v4 = vcombine.low %v3156_v54, %v3166_v55  ;;  %v22745_v48 = vld [vmem:[%s23585_s15] sm:$0xff]   ;;  %21287 = vmatpush3.bf16.msra.mxu0 %v22774_v43  ;;  %v22746_v54 = vld [vmem:[%s23585_s15 + $0xc] sm:$0xff]  }
 0x206   : > { %v3184_v5 = vor.u32 %v3183_v0, %v3179_v60  ;;  %v3189_v6 = vrot.slane %v3187_v2, 5  ;;  %v5660_v9 = vrot.slane %v18872_v52, 5  ;;  %v5663_v11 = vrot.slane %v18873_v57, 5  ;;  %v22755_v53 = vld [vmem:[#allocation13 + $0x40] sm:$0xff]   ;;  %v22748_v57 = vld [vmem:[%s23585_s15 + $0x24] sm:$0xff]   ;;  %v22760_v0 = vld [vmem:[#allocation13 + $0x58] sm:$0xff]  }
 0x207   : > { %20654 = vmatprep.mubr.bf16.mxu1 %v18601_v32  ;;  %v3192_v12 = vshrl.u32 %v18586_v10, 16  ;;  %v3195_v18 = vshll.u32 %v18586_v10, 16  ;;  %v3201_v37 = vshll.u32 %v18587_v3, 16  ;;  %v3211_v59 = vshll.u32 %v18588_v47, 16  ;;  %v22749_v58 = vld [vmem:[%s23585_s15 + $0x30] sm:$0xff]  }
 0x208   : > { %20861 = vmatpush3.bf16.msra.mxu1 %v22740_v63  ;;  %20843 = vmatmul.mubr.bf16.gmra.mrb[20].mxu0 %v18904_v1  ;;  %v3174_v63 = vor.u32 %v3173_v56, %v3170_v8  ;;  %v3185_v16 = vrot.slane %v3184_v5, 4  ;;  %v5661_v20 = vsel %vm23669_vm5, %v18891_v19, %v5660_v9  ;;  %v5662_v21 = vrot.slane %v5660_v9, 4  ;;  %v22756_v8 = vld [vmem:[#allocation13 + $0x48] sm:$0xff]   ;;  %v22759_v56 = vld [vmem:[#allocation13 + $0x50] sm:$0xff]   ;;  %v22763_v10 = vld [vmem:[#allocation13 + $0x60] sm:$0xff]  }
 0x209   : > { %20862 = vmatprep.subr.bf16.mxu1 %v22741_v27  ;;  %20846 = vmatprep.mubr.bf16.mxu0 %v18905_v33  ;;  %v3194_v26 = vrot.slane %v3192_v12, 4  ;;  %v3197_v23 = vrot.slane %v3195_v18, 5  ;;  %v3203_v51 = vrot.slane %v3201_v37, 5  ;;  %v3213_v40 = vrot.slane %v3211_v59, 5  ;;  %v22779_v2 = vld [vmem:[#allocation10 + $0x10] sm:$0xff]   ;;  %v22780_v55 = vld [vmem:[#allocation10 + $0x18] sm:$0xff]  }
 0x20a   : > { %v3175_v1 = vrot.slane %v3174_v63, 4  ;;  %v3190_v29 = vsel %vm23612_vm2, %v3185_v16, %v3189_v6  ;;  %v5664_v41 = vsel %vm23669_vm5, %v5662_v21, %v5663_v11  ;;  %v18892_v7 = vrot.slane %v18874_v30, 9  ;;  %v22751_v63 = vld [vmem:[%s23585_s15 + $0x48] sm:$0xff]   ;;  %v22752_v5 = vld [vmem:[%s23585_s15 + $0x54] sm:$0xff]   ;;  %v7179_v6 = vld [vmem:[%s23585_s15] sm:$0xf] }
 0x20b   : > { %20655 = vmatmul.mubr.bf16.gmra.mrb[24].mxu1 %v18602_v4  ;;  %v18907_v32 = vcombine.low %v5661_v20, %v5664_v41  ;;  %v3198_v33 = vor.u32 %v3197_v23, %v3194_v26  ;;  %v5667_v15 = vrot.slane %v18875_v35, 5  ;;  %v5670_v22 = vrot.slane %v18876_v13, 5  ;;  %v22764_v19 = vld [vmem:[#allocation13 + $0x68] sm:$0xff]   ;;  %v22767_v4 = vld [vmem:[#allocation13 + $0x70] sm:$0xff]   ;;  %v22768_v47 = vld [vmem:[#allocation13 + $0x78] sm:$0xff]  }
 0x20c   : > { %20863 = vmatpush3.bf16.msra.mxu1 %v22741_v27  ;;  %v3180_v25 = vsel %vm23612_vm2, %v3175_v1, %v3179_v60  ;;  %v3205_v27 = vshrl.u32 %v18587_v3, 16  ;;  %v22777_v60 = vld [vmem:[#allocation10 + $0x8] sm:$0xff]   ;;  %v22781_v3 = vld [vmem:[#allocation10 + $0x20] sm:$0xff]   ;;  %v7228_v11 = vshrl.u32 %v7179_v6, 16  ;;  %v7182_v12 = vld [vmem:[%s23585_s15 + $0xc] sm:$0xf] }
 0x20d   : > { %20864 = vmatprep.subr.bf16.mxu1 %v22742_v17  ;;  %v18603_v31 = vcombine.low %v3180_v25, %v3190_v29  ;;  %v3199_v28 = vrot.slane %v3198_v33, 4  ;;  %v5668_v44 = vsel %vm23669_vm5, %v18892_v7, %v5667_v15  ;;  %v5669_v45 = vrot.slane %v5667_v15, 4  ;;  %21288 = vmatprep.subr.bf16.mxu0 %v22777_v60  ;;  %v22753_v9 = vld [vmem:[%s23585_s15 + $0x60] sm:$0xff]   ;;  %v7181_v1 = vld [vmem:[%s23585_s15 + $0x8] sm:$0x1]  ;;  %v22754_v21 = vld [vmem:[%s23585_s15 + $0x6c] sm:$0xff]  }
 0x20e   : > { %v3207_v34 = vrot.slane %v3205_v27, 4  ;;  %21289 = vmatpush3.bf16.msra.mxu0 %v22777_v60  ;;  %v7231_v18 = vshll.u32 %v7179_v6, 16  ;;  %v7247_v13 = vshll.u32 %v7181_v1, 16  ;;  %v7252_v16 = vshrl.u32 %v7182_v12, 16  ;;  %v24465_v20 = vld [vmem:[#allocation13 + $0x80] sm:$0xff]  }
 0x20f   : > { %20658 = vmatprep.mubr.bf16.mxu1 %v18603_v31  ;;  %v3204_v46 = vsel %vm23612_vm2, %v3199_v28, %v3203_v51  ;;  %21290 = vmatprep.subr.bf16.mxu0 %v22779_v2  ;;  %v22757_v37 = vld [vmem:[%s23585_s15 + $0x78] sm:$0xff]   ;;  %v7230_v25 = vrot.slane %v7228_v11, 4  ;;  %v7183_v26 = vld [vmem:[%s23585_s15 + $0x10] sm:$0xf]  ;;  %v7255_v27 = vshll.u32 %v7182_v12, 16 }
 0x210   : > { %20865 = vmatpush3.bf16.msra.mxu1 %v22742_v17  ;;  %20847 = vmatmul.mubr.bf16.gmra.mrb[24].mxu0 %v18906_v24  ;;  %v3208_v42 = vor.u32 %v3207_v34, %v3203_v51  ;;  %v5671_v17 = vsel %vm23669_vm5, %v5669_v45, %v5670_v22  ;;  %v22750_v24 = vld [vmem:[%s23585_s15 + $0x3c] sm:$0xff]   ;;  %v7233_v23 = vrot.slane %v7231_v18, 5  ;;  %v7185_v29 = vld [vmem:[%s23585_s15 + $0x18] sm:$0xf]  ;;  %v7184_v31 = vld [vmem:[%s23585_s15 + $0x14] sm:$0x1] }
 0x211   : > { %20866 = vmatprep.subr.bf16.mxu1 %v22743_v14  ;;  %20850 = vmatprep.mubr.bf16.mxu0 %v18907_v32  ;;  %v18908_v50 = vcombine.low %v5668_v44, %v5671_v17  ;;  %v7186_v41 = vld [vmem:[%s23585_s15 + $0x1c] sm:$0xf]  ;;  %v7188_v32 = vld [vmem:[%s23585_s15 + $0x24] sm:$0xf]  ;;  %v24476_v33 = vrot.slane %v7247_v13, 5  ;;  %v7254_v34 = vrot.slane %v7252_v16, 4 }
 0x212   : > { %v3209_v38 = vrot.slane %v3208_v42, 4  ;;  %21291 = vmatpush3.bf16.msra.mxu0 %v22779_v2  ;;  %v7189_v7 = vld [vmem:[%s23585_s15 + $0x28] sm:$0xf]  ;;  %v7276_v15 = vshrl.u32 %v7185_v29, 16  ;;  %v7279_v22 = vshll.u32 %v7185_v29, 16  ;;  %v7285_v28 = vshll.u32 %v7186_v41, 16 }
 0x213   : > { %21292 = vmatprep.subr.bf16.mxu0 %v22780_v55  ;;  %v7289_v42 = vshrl.u32 %v7186_v41, 16  ;;  %v7257_v43 = vrot.slane %v7255_v27, 5  ;;  %v7271_v44 = vshll.u32 %v7184_v31, 16  ;;  %v7300_v45 = vshrl.u32 %v7188_v32, 16  ;;  %v7187_v60 = vld [vmem:[%s23585_s15 + $0x20] sm:$0x1] }
 0x214   : > { %20867 = vmatpush3.bf16.msra.mxu1 %v22743_v14  ;;  %v3214_v49 = vsel %vm23612_vm2, %v3209_v38, %v3213_v40  ;;  %v7180_v14 = vld [vmem:[%s23585_s15 + $0x4] sm:$0xf]  ;;  %v7265_v40 = vshrl.u32 %v7183_v26, 16  ;;  %v7309_v38 = vshll.u32 %v7189_v7, 16  ;;  %v7234_v17 = vor.u32 %v7233_v23, %v7230_v25  ;;  %v7190_v1 = vld [vmem:[%s23585_s15 + $0x2c] sm:$0x1] }
 0x215   : > { %20868 = vmatprep.subr.bf16.mxu1 %v22744_v39  ;;  %v18604_v52 = vcombine.low %v3204_v46, %v3214_v49  ;;  %v7237_v30 = vshll.u32 %v7180_v14, 16  ;;  %v7241_v35 = vshrl.u32 %v7180_v14, 16  ;;  %v7303_v46 = vshll.u32 %v7188_v32, 16  ;;  %v7194_v31 = vld [vmem:[%s23585_s15 + $0x3c] sm:$0xf] }
 0x216   : > { %21293 = vmatpush3.bf16.msra.mxu0 %v22780_v55  ;;  %v24492_v6 = vrot.slane %v7234_v17, 4  ;;  %v7273_v11 = vrot.slane %v7271_v44, 5  ;;  %v7295_v18 = vshll.u32 %v7187_v60, 16  ;;  %v7319_v25 = vshll.u32 %v7190_v1, 16  ;;  %v22762_v32 = vld [vmem:[%s23585_s15 + $0x9c] sm:$0xff]  }
 0x217   : > { %20659 = vmatmul.mubr.bf16.gmra.mrb[28].mxu1 %v18604_v52  ;;  %21294 = vmatprep.subr.bf16.mxu0 %v22781_v3  ;;  %v24472_v51 = vrot.slane %v7237_v30, 5  ;;  %v7243_v59 = vrot.slane %v7241_v35, 4  ;;  %v7267_v52 = vrot.slane %v7265_v40, 4  ;;  %v7305_v2 = vrot.slane %v7303_v46, 5  ;;  %v7193_v30 = vld [vmem:[%s23585_s15 + $0x38] sm:$0x1] }
 0x218   : > { %20869 = vmatpush3.bf16.msra.mxu1 %v22744_v39  ;;  %20851 = vmatmul.mubr.bf16.gmra.mrb[28].mxu0 %v18908_v50  ;;  %v7261_v39 = vshll.u32 %v7183_v26, 16  ;;  %v7348_v17 = vshrl.u32 %v7194_v31, 16 }
 0x219   : > { %20902 = vmatprep.subr.bf16.mxu1 %v22755_v53  ;;  %20870 = vmatprep.mubr.bf16.mxu1 %v22745_v48  ;;  %v7313_v48 = vshrl.u32 %v7189_v7, 16  ;;  %v7244_v49 = vor.u32 %v7243_v59, %v24472_v51  ;;  %v7297_v59 = vrot.slane %v7295_v18, 5  ;;  %v7343_v7 = vshll.u32 %v7193_v30, 16 }
 0x21a   : > { %21295 = vmatpush3.bf16.msra.mxu0 %v22781_v3  ;;  %v24482_v50 = vrot.slane %v7261_v39, 5  ;;  %v7240_v44 = vsel %vm23612_vm2, %v24492_v6, %v24472_v51  ;;  %v7351_v51 = vshll.u32 %v7194_v31, 16  ;;  %v22766_v6 = vld [vmem:[%s23585_s15 + $0xb4] sm:$0xff]  }
 0x21c   : > { %v7268_v14 = vor.u32 %v7267_v52, %v24482_v50  ;;  %v7197_v52 = vld [vmem:[%s23585_s15 + $0x48] sm:$0xf] }
 0x21e   : > { %v7269_v29 = vrot.slane %v7268_v14, 4  ;;  %v7353_v14 = vrot.slane %v7351_v51, 5 }
 0x21f   : > { %20871 = vmatmul.mubr.bf16.vlgmr.msra.gmra.mrb[32].mxu1 %v22746_v54  ;;  %v7192_v54 = vld [vmem:[%s23585_s15 + $0x34] sm:$0xf] }
 0x220   : > { %20874 = vmatprep.mubr.bf16.mxu1 %v22747_v62  ;;  %20903 = vmatpush3.bf16.msra.mxu1 %v22755_v53  ;;  %v7191_v53 = vld [vmem:[%s23585_s15 + $0x30] sm:$0xf]  ;;  %v22758_v62 = vld [vmem:[%s23585_s15 + $0x84] sm:$0xff]   ;;  %v7333_v3 = vshll.u32 %v7192_v54, 16 }
 0x221   : > { %20904 = vmatprep.subr.bf16.mxu1 %v22756_v8  ;;  %v7327_v55 = vshll.u32 %v7191_v53, 16 }
 0x222   : > { %v24501_v26 = vrot.slane %v7333_v3, 5 }
 0x224   : > { %20905 = vmatpush3.bf16.msra.mxu1 %v22756_v8  ;;  %v7278_v8 = vrot.slane %v7276_v15, 4  ;;  %v7195_v15 = vld [vmem:[%s23585_s15 + $0x40] sm:$0xf] }
 0x225   : > { %20906 = vmatprep.subr.bf16.mxu1 %v22759_v56 }
 0x227   : > { %20875 = vmatmul.mubr.bf16.gmra.mrb[36].mxu1 %v22748_v57  ;;  %v24486_v57 = vrot.slane %v7285_v28, 5 }
 0x228   : > { %20878 = vmatprep.mubr.bf16.mxu1 %v22749_v58  ;;  %20907 = vmatpush3.bf16.msra.mxu1 %v22759_v56  ;;  %v7281_v56 = vrot.slane %v7279_v22, 5  ;;  %v7291_v58 = vrot.slane %v7289_v42, 4  ;;  %v22765_v22 = vld [vmem:[%s23585_s15 + $0xa8] sm:$0xff]   ;;  %v7321_v42 = vrot.slane %v7319_v25, 5 }
 0x229   : > { %20908 = vmatprep.subr.bf16.mxu1 %v22760_v0 }
 0x22a   : > { %v7282_v12 = vor.u32 %v7281_v56, %v7278_v8  ;;  %v7292_v35 = vor.u32 %v7291_v58, %v24486_v57  ;;  %v7345_v8 = vrot.slane %v7343_v7, 5  ;;  %v7361_v58 = vshrl.u32 %v7195_v15, 16 }
 0x22c   : > { %20909 = vmatpush3.bf16.msra.mxu1 %v22760_v0  ;;  %v7302_v0 = vrot.slane %v7300_v45, 4  ;;  %v7283_v41 = vrot.slane %v7282_v12, 4  ;;  %v24551_v18 = vrot.slane %v7361_v58, 4 }
 0x22d   : > { %20910 = vmatprep.subr.bf16.mxu1 %v22763_v10 }
 0x22e   : > { %v7306_v13 = vor.u32 %v7305_v2, %v7302_v0  ;;  %v7198_v0 = vld [vmem:[%s23585_s15 + $0x4c] sm:$0xf]  ;;  %v7372_v2 = vshrl.u32 %v7197_v52, 16 }
 0x22f   : > { %20879 = vmatmul.mubr.bf16.gmra.mrb[40].mxu1 %v22750_v24  ;;  %v22761_v24 = vld [vmem:[%s23585_s15 + $0x90] sm:$0xff]   ;;  %v7385_v25 = vshrl.u32 %v7198_v0, 16 }
 0x230   : > { %20882 = vmatprep.mubr.bf16.mxu1 %v22751_v63  ;;  %20911 = vmatpush3.bf16.msra.mxu1 %v22763_v10  ;;  %v7324_v10 = vshrl.u32 %v7191_v53, 16  ;;  %v24490_v63 = vrot.slane %v7309_v38, 5  ;;  %v7307_v39 = vrot.slane %v7306_v13, 4  ;;  %v7274_v38 = vsel %vm23612_vm2, %v7269_v29, %v7273_v11  ;;  %v7206_v13 = vld [vmem:[%s23585_s15 + $0x6c] sm:$0xf] }
 0x231   : > { %20912 = vmatprep.subr.bf16.mxu1 %v22764_v19  ;;  %v7288_v53 = vsel %vm23612_vm2, %v7283_v41, %v24486_v57 }
 0x232   : > { %v7326_v16 = vrot.slane %v7324_v10, 4  ;;  %v7375_v10 = vshll.u32 %v7197_v52, 16 }
 0x234   : > { %20913 = vmatpush3.bf16.msra.mxu1 %v22764_v19  ;;  %v7315_v19 = vrot.slane %v7313_v48, 4  ;;  %v7196_v48 = vld [vmem:[%s23585_s15 + $0x44] sm:$0x1] }
 0x235   : > { %20914 = vmatprep.subr.bf16.mxu1 %v22767_v4  ;;  %v7367_v60 = vshll.u32 %v7196_v48, 16 }
 0x237   : > { %20883 = vmatmul.mubr.bf16.gmra.mrb[44].mxu1 %v22752_v5  ;;  %v22782_v5 = vld [vmem:[#allocation10 + $0x28] sm:$0xff]   ;;  %v24553_v30 = vrot.slane %v7367_v60, 5  ;;  %v7208_v60 = vld [vmem:[%s23585_s15 + $0x74] sm:$0x1] }
 0x238   : > { %20886 = vmatprep.mubr.bf16.mxu1 %v22753_v9  ;;  %20915 = vmatpush3.bf16.msra.mxu1 %v22767_v4  ;;  %v7337_v4 = vshrl.u32 %v7192_v54, 16  ;;  %v24494_v9 = vrot.slane %v7244_v49, 4  ;;  %v7357_v49 = vshll.u32 %v7195_v15, 16  ;;  %v22784_v54 = vld [vmem:[#allocation10 + $0x30] sm:$0xff]  }
 0x239   : > { %20916 = vmatprep.subr.bf16.mxu1 %v22768_v47  ;;  %21296 = vmatprep.subr.bf16.mxu0 %v22782_v5 }
 0x23a   : > { %21297 = vmatpush3.bf16.msra.mxu0 %v22782_v5  ;;  %v7339_v23 = vrot.slane %v7337_v4, 4  ;;  %v7250_v45 = vsel %vm23612_vm2, %v24494_v9, %v24476_v33  ;;  %v7203_v4 = vld [vmem:[%s23585_s15 + $0x60] sm:$0xf]  ;;  %v22787_v5 = vld [vmem:[#allocation10 + $0x38] sm:$0xff]   ;;  %v24544_v1 = vrot.slane %v7357_v49, 5 }
 0x23b   : > { %21298 = vmatprep.subr.bf16.mxu0 %v22784_v54  ;;  %v7423_v31 = vshll.u32 %v7203_v4, 16 }
 0x23c   : > { %20917 = vmatpush3.bf16.msra.mxu1 %v22768_v47  ;;  %v7258_v47 = vor.u32 %v7257_v43, %v7254_v34  ;;  %v7293_v34 = vrot.slane %v7292_v35, 4  ;;  %v7340_v43 = vor.u32 %v7339_v23, %v24501_v26  ;;  %v7204_v35 = vld [vmem:[%s23585_s15 + $0x64] sm:$0xf]  ;;  %v7207_v23 = vld [vmem:[%s23585_s15 + $0x70] sm:$0xf]  ;;  %v7364_v58 = vor.u32 %v24551_v18, %v24544_v1 }
 0x23d   : > { %20950 = vmatprep.subr.bf16.mxu1 %v24465_v20  ;;  %v7453_v7 = vshll.u32 %v7207_v23, 16  ;;  %v7457_v15 = vshrl.u32 %v7207_v23, 16  ;;  %v7425_v49 = vrot.slane %v7423_v31, 5 }
 0x23e   : > { %v7259_v27 = vrot.slane %v7258_v47, 4  ;;  %v7298_v33 = vsel %vm23612_vm2, %v7293_v34, %v7297_v59  ;;  %v7341_v57 = vrot.slane %v7340_v43, 4  ;;  %21299 = vmatpush3.bf16.msra.mxu0 %v22784_v54  ;;  %v7350_v47 = vrot.slane %v7348_v17, 4  ;;  %v7202_v17 = vld [vmem:[%s23585_s15 + $0x5c] sm:$0x1] }
 0x23f   : > { %20887 = vmatmul.mubr.bf16.gmra.mrb[48].mxu1 %v22754_v21  ;;  %v7329_v21 = vrot.slane %v7327_v55, 5  ;;  %v7200_v55 = vld [vmem:[%s23585_s15 + $0x54] sm:$0xf]  ;;  %v24538_v3 = vcombine.low %v7288_v53, %v7298_v33  ;;  %21300 = vmatprep.subr.bf16.mxu0 %v22787_v5  ;;  %v7420_v59 = vshrl.u32 %v7203_v4, 16  ;;  %v7433_v34 = vshrl.u32 %v7204_v35, 16 }
 0x240   : > { %20890 = vmatprep.mubr.bf16.mxu1 %v22757_v37  ;;  %v7316_v37 = vor.u32 %v7315_v19, %v24490_v63  ;;  %v7264_v46 = vsel %vm23612_vm2, %v7259_v27, %v24482_v50  ;;  %v7312_v50 = vsel %vm23612_vm2, %v7307_v39, %v24490_v63  ;;  %v18974_v63 = vcombine.low %v7240_v44, %v7250_v45  ;;  %v7209_v53 = vld [vmem:[%s23585_s15 + $0x78] sm:$0xf]  ;;  %v7205_v33 = vld [vmem:[%s23585_s15 + $0x68] sm:$0x1] }
 0x241   : > { %v7330_v40 = vor.u32 %v7329_v21, %v7326_v16  ;;  %v24536_v19 = vcombine.low %v7264_v46, %v7274_v38  ;;  %v7346_v12 = vsel %vm23612_vm2, %v7341_v57, %v7345_v8  ;;  %v24557_v16 = vrot.slane %v7372_v2, 4 }
 0x242   : > { %v7317_v28 = vrot.slane %v7316_v37, 4  ;;  %v24559_v21 = vrot.slane %v7375_v10, 5  ;;  %v7381_v37 = vshll.u32 %v7198_v0, 16  ;;  %21301 = vmatpush3.bf16.msra.mxu0 %v22787_v5  ;;  %v7396_v27 = vshrl.u32 %v7200_v55, 16  ;;  %v22770_v0 = vld [vmem:[#allocation13 + $0x88] sm:$0xff]  }
 0x243   : > { %v7444_v39 = vshrl.u32 %v7206_v13, 16  ;;  %v7387_v44 = vrot.slane %v7385_v25, 4  ;;  %v7422_v51 = vrot.slane %v7420_v59, 4  ;;  %v7435_v54 = vrot.slane %v7433_v34, 4  ;;  %v7210_v5 = vld [vmem:[%s23585_s15 + $0x7c] sm:$0xf] }
 0x244   : > { %v7322_v56 = vsel %vm23612_vm2, %v7317_v28, %v7321_v42  ;;  %v7354_v28 = vor.u32 %v7353_v14, %v7350_v47  ;;  %v7199_v42 = vld [vmem:[%s23585_s15 + $0x50] sm:$0x1]  ;;  %v24565_v43 = vrot.slane %v7381_v37, 5  ;;  %v7398_v45 = vrot.slane %v7396_v27, 4  ;;  %v7211_v34 = vld [vmem:[%s23585_s15 + $0x80] sm:$0x1] }
 0x245   : > { %v24542_v9 = vcombine.low %v7312_v50, %v7322_v56  ;;  %v7446_v50 = vrot.slane %v7444_v39, 4  ;;  %v24574_v8 = vrot.slane %v7453_v7, 5  ;;  %v7459_v56 = vrot.slane %v7457_v15, 4  ;;  %v22771_v25 = vld [vmem:[#allocation13 + $0x90] sm:$0xff]  }
 0x246   : > { %v24576_v57 = vrot.slane %v7354_v28, 4  ;;  %v7468_v2 = vshrl.u32 %v7209_v53, 16  ;;  %v7471_v10 = vshll.u32 %v7209_v53, 16  ;;  %v7415_v47 = vshll.u32 %v7202_v17, 16  ;;  %v24594_v39 = vld [vmem:[%s23585_s15 + $0x88] sm:$0xf] }
 0x247   : > { %20891 = vmatmul.mubr.bf16.gmra.mrb[52].mxu1 %v22758_v62  ;;  %v7331_v62 = vrot.slane %v7330_v40, 4  ;;  %v7447_v40 = vshll.u32 %v7206_v13, 16  ;;  %v7426_v14 = vor.u32 %v7425_v49, %v7422_v51  ;;  %v7463_v13 = vshll.u32 %v7208_v60, 16 }
 0x248   : > { %20894 = vmatprep.mubr.bf16.mxu1 %v22761_v24  ;;  %v7201_v24 = vld [vmem:[%s23585_s15 + $0x58] sm:$0xf]  ;;  %v7481_v37 = vshrl.u32 %v7210_v5, 16  ;;  %v7365_v23 = vrot.slane %v7364_v58, 4  ;;  %v7417_v31 = vrot.slane %v7415_v47, 5 }
 0x249   : > { %v7336_v11 = vsel %vm23612_vm2, %v7331_v62, %v24501_v26  ;;  %v7399_v26 = vshll.u32 %v7200_v55, 16  ;;  %v7405_v29 = vshll.u32 %v7201_v24, 16  ;;  %v7409_v41 = vshrl.u32 %v7201_v24, 16  ;;  %v22792_v58 = vld [vmem:[#allocation10 + $0x40] sm:$0xff]  }
 0x24a   : > { %v7449_v62 = vrot.slane %v7447_v40, 5  ;;  %v7378_v55 = vor.u32 %v24559_v21, %v24557_v16  ;;  %v7388_v24 = vor.u32 %v7387_v44, %v24565_v43  ;;  %v7473_v16 = vrot.slane %v7471_v10, 5  ;;  %21334 = vmatprep.subr.bf16.mxu0 %v22792_v58 }
 0x24b   : > { %v7401_v46 = vrot.slane %v7399_v26, 5  ;;  %v24567_v38 = vrot.slane %v7405_v29, 5  ;;  %v7411_v48 = vrot.slane %v7409_v41, 4  ;;  %v7477_v21 = vshll.u32 %v7210_v5, 16  ;;  %v7212_v29 = vld [vmem:[%s23585_s15 + $0x84] sm:$0xf] }
 0x24c   : > { %v7450_v18 = vor.u32 %v7449_v62, %v7446_v50  ;;  %v7379_v27 = vrot.slane %v7378_v55, 4  ;;  %v7465_v15 = vrot.slane %v7463_v13, 5  ;;  %v7370_v53 = vsel %vm23612_vm2, %v7365_v23, %v24553_v30  ;;  %v24675_v13 = vld [vmem:[#allocation13 + $0xa8] sm:$0xff]   ;;  %v24685_v23 = vld [vmem:[%s23585_s15 + $0xac] sm:$0xf] }
 0x24d   : > { %v7402_v4 = vor.u32 %v7401_v46, %v7398_v45  ;;  %v24596_v44 = vrot.slane %v7477_v21, 5  ;;  %v7483_v45 = vrot.slane %v7481_v37, 4  ;;  %v22772_v46 = vld [vmem:[#allocation13 + $0x98] sm:$0xff]   ;;  %v7501_v50 = vshll.u32 %v24594_v39, 16 }
 0x24e   : > { %v7451_v7 = vrot.slane %v7450_v18, 4  ;;  %v7384_v17 = vsel %vm23612_vm2, %v7379_v27, %v24565_v43  ;;  %v7487_v43 = vshll.u32 %v7211_v34, 16  ;;  %v23276_v27 = vmov 0  }
 0x24f   : > { %20895 = vmatmul.mubr.bf16.gmra.mrb[56].mxu1 %v22762_v32  ;;  %v7429_v32 = vshll.u32 %v7204_v35, 16  ;;  %v7460_v35 = vor.u32 %v7459_v56, %v24574_v8  ;;  %v7403_v41 = vrot.slane %v7402_v4, 4  ;;  %v7484_v56 = vor.u32 %v7483_v45, %v24596_v44  ;;  %385 = vst [vmem:[#allocation2 + $0x18] sm:$0xf] %v23276_v27  ;;  %379 = vst [vmem:[#allocation2] sm:$0xf] %v23276_v27 }
 0x250   : > { %20898 = vmatprep.mubr.bf16.mxu1 %v22765_v22  ;;  %v24562_v22 = vcombine.low %v7336_v11, %v7346_v12  ;;  %v7439_v11 = vshll.u32 %v7205_v33, 16  ;;  %v7495_v33 = vshll.u32 %v7212_v29, 16  ;;  %v24659_v47 = vrot.slane %v7501_v50, 5  ;;  %380 = vst [vmem:[#allocation2 + $0x4] sm:$0xf] %v23276_v27  ;;  %v22776_v45 = vld [vmem:[#allocation13 + $0xb0] sm:$0xff]  }
 0x251   : > { %v24571_v52 = vrot.slane %v7429_v32, 5  ;;  %v7461_v28 = vrot.slane %v7460_v35, 4  ;;  %v7408_v49 = vsel %vm23612_vm2, %v7403_v41, %v24567_v38  ;;  %v24671_v18 = vrot.slane %v7484_v56, 4  ;;  %381 = vst [vmem:[#allocation2 + $0x8] sm:$0x1] %v23276_v27 }
 0x252   : > { %v7441_v32 = vrot.slane %v7439_v11, 5  ;;  %v24665_v11 = vld [vmem:[%s23585_s15 + $0xa0] sm:$0xf]  ;;  %382 = vst [vmem:[#allocation2 + $0xc] sm:$0xf] %v23276_v27 }
 0x253   : > { %v7436_v12 = vor.u32 %v7435_v54, %v24571_v52  ;;  %v7492_v54 = vshrl.u32 %v7212_v29, 16  ;;  %383 = vst [vmem:[#allocation2 + $0x10] sm:$0xf] %v23276_v27  ;;  %384 = vst [vmem:[#allocation2 + $0x14] sm:$0x1] %v23276_v27 }
 0x254   : > { %386 = vst [vmem:[#allocation2 + $0x1c] sm:$0xf] %v23276_v27  ;;  %387 = vst [vmem:[#allocation2 + $0x20] sm:$0x1] %v23276_v27 }
 0x255   : > { %v7437_v40 = vrot.slane %v7436_v12, 4  ;;  %v24648_v55 = vrot.slane %v7492_v54, 4  ;;  %388 = vst [vmem:[#allocation2 + $0x24] sm:$0xf] %v23276_v27  ;;  %389 = vst [vmem:[#allocation2 + $0x28] sm:$0xf] %v23276_v27 }
 0x256   : > { %390 = vst [vmem:[#allocation2 + $0x2c] sm:$0x1] %v23276_v27  ;;  %391 = vst [vmem:[#allocation2 + $0x30] sm:$0xf] %v23276_v27 }
 0x257   : > { %20899 = vmatmul.mubr.bf16.gmra.mrb[60].mxu1 %v22766_v6  ;;  %v7412_v6 = vor.u32 %v7411_v48, %v24567_v38  ;;  %v7360_v48 = vsel %vm23612_vm2, %v24576_v57, %v24544_v1  ;;  %v7456_v38 = vsel %vm23612_vm2, %v7451_v7, %v24574_v8  ;;  %v24634_v57 = vld [vmem:[#allocation13 + $0xa0] sm:$0xff]   ;;  %v24641_v8 = vld [vmem:[%s23585_s15 + $0x90] sm:$0xf]  ;;  %392 = vst [vmem:[#allocation2 + $0x34] sm:$0xf] %v23276_v27 }
 0x258   : > { %20918 = vmatprep.mubr.bf16.mxu1 %v18974_v63  ;;  %v7391_v63 = vshll.u32 %v7199_v42, 16  ;;  %v24636_v60 = vcombine.low %v7360_v48, %v7370_v53  ;;  %v7519_v21 = vshll.u32 %v24641_v8, 16  ;;  %393 = vst [vmem:[#allocation2 + $0x38] sm:$0x1] %v23276_v27  ;;  %394 = vst [vmem:[#allocation2 + $0x3c] sm:$0xf] %v23276_v27 }
 0x259   : > { %v7413_v59 = vrot.slane %v7412_v6, 4  ;;  %v24657_v6 = vrot.slane %v7487_v43, 5  ;;  %395 = vst [vmem:[#allocation2 + $0x40] sm:$0xf] %v23276_v27  ;;  %396 = vst [vmem:[#allocation2 + $0x44] sm:$0x1] %v23276_v27 }
 0x25a   : > { %v7393_v26 = vrot.slane %v7391_v63, 5  ;;  %v7505_v63 = vshrl.u32 %v24594_v39, 16  ;;  %397 = vst [vmem:[#allocation2 + $0x48] sm:$0xf] %v23276_v27  ;;  %398 = vst [vmem:[#allocation2 + $0x4c] sm:$0xf] %v23276_v27 }
 0x25b   : > { %v7418_v1 = vsel %vm23612_vm2, %v7413_v59, %v7417_v31  ;;  %399 = vst [vmem:[#allocation2 + $0x50] sm:$0x1] %v23276_v27  ;;  %400 = vst [vmem:[#allocation2 + $0x54] sm:$0xf] %v23276_v27  ;;  %v7224_v59 = vld [vmem:[%s23585_s15 + $0xb4] sm:$0xf] }
 0x25c   : > { %v24646_v10 = vcombine.low %v7408_v49, %v7418_v1  ;;  %401 = vst [vmem:[#allocation2 + $0x58] sm:$0xf] %v23276_v27  ;;  %402 = vst [vmem:[#allocation2 + $0x5c] sm:$0x1] %v23276_v27  ;;  %v7549_v31 = vshll.u32 %v24665_v11, 16  ;;  %v7521_v48 = vrot.slane %v7519_v21, 5 }
 0x25d   : > { %403 = vst [vmem:[#allocation2 + $0x60] sm:$0xf] %v23276_v27  ;;  %404 = vst [vmem:[#allocation2 + $0x64] sm:$0xf] %v23276_v27  ;;  %v7588_v54 = vshrl.u32 %v7224_v59, 16 }
 0x25e   : > { %405 = vst [vmem:[#allocation2 + $0x68] sm:$0x1] %v23276_v27  ;;  %406 = vst [vmem:[#allocation2 + $0x6c] sm:$0xf] %v23276_v27 }
 0x25f   : > { %20919 = vmatmul.mubr.bf16.vlgmr.msra.gmra.mrb[32].mxu1 %v24536_v19  ;;  %v7470_v19 = vrot.slane %v7468_v2, 4  ;;  %v24644_v2 = vld [vmem:[%s23585_s15 + $0x94] sm:$0xf]  ;;  %407 = vst [vmem:[#allocation2 + $0x70] sm:$0xf] %v23276_v27 }
 0x260   : > { %20922 = vmatprep.mubr.bf16.mxu1 %v24538_v3  ;;  %20951 = vmatpush3.bf16.msra.mxu1 %v24465_v20  ;;  %v7389_v3 = vrot.slane %v7388_v24, 4  ;;  %v7427_v20 = vrot.slane %v7426_v14, 4  ;;  %v24650_v24 = vrot.slane %v7495_v33, 5  ;;  %v24662_v14 = vld [vmem:[%s23585_s15 + $0x9c] sm:$0xf]  ;;  %v7525_v37 = vshll.u32 %v24644_v2, 16 }
 0x261   : > { %20952 = vmatprep.subr.bf16.mxu1 %v22770_v0  ;;  %v7474_v42 = vor.u32 %v7473_v16, %v7470_v19  ;;  %v24678_v19 = vld [vmem:[%s23585_s15 + $0xa8] sm:$0xf]  ;;  %v7516_v16 = vshrl.u32 %v24641_v8, 16  ;;  %408 = vst [vmem:[#allocation2 + $0x74] sm:$0x1] %v23276_v27  ;;  %v7540_v29 = vshrl.u32 %v24662_v14, 16 }
 0x262   : > { %v7394_v51 = vsel %vm23612_vm2, %v7389_v3, %v7393_v26  ;;  %v7432_v30 = vsel %vm23612_vm2, %v7427_v20, %v24571_v52  ;;  %v24632_v52 = vld [vmem:[%s23585_s15 + $0x8c] sm:$0x1]  ;;  %409 = vst [vmem:[#allocation2 + $0x78] sm:$0xf] %v23276_v27  ;;  %410 = vst [vmem:[#allocation2 + $0x7c] sm:$0xf] %v23276_v27  ;;  %v7498_v3 = vor.u32 %v24650_v24, %v24648_v55 }
 0x263   : > { %v24628_v62 = vrot.slane %v7474_v42, 4  ;;  %v7511_v35 = vshll.u32 %v24632_v52, 16  ;;  %411 = vst [vmem:[#allocation2 + $0x80] sm:$0x1] %v23276_v27  ;;  %412 = vst [vmem:[#allocation2 + $0x84] sm:$0xf] %v23276_v27 }
 0x264   : > { %20953 = vmatpush3.bf16.msra.mxu1 %v22770_v0  ;;  %v24638_v0 = vcombine.low %v7384_v17, %v7394_v51  ;;  %413 = vst [vmem:[#allocation2 + $0x88] sm:$0xf] %v23276_v27  ;;  %414 = vst [vmem:[#allocation2 + $0x8c] sm:$0x1] %v23276_v27  ;;  %v24692_v26 = vrot.slane %v7505_v63, 4  ;;  %v7543_v41 = vshll.u32 %v24662_v14, 16 }
 0x265   : > { %20954 = vmatprep.subr.bf16.mxu1 %v22771_v25  ;;  %v7480_v12 = vsel %vm23612_vm2, %v24628_v62, %v24596_v44  ;;  %415 = vst [vmem:[#allocation2 + $0x90] sm:$0xf] %v23276_v27  ;;  %416 = vst [vmem:[#allocation2 + $0x94] sm:$0xf] %v23276_v27  ;;  %v7564_v34 = vshrl.u32 %v24678_v19, 16  ;;  %v7567_v39 = vshll.u32 %v24678_v19, 16 }
 0x266   : > { %417 = vst [vmem:[#allocation2 + $0x98] sm:$0x1] %v23276_v27  ;;  %418 = vst [vmem:[#allocation2 + $0x9c] sm:$0xf] %v23276_v27  ;;  %v7225_v20 = vld [vmem:[%s23585_s15 + $0xb8] sm:$0xf] }
 0x267   : > { %20923 = vmatmul.mubr.bf16.gmra.mrb[36].mxu1 %v24542_v9  ;;  %v7442_v9 = vsel %vm23612_vm2, %v7437_v40, %v7441_v32  ;;  %419 = vst [vmem:[#allocation2 + $0xa0] sm:$0xf] %v23276_v27  ;;  %420 = vst [vmem:[#allocation2 + $0xa4] sm:$0x1] %v23276_v27  ;;  %v7553_v32 = vshrl.u32 %v24665_v11, 16  ;;  %v7490_v40 = vsel %vm23612_vm2, %v24671_v18, %v24657_v6  ;;  %v24710_v7 = vrot.slane %v7511_v35, 5 }
 0x268   : > { %20926 = vmatprep.mubr.bf16.mxu1 %v24562_v22  ;;  %20955 = vmatpush3.bf16.msra.mxu1 %v22771_v25  ;;  %v7466_v22 = vsel %vm23612_vm2, %v7461_v28, %v7465_v15  ;;  %v24653_v4 = vcombine.low %v7432_v30, %v7442_v9  ;;  %v7529_v25 = vshrl.u32 %v24644_v2, 16  ;;  %421 = vst [vmem:[#allocation2 + $0xa8] sm:$0xf] %v23276_v27  ;;  %422 = vst [vmem:[#allocation2 + $0xac] sm:$0xf] %v23276_v27  ;;  %v22778_v30 = vld [vmem:[#allocation13 + $0xb8] sm:$0xff]  }
 0x269   : > { %20956 = vmatprep.subr.bf16.mxu1 %v22772_v46  ;;  %v24655_v5 = vcombine.low %v7456_v38, %v7466_v22  ;;  %423 = vst [vmem:[#allocation2 + $0xb0] sm:$0x1] %v23276_v27  ;;  %424 = vst [vmem:[#allocation2 + $0xb4] sm:$0xf] %v23276_v27  ;;  %v7217_v15 = vld [vmem:[%s23585_s15 + $0x98] sm:$0x1] }
 0x26a   : > { %425 = vst [vmem:[#allocation2 + $0xb8] sm:$0xf] %v23276_v27  ;;  %426 = vst [vmem:[#allocation2 + $0xbc] sm:$0x1] %v23276_v27  ;;  %v7573_v28 = vshll.u32 %v24685_v23, 16  ;;  %v7577_v42 = vshrl.u32 %v24685_v23, 16 }
 0x26b   : > { %427 = vst [vmem:[#allocation2 + $0xc0] sm:$0xf] %v23276_v27  ;;  %428 = vst [vmem:[#allocation2 + $0xc4] sm:$0xf] %v23276_v27  ;;  %v24722_v53 = vrot.slane %v7525_v37, 5  ;;  %v7531_v17 = vrot.slane %v7529_v25, 4 }
 0x26c   : > { %20957 = vmatpush3.bf16.msra.mxu1 %v22772_v46  ;;  %429 = vst [vmem:[#allocation2 + $0xc8] sm:$0x1] %v23276_v27  ;;  %430 = vst [vmem:[#allocation2 + $0xcc] sm:$0xf] %v23276_v27  ;;  %v7518_v46 = vrot.slane %v7516_v16, 4  ;;  %v7542_v49 = vrot.slane %v7540_v29, 4 }
 0x26d   : > { %20958 = vmatprep.subr.bf16.mxu1 %v24634_v57  ;;  %431 = vst [vmem:[#allocation2 + $0xd0] sm:$0xf] %v23276_v27  ;;  %432 = vst [vmem:[#allocation2 + $0xd4] sm:$0x1] %v23276_v27  ;;  %v7220_v51 = vld [vmem:[%s23585_s15 + $0xa4] sm:$0x1]  ;;  %v7532_v8 = vor.u32 %v7531_v17, %v24722_v53 }
 0x26e   : > { %v7545_v1 = vrot.slane %v7543_v41, 5  ;;  %v7591_v33 = vshll.u32 %v7224_v59, 16  ;;  %v24727_v9 = vrot.slane %v7549_v31, 5  ;;  %v7555_v43 = vrot.slane %v7553_v32, 4  ;;  %v7223_v22 = vld [vmem:[%s23585_s15 + $0xb0] sm:$0x1] }
 0x26f   : > { %20927 = vmatmul.mubr.bf16.gmra.mrb[40].mxu1 %v24636_v60  ;;  %v7566_v50 = vrot.slane %v7564_v34, 4  ;;  %v7569_v38 = vrot.slane %v7567_v39, 5  ;;  %v24731_v56 = vrot.slane %v7573_v28, 5  ;;  %v7579_v52 = vrot.slane %v7577_v42, 4  ;;  %v7226_v63 = vld [vmem:[%s23585_s15 + $0xbc] sm:$0x1] }
 0x270   : > { %20930 = vmatprep.mubr.bf16.mxu1 %v24638_v0  ;;  %20959 = vmatpush3.bf16.msra.mxu1 %v24634_v57  ;;  %v7597_v57 = vshll.u32 %v7225_v20, 16  ;;  %v7601_v58 = vshrl.u32 %v7225_v20, 16  ;;  %v7508_v60 = vor.u32 %v24692_v26, %v24659_v47  ;;  %v7522_v0 = vor.u32 %v7521_v48, %v7518_v46  ;;  %v24743_v19 = vld [vmem:[%s23585_s15] sm:$0xe]  ;;  %v22789_v16 = vld [vmem:[#allocation2] sm:$0xff]  }
 0x271   : > { %20960 = vmatprep.subr.bf16.mxu1 %v24675_v13  ;;  %v7535_v2 = vshll.u32 %v7217_v15, 16  ;;  %v7546_v55 = vor.u32 %v7545_v1, %v7542_v49  ;;  %v7559_v24 = vshll.u32 %v7220_v51, 16  ;;  %v7590_v6 = vrot.slane %v7588_v54, 4  ;;  %v24756_v23 = vld [vmem:[%s23585_s15 + $0x4] sm:$0xf]  ;;  %21302 = vmatprep.mubr.bf16.mxu0 %v22789_v16 }
 0x272   : > { %v7593_v14 = vrot.slane %v7591_v33, 5  ;;  %v24739_v11 = vrot.slane %v7498_v3, 4  ;;  %v7556_v18 = vor.u32 %v7555_v43, %v24727_v9  ;;  %v7570_v35 = vor.u32 %v7569_v38, %v7566_v50  ;;  %v24759_v41 = vld [vmem:[%s23585_s15 + $0x8] sm:$0x1]  ;;  %v24762_v44 = vld [vmem:[%s23585_s15 + $0x10] sm:$0xf] }
 0x273   : > { %v7580_v21 = vor.u32 %v7579_v52, %v24731_v56  ;;  %v24753_v37 = vrot.slane %v7597_v57, 5  ;;  %v7603_v25 = vrot.slane %v7601_v58, 4  ;;  %v7509_v27 = vrot.slane %v7508_v60, 4  ;;  %v24769_v32 = vld [vmem:[%s23585_s15 + $0xc] sm:$0xe] }
 0x274   : > { %20961 = vmatpush3.bf16.msra.mxu1 %v24675_v13  ;;  %v7583_v13 = vshll.u32 %v7223_v22, 16  ;;  %v7523_v3 = vrot.slane %v7522_v0, 4  ;;  %v7533_v26 = vrot.slane %v7532_v8, 4  ;;  %v7537_v29 = vrot.slane %v7535_v2, 5  ;;  %v24779_v15 = vld [vmem:[%s23585_s15 + $0x14] sm:$0x1] }
 0x275   : > { %20962 = vmatprep.subr.bf16.mxu1 %v22776_v45  ;;  %v24764_v62 = vrot.slane %v7546_v55, 4  ;;  %v7594_v59 = vor.u32 %v7593_v14, %v7590_v6  ;;  %v7607_v31 = vshll.u32 %v7226_v63, 16  ;;  %v24771_v34 = vrot.slane %v7556_v18, 4  ;;  %v24782_v28 = vld [vmem:[%s23585_s15 + $0x18] sm:$0xe] }
 0x276   : > { %v24773_v39 = vrot.slane %v7570_v35, 4  ;;  %v24775_v20 = vrot.slane %v7583_v13, 5  ;;  %v24785_v42 = vld [vmem:[%s23585_s15 + $0x1c] sm:$0xf]  ;;  %v7604_v46 = vor.u32 %v7603_v25, %v24753_v37  ;;  %v18998_v48 = vrot.slane %v24743_v19, 9 }
 0x277   : > { %20931 = vmatmul.mubr.bf16.gmra.mrb[44].mxu1 %v24646_v10  ;;  %v24745_v10 = vld [vmem:[#allocation13 + $0xc0] sm:$0xff]   ;;  %v27073_v17 = vrot.slane %v24762_v44, 5  ;;  %v24796_v49 = vld [vmem:[%s23585_s15 + $0x24] sm:$0xe]  ;;  %v7504_v1 = vsel %vm23612_vm2, %v24739_v11, %v24659_v47  ;;  %v7514_v54 = vsel %vm23612_vm2, %v7509_v27, %v24710_v7  ;;  %v7528_v33 = vsel %vm23612_vm2, %v7523_v3, %v24722_v53  ;;  %v24812_v43 = vld [vmem:[%s23585_s15 + $0x28] sm:$0xf] }
 0x278   : > { %20934 = vmatprep.mubr.bf16.mxu1 %v24653_v4  ;;  %20963 = vmatpush3.bf16.msra.mxu1 %v22776_v45  ;;  %v18984_v4 = vcombine.low %v7480_v12, %v7490_v40  ;;  %v24766_v12 = vrot.slane %v7559_v24, 5  ;;  %v8095_v40 = vrot.slane %v24756_v23, 5  ;;  %v24787_v45 = vrot.slane %v7580_v21, 4  ;;  %v24793_v51 = vld [vmem:[%s23585_s15 + $0x20] sm:$0x1] }
 0x279   : > { %20964 = vmatprep.subr.bf16.mxu1 %v22778_v30  ;;  %v24815_v50 = vld [vmem:[%s23585_s15 + $0x2c] sm:$0x1]  ;;  %v24818_v38 = vld [vmem:[%s23585_s15 + $0x34] sm:$0xf]  ;;  %v24821_v47 = vrot.slane %v7594_v59, 4  ;;  %v24823_v22 = vrot.slane %v7607_v31, 5  ;;  %v18985_v63 = vcombine.low %v7504_v1, %v7514_v54  ;;  %v7552_v16 = vsel %vm23612_vm2, %v24764_v62, %v24727_v9 }
 0x27a   : > { %v27070_v53 = vrot.slane %v24785_v42, 5  ;;  %v24828_v52 = vld [vmem:[%s23585_s15 + $0x30] sm:$0xe]  ;;  %v24831_v57 = vld [vmem:[%s23585_s15 + $0x38] sm:$0x1]  ;;  %v24838_v60 = vrot.slane %v8095_v40, 4  ;;  %v7586_v9 = vsel %vm23612_vm2, %v24787_v45, %v24775_v20 }
 0x27b   : > { %v24834_v58 = vld [vmem:[%s23585_s15 + $0x3c] sm:$0xe]  ;;  %v24841_v0 = vrot.slane %v7604_v46, 4  ;;  %v24845_v8 = vrot.slane %v27073_v17, 4  ;;  %v24850_v24 = vld [vmem:[%s23585_s15 + $0x40] sm:$0xf] }
 0x27c   : > { %20965 = vmatpush3.bf16.msra.mxu1 %v22778_v30  ;;  %v7538_v30 = vsel %vm23612_vm2, %v7533_v26, %v7537_v29  ;;  %v24855_v18 = vld [vmem:[%s23585_s15 + $0x4c] sm:$0xf]  ;;  %v24859_v35 = vrot.slane %v27070_v53, 4  ;;  %v27068_v13 = vrot.slane %v24812_v43, 5  ;;  %v24865_v21 = vld [vmem:[%s23585_s15 + $0x44] sm:$0x1] }
 0x27d   : > { %20998 = vmatprep.subr.bf16.mxu1 %v24745_v10  ;;  %v18986_v6 = vcombine.low %v7528_v33, %v7538_v30  ;;  %v27069_v26 = vrot.slane %v24850_v24, 5  ;;  %v24872_v29 = vld [vmem:[%s23585_s15 + $0x48] sm:$0xe]  ;;  %v24875_v59 = vld [vmem:[%s23585_s15 + $0x50] sm:$0x1]  ;;  %v27071_v27 = vrot.slane %v24855_v18, 5 }
 0x27e   : > { %v24878_v31 = vld [vmem:[%s23585_s15 + $0x58] sm:$0xf]  ;;  %v24881_v46 = vld [vmem:[%s23585_s15 + $0x54] sm:$0xe]  ;;  %v24884_v1 = vld [vmem:[%s23585_s15 + $0x5c] sm:$0x1] }
 0x27f   : > { %20935 = vmatmul.mubr.bf16.gmra.mrb[48].mxu1 %v24655_v5  ;;  %v24887_v54 = vld [vmem:[%s23585_s15 + $0x60] sm:$0xe]  ;;  %v24890_v33 = vld [vmem:[%s23585_s15 + $0x64] sm:$0xf]  ;;  %v24894_v30 = vrot.slane %v27068_v13, 4  ;;  %v27072_v25 = vrot.slane %v24878_v31, 5 }
 0x280   : > { %20938 = vmatprep.mubr.bf16.mxu1 %v18984_v4  ;;  %v27067_v4 = vrot.slane %v24818_v38, 5  ;;  %v24912_v11 = vrot.slane %v27069_v26, 4  ;;  %v24916_v13 = vld [vmem:[%s23585_s15 + $0x68] sm:$0x1]  ;;  %v27074_v20 = vrot.slane %v24890_v33, 5  ;;  %v24944_v62 = vrot.slane %v27071_v27, 4 }
 0x281   : > { %v24948_v55 = vrot.slane %v27072_v25, 4  ;;  %v24963_v27 = vld [vmem:[%s23585_s15 + $0x74] sm:$0x1]  ;;  %v24971_v5 = vld [vmem:[%s23585_s15 + $0x78] sm:$0xe]  ;;  %v7610_v25 = vsel %vm23612_vm2, %v24841_v0, %v24823_v22 }
 0x282   : > { %v24898_v3 = vrot.slane %v27067_v4, 4  ;;  %v24932_v4 = vld [vmem:[%s23585_s15 + $0x70] sm:$0xf]  ;;  %v24974_v17 = vld [vmem:[%s23585_s15 + $0x80] sm:$0x1] }
 0x283   : > { %v24986_v7 = vld [vmem:[%s23585_s15 + $0x84] sm:$0xe] }
 0x287   : > { %20939 = vmatmul.mubr.bf16.gmra.mrb[52].mxu1 %v18985_v63  ;;  %v7562_v63 = vsel %vm23612_vm2, %v24771_v34, %v24766_v12  ;;  %v24929_v34 = vld [vmem:[%s23585_s15 + $0x6c] sm:$0xe] }
 0x288   : > { %20942 = vmatprep.mubr.bf16.mxu1 %v18986_v6  ;;  %v7576_v6 = vsel %vm23612_vm2, %v24773_v39, %v24731_v56  ;;  %v18987_v45 = vcombine.low %v7552_v16, %v7562_v63  ;;  %v24952_v39 = vld [vmem:[%s23585_s15 + $0x7c] sm:$0xf]  ;;  %v27075_v16 = vrot.slane %v24932_v4, 5  ;;  %v24958_v63 = vld [vmem:[%s23585_s15 + $0x88] sm:$0xf]  ;;  %v24968_v56 = vrot.slane %v27074_v20, 4 }
 0x289   : > { %v18988_v53 = vcombine.low %v7576_v6, %v7586_v9  ;;  %v7600_v9 = vsel %vm23612_vm2, %v24821_v47, %v24753_v37  ;;  %v24993_v6 = vld [vmem:[%s23585_s15 + $0x8c] sm:$0x1]  ;;  %v8096_v37 = vsel %vm23669_vm5, %v18998_v48, %v8095_v40  ;;  %v27100_v47 = vrot.slane %v24759_v41, 5  ;;  %v25035_v41 = vld [vmem:[%s23585_s15 + $0x98] sm:$0x1] }
 0x28a   : > { %v24990_v20 = vrot.slane %v27075_v16, 4  ;;  %v27103_v19 = vrot.slane %v24952_v39, 5  ;;  %v25054_v40 = vld [vmem:[%s23585_s15 + $0xa0] sm:$0xf] }
 0x28b   : > { %v8099_v22 = vsel %vm23669_vm5, %v24838_v60, %v27100_v47  ;;  %v25026_v47 = vld [vmem:[%s23585_s15 + $0x94] sm:$0xf] }
 0x28c   : > { %v19014_v60 = vcombine.low %v8096_v37, %v8099_v22  ;;  %v27107_v37 = vrot.slane %v24762_v44, 5  ;;  %v27108_v22 = vrot.slane %v24769_v32, 9  ;;  %v27111_v44 = vrot.slane %v24782_v28, 9 }
 0x28d   : > { %v27113_v28 = vrot.slane %v25026_v47, 5 }
 0x28e   : > { %v24934_v26 = vpop.f32.mrb[0].mxu1 }
 0x28f   : > { %v24940_v12 = vpop.f32.mrb[1].mxu1  ;;  %20943 = vmatmul.mubr.bf16.gmra.mrb[56].mxu1 %v18987_v45 }
 0x290   : > { %v24954_v14 = vpop.f32.mrb[2].mxu1  ;;  %20946 = vmatprep.mubr.bf16.mxu1 %v18988_v53  ;;  %v18989_v53 = vcombine.low %v7600_v9, %v7610_v25  ;;  %v25023_v9 = vld [vmem:[%s23585_s15 + $0x90] sm:$0xe]  ;;  %v8103_v25 = vsel %vm23669_vm5, %v27108_v22, %v27107_v37  ;;  %v27112_v37 = vrot.slane %v24793_v51, 5 }
 0x291   : > { %v24960_v2 = vpop.f32.mrb[3].mxu1 }
 0x292   : > { %27099 = vst [vmem:[#allocation22_spill] sm:$0xff] %v24960_v2  ;;  %v25015_v2 = vrot.slane %v27103_v19, 4  ;;  %v27106_v19 = vrot.slane %v24958_v63, 5 }
 0x294   : > { %v25032_v16 = vrot.slane %v27106_v19, 4  ;;  %v25051_v19 = vld [vmem:[%s23585_s15 + $0x9c] sm:$0xe] }
 0x296   : > { %v25007_v0 = vpop.f32.mrb[4].mxu1 }
 0x297   : > { %27101 = vst [vmem:[#allocation23_spill] sm:$0xff] %v25007_v0  ;;  %v25010_v45 = vpop.f32.mrb[5].mxu1  ;;  %20947 = vmatmul.mubr.bf16.gmra.mrb[60].mxu1 %v18989_v53 }
 0x298   : > { %27102 = vst [vmem:[#allocation24_spill] sm:$0xff] %v25010_v45  ;;  %v25019_v48 = vpop.f32.mrb[6].mxu1  ;;  %20966 = vmatprep.mubr.bf16.mxu1 %v19014_v60  ;;  %v27110_v60 = vrot.slane %v24785_v42, 5  ;;  %v22785_v42 = vld [vmem:[#allocation13 + $0xc8] sm:$0xff]   ;;  %v25074_v45 = vrot.slane %v27113_v28, 4  ;;  %v27114_v28 = vrot.slane %v24812_v43, 5 }
 0x299   : > { %27104 = vst [vmem:[#allocation25_spill] sm:$0xff] %v25019_v48  ;;  %v25028_v23 = vpop.f32.mrb[7].mxu1  ;;  %v27119_v43 = vrot.slane %v24831_v57, 5  ;;  %v27122_v57 = vrot.slane %v24834_v58, 9  ;;  %v27126_v58 = vrot.slane %v24872_v29, 9  ;;  %v27128_v29 = vrot.slane %v24878_v31, 5 }
 0x29a   : > { %27105 = vst [vmem:[#allocation26_spill] sm:$0xff] %v25028_v23  ;;  %v27109_v23 = vrot.slane %v24779_v15, 5  ;;  %v8110_v32 = vsel %vm23669_vm5, %v27111_v44, %v27110_v60  ;;  %v8113_v15 = vsel %vm23669_vm5, %v24859_v35, %v27112_v37  ;;  %v25082_v35 = vld [vmem:[%s23585_s15 + $0xa4] sm:$0x1]  ;;  %v25086_v37 = vld [vmem:[%s23585_s15 + $0xa8] sm:$0xe] }
 0x29b   : > { %v19016_v51 = vcombine.low %v8110_v32, %v8113_v15  ;;  %v27116_v15 = vrot.slane %v24815_v50, 5  ;;  %v8127_v50 = vsel %vm23669_vm5, %v24898_v3, %v27119_v43  ;;  %v22788_v43 = vld [vmem:[#allocation13 + $0xd8] sm:$0xff]  }
 0x29c   : > { %v8106_v53 = vsel %vm23669_vm5, %v24845_v8, %v27109_v23  ;;  %v27115_v8 = vrot.slane %v24796_v49, 9 }
 0x29d   : > { %v19015_v23 = vcombine.low %v8103_v25, %v8106_v53  ;;  %v22786_v53 = vld [vmem:[#allocation13 + $0xd0] sm:$0xff]   ;;  %v8120_v44 = vsel %vm23669_vm5, %v24894_v30, %v27116_v15  ;;  %v27117_v25 = vrot.slane %v24818_v38, 5  ;;  %v25121_v38 = vld [vmem:[%s23585_s15 + $0xb8] sm:$0xf]  ;;  %v27123_v15 = vrot.slane %v24865_v21, 5 }
 0x29e   : > { %v25067_v22 = vpop.f32.mrb[8].mxu1  ;;  %v8117_v32 = vsel %vm23669_vm5, %v27115_v8, %v27114_v28  ;;  %v25118_v30 = vld [vmem:[%s23585_s15 + $0xb0] sm:$0x1]  ;;  %v27127_v21 = vrot.slane %v24875_v59, 5 }
 0x29f   : > { %v25070_v48 = vpop.f32.mrb[9].mxu1  ;;  %20967 = vmatmul.mubr.bf16.vlgmr.msra.gmra.mrb[32].mxu1 %v19015_v23  ;;  %v25101_v23 = vld [vmem:[%s23585_s15 + $0xac] sm:$0xf] }
 0x2a0   : > { %v25076_v60 = vpop.f32.mrb[10].mxu1  ;;  %20970 = vmatprep.mubr.bf16.mxu1 %v19016_v51  ;;  %20999 = vmatpush3.bf16.msra.mxu1 %v24745_v10  ;;  %v27118_v51 = vrot.slane %v24828_v52, 9  ;;  %v19017_v52 = vcombine.low %v8117_v32, %v8120_v44  ;;  %v27124_v10 = vrot.slane %v25054_v40, 5 }
 0x2a1   : > { %v25079_v0 = vpop.f32.mrb[11].mxu1  ;;  %21000 = vmatprep.subr.bf16.mxu1 %v22785_v42 }
 0x2a2   : > { %v8124_v49 = vsel %vm23669_vm5, %v27118_v51, %v27117_v25  ;;  %v27121_v25 = vrot.slane %v24850_v24, 5  ;;  %v8134_v51 = vsel %vm23669_vm5, %v24912_v11, %v27123_v15  ;;  %v8188_v44 = vrot.slane %v27124_v10, 4  ;;  %v8042_v10 = vld [vmem:[%s23585_s15 + $0xb4] sm:$0xe] }
 0x2a3   : > { %v27125_v24 = vrot.slane %v24855_v18, 5  ;;  %v8141_v11 = vsel %vm23669_vm5, %v24944_v62, %v27127_v21  ;;  %v8193_v18 = vrot.slane %v25101_v23, 5  ;;  %v27130_v62 = vrot.slane %v24890_v33, 5  ;;  %v12901_v21 = vld [vmem:[#allocation2 + $0x8] sm:$0x1] }
 0x2a4   : > { %v8131_v3 = vsel %vm23669_vm5, %v27122_v57, %v27121_v25  ;;  %21001 = vmatpush3.bf16.msra.mxu1 %v22785_v42  ;;  %v19012_v57 = vrot.slane %v25086_v37, 9  ;;  %v27131_v42 = vrot.slane %v24887_v54, 9  ;;  %v8200_v33 = vrot.slane %v25121_v38, 5  ;;  %v12899_v54 = vld [vmem:[#allocation2] sm:$0xf] }
 0x2a5   : > { %v8138_v25 = vsel %vm23669_vm5, %v27126_v58, %v27125_v24  ;;  %21002 = vmatprep.subr.bf16.mxu1 %v22786_v53  ;;  %v8044_v24 = vld [vmem:[%s23585_s15 + $0xbc] sm:$0x1]  ;;  %v12900_v58 = vld [vmem:[#allocation2 + $0x4] sm:$0xf]  ;;  %v27135_v38 = vrot.slane %v24929_v34, 9  ;;  %v27138_v34 = vrot.slane %v24971_v5, 9 }
 0x2a6   : > { %v25114_v8 = vpop.f32.mrb[12].mxu1  ;;  %v25170_v37 = vsel %vm23669_vm5, %v27131_v42, %v27130_v62  ;;  %v19020_v23 = vcombine.low %v8138_v25, %v8141_v11  ;;  %v12957_v25 = vshll.u32 %v12900_v58, 16  ;;  %v12961_v11 = vshrl.u32 %v12900_v58, 16 }
 0x2a7   : > { %v25123_v28 = vpop.f32.mrb[13].mxu1  ;;  %20971 = vmatmul.mubr.bf16.gmra.mrb[36].mxu1 %v19017_v52  ;;  %v12951_v52 = vshll.u32 %v12899_v54, 16  ;;  %v27140_v5 = vrot.slane %v24958_v63, 5 }
 0x2a8   : > { %27120 = vst [vmem:[#allocation27_spill] sm:$0xff] %v25123_v28  ;;  %v25138_v32 = vpop.f32.mrb[14].mxu1  ;;  %v19018_v28 = vcombine.low %v8124_v49, %v8127_v50  ;;  %v19019_v49 = vcombine.low %v8131_v3, %v8134_v51  ;;  %v27129_v50 = vrot.slane %v24881_v46, 9  ;;  %v27132_v3 = vrot.slane %v24884_v1, 5  ;;  %v22790_v46 = vld [vmem:[#allocation13 + $0xe0] sm:$0xff]   ;;  %21003 = vmatpush3.bf16.msra.mxu1 %v22786_v53 }
 0x2a9   : > { %v25153_v15 = vpop.f32.mrb[15].mxu1  ;;  %v8196_v51 = vrot.slane %v25118_v30, 5  ;;  %v27133_v1 = vrot.slane %v24916_v13, 5  ;;  %v27134_v30 = vrot.slane %v24932_v4, 5  ;;  %21004 = vmatprep.subr.bf16.mxu1 %v22788_v43  ;;  %v19013_v53 = vrot.slane %v8042_v10, 9 }
 0x2aa   : > { %v25162_v59 = vsel %vm23669_vm5, %v27129_v50, %v27128_v29  ;;  %v25178_v31 = vsel %vm23669_vm5, %v24948_v55, %v27132_v3  ;;  %20974 = vmatprep.mubr.bf16.mxu1 %v19018_v28  ;;  %v12948_v29 = vshrl.u32 %v12899_v54, 16  ;;  %v12967_v50 = vshll.u32 %v12901_v21, 16 }
 0x2ab   : > { %v25187_v55 = vsel %vm23669_vm5, %v24968_v56, %v27133_v1  ;;  %v25195_v28 = vsel %vm23669_vm5, %v27135_v38, %v27134_v30  ;;  %v12953_v42 = vrot.slane %v12951_v52, 5  ;;  %v12959_v3 = vrot.slane %v12957_v25, 5 }
 0x2ac   : > { %v12950_v62 = vrot.slane %v12948_v29, 4  ;;  %v12963_v13 = vrot.slane %v12961_v11, 4  ;;  %v27136_v54 = vrot.slane %v24963_v27, 5  ;;  %v27137_v4 = vrot.slane %v24952_v39, 5  ;;  %21005 = vmatpush3.bf16.msra.mxu1 %v22788_v43 }
 0x2ad   : > { %v8195_v10 = vrot.slane %v8193_v18, 4  ;;  %v8203_v21 = vrot.slane %v8044_v24, 5  ;;  %v8202_v29 = vrot.slane %v8200_v33, 4  ;;  %v12969_v27 = vrot.slane %v12967_v50, 5  ;;  %21006 = vmatprep.subr.bf16.mxu1 %v22790_v46 }
 0x2ae   : > { %v25202_v56 = vsel %vm23669_vm5, %v24990_v20, %v27136_v54  ;;  %v25210_v58 = vsel %vm23669_vm5, %v27138_v34, %v27137_v4  ;;  %v12954_v52 = vor.u32 %v12953_v42, %v12950_v62  ;;  %v12964_v25 = vor.u32 %v12963_v13, %v12959_v3  ;;  %v19095_v54 = vld [vmem:[%s23585_s15 + $0x10] sm:$0xf]  ;;  %v19096_v4 = vld [vmem:[%s23585_s15 + $0x14] sm:$0x1] }
 0x2af   : > { %v27139_v11 = vrot.slane %v24974_v17, 5  ;;  %v27141_v39 = vrot.slane %v24986_v7, 9  ;;  %v27142_v43 = vrot.slane %v24993_v6, 5  ;;  %v27143_v17 = vrot.slane %v25026_v47, 5  ;;  %v22794_v7 = vld [vmem:[#allocation13 + $0xe8] sm:$0xff]   ;;  %20975 = vmatmul.mubr.bf16.gmra.mrb[40].mxu1 %v19019_v49 }
 0x2b0   : > { %v27145_v30 = vrot.slane %v25035_v41, 5  ;;  %v27147_v38 = vrot.slane %v25051_v19, 9  ;;  %v12955_v47 = vrot.slane %v12954_v52, 4  ;;  %v12965_v50 = vrot.slane %v12964_v25, 4  ;;  %20978 = vmatprep.mubr.bf16.mxu1 %v19020_v23  ;;  %21007 = vmatpush3.bf16.msra.mxu1 %v22790_v46  ;;  %v22795_v46 = vld [vmem:[#allocation13 + $0xf0] sm:$0xff]  }
 0x2b1   : > { %v25217_v20 = vsel %vm23669_vm5, %v25015_v2, %v27139_v11  ;;  %v25225_v1 = vsel %vm23669_vm5, %v27141_v39, %v27140_v5  ;;  %v25232_v24 = vsel %vm23669_vm5, %v25032_v16, %v27142_v43  ;;  %v27144_v2 = vrot.slane %v25023_v9, 9  ;;  %21008 = vmatprep.subr.bf16.mxu1 %v22794_v7  ;;  %v22799_v39 = vld [vmem:[#allocation13 + $0xf8] sm:$0xff]  }
 0x2b2   : > { %v25247_v6 = vsel %vm23669_vm5, %v25074_v45, %v27145_v30  ;;  %v27146_v16 = vrot.slane %v25054_v40, 5  ;;  %v27148_v62 = vrot.slane %v25082_v35, 5  ;;  %v25265_v45 = vsel %vm23669_vm5, %v19012_v57, %v8193_v18 }
 0x2b3   : > { %v25240_v63 = vsel %vm23669_vm5, %v27144_v2, %v27143_v17  ;;  %v25269_v40 = vsel %vm23669_vm5, %v8195_v10, %v8196_v51  ;;  %v25273_v19 = vsel %vm23669_vm5, %v19013_v53, %v8200_v33  ;;  %v25277_v35 = vsel %vm23669_vm5, %v8202_v29, %v8203_v21  ;;  %v25289_v51 = vld [vmem:[#allocation9] ss:$0 sm:$0xff] }
 0x2b4   : > { %v25255_v9 = vsel %vm23669_vm5, %v27147_v38, %v27146_v16  ;;  %v25261_v41 = vsel %vm23669_vm5, %v8188_v44, %v27148_v62  ;;  %v12960_v44 = vsel %vm23612_vm2, %v12955_v47, %v12959_v3  ;;  %v12970_v57 = vsel %vm23612_vm2, %v12965_v50, %v12969_v27  ;;  %21009 = vmatpush3.bf16.msra.mxu1 %v22794_v7  ;;  %v19097_v27 = vld [vmem:[%s23585_s15 + $0x18] sm:$0xf]  ;;  %v25316_v47 = vld [vmem:[%s23585_s15 + $0x1c] sm:$0xf] }
 0x2b5   : > { %v19021_v18 = vcombine.low %v25162_v59, %v25178_v31  ;;  %v19022_v49 = vcombine.low %v25170_v37, %v25187_v55  ;;  %v19023_v23 = vcombine.low %v25195_v28, %v25202_v56  ;;  %v19024_v33 = vcombine.low %v25210_v58, %v25217_v20  ;;  %v19094_v37 = vld [vmem:[%s23585_s15 + $0xc] sm:$0xf]  ;;  %v20824_v55 = vpop.f32.mrb[0].mxu0  ;;  %21010 = vmatprep.subr.bf16.mxu1 %v22795_v46  ;;  %v27149_v50 = vld [vmem:[#allocation22_spill] sm:$0xff]  ;;  %v6597_v56 = vld [vmem:[#allocation2 + $0x20] sm:$0x1] }
 0x2b6   : > { %v19025_v53 = vcombine.low %v25225_v1, %v25232_v24  ;;  %v19026_v59 = vcombine.low %v25240_v63, %v25247_v6  ;;  %v19027_v31 = vcombine.low %v25255_v9, %v25261_v41  ;;  %v19028_v42 = vcombine.low %v25265_v45, %v25269_v40  ;;  %v5867_v21 = vpop.f32.mrb[1].mxu0 }
 0x2b7   : > { %v19029_v3 = vcombine.low %v25273_v19, %v25277_v35  ;;  %v25304_v13 = vcombine.low %v12960_v44, %v12970_v57  ;;  %v9090_v34 = vshrl.u32 %v19094_v37, 16  ;;  %v21734_v10 = vadd.f32 %v20824_v55, %v24934_v26  ;;  %v20825_v5 = vpop.f32.mrb[2].mxu0  ;;  %20979 = vmatmul.mubr.bf16.gmra.mrb[44].mxu1 %v19021_v18  ;;  %v22813_v19 = vld [vmem:[#allocation10 + $0x60] sm:$0xff]  }
 0x2b8   : > { %v9093_v29 = vshll.u32 %v19094_v37, 16  ;;  %v9099_v52 = vshll.u32 %v19095_v54, 16  ;;  %v9103_v25 = vshrl.u32 %v19095_v54, 16  ;;  %v21735_v11 = vadd.f32 %v5867_v21, %v24940_v12  ;;  %v5870_v7 = vpop.f32.mrb[3].mxu0  ;;  %20982 = vmatprep.mubr.bf16.mxu1 %v19022_v49  ;;  %21011 = vmatpush3.bf16.msra.mxu1 %v22795_v46 }
 0x2b9   : > { %v9092_v43 = vrot.slane %v9090_v34, 4  ;;  %v9109_v17 = vshll.u32 %v19096_v4, 16  ;;  %v9114_v2 = vshrl.u32 %v19097_v27, 16  ;;  %v6099_v26 = vadd.f32 %v21734_v10, %v25289_v51  ;;  %21012 = vmatprep.subr.bf16.mxu1 %v22799_v39  ;;  %v25326_v10 = vld [vmem:[#allocation13 + $0x100] sm:$0xff]  }
 0x2ba   : > { %v21736_v30 = vadd.f32 %v20825_v5, %v24954_v14  ;;  %v9095_v16 = vrot.slane %v9093_v29, 5  ;;  %v25313_v38 = vrot.slane %v9099_v52, 5  ;;  %v6097_v12 = vadd.f32 %v21735_v11, %v25289_v51 }
 0x2bb   : > { %v21737_v62 = vadd.f32 %v5870_v7, %v27149_v50  ;;  %v9105_v44 = vrot.slane %v9103_v25, 4  ;;  %v25320_v57 = vrot.slane %v9109_v17, 5  ;;  %v6131_v37 = vmax.f32 %v6099_v26, 0.0  ;;  %v20828_v5 = vpop.f32.mrb[4].mxu0  ;;  %v27150_v7 = vld [vmem:[#allocation23_spill] sm:$0xff] }
 0x2bc   : > { %v6100_v55 = vadd.f32 %v21736_v30, %v25289_v51  ;;  %v9096_v14 = vor.u32 %v9095_v16, %v9092_v43  ;;  %v25323_v54 = vrot.slane %v9114_v2, 4  ;;  %v6129_v4 = vmax.f32 %v6097_v12, 0.0  ;;  %v5883_v12 = vpop.f32.mrb[5].mxu0  ;;  %21013 = vmatpush3.bf16.msra.mxu1 %v22799_v39 }
 0x2bd   : > { %v6098_v34 = vadd.f32 %v21737_v62, %v25289_v51  ;;  %v9106_v21 = vor.u32 %v9105_v44, %v25313_v38  ;;  %v9117_v18 = vshll.u32 %v19097_v27, 16  ;;  %v19743_v29 = vpack.c.bf16 %v6131_v37, %v6131_v37  ;;  %v6593_v27 = vld [vmem:[#allocation2 + $0x18] sm:$0xf]  ;;  %v27151_v37 = vld [vmem:[#allocation24_spill] sm:$0xff]  ;;  %21046 = vmatprep.subr.bf16.mxu1 %v25326_v10 }
 0x2be   : > { %v6132_v52 = vmax.f32 %v6100_v55, 0.0  ;;  %v25329_v25 = vrot.slane %v9096_v14, 4  ;;  %v19741_v49 = vpack.c.bf16 %v6129_v4, %v6129_v4  ;;  %v21738_v16 = vadd.f32 %v20828_v5, %v27150_v7  ;;  %v20829_v14 = vpop.f32.mrb[6].mxu0 }
 0x2bf   : > { %v6130_v46 = vmax.f32 %v6098_v34, 0.0  ;;  %v25332_v43 = vrot.slane %v9106_v21, 4  ;;  %v25334_v17 = vrot.slane %v9117_v18, 5  ;;  %v6278_v2 = vshrl.u32 %v19743_v29, 16  ;;  %v6584_v34 = vld [vmem:[#allocation2 + $0xc] sm:$0xf]  ;;  %20983 = vmatmul.mubr.bf16.gmra.mrb[48].mxu1 %v19023_v23 }
 0x2c0   : > { %v6281_v26 = vshll.u32 %v19743_v29, 16  ;;  %v19744_v30 = vpack.c.bf16 %v6132_v52, %v6132_v52  ;;  %v6261_v50 = vshrl.u32 %v19741_v49, 16  ;;  %v6264_v62 = vshll.u32 %v19741_v49, 16  ;;  %v5886_v52 = vpop.f32.mrb[7].mxu0  ;;  %20986 = vmatprep.mubr.bf16.mxu1 %v19024_v33 }
 0x2c1   : > { %v19742_v44 = vpack.c.bf16 %v6130_v46, %v6130_v46  ;;  %v21739_v55 = vadd.f32 %v5883_v12, %v27151_v37  ;;  %v6280_v4 = vrot.slane %v6278_v2, 7  ;;  %v6103_v29 = vadd.f32 %v21738_v16, %v25289_v51 }
 0x2c2   : > { %v6286_v21 = vshrl.u32 %v19744_v30, 16  ;;  %v6289_v18 = vshll.u32 %v19744_v30, 16  ;;  %v6263_v49 = vrot.slane %v6261_v50, 7 }
 0x2c3   : > { %v6269_v46 = vshrl.u32 %v19742_v44, 16  ;;  %v6272_v5 = vshll.u32 %v19742_v44, 16  ;;  %v6101_v7 = vadd.f32 %v21739_v55, %v25289_v51  ;;  %v6283_v2 = vor.u32 %v6281_v26, %v6280_v4 }
 0x2c4   : > { %v6284_v30 = vrot.slane %v6280_v4, 4  ;;  %v6288_v12 = vrot.slane %v6286_v21, 7  ;;  %v6135_v37 = vmax.f32 %v6103_v29, 0.0  ;;  %v6266_v50 = vor.u32 %v6264_v62, %v6263_v49  ;;  %v6590_v29 = vld [vmem:[#allocation2 + $0x14] sm:$0x1] }
 0x2c5   : > { %v6267_v44 = vrot.slane %v6263_v49, 4  ;;  %v6271_v23 = vrot.slane %v6269_v46, 7  ;;  %v6133_v26 = vmax.f32 %v6101_v7, 0.0  ;;  %v6594_v55 = vsel %vm25342_vm11, %v6283_v2, %v6593_v27  ;;  %v20832_v49 = vpop.f32.mrb[8].mxu0 }
 0x2c6   : > { %v6291_v4 = vor.u32 %v6289_v18, %v6288_v12  ;;  %v6293_v21 = vrot.slane %v6288_v12, 4  ;;  %v19747_v11 = vpack.c.bf16 %v6135_v37, %v6135_v37  ;;  %6595 = vst [vmem:[#allocation2 + $0x18] sm:$0xf] %v6594_v55  ;;  %v6585_v58 = vsel %vm25342_vm11, %v6266_v50, %v6584_v34  ;;  %v5899_v2 = vpop.f32.mrb[9].mxu0  ;;  %v27159_v55 = vld [vmem:[#allocation26_spill] sm:$0xff] }
 0x2c7   : > { %v6274_v20 = vor.u32 %v6272_v5, %v6271_v23  ;;  %v6276_v33 = vrot.slane %v6271_v23, 4  ;;  %v19745_v62 = vpack.c.bf16 %v6133_v26, %v6133_v26  ;;  %6586 = vst [vmem:[#allocation2 + $0xc] sm:$0xf] %v6585_v58  ;;  %v6607_v5 = vld [vmem:[#allocation2 + $0x30] sm:$0xf]  ;;  %v20833_v23 = vpop.f32.mrb[10].mxu0  ;;  %20987 = vmatmul.mubr.bf16.gmra.mrb[52].mxu1 %v19025_v53 }
 0x2c8   : > { %v6292_v46 = vsel %vm25352_vm12, %v6284_v30, %v6291_v4  ;;  %v6598_v7 = vsel %vm25361_vm13, %v6293_v21, %v6597_v56  ;;  %v6312_v27 = vshrl.u32 %v19747_v11, 16  ;;  %v6315_v18 = vshll.u32 %v19747_v11, 16  ;;  %v6600_v56 = vld [vmem:[#allocation2 + $0x24] sm:$0xf]  ;;  %v5902_v58 = vpop.f32.mrb[11].mxu0  ;;  %20990 = vmatprep.mubr.bf16.mxu1 %v19026_v59 }
 0x2c9   : > { %6596 = vst [vmem:[#allocation2 + $0x1c] sm:$0xf] %v6292_v46  ;;  %6599 = vst [vmem:[#allocation2 + $0x20] sm:$0x1] %v6598_v7  ;;  %v6275_v12 = vsel %vm25352_vm12, %v6267_v44, %v6274_v20  ;;  %v6591_v34 = vsel %vm25361_vm13, %v6276_v33, %v6590_v29  ;;  %v6295_v37 = vshrl.u32 %v19745_v62, 16  ;;  %v6298_v50 = vshll.u32 %v19745_v62, 16 }
 0x2ca   : > { %6587 = vst [vmem:[#allocation2 + $0x10] sm:$0xf] %v6275_v12  ;;  %6592 = vst [vmem:[#allocation2 + $0x14] sm:$0x1] %v6591_v34  ;;  %v25377_v30 = vrot.slane %v6312_v27, 7  ;;  %v27158_v26 = vld [vmem:[#allocation25_spill] sm:$0xff]  ;;  %v21741_v4 = vadd.f32 %v5886_v52, %v27159_v55  ;;  %v21742_v21 = vadd.f32 %v20832_v49, %v25067_v22  ;;  %v21743_v29 = vadd.f32 %v5899_v2, %v25070_v48 }
 0x2cb   : > { %v21740_v11 = vadd.f32 %v20829_v14, %v27158_v26  ;;  %v25382_v44 = vrot.slane %v6295_v37, 7  ;;  %v21744_v20 = vadd.f32 %v20833_v23, %v25076_v60  ;;  %v21745_v33 = vadd.f32 %v5902_v58, %v25079_v0  ;;  %v22797_v26 = vld [vmem:[#allocation10 + $0x48] sm:$0xff]  }
 0x2cc   : > { %v6317_v62 = vor.u32 %v6315_v18, %v25377_v30  ;;  %v6318_v14 = vrot.slane %v25377_v30, 4  ;;  %v6102_v22 = vadd.f32 %v21741_v4, %v25289_v51  ;;  %v6107_v60 = vadd.f32 %v21742_v21, %v25289_v51  ;;  %v20836_v18 = vpop.f32.mrb[12].mxu0  ;;  %v27160_v4 = vld [vmem:[#allocation27_spill] sm:$0xff] }
 0x2cd   : > { %v6104_v52 = vadd.f32 %v21740_v11, %v25289_v51  ;;  %v6300_v48 = vor.u32 %v6298_v50, %v25382_v44  ;;  %v6301_v0 = vrot.slane %v25382_v44, 4  ;;  %v6105_v1 = vadd.f32 %v21743_v29, %v25289_v51  ;;  %v5915_v50 = vpop.f32.mrb[13].mxu0 }
 0x2ce   : > { %v6608_v24 = vsel %vm25342_vm11, %v6317_v62, %v6607_v5  ;;  %v6134_v49 = vmax.f32 %v6102_v22, 0.0  ;;  %v6108_v46 = vadd.f32 %v21744_v20, %v25289_v51  ;;  %v25404_v7 = vpop.f32.mrb[16].mxu1  ;;  %v6139_v6 = vmax.f32 %v6107_v60, 0.0  ;;  %v25415_v58 = vpop.f32.mrb[14].mxu0  ;;  %v6611_v60 = vld [vmem:[#allocation2 + $0x38] sm:$0x1] }
 0x2cf   : > { %v6136_v53 = vmax.f32 %v6104_v52, 0.0  ;;  %6609 = vst [vmem:[#allocation2 + $0x30] sm:$0xf] %v6608_v24  ;;  %v6601_v63 = vsel %vm25342_vm11, %v6300_v48, %v6600_v56  ;;  %v6137_v59 = vmax.f32 %v6105_v1, 0.0  ;;  %v6106_v27 = vadd.f32 %v21745_v33, %v25289_v51  ;;  %v25409_v2 = vpop.f32.mrb[17].mxu1  ;;  %v25419_v48 = vpop.f32.mrb[15].mxu0  ;;  %20991 = vmatmul.mubr.bf16.gmra.mrb[56].mxu1 %v19027_v31 }
 0x2d0   : > { %6602 = vst [vmem:[#allocation2 + $0x24] sm:$0xf] %v6601_v63  ;;  %v19746_v34 = vpack.c.bf16 %v6134_v49, %v6134_v49  ;;  %v6140_v5 = vmax.f32 %v6108_v46, 0.0  ;;  %v21746_v37 = vadd.f32 %v20836_v18, %v25114_v8  ;;  %v25412_v23 = vpop.f32.mrb[18].mxu1  ;;  %v19751_v11 = vpack.c.bf16 %v6139_v6, %v6139_v6  ;;  %v22793_v8 = vld [vmem:[#allocation2 + $0x18] sm:$0xff]   ;;  %20994 = vmatprep.mubr.bf16.mxu1 %v19028_v42 }
 0x2d1   : > { %v19748_v12 = vpack.c.bf16 %v6136_v53, %v6136_v53  ;;  %v19749_v55 = vpack.c.bf16 %v6137_v59, %v6137_v59  ;;  %v6138_v56 = vmax.f32 %v6106_v27, 0.0  ;;  %v21747_v21 = vadd.f32 %v5915_v50, %v27160_v4  ;;  %v22791_v29 = vld [vmem:[#allocation2 + $0xc] sm:$0xff]   ;;  %v25417_v20 = vpop.f32.mrb[19].mxu1  ;;  %v6621_v59 = vld [vmem:[#allocation2 + $0x48] sm:$0xf]  ;;  %v22803_v31 = vld [vmem:[#allocation10 + $0x50] sm:$0xff]  }
 0x2d2   : > { %v6303_v52 = vshrl.u32 %v19746_v34, 16  ;;  %v6306_v22 = vshll.u32 %v19746_v34, 16  ;;  %v6346_v1 = vshrl.u32 %v19751_v11, 16  ;;  %v6349_v24 = vshll.u32 %v19751_v11, 16  ;;  %21303 = vmatmul.mubr.bf16.vlgmr.msra.gmra.mrb[32].mxu0 %v22791_v29  ;;  %v6604_v6 = vld [vmem:[#allocation2 + $0x2c] sm:$0x1] }
 0x2d3   : > { %v6320_v33 = vshrl.u32 %v19748_v12, 16  ;;  %v6323_v62 = vshll.u32 %v19748_v12, 16  ;;  %v6329_v53 = vshrl.u32 %v19749_v55, 16  ;;  %v6332_v49 = vshll.u32 %v19749_v55, 16  ;;  %21306 = vmatprep.mubr.bf16.mxu0 %v22793_v8  ;;  %v22985_v12 = vld [vmem:[#allocation10 + $0x40] sm:$0xff]   ;;  %v20840_v8 = vpop.f32.mrb[16].mxu0 }
 0x2d4   : > { %v6305_v63 = vrot.slane %v6303_v52, 7  ;;  %v25424_v27 = vpack.c.bf16 %v6140_v5, %v6140_v5  ;;  %v25426_v18 = vpack.c.bf16 %v6138_v56, %v6138_v56  ;;  %21335 = vmatpush3.bf16.msra.mxu0 %v22985_v12  ;;  %v25428_v34 = vrot.slane %v6346_v1, 7  ;;  %v6614_v11 = vld [vmem:[#allocation2 + $0x3c] sm:$0xf]  ;;  %v5931_v1 = vpop.f32.mrb[17].mxu0 }
 0x2d5   : > { %v6322_v46 = vrot.slane %v6320_v33, 7  ;;  %v25430_v50 = vrot.slane %v6329_v53, 7  ;;  %v6111_v9 = vadd.f32 %v21746_v37, %v25289_v51  ;;  %v6109_v41 = vadd.f32 %v21747_v21, %v25289_v51  ;;  %21336 = vmatprep.subr.bf16.mxu0 %v22797_v26  ;;  %v22800_v53 = vld [vmem:[%s23585_s15 + $0xc] sm:$0xff]  }
 0x2d6   : > { %v6308_v56 = vor.u32 %v6306_v22, %v6305_v63  ;;  %v6310_v4 = vrot.slane %v6305_v63, 4  ;;  %v25437_v29 = vpop.f32.mrb[20].mxu1  ;;  %v6351_v33 = vor.u32 %v6349_v24, %v25428_v34  ;;  %v6352_v52 = vrot.slane %v25428_v34, 4 }
 0x2d7   : > { %v6325_v5 = vor.u32 %v6323_v62, %v6322_v46  ;;  %v6327_v55 = vrot.slane %v6322_v46, 4  ;;  %v6334_v37 = vor.u32 %v6332_v49, %v25430_v50  ;;  %v6335_v21 = vrot.slane %v25430_v50, 4  ;;  %v25443_v45 = vpop.f32.mrb[21].mxu1  ;;  %v22808_v49 = vld [vmem:[#allocation10 + $0x58] sm:$0xff]   ;;  %20995 = vmatmul.mubr.bf16.gmra.mrb[60].mxu1 %v19029_v3 }
 0x2d8   : > { %v6309_v62 = vsel %vm25352_vm12, %v6301_v0, %v6308_v56  ;;  %v6605_v22 = vsel %vm25361_vm13, %v6310_v4, %v6604_v6  ;;  %21337 = vmatpush3.bf16.msra.mxu0 %v22797_v26  ;;  %v25457_v24 = vpop.f32.mrb[22].mxu1  ;;  %v6622_v30 = vsel %vm25342_vm11, %v6351_v33, %v6621_v59  ;;  %v6357_v0 = vshll.u32 %v25424_v27, 16  ;;  %21014 = vmatprep.mubr.bf16.mxu1 %v22800_v53  ;;  %v6618_v4 = vld [vmem:[#allocation2 + $0x44] sm:$0x1]  ;;  %v17445_v36 = vld [vmem:[#allocation2 + $0x24] sm:$0xe] }
 0x2d9   : > { %v6326_v40 = vsel %vm25352_vm12, %v6318_v14, %v6325_v5  ;;  %v6612_v42 = vsel %vm25361_vm13, %v6327_v55, %v6611_v60  ;;  %6603 = vst [vmem:[#allocation2 + $0x28] sm:$0xf] %v6309_v62  ;;  %6606 = vst [vmem:[#allocation2 + $0x2c] sm:$0x1] %v6605_v22  ;;  %v6615_v44 = vsel %vm25342_vm11, %v6334_v37, %v6614_v11  ;;  %v6354_v14 = vshrl.u32 %v25424_v27, 16  ;;  %v25466_v60 = vpop.f32.mrb[18].mxu0 }
 0x2da   : > { %6610 = vst [vmem:[#allocation2 + $0x34] sm:$0xf] %v6326_v40  ;;  %6613 = vst [vmem:[#allocation2 + $0x38] sm:$0x1] %v6612_v42  ;;  %v25468_v26 = vpop.f32.mrb[23].mxu1  ;;  %21338 = vmatprep.subr.bf16.mxu0 %v22803_v31  ;;  %v6337_v46 = vshrl.u32 %v25426_v18, 16  ;;  %v21748_v27 = vadd.f32 %v25415_v58, %v25138_v32  ;;  %v21749_v11 = vadd.f32 %v25419_v48, %v25153_v15 }
 0x2db   : > { %6623 = vst [vmem:[#allocation2 + $0x48] sm:$0xf] %v6622_v30  ;;  %6616 = vst [vmem:[#allocation2 + $0x3c] sm:$0xf] %v6615_v44  ;;  %v6340_v63 = vshll.u32 %v25426_v18, 16  ;;  %v6143_v6 = vmax.f32 %v6111_v9, 0.0  ;;  %v21750_v5 = vadd.f32 %v20840_v8, %v25404_v7  ;;  %v21751_v56 = vadd.f32 %v5931_v1, %v25409_v2 }
 0x2dc   : > { %v6141_v59 = vmax.f32 %v6109_v41, 0.0  ;;  %v25472_v12 = vpop.f32.mrb[19].mxu0  ;;  %v6356_v34 = vrot.slane %v6354_v14, 7  ;;  %v6625_v55 = vld [vmem:[#allocation2 + $0x50] sm:$0x1]  ;;  %v6339_v18 = vrot.slane %v6337_v46, 7  ;;  %21339 = vmatpush3.bf16.msra.mxu0 %v22803_v31  ;;  %v6112_v15 = vadd.f32 %v21748_v27, %v25289_v51 }
 0x2dd   : > { %v19755_v9 = vpack.c.bf16 %v6143_v6, %v6143_v6  ;;  %v6110_v7 = vadd.f32 %v21749_v11, %v25289_v51  ;;  %v22801_v48 = vld [vmem:[%s23585_s15 + $0x18] sm:$0xff]   ;;  %21340 = vmatprep.subr.bf16.mxu0 %v22808_v49  ;;  %v22805_v8 = vld [vmem:[%s23585_s15 + $0x24] sm:$0xff]   ;;  %v25491_v22 = vpop.f32.mrb[20].mxu0  ;;  %v6115_v50 = vadd.f32 %v21750_v5, %v25289_v51 }
 0x2de   : > { %v19753_v41 = vpack.c.bf16 %v6141_v59, %v6141_v59  ;;  %v6359_v32 = vor.u32 %v6357_v0, %v6356_v34  ;;  %v6361_v58 = vrot.slane %v6356_v34, 4  ;;  %v6342_v35 = vor.u32 %v6340_v63, %v6339_v18  ;;  %v6635_v40 = vld [vmem:[#allocation2 + $0x60] sm:$0xf]  ;;  %v25493_v1 = vld [vmem:[#allocation10 + $0x68] sm:$0xff]   ;;  %v25509_v34 = vpop.f32.mrb[21].mxu0 }
 0x2df   : > { %v6344_v3 = vrot.slane %v6339_v18, 4  ;;  %v6380_v33 = vshrl.u32 %v19755_v9, 16  ;;  %v6383_v37 = vshll.u32 %v19755_v9, 16  ;;  %v6628_v44 = vld [vmem:[#allocation2 + $0x54] sm:$0xf]  ;;  %v6144_v14 = vmax.f32 %v6112_v15, 0.0  ;;  %21015 = vmatmul.mubr.bf16.vlgmr.msra.gmra.mrb[32].mxu1 %v22801_v48 }
 0x2e0   : > { %v6360_v2 = vsel %vm25352_vm12, %v6352_v52, %v6359_v32  ;;  %v6626_v31 = vsel %vm25361_vm13, %v6361_v58, %v6625_v55  ;;  %v6363_v42 = vshrl.u32 %v19753_v41, 16  ;;  %v6366_v62 = vshll.u32 %v19753_v41, 16  ;;  %v22796_v0 = vld [vmem:[#allocation2 + $0x24] sm:$0xff]   ;;  %21341 = vmatpush3.bf16.msra.mxu0 %v22808_v49  ;;  %v25503_v46 = vld [vmem:[#allocation13 + $0x108] sm:$0xff]   ;;  %v25515_v18 = vpop.f32.mrb[22].mxu0  ;;  %v25521_v58 = vpop.f32.mrb[24].mxu1  ;;  %21018 = vmatprep.mubr.bf16.mxu1 %v22805_v8 }
 0x2e1   : > { %6624 = vst [vmem:[#allocation2 + $0x4c] sm:$0xf] %v6360_v2  ;;  %6627 = vst [vmem:[#allocation2 + $0x50] sm:$0x1] %v6626_v31  ;;  %v6343_v53 = vsel %vm25352_vm12, %v6335_v21, %v6342_v35  ;;  %v6619_v52 = vsel %vm25361_vm13, %v6344_v3, %v6618_v4  ;;  %v25501_v30 = vrot.slane %v6380_v33, 7  ;;  %v6142_v6 = vmax.f32 %v6110_v7, 0.0  ;;  %21342 = vmatprep.subr.bf16.mxu0 %v22813_v19 }
 0x2e2   : > { %6617 = vst [vmem:[#allocation2 + $0x40] sm:$0xf] %v6343_v53  ;;  %6620 = vst [vmem:[#allocation2 + $0x44] sm:$0x1] %v6619_v52  ;;  %v25505_v63 = vrot.slane %v6363_v42, 7  ;;  %v6113_v21 = vadd.f32 %v21751_v56, %v25289_v51  ;;  %v22798_v59 = vld [vmem:[#allocation2 + $0x30] sm:$0xff]   ;;  %v19756_v49 = vpack.c.bf16 %v6144_v14, %v6144_v14  ;;  %v21752_v55 = vadd.f32 %v25466_v60, %v25412_v23 }
 0x2e3   : > { %v6385_v27 = vor.u32 %v6383_v37, %v25501_v30  ;;  %v6386_v11 = vrot.slane %v25501_v30, 4  ;;  %21307 = vmatmul.mubr.bf16.gmra.mrb[36].mxu0 %v22796_v0  ;;  %v19754_v41 = vpack.c.bf16 %v6142_v6, %v6142_v6  ;;  %v6147_v56 = vmax.f32 %v6115_v50, 0.0  ;;  %v25519_v32 = vpop.f32.mrb[23].mxu0  ;;  %v25525_v7 = vpop.f32.mrb[25].mxu1  ;;  %v6639_v3 = vld [vmem:[#allocation2 + $0x68] sm:$0x1]  ;;  %21047 = vmatpush3.bf16.msra.mxu1 %v25326_v10 }
 0x2e4   : > { %v6368_v9 = vor.u32 %v6366_v62, %v25505_v63  ;;  %v6369_v5 = vrot.slane %v25505_v63, 4  ;;  %21310 = vmatprep.mubr.bf16.mxu0 %v22798_v59  ;;  %v6388_v15 = vshrl.u32 %v19756_v49, 16  ;;  %v6391_v23 = vshll.u32 %v19756_v49, 16  ;;  %21343 = vmatpush3.bf16.msra.mxu0 %v22813_v19  ;;  %v25529_v2 = vpop.f32.mrb[26].mxu1  ;;  %v22824_v31 = vld [vmem:[#allocation10 + $0x70] sm:$0xff]  }
 0x2e5   : > { %v6636_v4 = vsel %vm25342_vm11, %v6385_v27, %v6635_v40  ;;  %v6145_v60 = vmax.f32 %v6113_v21, 0.0  ;;  %v6371_v33 = vshrl.u32 %v19754_v41, 16  ;;  %v6374_v48 = vshll.u32 %v19754_v41, 16  ;;  %21344 = vmatprep.subr.bf16.mxu0 %v25493_v1  ;;  %v6632_v19 = vld [vmem:[#allocation2 + $0x5c] sm:$0x1]  ;;  %v25536_v53 = vpop.f32.mrb[27].mxu1  ;;  %21048 = vmatprep.subr.bf16.mxu1 %v25503_v46 }
 0x2e6   : > { %6637 = vst [vmem:[#allocation2 + $0x60] sm:$0xf] %v6636_v4  ;;  %v6629_v35 = vsel %vm25342_vm11, %v6368_v9, %v6628_v44  ;;  %v19759_v37 = vpack.c.bf16 %v6147_v56, %v6147_v56  ;;  %v6390_v8 = vrot.slane %v6388_v15, 7  ;;  %v6116_v42 = vadd.f32 %v21752_v55, %v25289_v51  ;;  %v22806_v52 = vld [vmem:[%s23585_s15 + $0x30] sm:$0xff]   ;;  %v22810_v6 = vld [vmem:[%s23585_s15 + $0x3c] sm:$0xff]   ;;  %v20848_v56 = vpop.f32.mrb[24].mxu0 }
 0x2e7   : > { %6630 = vst [vmem:[#allocation2 + $0x54] sm:$0xf] %v6629_v35  ;;  %v19757_v40 = vpack.c.bf16 %v6145_v60, %v6145_v60  ;;  %v21753_v62 = vadd.f32 %v25472_v12, %v25417_v20  ;;  %v22829_v30 = vld [vmem:[#allocation13 + $0x110] sm:$0xff]   ;;  %v6373_v44 = vrot.slane %v6371_v33, 7  ;;  %v21754_v10 = vadd.f32 %v25491_v22, %v25437_v29  ;;  %21049 = vmatpush3.bf16.msra.mxu1 %v25503_v46  ;;  %v6649_v15 = vld [vmem:[#allocation2 + $0x78] sm:$0xf] }
 0x2e8   : > { %v6414_v14 = vshrl.u32 %v19759_v37, 16  ;;  %v6417_v0 = vshll.u32 %v19759_v37, 16  ;;  %v6393_v50 = vor.u32 %v6391_v23, %v6390_v8  ;;  %v6395_v21 = vrot.slane %v6390_v8, 4  ;;  %21345 = vmatpush3.bf16.msra.mxu0 %v25493_v1  ;;  %v22804_v41 = vld [vmem:[#allocation2 + $0x48] sm:$0xff]   ;;  %v25554_v60 = vpop.f32.mrb[25].mxu0  ;;  %21050 = vmatprep.subr.bf16.mxu1 %v22829_v30 }
 0x2e9   : > { %v6397_v59 = vshrl.u32 %v19757_v40, 16  ;;  %v6400_v27 = vshll.u32 %v19757_v40, 16  ;;  %v22802_v49 = vld [vmem:[#allocation2 + $0x3c] sm:$0xff]   ;;  %v6376_v20 = vor.u32 %v6374_v48, %v6373_v44  ;;  %v6378_v12 = vrot.slane %v6373_v44, 4  ;;  %21346 = vmatprep.subr.bf16.mxu0 %v22824_v31  ;;  %v6642_v33 = vld [vmem:[#allocation2 + $0x6c] sm:$0xf]  ;;  %21019 = vmatmul.mubr.bf16.gmra.mrb[36].mxu1 %v22806_v52 }
 0x2ea   : > { %v25544_v55 = vrot.slane %v6414_v14, 7  ;;  %v6148_v9 = vmax.f32 %v6116_v42, 0.0  ;;  %v22831_v4 = vld [vmem:[#allocation10 + $0x78] sm:$0xff]   ;;  %v6394_v29 = vsel %vm25352_vm12, %v6386_v11, %v6393_v50  ;;  %v6640_v22 = vsel %vm25361_vm13, %v6395_v21, %v6639_v3  ;;  %v25564_v48 = vpop.f32.mrb[26].mxu0  ;;  %21022 = vmatprep.mubr.bf16.mxu1 %v22810_v6  ;;  %v25577_v14 = vld [vmem:[#allocation10 + $0x80] sm:$0xff]   ;;  %v25581_v21 = vpop.f32.mrb[28].mxu1 }
 0x2eb   : > { %v25551_v23 = vrot.slane %v6397_v59, 7  ;;  %v6114_v1 = vadd.f32 %v21753_v62, %v25289_v51  ;;  %21311 = vmatmul.mubr.bf16.gmra.mrb[40].mxu0 %v22802_v49  ;;  %6638 = vst [vmem:[#allocation2 + $0x64] sm:$0xf] %v6394_v29  ;;  %6641 = vst [vmem:[#allocation2 + $0x68] sm:$0x1] %v6640_v22  ;;  %v6377_v46 = vsel %vm25352_vm12, %v6369_v5, %v6376_v20  ;;  %v22832_v37 = vld [vmem:[#allocation13 + $0x118] sm:$0xff]   ;;  %21051 = vmatpush3.bf16.msra.mxu1 %v22829_v30 }
 0x2ec   : > { %v6633_v11 = vsel %vm25361_vm13, %v6378_v12, %v6632_v19  ;;  %v6419_v35 = vor.u32 %v6417_v0, %v25544_v55  ;;  %v6420_v3 = vrot.slane %v25544_v55, 4  ;;  %21314 = vmatprep.mubr.bf16.mxu0 %v22804_v41  ;;  %6631 = vst [vmem:[#allocation2 + $0x58] sm:$0xf] %v6377_v46  ;;  %v19760_v5 = vpack.c.bf16 %v6148_v9, %v6148_v9  ;;  %v25568_v19 = vpop.f32.mrb[27].mxu0  ;;  %v22811_v59 = vld [vmem:[%s23585_s15 + $0x48] sm:$0xff]   ;;  %v25590_v49 = vpop.f32.mrb[29].mxu1 }
 0x2ed   : > { %6634 = vst [vmem:[#allocation2 + $0x5c] sm:$0x1] %v6633_v11  ;;  %v6402_v63 = vor.u32 %v6400_v27, %v25551_v23  ;;  %v6403_v8 = vrot.slane %v25551_v23, 4  ;;  %v6146_v40 = vmax.f32 %v6114_v1, 0.0  ;;  %21347 = vmatpush3.bf16.msra.mxu0 %v22824_v31  ;;  %v6119_v62 = vadd.f32 %v21754_v10, %v25289_v51  ;;  %v25588_v27 = vpop.f32.mrb[28].mxu0  ;;  %21052 = vmatprep.subr.bf16.mxu1 %v22832_v37  ;;  %v22835_v20 = vld [vmem:[#allocation13 + $0x120] sm:$0xff]  }
 0x2ee   : > { %v6650_v42 = vsel %vm25342_vm11, %v6419_v35, %v6649_v15  ;;  %v21755_v52 = vadd.f32 %v25509_v34, %v25443_v45  ;;  %v21756_v44 = vadd.f32 %v25515_v18, %v25457_v24  ;;  %21348 = vmatprep.subr.bf16.mxu0 %v22831_v4  ;;  %v6422_v6 = vshrl.u32 %v19760_v5, 16  ;;  %v6653_v45 = vld [vmem:[#allocation2 + $0x80] sm:$0x1]  ;;  %v25593_v29 = vpop.f32.mrb[29].mxu0  ;;  %v25595_v22 = vpop.f32.mrb[30].mxu1  ;;  %v22815_v15 = vld [vmem:[%s23585_s15 + $0x54] sm:$0xff]  }
 0x2ef   : > { %6651 = vst [vmem:[#allocation2 + $0x78] sm:$0xf] %v6650_v42  ;;  %v6643_v0 = vsel %vm25342_vm11, %v6402_v63, %v6642_v33  ;;  %v6425_v31 = vshll.u32 %v19760_v5, 16  ;;  %v19758_v50 = vpack.c.bf16 %v6146_v40, %v6146_v40  ;;  %v6151_v34 = vmax.f32 %v6119_v62, 0.0  ;;  %v6646_v1 = vld [vmem:[#allocation2 + $0x74] sm:$0x1]  ;;  %21053 = vmatpush3.bf16.msra.mxu1 %v22832_v37 }
 0x2f0   : > { %6644 = vst [vmem:[#allocation2 + $0x6c] sm:$0xf] %v6643_v0  ;;  %v6117_v24 = vadd.f32 %v21755_v52, %v25289_v51  ;;  %v6120_v18 = vadd.f32 %v21756_v44, %v25289_v51  ;;  %v21757_v10 = vadd.f32 %v25519_v32, %v25468_v26  ;;  %v6424_v12 = vrot.slane %v6422_v6, 7  ;;  %v25599_v35 = vpop.f32.mrb[30].mxu0  ;;  %v25601_v33 = vpop.f32.mrb[31].mxu1  ;;  %21054 = vmatprep.subr.bf16.mxu1 %v22835_v20  ;;  %v22837_v0 = vld [vmem:[#allocation13 + $0x128] sm:$0xff]  }
 0x2f1   : > { %v6405_v9 = vshrl.u32 %v19758_v50, 16  ;;  %v6408_v30 = vshll.u32 %v19758_v50, 16  ;;  %v21758_v41 = vadd.f32 %v20848_v56, %v25521_v58  ;;  %21349 = vmatpush3.bf16.msra.mxu0 %v22831_v4  ;;  %v19763_v46 = vpack.c.bf16 %v6151_v34, %v6151_v34  ;;  %v25605_v40 = vpop.f32.mrb[31].mxu0  ;;  %21023 = vmatmul.mubr.bf16.gmra.mrb[40].mxu1 %v22811_v59  ;;  %v6656_v23 = vld [vmem:[#allocation2 + $0x84] sm:$0xf] }
 0x2f2   : > { %v6149_v26 = vmax.f32 %v6117_v24, 0.0  ;;  %v6152_v32 = vmax.f32 %v6120_v18, 0.0  ;;  %v6118_v11 = vadd.f32 %v21757_v10, %v25289_v51  ;;  %21382 = vmatprep.subr.bf16.mxu0 %v25577_v14  ;;  %v6427_v63 = vor.u32 %v6425_v31, %v6424_v12  ;;  %v22809_v34 = vld [vmem:[#allocation2 + $0x60] sm:$0xff]   ;;  %21026 = vmatprep.mubr.bf16.mxu1 %v22815_v15 }
 0x2f3   : > { %v6429_v58 = vrot.slane %v6424_v12, 4  ;;  %v6407_v56 = vrot.slane %v6405_v9, 7  ;;  %v6123_v5 = vadd.f32 %v21758_v41, %v25289_v51  ;;  %v6448_v4 = vshrl.u32 %v19763_v46, 16  ;;  %v22807_v44 = vld [vmem:[#allocation2 + $0x54] sm:$0xff]   ;;  %21055 = vmatpush3.bf16.msra.mxu1 %v22835_v20 }
 0x2f4   : > { %v6451_v42 = vshll.u32 %v19763_v46, 16  ;;  %v19761_v62 = vpack.c.bf16 %v6149_v26, %v6149_v26  ;;  %v19764_v52 = vpack.c.bf16 %v6152_v32, %v6152_v32  ;;  %v6428_v6 = vsel %vm25352_vm12, %v6420_v3, %v6427_v63  ;;  %21315 = vmatmul.mubr.bf16.gmra.mrb[44].mxu0 %v22807_v44  ;;  %v22816_v46 = vld [vmem:[%s23585_s15 + $0x60] sm:$0xff]   ;;  %21056 = vmatprep.subr.bf16.mxu1 %v22837_v0 }
 0x2f5   : > { %v6654_v31 = vsel %vm25361_vm13, %v6429_v58, %v6653_v45  ;;  %v6410_v51 = vor.u32 %v6408_v30, %v6407_v56  ;;  %v6412_v50 = vrot.slane %v6407_v56, 4  ;;  %6652 = vst [vmem:[#allocation2 + $0x7c] sm:$0xf] %v6428_v6  ;;  %v6450_v37 = vrot.slane %v6448_v4, 7  ;;  %v6663_v45 = vld [vmem:[#allocation2 + $0x90] sm:$0xf]  ;;  %21318 = vmatprep.mubr.bf16.mxu0 %v22809_v34 }
 0x2f6   : > { %6655 = vst [vmem:[#allocation2 + $0x80] sm:$0x1] %v6654_v31  ;;  %v6431_v24 = vshrl.u32 %v19761_v62, 16  ;;  %v6434_v18 = vshll.u32 %v19761_v62, 16  ;;  %v6456_v59 = vshrl.u32 %v19764_v52, 16  ;;  %v6459_v10 = vshll.u32 %v19764_v52, 16 }
 0x2f7   : > { %v6411_v55 = vsel %vm25352_vm12, %v6403_v8, %v6410_v51  ;;  %v6647_v3 = vsel %vm25361_vm13, %v6412_v50, %v6646_v1  ;;  %v6150_v12 = vmax.f32 %v6118_v11, 0.0  ;;  %v6453_v9 = vor.u32 %v6451_v42, %v6450_v37  ;;  %v22820_v11 = vld [vmem:[%s23585_s15 + $0x6c] sm:$0xff]   ;;  %v6667_v42 = vld [vmem:[#allocation2 + $0x98] sm:$0x1]  ;;  %21057 = vmatpush3.bf16.msra.mxu1 %v22837_v0 }
 0x2f8   : > { %6645 = vst [vmem:[#allocation2 + $0x70] sm:$0xf] %v6411_v55  ;;  %6648 = vst [vmem:[#allocation2 + $0x74] sm:$0x1] %v6647_v3  ;;  %v6454_v30 = vrot.slane %v6450_v37, 4  ;;  %v6433_v41 = vrot.slane %v6431_v24, 7  ;;  %v21759_v1 = vadd.f32 %v25554_v60, %v25525_v7  ;;  %v21760_v32 = vadd.f32 %v25564_v48, %v25529_v2 }
 0x2f9   : > { %v6458_v15 = vrot.slane %v6456_v59, 7  ;;  %v19762_v26 = vpack.c.bf16 %v6150_v12, %v6150_v12  ;;  %v6155_v8 = vmax.f32 %v6123_v5, 0.0  ;;  %v22840_v63 = vld [vmem:[#allocation13 + $0x130] sm:$0xff]   ;;  %v6664_v20 = vsel %vm25342_vm11, %v6453_v9, %v6663_v45  ;;  %v25631_v60 = vld [vmem:[#allocation9] ss:$0 sm:$0xff]  ;;  %21027 = vmatmul.mubr.bf16.gmra.mrb[44].mxu1 %v22816_v46 }
 0x2fa   : > { %v6436_v58 = vor.u32 %v6434_v18, %v6433_v41  ;;  %v6437_v56 = vrot.slane %v6433_v41, 4  ;;  %6665 = vst [vmem:[#allocation2 + $0x90] sm:$0xf] %v6664_v20  ;;  %v6121_v48 = vadd.f32 %v25631_v60, %v21759_v1  ;;  %v6124_v6 = vadd.f32 %v25631_v60, %v21760_v32  ;;  %v22842_v31 = vld [vmem:[#allocation13 + $0x138] sm:$0xff]   ;;  %21030 = vmatprep.mubr.bf16.mxu1 %v22820_v11  ;;  %v6660_v37 = vld [vmem:[#allocation2 + $0x8c] sm:$0x1] }
 0x2fb   : > { %v6461_v4 = vor.u32 %v6459_v10, %v6458_v15  ;;  %v6463_v62 = vrot.slane %v6458_v15, 4  ;;  %v6439_v52 = vshrl.u32 %v19762_v26, 16  ;;  %v6442_v44 = vshll.u32 %v19762_v26, 16  ;;  %21058 = vmatprep.subr.bf16.mxu1 %v22840_v63  ;;  %v6677_v24 = vld [vmem:[#allocation2 + $0xa8] sm:$0xf] }
 0x2fc   : > { %v19767_v5 = vpack.c.bf16 %v6155_v8, %v6155_v8  ;;  %v6657_v7 = vsel %vm25342_vm11, %v6436_v58, %v6656_v23  ;;  %v6153_v18 = vmax.f32 %v6121_v48, 0.0  ;;  %v6156_v59 = vmax.f32 %v6124_v6, 0.0  ;;  %21059 = vmatpush3.bf16.msra.mxu1 %v22840_v63  ;;  %v22814_v26 = vld [vmem:[#allocation2 + $0x78] sm:$0xff]   ;;  %v25653_v1 = vld [vmem:[#allocation2 + $0xc] sm:$0xf] }
 0x2fd   : > { %v6462_v2 = vsel %vm25352_vm12, %v6454_v30, %v6461_v4  ;;  %6658 = vst [vmem:[#allocation2 + $0x84] sm:$0xf] %v6657_v7  ;;  %v6668_v51 = vsel %vm25361_vm13, %v6463_v62, %v6667_v42  ;;  %v6441_v0 = vrot.slane %v6439_v52, 7  ;;  %v21761_v55 = vadd.f32 %v25568_v19, %v25536_v53  ;;  %v22821_v53 = vld [vmem:[%s23585_s15 + $0x78] sm:$0xff]   ;;  %21060 = vmatprep.subr.bf16.mxu1 %v22842_v31  ;;  %v22827_v8 = vld [vmem:[%s23585_s15 + $0x84] sm:$0xff]  }
 0x2fe   : > { %6666 = vst [vmem:[#allocation2 + $0x94] sm:$0xf] %v6462_v2  ;;  %v6482_v50 = vshrl.u32 %v19767_v5, 16  ;;  %v6485_v34 = vshll.u32 %v19767_v5, 16  ;;  %6669 = vst [vmem:[#allocation2 + $0x98] sm:$0x1] %v6668_v51  ;;  %v21762_v3 = vadd.f32 %v25588_v27, %v25581_v21  ;;  %v21763_v9 = vadd.f32 %v25593_v29, %v25590_v49 }
 0x2ff   : > { %v6444_v45 = vor.u32 %v6442_v44, %v6441_v0  ;;  %v6446_v10 = vrot.slane %v6441_v0, 4  ;;  %v22812_v30 = vld [vmem:[#allocation2 + $0x6c] sm:$0xff]   ;;  %v19765_v41 = vpack.c.bf16 %v6153_v18, %v6153_v18  ;;  %v19768_v15 = vpack.c.bf16 %v6156_v59, %v6156_v59  ;;  %v6670_v7 = vld [vmem:[#allocation2 + $0x9c] sm:$0xf] }
 0x300   : > { %v6484_v12 = vrot.slane %v6482_v50, 7  ;;  %v6122_v46 = vadd.f32 %v25631_v60, %v21761_v55  ;;  %v6127_v23 = vadd.f32 %v25631_v60, %v21762_v3  ;;  %v25646_v19 = vld [vmem:[#allocation13 + $0x140] sm:$0xff]   ;;  %21319 = vmatmul.mubr.bf16.gmra.mrb[48].mxu0 %v22812_v30  ;;  %v6125_v42 = vadd.f32 %v25631_v60, %v21763_v9  ;;  %21061 = vmatpush3.bf16.msra.mxu1 %v22842_v31  ;;  %v6674_v55 = vld [vmem:[#allocation2 + $0xa4] sm:$0x1]  ;;  %v6691_v3 = vld [vmem:[#allocation2 + $0xc0] sm:$0xf] }
 0x301   : > { %v6445_v21 = vsel %vm25352_vm12, %v6437_v56, %v6444_v45  ;;  %v6661_v27 = vsel %vm25361_vm13, %v6446_v10, %v6660_v37  ;;  %v6465_v32 = vshrl.u32 %v19765_v41, 16  ;;  %v6468_v11 = vshll.u32 %v19765_v41, 16  ;;  %21322 = vmatprep.mubr.bf16.mxu0 %v22814_v26  ;;  %21031 = vmatmul.mubr.bf16.gmra.mrb[48].mxu1 %v22821_v53  ;;  %v6681_v2 = vld [vmem:[#allocation2 + $0xb0] sm:$0x1]  ;;  %v22828_v10 = vld [vmem:[%s23585_s15 + $0x90] sm:$0xff]  }
 0x302   : > { %v6487_v49 = vor.u32 %v6485_v34, %v6484_v12  ;;  %v6488_v29 = vrot.slane %v6484_v12, 4  ;;  %6659 = vst [vmem:[#allocation2 + $0x88] sm:$0xf] %v6445_v21  ;;  %6662 = vst [vmem:[#allocation2 + $0x8c] sm:$0x1] %v6661_v27  ;;  %v6490_v63 = vshrl.u32 %v19768_v15, 16  ;;  %v21764_v44 = vadd.f32 %v25599_v35, %v25595_v22  ;;  %21094 = vmatprep.subr.bf16.mxu1 %v25646_v19 }
 0x303   : > { %v6493_v20 = vshll.u32 %v19768_v15, 16  ;;  %v6154_v56 = vmax.f32 %v6122_v46, 0.0  ;;  %v6159_v4 = vmax.f32 %v6127_v23, 0.0  ;;  %v6467_v62 = vrot.slane %v6465_v32, 7  ;;  %21034 = vmatprep.mubr.bf16.mxu1 %v22827_v8  ;;  %v12903_v12 = vld [vmem:[#allocation2 + $0x10] sm:$0xf] }
 0x304   : > { %v6678_v58 = vsel %vm25342_vm11, %v6487_v49, %v6677_v24  ;;  %v6492_v52 = vrot.slane %v6490_v63, 7  ;;  %v21765_v5 = vadd.f32 %v25605_v40, %v25601_v33  ;;  %v6157_v51 = vmax.f32 %v6125_v42, 0.0  ;;  %v22833_v23 = vld [vmem:[%s23585_s15 + $0x9c] sm:$0xff]  }
 0x305   : > { %6679 = vst [vmem:[#allocation2 + $0xa8] sm:$0xf] %v6678_v58  ;;  %v19766_v48 = vpack.c.bf16 %v6154_v56, %v6154_v56  ;;  %v19771_v6 = vpack.c.bf16 %v6159_v4, %v6159_v4  ;;  %v12972_v31 = vshrl.u32 %v25653_v1, 16  ;;  %v6470_v0 = vor.u32 %v6468_v11, %v6467_v62  ;;  %v22819_v21 = vld [vmem:[#allocation2 + $0x90] sm:$0xff]  }
 0x306   : > { %v6471_v50 = vrot.slane %v6467_v62, 4  ;;  %v6495_v34 = vor.u32 %v6493_v20, %v6492_v52  ;;  %v6497_v37 = vrot.slane %v6492_v52, 4  ;;  %v19769_v45 = vpack.c.bf16 %v6157_v51, %v6157_v51  ;;  %v6684_v62 = vld [vmem:[#allocation2 + $0xb4] sm:$0xf] }
 0x307   : > { %v6473_v22 = vshrl.u32 %v19766_v48, 16  ;;  %v6476_v35 = vshll.u32 %v19766_v48, 16  ;;  %v6516_v24 = vshrl.u32 %v19771_v6, 16  ;;  %v6519_v33 = vshll.u32 %v19771_v6, 16  ;;  %v12905_v48 = vld [vmem:[#allocation2 + $0x18] sm:$0xf] }
 0x308   : > { %v6671_v40 = vsel %vm25342_vm11, %v6470_v0, %v6670_v7  ;;  %v6496_v18 = vsel %vm25352_vm12, %v6488_v29, %v6495_v34  ;;  %v6682_v59 = vsel %vm25361_vm13, %v6497_v37, %v6681_v2  ;;  %v6128_v41 = vadd.f32 %v25631_v60, %v21764_v44  ;;  %v22834_v6 = vld [vmem:[%s23585_s15 + $0xa8] sm:$0xff]  }
 0x309   : > { %6672 = vst [vmem:[#allocation2 + $0x9c] sm:$0xf] %v6671_v40  ;;  %6680 = vst [vmem:[#allocation2 + $0xac] sm:$0xf] %v6496_v18  ;;  %v6475_v9 = vrot.slane %v6473_v22, 7  ;;  %v25671_v30 = vrot.slane %v6516_v24, 7  ;;  %v6126_v15 = vadd.f32 %v25631_v60, %v21765_v5  ;;  %21035 = vmatmul.mubr.bf16.gmra.mrb[52].mxu1 %v22828_v10 }
 0x30a   : > { %6683 = vst [vmem:[#allocation2 + $0xb0] sm:$0x1] %v6682_v59  ;;  %v22817_v46 = vld [vmem:[#allocation2 + $0x84] sm:$0xff]   ;;  %v6499_v26 = vshrl.u32 %v19769_v45, 16  ;;  %v6502_v53 = vshll.u32 %v19769_v45, 16  ;;  %v12974_v27 = vrot.slane %v12972_v31, 4  ;;  %21038 = vmatprep.mubr.bf16.mxu1 %v22833_v23 }
 0x30b   : > { %v12975_v49 = vshll.u32 %v25653_v1, 16  ;;  %v6478_v29 = vor.u32 %v6476_v35, %v6475_v9  ;;  %v6480_v8 = vrot.slane %v6475_v9, 4  ;;  %v6521_v32 = vor.u32 %v6519_v33, %v25671_v30  ;;  %21323 = vmatmul.mubr.bf16.gmra.mrb[52].mxu0 %v22817_v46  ;;  %v12904_v60 = vld [vmem:[#allocation2 + $0x14] sm:$0x1]  ;;  %v12906_v34 = vld [vmem:[#allocation2 + $0x1c] sm:$0xf] }
 0x30c   : > { %v6522_v11 = vrot.slane %v25671_v30, 4  ;;  %v25679_v63 = vrot.slane %v6499_v26, 7  ;;  %v6160_v20 = vmax.f32 %v6128_v41, 0.0  ;;  %v6158_v58 = vmax.f32 %v6126_v15, 0.0  ;;  %21326 = vmatprep.mubr.bf16.mxu0 %v22819_v21  ;;  %v22838_v33 = vld [vmem:[%s23585_s15 + $0xb4] sm:$0xff]  }
 0x30d   : > { %v12977_v56 = vrot.slane %v12975_v49, 5  ;;  %v6479_v4 = vsel %vm25352_vm12, %v6471_v50, %v6478_v29  ;;  %v6675_v1 = vsel %vm25361_vm13, %v6480_v8, %v6674_v55  ;;  %v6692_v42 = vsel %vm25342_vm11, %v6521_v32, %v6691_v3  ;;  %v6695_v41 = vld [vmem:[#allocation2 + $0xc8] sm:$0x1]  ;;  %v12907_v49 = vld [vmem:[#allocation2 + $0x20] sm:$0x1] }
 0x30e   : > { %v12981_v52 = vshll.u32 %v12903_v12, 16  ;;  %6673 = vst [vmem:[#allocation2 + $0xa0] sm:$0xf] %v6479_v4  ;;  %6676 = vst [vmem:[#allocation2 + $0xa4] sm:$0x1] %v6675_v1  ;;  %v6504_v44 = vor.u32 %v6502_v53, %v25679_v63  ;;  %v6505_v5 = vrot.slane %v25679_v63, 4  ;;  %v19772_v7 = vpack.c.bf16 %v6160_v20, %v6160_v20 }
 0x30f   : > { %6693 = vst [vmem:[#allocation2 + $0xc0] sm:$0xf] %v6692_v42  ;;  %v19770_v2 = vpack.c.bf16 %v6158_v58, %v6158_v58  ;;  %v12978_v51 = vor.u32 %v12977_v56, %v12974_v27  ;;  %v12985_v0 = vshrl.u32 %v12903_v12, 16  ;;  %v12991_v50 = vshll.u32 %v12904_v60, 16  ;;  %v6688_v12 = vld [vmem:[#allocation2 + $0xbc] sm:$0x1] }
 0x310   : > { %v12983_v31 = vrot.slane %v12981_v52, 5  ;;  %v6685_v37 = vsel %vm25342_vm11, %v6504_v44, %v6684_v62  ;;  %v6524_v22 = vshrl.u32 %v19772_v7, 16  ;;  %v6527_v35 = vshll.u32 %v19772_v7, 16  ;;  %v12908_v29 = vld [vmem:[#allocation2 + $0x24] sm:$0xf]  ;;  %v22825_v42 = vld [vmem:[#allocation2 + $0xa8] sm:$0xff]  }
 0x311   : > { %v6507_v24 = vshrl.u32 %v19770_v2, 16  ;;  %6686 = vst [vmem:[#allocation2 + $0xb4] sm:$0xf] %v6685_v37  ;;  %v6510_v40 = vshll.u32 %v19770_v2, 16  ;;  %v12979_v18 = vrot.slane %v12978_v51, 4  ;;  %v12987_v59 = vrot.slane %v12985_v0, 4  ;;  %21039 = vmatmul.mubr.bf16.gmra.mrb[56].mxu1 %v22834_v6 }
 0x312   : > { %v12993_v55 = vrot.slane %v12991_v50, 5  ;;  %v6526_v3 = vrot.slane %v6524_v22, 7  ;;  %v12996_v10 = vshrl.u32 %v12905_v48, 16  ;;  %v12999_v9 = vshll.u32 %v12905_v48, 16  ;;  %21042 = vmatprep.mubr.bf16.mxu1 %v22838_v33  ;;  %v12909_v62 = vld [vmem:[#allocation2 + $0x28] sm:$0xf] }
 0x313   : > { %v6509_v45 = vrot.slane %v6507_v24, 7  ;;  %v12984_v15 = vsel %vm23612_vm2, %v12979_v18, %v12983_v31  ;;  %v12988_v39 = vor.u32 %v12987_v59, %v12983_v31  ;;  %v13005_v46 = vshll.u32 %v12906_v34, 16  ;;  %v12910_v52 = vld [vmem:[#allocation2 + $0x2c] sm:$0x1]  ;;  %v12911_v50 = vld [vmem:[#allocation2 + $0x30] sm:$0xf] }
 0x314   : > { %v13009_v23 = vshrl.u32 %v12906_v34, 16  ;;  %v6529_v26 = vor.u32 %v6527_v35, %v6526_v3  ;;  %v6531_v53 = vrot.slane %v6526_v3, 4  ;;  %v12998_v63 = vrot.slane %v12996_v10, 4  ;;  %v12912_v24 = vld [vmem:[#allocation2 + $0x34] sm:$0xf] }
 0x315   : > { %v6512_v21 = vor.u32 %v6510_v40, %v6509_v45  ;;  %v6514_v27 = vrot.slane %v6509_v45, 4  ;;  %v22823_v8 = vld [vmem:[#allocation2 + $0x9c] sm:$0xff]   ;;  %v12989_v32 = vrot.slane %v12988_v39, 4  ;;  %v13001_v20 = vrot.slane %v12999_v9, 5  ;;  %v12913_v45 = vld [vmem:[#allocation2 + $0x38] sm:$0x1] }
 0x316   : > { %v9102_v58 = vsel %vm23612_vm2, %v25329_v25, %v25313_v38  ;;  %v6530_v60 = vsel %vm25352_vm12, %v6522_v11, %v6529_v26  ;;  %v6696_v56 = vsel %vm25361_vm13, %v6531_v53, %v6695_v41  ;;  %21327 = vmatmul.mubr.bf16.gmra.mrb[56].mxu0 %v22823_v8  ;;  %v13007_v44 = vrot.slane %v13005_v46, 5  ;;  %v12916_v25 = vld [vmem:[#allocation2 + $0x44] sm:$0x1] }
 0x317   : > { %v6513_v4 = vsel %vm25352_vm12, %v6505_v5, %v6512_v21  ;;  %v6689_v1 = vsel %vm25361_vm13, %v6514_v27, %v6688_v12  ;;  %6694 = vst [vmem:[#allocation2 + $0xc4] sm:$0xf] %v6530_v60  ;;  %6697 = vst [vmem:[#allocation2 + $0xc8] sm:$0x1] %v6696_v56  ;;  %v12994_v30 = vsel %vm23612_vm2, %v12989_v32, %v12993_v55  ;;  %v13011_v7 = vrot.slane %v13009_v23, 4  ;;  %v22839_v5 = vld [vmem:[%s23585_s15 + $0xc0] sm:$0xff]  }
 0x318   : > { %6687 = vst [vmem:[#allocation2 + $0xb8] sm:$0xf] %v6513_v4  ;;  %6690 = vst [vmem:[#allocation2 + $0xbc] sm:$0x1] %v6689_v1  ;;  %v13002_v11 = vor.u32 %v13001_v20, %v12998_v63  ;;  %21330 = vmatprep.mubr.bf16.mxu0 %v22825_v42  ;;  %v25711_v16 = vcombine.low %v12984_v15, %v12994_v30  ;;  %v13015_v28 = vshll.u32 %v12907_v49, 16  ;;  %v13020_v2 = vshrl.u32 %v12908_v29, 16 }
 0x319   : > { %v13023_v48 = vshll.u32 %v12908_v29, 16  ;;  %v13012_v51 = vor.u32 %v13011_v7, %v13007_v44  ;;  %v13029_v31 = vshll.u32 %v12909_v62, 16  ;;  %v13033_v0 = vshrl.u32 %v12909_v62, 16  ;;  %21043 = vmatmul.mubr.bf16.gmra.mrb[60].mxu1 %v22839_v5  ;;  %v19099_v60 = vld [vmem:[%s23585_s15 + $0x20] sm:$0x1] }
 0x31a   : > { %v13003_v6 = vrot.slane %v13002_v11, 4  ;;  %v13017_v34 = vrot.slane %v13015_v28, 5  ;;  %v13022_v37 = vrot.slane %v13020_v2, 4  ;;  %v13039_v35 = vshll.u32 %v12910_v52, 16  ;;  %v12914_v4 = vld [vmem:[#allocation2 + $0x3c] sm:$0xf] }
 0x31b   : > { %v13025_v22 = vrot.slane %v13023_v48, 5  ;;  %v13013_v40 = vrot.slane %v13012_v51, 4  ;;  %v13031_v18 = vrot.slane %v13029_v31, 5  ;;  %v13035_v59 = vrot.slane %v13033_v0, 4 }
 0x31c   : > { %v13008_v33 = vsel %vm23612_vm2, %v13003_v6, %v13007_v44  ;;  %v13041_v3 = vrot.slane %v13039_v35, 5  ;;  %v13044_v10 = vshrl.u32 %v12911_v50, 16  ;;  %v13047_v9 = vshll.u32 %v12911_v50, 16  ;;  %v22987_v44 = vld [vmem:[%s23585_s15 + $0x1c] sm:$0xf] }
 0x31d   : > { %v13026_v55 = vor.u32 %v13025_v22, %v13022_v37  ;;  %v13018_v41 = vsel %vm23612_vm2, %v13013_v40, %v13017_v34  ;;  %v13036_v12 = vor.u32 %v13035_v59, %v13031_v18  ;;  %v13053_v15 = vshll.u32 %v12912_v24, 16  ;;  %v12917_v6 = vld [vmem:[#allocation2 + $0x48] sm:$0xf]  ;;  %v12918_v50 = vld [vmem:[#allocation2 + $0x4c] sm:$0xf]  ;;  %v22841_v34 = vld [vmem:[#allocation10 + $0x88] sm:$0xff]  }
 0x31e   : > { %v13057_v39 = vshrl.u32 %v12912_v24, 16  ;;  %v19497_v23 = vcombine.low %v13008_v33, %v13018_v41  ;;  %v13046_v53 = vrot.slane %v13044_v10, 4  ;;  %v13049_v21 = vrot.slane %v13047_v9, 5  ;;  %v19100_v33 = vld [vmem:[%s23585_s15 + $0x24] sm:$0xf] }
 0x31f   : > { %v22830_v46 = vld [vmem:[#allocation2 + $0xb4] sm:$0xff]   ;;  %v13027_v26 = vrot.slane %v13026_v55, 4  ;;  %v13037_v27 = vrot.slane %v13036_v12, 4  ;;  %v13055_v49 = vrot.slane %v13053_v15, 5  ;;  %v13063_v8 = vshll.u32 %v12913_v45, 16 }
 0x320   : > { %v13059_v29 = vrot.slane %v13057_v39, 4  ;;  %21331 = vmatmul.mubr.bf16.gmra.mrb[60].mxu0 %v22830_v46  ;;  %v13050_v63 = vor.u32 %v13049_v21, %v13046_v53  ;;  %v9112_v20 = vsel %vm23612_vm2, %v25332_v43, %v25320_v57  ;;  %v9120_v56 = vor.u32 %v25334_v17, %v25323_v54  ;;  %v12915_v57 = vld [vmem:[#allocation2 + $0x40] sm:$0xf]  ;;  %v12919_v59 = vld [vmem:[#allocation2 + $0x50] sm:$0x1] }
 0x321   : > { %v13032_v32 = vsel %vm23612_vm2, %v13027_v26, %v13031_v18  ;;  %21350 = vmatprep.mubr.bf16.mxu0 %v25304_v13  ;;  %v13042_v1 = vsel %vm23612_vm2, %v13037_v27, %v13041_v3  ;;  %v13065_v62 = vrot.slane %v13063_v8, 5  ;;  %v19142_v52 = vcombine.low %v9102_v58, %v9112_v20  ;;  %v22843_v21 = vld [vmem:[#allocation10 + $0x90] sm:$0xff]  }
 0x322   : > { %v13060_v42 = vor.u32 %v13059_v29, %v13055_v49  ;;  %v25735_v43 = vcombine.low %v13032_v32, %v13042_v1  ;;  %v13051_v30 = vrot.slane %v13050_v63, 4  ;;  %v9121_v11 = vrot.slane %v9120_v56, 4  ;;  %v19102_v32 = vld [vmem:[%s23585_s15 + $0x2c] sm:$0x1]  ;;  %v19103_v63 = vld [vmem:[%s23585_s15 + $0x30] sm:$0xf] }
 0x323   : > { %v27161_v54 = vshll.u32 %v25316_v47, 16  ;;  %21062 = vmatprep.mubr.bf16.mxu1 %v19142_v52  ;;  %v9127_v7 = vshrl.u32 %v22987_v44, 16  ;;  %v9133_v28 = vshll.u32 %v19099_v60, 16  ;;  %v13068_v5 = vshrl.u32 %v12914_v4, 16  ;;  %v22849_v1 = vld [vmem:[#allocation13 + $0x148] sm:$0xff]  }
 0x324   : > { %v13061_v13 = vrot.slane %v13060_v42, 4  ;;  %v13056_v2 = vsel %vm23612_vm2, %v13051_v30, %v13055_v49  ;;  %v13071_v58 = vshll.u32 %v12914_v4, 16  ;;  %v13077_v48 = vshll.u32 %v12915_v57, 16  ;;  %v19101_v49 = vld [vmem:[%s23585_s15 + $0x28] sm:$0xf] }
 0x325   : > { %v9125_v17 = vrot.slane %v27161_v54, 5  ;;  %v9129_v51 = vrot.slane %v9127_v7, 4  ;;  %v9135_v31 = vrot.slane %v9133_v28, 5  ;;  %v13070_v0 = vrot.slane %v13068_v5, 4  ;;  %v19104_v30 = vld [vmem:[%s23585_s15 + $0x34] sm:$0xf] }
 0x326   : > { %v13066_v47 = vsel %vm23612_vm2, %v13061_v13, %v13065_v62  ;;  %v13073_v22 = vrot.slane %v13071_v58, 5  ;;  %v13079_v35 = vrot.slane %v13077_v48, 5  ;;  %v13081_v24 = vshrl.u32 %v12915_v57, 16  ;;  %v19105_v44 = vld [vmem:[%s23585_s15 + $0x38] sm:$0x1] }
 0x327   : > { %v9126_v38 = vsel %vm23612_vm2, %v9121_v11, %v9125_v17  ;;  %v25746_v37 = vcombine.low %v13056_v2, %v13066_v47  ;;  %v9130_v40 = vor.u32 %v9129_v51, %v9125_v17  ;;  %v13087_v18 = vshll.u32 %v12916_v25, 16  ;;  %v22844_v7 = vld [vmem:[#allocation10 + $0x98] sm:$0xff]   ;;  %v12920_v25 = vld [vmem:[#allocation2 + $0x54] sm:$0xf] }
 0x328   : > { %v13092_v55 = vshrl.u32 %v12917_v6, 16  ;;  %v13095_v3 = vshll.u32 %v12917_v6, 16  ;;  %21351 = vmatmul.mubr.bf16.vlgmr.msra.gmra.mrb[32].mxu0 %v25711_v16  ;;  %v13074_v45 = vor.u32 %v13073_v22, %v13070_v0  ;;  %v13083_v10 = vrot.slane %v13081_v24, 4  ;;  %v22850_v51 = vld [vmem:[#allocation13 + $0x150] sm:$0xff]  }
 0x329   : > { %v13101_v9 = vshll.u32 %v12918_v50, 16  ;;  %v13105_v41 = vshrl.u32 %v12918_v50, 16  ;;  %21354 = vmatprep.mubr.bf16.mxu0 %v19497_v23  ;;  %21383 = vmatpush3.bf16.msra.mxu0 %v25577_v14  ;;  %v9131_v12 = vrot.slane %v9130_v40, 4  ;;  %v13089_v15 = vrot.slane %v13087_v18, 5 }
 0x32a   : > { %v13094_v39 = vrot.slane %v13092_v55, 4  ;;  %v13097_v46 = vrot.slane %v13095_v3, 5  ;;  %21384 = vmatprep.subr.bf16.mxu0 %v22841_v34  ;;  %v13075_v26 = vrot.slane %v13074_v45, 4  ;;  %v13084_v53 = vor.u32 %v13083_v10, %v13079_v35  ;;  %v12922_v55 = vld [vmem:[#allocation2 + $0x5c] sm:$0x1] }
 0x32b   : > { %v13103_v27 = vrot.slane %v13101_v9, 5  ;;  %v13107_v16 = vrot.slane %v13105_v41, 4  ;;  %v9136_v29 = vsel %vm23612_vm2, %v9131_v12, %v9135_v31  ;;  %v13111_v8 = vshll.u32 %v12919_v59, 16  ;;  %v22852_v41 = vld [vmem:[#allocation13 + $0x158] sm:$0xff]  }
 0x32c   : > { %v13098_v23 = vor.u32 %v13097_v46, %v13094_v39  ;;  %v9138_v14 = vshrl.u32 %v19100_v33, 16  ;;  %v19143_v20 = vcombine.low %v9126_v38, %v9136_v29  ;;  %v13080_v60 = vsel %vm23612_vm2, %v13075_v26, %v13079_v35  ;;  %v12923_v26 = vld [vmem:[#allocation2 + $0x60] sm:$0xf] }
 0x32d   : > { %v13085_v56 = vrot.slane %v13084_v53, 4  ;;  %v13108_v4 = vor.u32 %v13107_v16, %v13103_v27  ;;  %21385 = vmatpush3.bf16.msra.mxu0 %v22841_v34  ;;  %v13113_v62 = vrot.slane %v13111_v8, 5  ;;  %v9141_v57 = vshll.u32 %v19100_v33, 16  ;;  %v22845_v33 = vld [vmem:[#allocation10 + $0xa0] sm:$0xff]  }
 0x32e   : > { %v13099_v42 = vrot.slane %v13098_v23, 4  ;;  %v9140_v52 = vrot.slane %v9138_v14, 4  ;;  %21063 = vmatmul.mubr.bf16.vlgmr.msra.gmra.mrb[32].mxu1 %v19143_v20  ;;  %21386 = vmatprep.subr.bf16.mxu0 %v22843_v21  ;;  %v9147_v17 = vshll.u32 %v19101_v49, 16  ;;  %v9151_v13 = vshrl.u32 %v19101_v49, 16  ;;  %v12924_v49 = vld [vmem:[#allocation2 + $0x64] sm:$0xf] }
 0x32f   : > { %v13090_v11 = vsel %vm23612_vm2, %v13085_v56, %v13089_v15  ;;  %v13109_v54 = vrot.slane %v13108_v4, 4  ;;  %v9143_v2 = vrot.slane %v9141_v57, 5  ;;  %v9157_v38 = vshll.u32 %v19102_v32, 16  ;;  %21095 = vmatpush3.bf16.msra.mxu1 %v25646_v19  ;;  %v19106_v14 = vld [vmem:[%s23585_s15 + $0x3c] sm:$0xf] }
 0x330   : > { %v19500_v28 = vcombine.low %v13080_v60, %v13090_v11  ;;  %v13104_v5 = vsel %vm23612_vm2, %v13099_v42, %v13103_v27  ;;  %21355 = vmatmul.mubr.bf16.gmra.mrb[36].mxu0 %v25735_v43  ;;  %v9149_v48 = vrot.slane %v9147_v17, 5  ;;  %v9153_v6 = vrot.slane %v9151_v13, 4  ;;  %21096 = vmatprep.subr.bf16.mxu1 %v22849_v1  ;;  %v12921_v43 = vld [vmem:[#allocation2 + $0x58] sm:$0xf]  ;;  %v12925_v57 = vld [vmem:[#allocation2 + $0x68] sm:$0x1] }
 0x331   : > { %v13114_v58 = vsel %vm23612_vm2, %v13109_v54, %v13113_v62  ;;  %v9162_v47 = vshrl.u32 %v19103_v63, 16  ;;  %21358 = vmatprep.mubr.bf16.mxu0 %v25746_v37  ;;  %21387 = vmatpush3.bf16.msra.mxu0 %v22843_v21  ;;  %v9144_v0 = vor.u32 %v9143_v2, %v9140_v52  ;;  %v9159_v50 = vrot.slane %v9157_v38, 5  ;;  %v19107_v2 = vld [vmem:[%s23585_s15 + $0x40] sm:$0xf] }
 0x332   : > { %v19501_v31 = vcombine.low %v13104_v5, %v13114_v58  ;;  %v9165_v34 = vshll.u32 %v19103_v63, 16  ;;  %v9154_v22 = vor.u32 %v9153_v6, %v9149_v48  ;;  %v9171_v19 = vshll.u32 %v19104_v30, 16  ;;  %21388 = vmatprep.subr.bf16.mxu0 %v22844_v7  ;;  %v22846_v63 = vld [vmem:[#allocation10 + $0xa8] sm:$0xff]   ;;  %v22848_v38 = vld [vmem:[#allocation10 + $0xb0] sm:$0xff]  }
 0x333   : > { %v9164_v35 = vrot.slane %v9162_v47, 4  ;;  %v9175_v24 = vshrl.u32 %v19104_v30, 16  ;;  %v9145_v40 = vrot.slane %v9144_v0, 4  ;;  %v9181_v59 = vshll.u32 %v19105_v44, 16  ;;  %21097 = vmatpush3.bf16.msra.mxu1 %v22849_v1  ;;  %v22853_v1 = vld [vmem:[#allocation13 + $0x160] sm:$0xff]   ;;  %v22855_v47 = vld [vmem:[#allocation13 + $0x168] sm:$0xff]  }
 0x334   : > { %v9167_v18 = vrot.slane %v9165_v34, 5  ;;  %v13116_v3 = vshrl.u32 %v12920_v25, 16  ;;  %v9155_v45 = vrot.slane %v9154_v22, 4  ;;  %v9173_v37 = vrot.slane %v9171_v19, 5  ;;  %21098 = vmatprep.subr.bf16.mxu1 %v22850_v51 }
 0x335   : > { %v9177_v10 = vrot.slane %v9175_v24, 4  ;;  %v13119_v9 = vshll.u32 %v12920_v25, 16  ;;  %v9150_v12 = vsel %vm23612_vm2, %v9145_v40, %v9149_v48  ;;  %v9183_v39 = vrot.slane %v9181_v59, 5  ;;  %21389 = vmatpush3.bf16.msra.mxu0 %v22844_v7 }
 0x336   : > { %v9168_v15 = vor.u32 %v9167_v18, %v9164_v35  ;;  %v13118_v46 = vrot.slane %v13116_v3, 4  ;;  %v9160_v53 = vsel %vm23612_vm2, %v9155_v45, %v9159_v50  ;;  %v13125_v16 = vshll.u32 %v12921_v43, 16  ;;  %21390 = vmatprep.subr.bf16.mxu0 %v22845_v33  ;;  %v19108_v50 = vld [vmem:[%s23585_s15 + $0x44] sm:$0x1] }
 0x337   : > { %v9178_v21 = vor.u32 %v9177_v10, %v9173_v37  ;;  %v13121_v27 = vrot.slane %v13119_v9, 5  ;;  %v19144_v29 = vcombine.low %v9150_v12, %v9160_v53  ;;  %v13129_v8 = vshrl.u32 %v12921_v43, 16  ;;  %21099 = vmatpush3.bf16.msra.mxu1 %v22850_v51  ;;  %v19109_v43 = vld [vmem:[%s23585_s15 + $0x48] sm:$0xf]  ;;  %v19111_v9 = vld [vmem:[%s23585_s15 + $0x50] sm:$0x1] }
 0x338   : > { %v9169_v23 = vrot.slane %v9168_v15, 4  ;;  %v13135_v32 = vshll.u32 %v12922_v55, 16  ;;  %21359 = vmatmul.mubr.bf16.gmra.mrb[40].mxu0 %v19500_v28  ;;  %v13127_v56 = vrot.slane %v13125_v16, 5  ;;  %v13140_v4 = vshrl.u32 %v12923_v26, 16  ;;  %21100 = vmatprep.subr.bf16.mxu1 %v22852_v41  ;;  %v19110_v55 = vld [vmem:[%s23585_s15 + $0x4c] sm:$0xf] }
 0x339   : > { %v9179_v20 = vrot.slane %v9178_v21, 4  ;;  %v13122_v60 = vor.u32 %v13121_v27, %v13118_v46  ;;  %21362 = vmatprep.mubr.bf16.mxu0 %v19501_v31  ;;  %21066 = vmatprep.mubr.bf16.mxu1 %v19144_v29  ;;  %v13131_v62 = vrot.slane %v13129_v8, 4  ;;  %v13143_v30 = vshll.u32 %v12923_v26, 16  ;;  %v22856_v12 = vld [vmem:[#allocation13 + $0x170] sm:$0xff]   ;;  %v12926_v53 = vld [vmem:[#allocation2 + $0x6c] sm:$0xf] }
 0x33a   : > { %v9174_v42 = vsel %vm23612_vm2, %v9169_v23, %v9173_v37  ;;  %v13137_v52 = vrot.slane %v13135_v32, 5  ;;  %v13142_v17 = vrot.slane %v13140_v4, 4  ;;  %v13149_v13 = vshll.u32 %v12924_v49, 16  ;;  %21391 = vmatpush3.bf16.msra.mxu0 %v22845_v33  ;;  %v12927_v21 = vld [vmem:[#allocation2 + $0x70] sm:$0xf] }
 0x33b   : > { %v9184_v11 = vsel %vm23612_vm2, %v9179_v20, %v9183_v39  ;;  %v13123_v54 = vrot.slane %v13122_v60, 4  ;;  %v13132_v7 = vor.u32 %v13131_v62, %v13127_v56  ;;  %v13145_v28 = vrot.slane %v13143_v30, 5  ;;  %21392 = vmatprep.subr.bf16.mxu0 %v22846_v63  ;;  %21101 = vmatpush3.bf16.msra.mxu1 %v22852_v41  ;;  %v22851_v41 = vld [vmem:[#allocation10 + $0xb8] sm:$0xff]   ;;  %v25791_v4 = vld [vmem:[#allocation10 + $0xc0] sm:$0xff]  }
 0x33c   : > { %v19145_v44 = vcombine.low %v9174_v42, %v9184_v11  ;;  %v13153_v5 = vshrl.u32 %v12924_v49, 16  ;;  %v13151_v58 = vrot.slane %v13149_v13, 5  ;;  %v13159_v48 = vshll.u32 %v12925_v57, 16  ;;  %21102 = vmatprep.subr.bf16.mxu1 %v22853_v1 }
 0x33d   : > { %v13128_v25 = vsel %vm23612_vm2, %v13123_v54, %v13127_v56  ;;  %v9186_v6 = vshrl.u32 %v19106_v14, 16  ;;  %v13133_v51 = vrot.slane %v13132_v7, 4  ;;  %v13146_v31 = vor.u32 %v13145_v28, %v13142_v17  ;;  %v12928_v54 = vld [vmem:[#allocation2 + $0x74] sm:$0x1] }
 0x33e   : > { %21067 = vmatmul.mubr.bf16.gmra.mrb[36].mxu1 %v19145_v44  ;;  %v13155_v0 = vrot.slane %v13153_v5, 4  ;;  %v9189_v34 = vshll.u32 %v19106_v14, 16  ;;  %v13161_v22 = vrot.slane %v13159_v48, 5  ;;  %v9195_v19 = vshll.u32 %v19107_v2, 16  ;;  %21393 = vmatpush3.bf16.msra.mxu0 %v22846_v63  ;;  %v12929_v44 = vld [vmem:[#allocation2 + $0x78] sm:$0xf] }
 0x33f   : > { %v9188_v35 = vrot.slane %v9186_v6, 4  ;;  %v9199_v24 = vshrl.u32 %v19107_v2, 16  ;;  %v13138_v33 = vsel %vm23612_vm2, %v13133_v51, %v13137_v52  ;;  %v13147_v40 = vrot.slane %v13146_v31, 4  ;;  %21394 = vmatprep.subr.bf16.mxu0 %v22848_v38  ;;  %21103 = vmatpush3.bf16.msra.mxu1 %v22853_v1  ;;  %v22858_v1 = vld [vmem:[#allocation13 + $0x178] sm:$0xff]  }
 0x340   : > { %v13156_v18 = vor.u32 %v13155_v0, %v13151_v58  ;;  %v9191_v59 = vrot.slane %v9189_v34, 5  ;;  %v19502_v3 = vcombine.low %v13128_v25, %v13138_v33  ;;  %v9197_v45 = vrot.slane %v9195_v19, 5  ;;  %21104 = vmatprep.subr.bf16.mxu1 %v22855_v47  ;;  %v12931_v19 = vld [vmem:[#allocation2 + $0x80] sm:$0x1] }
 0x341   : > { %v9201_v37 = vrot.slane %v9199_v24, 4  ;;  %v9205_v10 = vshll.u32 %v19108_v50, 16  ;;  %v13152_v15 = vsel %vm23612_vm2, %v13147_v40, %v13151_v58  ;;  %v9210_v26 = vshrl.u32 %v19109_v43, 16 }
 0x342   : > { %v13157_v39 = vrot.slane %v13156_v18, 4  ;;  %v9192_v46 = vor.u32 %v9191_v59, %v9188_v35  ;;  %21363 = vmatmul.mubr.bf16.gmra.mrb[44].mxu0 %v19502_v3  ;;  %v9213_v49 = vshll.u32 %v19109_v43, 16  ;;  %v9219_v29 = vshll.u32 %v19110_v55, 16  ;;  %v19112_v43 = vld [vmem:[%s23585_s15 + $0x54] sm:$0xf] }
 0x343   : > { %v9202_v27 = vor.u32 %v9201_v37, %v9197_v45  ;;  %v9207_v16 = vrot.slane %v9205_v10, 5  ;;  %v9212_v32 = vrot.slane %v9210_v26, 4  ;;  %v9223_v14 = vshrl.u32 %v19110_v55, 16  ;;  %21395 = vmatpush3.bf16.msra.mxu0 %v22848_v38  ;;  %21105 = vmatpush3.bf16.msra.mxu1 %v22855_v47  ;;  %v12930_v38 = vld [vmem:[#allocation2 + $0x7c] sm:$0xf]  ;;  %v22863_v47 = vld [vmem:[#allocation13 + $0x180] sm:$0xff]  }
 0x344   : > { %v13162_v23 = vsel %vm23612_vm2, %v13157_v39, %v13161_v22  ;;  %v9193_v8 = vrot.slane %v9192_v46, 4  ;;  %v9215_v60 = vrot.slane %v9213_v49, 5  ;;  %v9221_v56 = vrot.slane %v9219_v29, 5  ;;  %21396 = vmatprep.subr.bf16.mxu0 %v22851_v41  ;;  %21106 = vmatprep.subr.bf16.mxu1 %v22856_v12  ;;  %v19113_v55 = vld [vmem:[%s23585_s15 + $0x58] sm:$0xf] }
 0x345   : > { %v19503_v63 = vcombine.low %v13152_v15, %v13162_v23  ;;  %v9203_v20 = vrot.slane %v9202_v27, 4  ;;  %v9225_v62 = vrot.slane %v9223_v14, 4  ;;  %v9229_v52 = vshll.u32 %v19111_v9, 16  ;;  %v19114_v26 = vld [vmem:[%s23585_s15 + $0x5c] sm:$0x1] }
 0x346   : > { %v9198_v42 = vsel %vm23612_vm2, %v9193_v8, %v9197_v45  ;;  %v13164_v57 = vshrl.u32 %v12926_v53, 16  ;;  %v9216_v11 = vor.u32 %v9215_v60, %v9212_v32  ;;  %v13167_v17 = vshll.u32 %v12926_v53, 16  ;;  %v19115_v23 = vld [vmem:[%s23585_s15 + $0x60] sm:$0xf] }
 0x347   : > { %21366 = vmatprep.mubr.bf16.mxu0 %v19503_v63  ;;  %v9208_v30 = vsel %vm23612_vm2, %v9203_v20, %v9207_v16  ;;  %v13173_v13 = vshll.u32 %v12927_v21, 16  ;;  %v9226_v28 = vor.u32 %v9225_v62, %v9221_v56  ;;  %v9231_v5 = vrot.slane %v9229_v52, 5  ;;  %21397 = vmatpush3.bf16.msra.mxu0 %v22851_v41  ;;  %v19116_v20 = vld [vmem:[%s23585_s15 + $0x64] sm:$0xf] }
 0x348   : > { %v19146_v7 = vcombine.low %v9198_v42, %v9208_v30  ;;  %v13166_v2 = vrot.slane %v13164_v57, 4  ;;  %21107 = vmatpush3.bf16.msra.mxu1 %v22856_v12  ;;  %v9217_v25 = vrot.slane %v9216_v11, 4  ;;  %v13169_v58 = vrot.slane %v13167_v17, 5  ;;  %21430 = vmatprep.subr.bf16.mxu0 %v25791_v4  ;;  %v19117_v57 = vld [vmem:[%s23585_s15 + $0x68] sm:$0x1] }
 0x349   : > { %v13175_v48 = vrot.slane %v13173_v13, 5  ;;  %v13177_v6 = vshrl.u32 %v12927_v21, 16  ;;  %21108 = vmatprep.subr.bf16.mxu1 %v22858_v1  ;;  %v9227_v51 = vrot.slane %v9226_v28, 4  ;;  %v13183_v31 = vshll.u32 %v12928_v54, 16 }
 0x34a   : > { %21070 = vmatprep.mubr.bf16.mxu1 %v19146_v7  ;;  %v13188_v0 = vshrl.u32 %v12929_v44, 16  ;;  %v13191_v50 = vshll.u32 %v12929_v44, 16  ;;  %v9222_v34 = vsel %vm23612_vm2, %v9217_v25, %v9221_v56  ;;  %v13170_v22 = vor.u32 %v13169_v58, %v13166_v2 }
 0x34b   : > { %v13179_v35 = vrot.slane %v13177_v6, 4  ;;  %v13197_v24 = vshll.u32 %v12930_v38, 16  ;;  %v9232_v33 = vsel %vm23612_vm2, %v9227_v51, %v9231_v5  ;;  %v13185_v40 = vrot.slane %v13183_v31, 5 }
 0x34c   : > { %v13190_v18 = vrot.slane %v13188_v0, 4  ;;  %v13193_v59 = vrot.slane %v13191_v50, 5  ;;  %21109 = vmatpush3.bf16.msra.mxu1 %v22858_v1  ;;  %v19147_v3 = vcombine.low %v9222_v34, %v9232_v33  ;;  %v13171_v45 = vrot.slane %v13170_v22, 4  ;;  %v12935_v34 = vld [vmem:[#allocation2 + $0x90] sm:$0xf] }
 0x34d   : > { %v13180_v37 = vor.u32 %v13179_v35, %v13175_v48  ;;  %v13199_v10 = vrot.slane %v13197_v24, 5  ;;  %21142 = vmatprep.subr.bf16.mxu1 %v22863_v47  ;;  %v13201_v41 = vshrl.u32 %v12930_v38, 16  ;;  %v13207_v12 = vshll.u32 %v12931_v19, 16  ;;  %v12932_v38 = vld [vmem:[#allocation2 + $0x84] sm:$0xf] }
 0x34e   : > { %v13194_v9 = vor.u32 %v13193_v59, %v13190_v18  ;;  %v9234_v15 = vshrl.u32 %v19112_v43, 16  ;;  %21071 = vmatmul.mubr.bf16.gmra.mrb[40].mxu1 %v19147_v3  ;;  %v13176_v39 = vsel %vm23612_vm2, %v13171_v45, %v13175_v48  ;;  %v9237_v53 = vshll.u32 %v19112_v43, 16  ;;  %v12933_v47 = vld [vmem:[#allocation2 + $0x88] sm:$0xf]  ;;  %v12934_v19 = vld [vmem:[#allocation2 + $0x8c] sm:$0x1] }
 0x34f   : > { %v13181_v46 = vrot.slane %v13180_v37, 4  ;;  %v9243_v21 = vshll.u32 %v19113_v55, 16  ;;  %v13203_v16 = vrot.slane %v13201_v41, 4  ;;  %v13209_v49 = vrot.slane %v13207_v12, 5  ;;  %v12936_v33 = vld [vmem:[#allocation2 + $0x94] sm:$0xf] }
 0x350   : > { %v13195_v27 = vrot.slane %v13194_v9, 4  ;;  %v9236_v29 = vrot.slane %v9234_v15, 4  ;;  %v9239_v32 = vrot.slane %v9237_v53, 5  ;;  %v9247_v63 = vshrl.u32 %v19113_v55, 16 }
 0x351   : > { %v13186_v8 = vsel %vm23612_vm2, %v13181_v46, %v13185_v40  ;;  %v9245_v14 = vrot.slane %v9243_v21, 5  ;;  %v13204_v1 = vor.u32 %v13203_v16, %v13199_v10  ;;  %v9253_v42 = vshll.u32 %v19114_v26, 16  ;;  %v12937_v26 = vld [vmem:[#allocation2 + $0x98] sm:$0x1] }
 0x352   : > { %v19504_v60 = vcombine.low %v13176_v39, %v13186_v8  ;;  %v13200_v56 = vsel %vm23612_vm2, %v13195_v27, %v13199_v10  ;;  %v9240_v62 = vor.u32 %v9239_v32, %v9236_v29  ;;  %v9249_v52 = vrot.slane %v9247_v63, 4  ;;  %v19118_v27 = vld [vmem:[%s23585_s15 + $0x6c] sm:$0xf] }
 0x353   : > { %v9258_v30 = vshrl.u32 %v19115_v23, 16  ;;  %v9261_v11 = vshll.u32 %v19115_v23, 16  ;;  %v13205_v54 = vrot.slane %v13204_v1, 4  ;;  %v9255_v17 = vrot.slane %v9253_v42, 5 }
 0x354   : > { %21367 = vmatmul.mubr.bf16.gmra.mrb[48].mxu0 %v19504_v60  ;;  %v9267_v13 = vshll.u32 %v19116_v20, 16  ;;  %v9271_v44 = vshrl.u32 %v19116_v20, 16  ;;  %v9241_v7 = vrot.slane %v9240_v62, 4  ;;  %v9250_v28 = vor.u32 %v9249_v52, %v9245_v14  ;;  %v19119_v20 = vld [vmem:[%s23585_s15 + $0x70] sm:$0xf] }
 0x355   : > { %v9260_v5 = vrot.slane %v9258_v30, 4  ;;  %v9263_v2 = vrot.slane %v9261_v11, 5  ;;  %v13210_v25 = vsel %vm23612_vm2, %v13205_v54, %v13209_v49  ;;  %v9277_v6 = vshll.u32 %v19117_v57, 16  ;;  %v19120_v30 = vld [vmem:[%s23585_s15 + $0x74] sm:$0x1] }
 0x356   : > { %v9269_v58 = vrot.slane %v9267_v13, 5  ;;  %v9273_v48 = vrot.slane %v9271_v44, 4  ;;  %v19505_v51 = vcombine.low %v13200_v56, %v13210_v25  ;;  %v9246_v31 = vsel %vm23612_vm2, %v9241_v7, %v9245_v14  ;;  %v19121_v54 = vld [vmem:[%s23585_s15 + $0x78] sm:$0xf]  ;;  %v19122_v25 = vld [vmem:[%s23585_s15 + $0x7c] sm:$0xf] }
 0x357   : > { %v9251_v0 = vrot.slane %v9250_v28, 4  ;;  %v9264_v50 = vor.u32 %v9263_v2, %v9260_v5  ;;  %v9279_v35 = vrot.slane %v9277_v6, 5  ;;  %v13212_v24 = vshrl.u32 %v12932_v38, 16 }
 0x358   : > { %v9274_v22 = vor.u32 %v9273_v48, %v9269_v58  ;;  %v13215_v43 = vshll.u32 %v12932_v38, 16  ;;  %21370 = vmatprep.mubr.bf16.mxu0 %v19505_v51  ;;  %v13221_v59 = vshll.u32 %v12933_v47, 16  ;;  %v13225_v55 = vshrl.u32 %v12933_v47, 16  ;;  %v19123_v47 = vld [vmem:[%s23585_s15 + $0x80] sm:$0x1] }
 0x359   : > { %v9256_v40 = vsel %vm23612_vm2, %v9251_v0, %v9255_v17  ;;  %v9265_v18 = vrot.slane %v9264_v50, 4  ;;  %v13214_v37 = vrot.slane %v13212_v24, 4  ;;  %v13231_v15 = vshll.u32 %v12934_v19, 16 }
 0x35a   : > { %v19148_v3 = vcombine.low %v9246_v31, %v9256_v40  ;;  %v9275_v45 = vrot.slane %v9274_v22, 4  ;;  %v13217_v10 = vrot.slane %v13215_v43, 5  ;;  %v13223_v41 = vrot.slane %v13221_v59, 5  ;;  %v12938_v22 = vld [vmem:[#allocation2 + $0x9c] sm:$0xf] }
 0x35b   : > { %v9270_v9 = vsel %vm23612_vm2, %v9265_v18, %v9269_v58  ;;  %v13227_v12 = vrot.slane %v13225_v55, 4  ;;  %v13236_v53 = vshrl.u32 %v12935_v34, 16  ;;  %v13239_v21 = vshll.u32 %v12935_v34, 16  ;;  %v12939_v55 = vld [vmem:[#allocation2 + $0xa0] sm:$0xf] }
 0x35c   : > { %21074 = vmatprep.mubr.bf16.mxu1 %v19148_v3  ;;  %v9280_v39 = vsel %vm23612_vm2, %v9275_v45, %v9279_v35  ;;  %v13218_v46 = vor.u32 %v13217_v10, %v13214_v37  ;;  %v13233_v29 = vrot.slane %v13231_v15, 5  ;;  %v13245_v23 = vshll.u32 %v12936_v33, 16 }
 0x35d   : > { %v19149_v16 = vcombine.low %v9270_v9, %v9280_v39  ;;  %v13228_v49 = vor.u32 %v13227_v12, %v13223_v41  ;;  %v13238_v32 = vrot.slane %v13236_v53, 4  ;;  %v13241_v14 = vrot.slane %v13239_v21, 5  ;;  %v12940_v9 = vld [vmem:[#allocation2 + $0xa4] sm:$0x1] }
 0x35e   : > { %v13219_v8 = vrot.slane %v13218_v46, 4  ;;  %v13249_v63 = vshrl.u32 %v12936_v33, 16  ;;  %v13247_v56 = vrot.slane %v13245_v23, 5  ;;  %v13255_v1 = vshll.u32 %v12937_v26, 16  ;;  %v12941_v23 = vld [vmem:[#allocation2 + $0xa8] sm:$0xf] }
 0x35f   : > { %21075 = vmatmul.mubr.bf16.gmra.mrb[44].mxu1 %v19149_v16  ;;  %v13229_v60 = vrot.slane %v13228_v49, 4  ;;  %v9282_v42 = vshrl.u32 %v19118_v27, 16  ;;  %v13242_v52 = vor.u32 %v13241_v14, %v13238_v32  ;;  %v9285_v11 = vshll.u32 %v19118_v27, 16 }
 0x360   : > { %v13224_v62 = vsel %vm23612_vm2, %v13219_v8, %v13223_v41  ;;  %v13251_v57 = vrot.slane %v13249_v63, 4  ;;  %v13257_v13 = vrot.slane %v13255_v1, 5  ;;  %v9291_v7 = vshll.u32 %v19119_v20, 16 }
 0x361   : > { %v13234_v17 = vsel %vm23612_vm2, %v13229_v60, %v13233_v29  ;;  %v9284_v44 = vrot.slane %v9282_v42, 4  ;;  %v13243_v5 = vrot.slane %v13242_v52, 4  ;;  %v9287_v38 = vrot.slane %v9285_v11, 5 }
 0x362   : > { %v19506_v28 = vcombine.low %v13224_v62, %v13234_v17  ;;  %v13252_v2 = vor.u32 %v13251_v57, %v13247_v56  ;;  %v9293_v58 = vrot.slane %v9291_v7, 5  ;;  %v9295_v48 = vshrl.u32 %v19119_v20, 16  ;;  %v12942_v20 = vld [vmem:[#allocation2 + $0xac] sm:$0xf]  ;;  %v19124_v62 = vld [vmem:[%s23585_s15 + $0x84] sm:$0xf] }
 0x363   : > { %v9301_v6 = vshll.u32 %v19120_v30, 16  ;;  %v9306_v51 = vshrl.u32 %v19121_v54, 16  ;;  %v13248_v31 = vsel %vm23612_vm2, %v13243_v5, %v13247_v56  ;;  %v9288_v50 = vor.u32 %v9287_v38, %v9284_v44  ;;  %v12943_v30 = vld [vmem:[#allocation2 + $0xb0] sm:$0x1]  ;;  %v19125_v17 = vld [vmem:[%s23585_s15 + $0x88] sm:$0xf] }
 0x364   : > { %21371 = vmatmul.mubr.bf16.gmra.mrb[52].mxu0 %v19506_v28  ;;  %v13253_v0 = vrot.slane %v13252_v2, 4  ;;  %v9309_v34 = vshll.u32 %v19121_v54, 16  ;;  %v9297_v35 = vrot.slane %v9295_v48, 4  ;;  %v9315_v43 = vshll.u32 %v19122_v25, 16 }
 0x365   : > { %v9303_v19 = vrot.slane %v9301_v6, 5  ;;  %v9308_v24 = vrot.slane %v9306_v51, 4  ;;  %v9289_v40 = vrot.slane %v9288_v50, 4  ;;  %v9319_v59 = vshrl.u32 %v19122_v25, 16 }
 0x366   : > { %v13258_v33 = vsel %vm23612_vm2, %v13253_v0, %v13257_v13  ;;  %v9311_v18 = vrot.slane %v9309_v34, 5  ;;  %v9298_v45 = vor.u32 %v9297_v35, %v9293_v58  ;;  %v9317_v37 = vrot.slane %v9315_v43, 5  ;;  %v19128_v35 = vld [vmem:[%s23585_s15 + $0x94] sm:$0xf] }
 0x367   : > { %v19507_v3 = vcombine.low %v13248_v31, %v13258_v33  ;;  %v9325_v10 = vshll.u32 %v19123_v47, 16  ;;  %v9294_v41 = vsel %vm23612_vm2, %v9289_v40, %v9293_v58  ;;  %v9321_v15 = vrot.slane %v9319_v59, 4  ;;  %v19126_v58 = vld [vmem:[%s23585_s15 + $0x8c] sm:$0x1]  ;;  %v19127_v31 = vld [vmem:[%s23585_s15 + $0x90] sm:$0xf] }
 0x368   : > { %v9312_v12 = vor.u32 %v9311_v18, %v9308_v24  ;;  %v13260_v39 = vshrl.u32 %v12938_v22, 16  ;;  %v9299_v46 = vrot.slane %v9298_v45, 4  ;;  %v13263_v53 = vshll.u32 %v12938_v22, 16 }
 0x369   : > { %21374 = vmatprep.mubr.bf16.mxu0 %v19507_v3  ;;  %v9327_v26 = vrot.slane %v9325_v10, 5  ;;  %v13269_v21 = vshll.u32 %v12939_v55, 16  ;;  %v9322_v16 = vor.u32 %v9321_v15, %v9317_v37  ;;  %v13273_v29 = vshrl.u32 %v12939_v55, 16 }
 0x36a   : > { %v9313_v27 = vrot.slane %v9312_v12, 4  ;;  %v13262_v49 = vrot.slane %v13260_v39, 4  ;;  %v9304_v8 = vsel %vm23612_vm2, %v9299_v46, %v9303_v19  ;;  %v13265_v32 = vrot.slane %v13263_v53, 5  ;;  %v19129_v12 = vld [vmem:[%s23585_s15 + $0x98] sm:$0x1] }
 0x36b   : > { %v13271_v14 = vrot.slane %v13269_v21, 5  ;;  %v13279_v63 = vshll.u32 %v12940_v9, 16  ;;  %v19150_v60 = vcombine.low %v9294_v41, %v9304_v8  ;;  %v9323_v1 = vrot.slane %v9322_v16, 4  ;;  %v12945_v8 = vld [vmem:[#allocation2 + $0xb8] sm:$0xf] }
 0x36c   : > { %v9318_v56 = vsel %vm23612_vm2, %v9313_v27, %v9317_v37  ;;  %v13275_v42 = vrot.slane %v13273_v29, 4  ;;  %v13266_v52 = vor.u32 %v13265_v32, %v13262_v49  ;;  %v13284_v11 = vshrl.u32 %v12941_v23, 16  ;;  %v12944_v27 = vld [vmem:[#allocation2 + $0xb4] sm:$0xf] }
 0x36d   : > { %v13281_v57 = vrot.slane %v13279_v63, 5  ;;  %v13287_v54 = vshll.u32 %v12941_v23, 16  ;;  %21078 = vmatprep.mubr.bf16.mxu1 %v19150_v60  ;;  %v9328_v13 = vsel %vm23612_vm2, %v9323_v1, %v9327_v26  ;;  %v13293_v7 = vshll.u32 %v12942_v20, 16  ;;  %v12946_v1 = vld [vmem:[#allocation2 + $0xbc] sm:$0x1] }
 0x36e   : > { %v13276_v44 = vor.u32 %v13275_v42, %v13271_v14  ;;  %v13297_v28 = vshrl.u32 %v12942_v20, 16  ;;  %v19151_v5 = vcombine.low %v9318_v56, %v9328_v13  ;;  %v13267_v2 = vrot.slane %v13266_v52, 4  ;;  %v19130_v52 = vld [vmem:[%s23585_s15 + $0x9c] sm:$0xf] }
 0x36f   : > { %v13286_v38 = vrot.slane %v13284_v11, 4  ;;  %v13289_v25 = vrot.slane %v13287_v54, 5  ;;  %v13295_v6 = vrot.slane %v13293_v7, 5  ;;  %v13303_v51 = vshll.u32 %v12943_v30, 16 }
 0x370   : > { %v13277_v48 = vrot.slane %v13276_v44, 4  ;;  %v13299_v47 = vrot.slane %v13297_v28, 4  ;;  %21079 = vmatmul.mubr.bf16.gmra.mrb[48].mxu1 %v19151_v5  ;;  %v13272_v0 = vsel %vm23612_vm2, %v13267_v2, %v13271_v14  ;;  %v9330_v34 = vshrl.u32 %v19124_v62, 16  ;;  %v19132_v5 = vld [vmem:[%s23585_s15 + $0xa4] sm:$0x1] }
 0x371   : > { %v13290_v50 = vor.u32 %v13289_v25, %v13286_v38  ;;  %v9333_v22 = vshll.u32 %v19124_v62, 16  ;;  %v13305_v43 = vrot.slane %v13303_v51, 5  ;;  %v9339_v33 = vshll.u32 %v19125_v17, 16 }
 0x372   : > { %v13282_v19 = vsel %vm23612_vm2, %v13277_v48, %v13281_v57  ;;  %v13300_v24 = vor.u32 %v13299_v47, %v13295_v6  ;;  %v9332_v59 = vrot.slane %v9330_v34, 4  ;;  %v9343_v37 = vshrl.u32 %v19125_v17, 16  ;;  %v19131_v17 = vld [vmem:[%s23585_s15 + $0xa0] sm:$0xf] }
 0x373   : > { %v19508_v40 = vcombine.low %v13272_v0, %v13282_v19  ;;  %v13291_v18 = vrot.slane %v13290_v50, 4  ;;  %v9335_v55 = vrot.slane %v9333_v22, 5  ;;  %v9341_v45 = vrot.slane %v9339_v33, 5  ;;  %v13719_v19 = vld [vmem:[#allocation2 + $0x8] sm:$0x1] }
 0x374   : > { %v13301_v3 = vrot.slane %v13300_v24, 4  ;;  %v9349_v10 = vshll.u32 %v19126_v58, 16  ;;  %v9354_v15 = vshrl.u32 %v19127_v31, 16  ;;  %v9357_v39 = vshll.u32 %v19127_v31, 16  ;;  %v13717_v31 = vld [vmem:[#allocation2] sm:$0xe] }
 0x375   : > { %21375 = vmatmul.mubr.bf16.gmra.mrb[56].mxu0 %v19508_v40  ;;  %v13296_v9 = vsel %vm23612_vm2, %v13291_v18, %v13295_v6  ;;  %v9336_v41 = vor.u32 %v9335_v55, %v9332_v59  ;;  %v9345_v26 = vrot.slane %v9343_v37, 4  ;;  %v9363_v21 = vshll.u32 %v19128_v35, 16  ;;  %v19133_v24 = vld [vmem:[%s23585_s15 + $0xa8] sm:$0xf] }
 0x376   : > { %v13306_v46 = vsel %vm23612_vm2, %v13301_v3, %v13305_v43  ;;  %v9351_v53 = vrot.slane %v9349_v10, 5  ;;  %v9356_v29 = vrot.slane %v9354_v15, 4  ;;  %v9359_v23 = vrot.slane %v9357_v39, 5 }
 0x377   : > { %v19509_v16 = vcombine.low %v13296_v9, %v13306_v46  ;;  %v9337_v49 = vrot.slane %v9336_v41, 4  ;;  %v9346_v32 = vor.u32 %v9345_v26, %v9341_v45  ;;  %v9365_v14 = vrot.slane %v9363_v21, 5 }
 0x378   : > { %v9367_v63 = vshrl.u32 %v19128_v35, 16  ;;  %v9373_v20 = vshll.u32 %v19129_v12, 16  ;;  %v9360_v56 = vor.u32 %v9359_v23, %v9356_v29  ;;  %v13308_v42 = vshrl.u32 %v12944_v27, 16  ;;  %v13718_v35 = vld [vmem:[#allocation2 + $0x4] sm:$0xf] }
 0x379   : > { %21378 = vmatprep.mubr.bf16.mxu0 %v19509_v16  ;;  %v9342_v60 = vsel %vm23612_vm2, %v9337_v49, %v9341_v45  ;;  %v13311_v62 = vshll.u32 %v12944_v27, 16  ;;  %v9347_v57 = vrot.slane %v9346_v32, 4  ;;  %v13317_v54 = vshll.u32 %v12945_v8, 16  ;;  %v19134_v12 = vld [vmem:[%s23585_s15 + $0xac] sm:$0xf] }
 0x37a   : > { %v9369_v30 = vrot.slane %v9367_v63, 4  ;;  %v9375_v11 = vrot.slane %v9373_v20, 5  ;;  %v9361_v13 = vrot.slane %v9360_v56, 4  ;;  %v13310_v44 = vrot.slane %v13308_v42, 4  ;;  %v13720_v29 = vld [vmem:[#allocation2 + $0xc] sm:$0xe] }
 0x37b   : > { %v13313_v7 = vrot.slane %v13311_v62, 5  ;;  %v13321_v28 = vshrl.u32 %v12945_v8, 16  ;;  %v9352_v2 = vsel %vm23612_vm2, %v9347_v57, %v9351_v53  ;;  %v13319_v25 = vrot.slane %v13317_v54, 5  ;;  %v19135_v53 = vld [vmem:[%s23585_s15 + $0xb0] sm:$0x1] }
 0x37c   : > { %v9370_v38 = vor.u32 %v9369_v30, %v9365_v14  ;;  %v13327_v58 = vshll.u32 %v12946_v1, 16  ;;  %v19152_v48 = vcombine.low %v9342_v60, %v9352_v2  ;;  %v9366_v6 = vsel %vm23612_vm2, %v9361_v13, %v9365_v14  ;;  %v13721_v63 = vld [vmem:[#allocation2 + $0x10] sm:$0xf]  ;;  %v13722_v20 = vld [vmem:[#allocation2 + $0x14] sm:$0x1] }
 0x37d   : > { %v13314_v47 = vor.u32 %v13313_v7, %v13310_v44  ;;  %v13323_v51 = vrot.slane %v13321_v28, 4  ;;  %v9378_v34 = vshrl.u32 %v19130_v52, 16  ;;  %v9381_v22 = vshll.u32 %v19130_v52, 16  ;;  %v13723_v62 = vld [vmem:[#allocation2 + $0x18] sm:$0xe] }
 0x37e   : > { %v9371_v0 = vrot.slane %v9370_v38, 4  ;;  %v13329_v50 = vrot.slane %v13327_v58, 5  ;;  %21082 = vmatprep.mubr.bf16.mxu1 %v19152_v48  ;;  %v9387_v40 = vshll.u32 %v19131_v17, 16  ;;  %v9391_v18 = vshrl.u32 %v19131_v17, 16  ;;  %v13724_v52 = vld [vmem:[#allocation2 + $0x1c] sm:$0xf] }
 0x37f   : > { %v13315_v43 = vrot.slane %v13314_v47, 4  ;;  %v13324_v33 = vor.u32 %v13323_v51, %v13319_v25  ;;  %v9380_v55 = vrot.slane %v9378_v34, 4  ;;  %v9383_v3 = vrot.slane %v9381_v22, 5  ;;  %v13725_v17 = vld [vmem:[#allocation2 + $0x20] sm:$0x1] }
 0x380   : > { %v9376_v59 = vsel %vm23612_vm2, %v9371_v0, %v9375_v11  ;;  %v9397_v45 = vshll.u32 %v19132_v5, 16  ;;  %v9389_v41 = vrot.slane %v9387_v40, 5  ;;  %v9393_v39 = vrot.slane %v9391_v18, 4  ;;  %v19136_v13 = vld [vmem:[%s23585_s15 + $0xb4] sm:$0xf] }
 0x381   : > { %v19153_v37 = vcombine.low %v9366_v6, %v9376_v59  ;;  %v13320_v10 = vsel %vm23612_vm2, %v13315_v43, %v13319_v25  ;;  %v13325_v9 = vrot.slane %v13324_v33, 4  ;;  %v9384_v15 = vor.u32 %v9383_v3, %v9380_v55  ;;  %v19137_v48 = vld [vmem:[%s23585_s15 + $0xb8] sm:$0xf]  ;;  %v19138_v43 = vld [vmem:[%s23585_s15 + $0xbc] sm:$0x1] }
 0x382   : > { %v9399_v46 = vrot.slane %v9397_v45, 5  ;;  %v19519_v26 = vrot.slane %v13717_v31, 9  ;;  %v13815_v27 = vrot.slane %v13718_v35, 5  ;;  %v13818_v16 = vrot.slane %v13719_v19, 5  ;;  %v19139_v40 = vld [vmem:[%s23585_s15 + $0xc0] sm:$0xf] }
 0x383   : > { %21083 = vmatmul.mubr.bf16.gmra.mrb[52].mxu1 %v19153_v37  ;;  %v13330_v21 = vsel %vm23612_vm2, %v13325_v9, %v13329_v50  ;;  %v9402_v49 = vshrl.u32 %v19133_v24, 16  ;;  %v9385_v8 = vrot.slane %v9384_v15, 4  ;;  %v9394_v32 = vor.u32 %v9393_v39, %v9389_v41  ;;  %v19140_v45 = vld [vmem:[%s23585_s15 + $0xc4] sm:$0xf]  ;;  %v19141_v37 = vld [vmem:[%s23585_s15 + $0xc8] sm:$0x1] }
 0x384   : > { %v19510_v23 = vcombine.low %v13320_v10, %v13330_v21  ;;  %v9405_v14 = vshll.u32 %v19133_v24, 16  ;;  %v13816_v60 = vsel %vm23669_vm5, %v19519_v26, %v13815_v27  ;;  %v13817_v56 = vrot.slane %v13815_v27, 4 }
 0x385   : > { %v9404_v1 = vrot.slane %v9402_v49, 4  ;;  %v9411_v42 = vshll.u32 %v19134_v12, 16  ;;  %v9390_v57 = vsel %vm23612_vm2, %v9385_v8, %v9389_v41  ;;  %v9395_v30 = vrot.slane %v9394_v32, 4 }
 0x386   : > { %21379 = vmatmul.mubr.bf16.gmra.mrb[60].mxu0 %v19510_v23  ;;  %v9407_v11 = vrot.slane %v9405_v14, 5  ;;  %v9415_v54 = vshrl.u32 %v19134_v12, 16  ;;  %v13819_v44 = vsel %vm23669_vm5, %v13817_v56, %v13818_v16  ;;  %v9421_v28 = vshll.u32 %v19135_v53, 16  ;;  %v22857_v53 = vld [vmem:[#allocation10 + $0xc8] sm:$0xff]   ;;  %v13727_v23 = vld [vmem:[#allocation2 + $0x28] sm:$0xf] }
 0x387   : > { %v9413_v7 = vrot.slane %v9411_v42, 5  ;;  %v19520_v5 = vrot.slane %v13720_v29, 9  ;;  %v9400_v2 = vsel %vm23612_vm2, %v9395_v30, %v9399_v46  ;;  %v19535_v38 = vcombine.low %v13816_v60, %v13819_v44  ;;  %v13726_v29 = vld [vmem:[#allocation2 + $0x24] sm:$0xe]  ;;  %v13729_v60 = vld [vmem:[#allocation2 + $0x30] sm:$0xe] }
 0x388   : > { %v9408_v25 = vor.u32 %v9407_v11, %v9404_v1  ;;  %v9417_v58 = vrot.slane %v9415_v54, 4  ;;  %v19154_v6 = vcombine.low %v9390_v57, %v9400_v2  ;;  %v9423_v47 = vrot.slane %v9421_v28, 5  ;;  %v13730_v54 = vld [vmem:[#allocation2 + $0x34] sm:$0xf]  ;;  %v19166_v2 = vld [vmem:[%s23585_s15 + $0xc] sm:$0xe] }
 0x389   : > { %v13822_v51 = vrot.slane %v13721_v63, 5  ;;  %v13825_v31 = vrot.slane %v13722_v20, 5  ;;  %21398 = vmatprep.mubr.bf16.mxu0 %v19535_v38  ;;  %v19521_v34 = vrot.slane %v13723_v62, 9  ;;  %v13829_v22 = vrot.slane %v13724_v52, 5  ;;  %v13728_v20 = vld [vmem:[#allocation2 + $0x2c] sm:$0x1] }
 0x38a   : > { %v9409_v0 = vrot.slane %v9408_v25, 4  ;;  %v9418_v50 = vor.u32 %v9417_v58, %v9413_v7  ;;  %21086 = vmatprep.mubr.bf16.mxu1 %v19154_v6  ;;  %v13832_v24 = vrot.slane %v13725_v17, 5  ;;  %v9426_v33 = vshrl.u32 %v19136_v13, 16  ;;  %v13731_v17 = vld [vmem:[#allocation2 + $0x38] sm:$0x1] }
 0x38b   : > { %v13823_v35 = vsel %vm23669_vm5, %v19520_v5, %v13822_v51  ;;  %v13824_v19 = vrot.slane %v13822_v51, 4  ;;  %v13830_v55 = vsel %vm23669_vm5, %v19521_v34, %v13829_v22  ;;  %v13831_v3 = vrot.slane %v13829_v22, 4  ;;  %v19167_v38 = vld [vmem:[%s23585_s15 + $0x10] sm:$0xf] }
 0x38c   : > { %v9414_v18 = vsel %vm23612_vm2, %v9409_v0, %v9413_v7  ;;  %v9419_v59 = vrot.slane %v9418_v50, 4  ;;  %v9428_v9 = vrot.slane %v9426_v33, 4  ;;  %v9429_v41 = vshll.u32 %v19136_v13, 16  ;;  %v22859_v13 = vld [vmem:[#allocation10 + $0xd0] sm:$0xff]   ;;  %v19168_v0 = vld [vmem:[%s23585_s15 + $0x14] sm:$0x1] }
 0x38d   : > { %v13826_v10 = vsel %vm23669_vm5, %v13824_v19, %v13825_v31  ;;  %v9435_v12 = vshll.u32 %v19137_v48, 16  ;;  %v13833_v46 = vsel %vm23669_vm5, %v13831_v3, %v13832_v24  ;;  %v9439_v26 = vshrl.u32 %v19137_v48, 16  ;;  %v19169_v19 = vld [vmem:[%s23585_s15 + $0x18] sm:$0xe]  ;;  %v19170_v24 = vld [vmem:[%s23585_s15 + $0x1c] sm:$0xf] }
 0x38e   : > { %v9424_v15 = vsel %vm23612_vm2, %v9419_v59, %v9423_v47  ;;  %v19536_v39 = vcombine.low %v13823_v35, %v13826_v10  ;;  %v19537_v27 = vcombine.low %v13830_v55, %v13833_v46  ;;  %v9431_v16 = vrot.slane %v9429_v41, 5  ;;  %v13732_v55 = vld [vmem:[#allocation2 + $0x3c] sm:$0xe]  ;;  %v13733_v3 = vld [vmem:[#allocation2 + $0x40] sm:$0xf] }
 0x38f   : > { %v19155_v21 = vcombine.low %v9414_v18, %v9424_v15  ;;  %v9437_v49 = vrot.slane %v9435_v12, 5  ;;  %v9441_v8 = vrot.slane %v9439_v26, 4  ;;  %v9445_v32 = vshll.u32 %v19138_v43, 16  ;;  %v19171_v43 = vld [vmem:[%s23585_s15 + $0x20] sm:$0x1] }
 0x390   : > { %21399 = vmatmul.mubr.bf16.vlgmr.msra.gmra.mrb[32].mxu0 %v19536_v39  ;;  %v9450_v14 = vshrl.u32 %v19139_v40, 16  ;;  %v9453_v63 = vshll.u32 %v19139_v40, 16  ;;  %v9432_v56 = vor.u32 %v9431_v16, %v9428_v9  ;;  %v9459_v1 = vshll.u32 %v19140_v45, 16  ;;  %v13734_v12 = vld [vmem:[#allocation2 + $0x44] sm:$0x1] }
 0x391   : > { %21087 = vmatmul.mubr.bf16.gmra.mrb[56].mxu1 %v19155_v21  ;;  %21402 = vmatprep.mubr.bf16.mxu0 %v19537_v27  ;;  %v9463_v42 = vshrl.u32 %v19140_v45, 16  ;;  %v9469_v62 = vshll.u32 %v19141_v37, 16  ;;  %v9442_v52 = vor.u32 %v9441_v8, %v9437_v49  ;;  %v9447_v57 = vrot.slane %v9445_v32, 5  ;;  %v22860_v45 = vld [vmem:[#allocation10 + $0xd8] sm:$0xff]   ;;  %v13736_v21 = vld [vmem:[#allocation2 + $0x4c] sm:$0xf] }
 0x392   : > { %21431 = vmatpush3.bf16.msra.mxu0 %v25791_v4  ;;  %v9452_v30 = vrot.slane %v9450_v14, 4  ;;  %v9455_v11 = vrot.slane %v9453_v63, 5  ;;  %v9433_v44 = vrot.slane %v9432_v56, 4  ;;  %v9461_v7 = vrot.slane %v9459_v1, 5  ;;  %v19172_v8 = vld [vmem:[%s23585_s15 + $0x24] sm:$0xe] }
 0x393   : > { %v9465_v28 = vrot.slane %v9463_v42, 4  ;;  %v9471_v5 = vrot.slane %v9469_v62, 5  ;;  %21432 = vmatprep.subr.bf16.mxu0 %v22857_v53  ;;  %v9443_v25 = vrot.slane %v9442_v52, 4  ;;  %v19522_v58 = vrot.slane %v13726_v29, 9  ;;  %v19173_v32 = vld [vmem:[%s23585_s15 + $0x28] sm:$0xf] }
 0x394   : > { %v9456_v4 = vor.u32 %v9455_v11, %v9452_v30  ;;  %v13836_v48 = vrot.slane %v13727_v23, 5  ;;  %v9438_v6 = vsel %vm23612_vm2, %v9433_v44, %v9437_v49  ;;  %v13839_v51 = vrot.slane %v13728_v20, 5  ;;  %v13737_v23 = vld [vmem:[#allocation2 + $0x50] sm:$0x1]  ;;  %v19176_v44 = vld [vmem:[%s23585_s15 + $0x34] sm:$0xf] }
 0x395   : > { %v9466_v47 = vor.u32 %v9465_v28, %v9461_v7  ;;  %v19523_v31 = vrot.slane %v13729_v60, 9  ;;  %v9448_v50 = vsel %vm23612_vm2, %v9443_v25, %v9447_v57  ;;  %v13843_v18 = vrot.slane %v13730_v54, 5  ;;  %v22861_v56 = vld [vmem:[#allocation10 + $0xe0] sm:$0xff]   ;;  %v19174_v57 = vld [vmem:[%s23585_s15 + $0x2c] sm:$0x1] }
 0x396   : > { %v9457_v34 = vrot.slane %v9456_v4, 4  ;;  %v13837_v22 = vsel %vm23669_vm5, %v19522_v58, %v13836_v48  ;;  %v13838_v35 = vrot.slane %v13836_v48, 4  ;;  %21433 = vmatpush3.bf16.msra.mxu0 %v22857_v53  ;;  %v19156_v33 = vcombine.low %v9438_v6, %v9448_v50  ;;  %v13735_v53 = vld [vmem:[#allocation2 + $0x48] sm:$0xe]  ;;  %v13738_v25 = vld [vmem:[#allocation2 + $0x54] sm:$0xe] }
 0x397   : > { %v9467_v40 = vrot.slane %v9466_v47, 4  ;;  %v13846_v59 = vrot.slane %v13731_v17, 5  ;;  %21434 = vmatprep.subr.bf16.mxu0 %v22859_v13  ;;  %v19214_v9 = vrot.slane %v19166_v2, 9  ;;  %v9957_v41 = vrot.slane %v19167_v38, 5  ;;  %v13739_v4 = vld [vmem:[#allocation2 + $0x58] sm:$0xf] }
 0x398   : > { %v9462_v37 = vsel %vm23612_vm2, %v9457_v34, %v9461_v7  ;;  %v13840_v10 = vsel %vm23669_vm5, %v13838_v35, %v13839_v51  ;;  %21090 = vmatprep.mubr.bf16.mxu1 %v19156_v33  ;;  %v13844_v46 = vsel %vm23669_vm5, %v19523_v31, %v13843_v18  ;;  %v13845_v26 = vrot.slane %v13843_v18, 4  ;;  %v25939_v7 = vld [vmem:[%s23585_s15 + $0x38] sm:$0x1]  ;;  %v13740_v51 = vld [vmem:[#allocation2 + $0x5c] sm:$0x1]  ;;  %v22862_v31 = vld [vmem:[#allocation10 + $0xe8] sm:$0xff]  }
 0x399   : > { %v9472_v15 = vsel %vm23612_vm2, %v9467_v40, %v9471_v5  ;;  %v19538_v39 = vcombine.low %v13837_v22, %v13840_v10  ;;  %v9958_v16 = vsel %vm23669_vm5, %v19214_v9, %v9957_v41  ;;  %v9959_v49 = vrot.slane %v9957_v41, 4  ;;  %v13741_v35 = vld [vmem:[#allocation2 + $0x60] sm:$0xe]  ;;  %v13743_v18 = vld [vmem:[#allocation2 + $0x68] sm:$0x1]  ;;  %v22865_v41 = vld [vmem:[#allocation13 + $0x188] sm:$0xff]  }
 0x39a   : > { %v19157_v27 = vcombine.low %v9462_v37, %v9472_v15  ;;  %v9960_v29 = vrot.slane %v19168_v0, 5  ;;  %21435 = vmatpush3.bf16.msra.mxu0 %v22859_v13  ;;  %v13847_v14 = vsel %vm23669_vm5, %v13845_v26, %v13846_v59  ;;  %v19215_v63 = vrot.slane %v19169_v19, 9  ;;  %v19175_v13 = vld [vmem:[%s23585_s15 + $0x30] sm:$0xe]  ;;  %v13742_v19 = vld [vmem:[#allocation2 + $0x64] sm:$0xf] }
 0x39b   : > { %21403 = vmatmul.mubr.bf16.gmra.mrb[36].mxu0 %v19538_v39  ;;  %v9964_v20 = vrot.slane %v19170_v24, 5  ;;  %v9967_v60 = vrot.slane %v19171_v43, 5  ;;  %21436 = vmatprep.subr.bf16.mxu0 %v22860_v45  ;;  %v19539_v1 = vcombine.low %v13844_v46, %v13847_v14  ;;  %v19524_v62 = vrot.slane %v13732_v55, 9  ;;  %v19178_v59 = vld [vmem:[%s23585_s15 + $0x3c] sm:$0xe] }
 0x39c   : > { %21091 = vmatmul.mubr.bf16.gmra.mrb[60].mxu1 %v19157_v27  ;;  %v9961_v42 = vsel %vm23669_vm5, %v9959_v49, %v9960_v29  ;;  %v13850_v52 = vrot.slane %v13733_v3, 5  ;;  %v13853_v17 = vrot.slane %v13734_v12, 5  ;;  %v19525_v2 = vrot.slane %v13735_v53, 9  ;;  %v19179_v55 = vld [vmem:[%s23585_s15 + $0x40] sm:$0xf] }
 0x39d   : > { %v19230_v30 = vcombine.low %v9958_v16, %v9961_v42  ;;  %v9965_v11 = vsel %vm23669_vm5, %v19215_v63, %v9964_v20  ;;  %v9966_v54 = vrot.slane %v9964_v20, 4  ;;  %21406 = vmatprep.mubr.bf16.mxu0 %v19539_v1  ;;  %v13857_v38 = vrot.slane %v13736_v21, 5  ;;  %v25953_v3 = vld [vmem:[#allocation10 + $0xf0] sm:$0xff]   ;;  %v13744_v20 = vld [vmem:[#allocation2 + $0x6c] sm:$0xe] }
 0x39e   : > { %v13851_v28 = vsel %vm23669_vm5, %v19524_v62, %v13850_v52  ;;  %v13852_v5 = vrot.slane %v13850_v52, 4  ;;  %21437 = vmatpush3.bf16.msra.mxu0 %v22860_v45  ;;  %v13860_v48 = vrot.slane %v13737_v23, 5  ;;  %v19216_v6 = vrot.slane %v19172_v8, 9  ;;  %v19180_v26 = vld [vmem:[%s23585_s15 + $0x44] sm:$0x1] }
 0x39f   : > { %21110 = vmatprep.mubr.bf16.mxu1 %v19230_v30  ;;  %v9968_v58 = vsel %vm23669_vm5, %v9966_v54, %v9967_v60  ;;  %v9971_v47 = vrot.slane %v19173_v32, 5  ;;  %21438 = vmatprep.subr.bf16.mxu0 %v22861_v56  ;;  %v13858_v34 = vsel %vm23669_vm5, %v19525_v2, %v13857_v38  ;;  %v13859_v22 = vrot.slane %v13857_v38, 4  ;;  %v19181_v49 = vld [vmem:[%s23585_s15 + $0x48] sm:$0xe]  ;;  %v19182_v29 = vld [vmem:[%s23585_s15 + $0x4c] sm:$0xf] }
 0x3a0   : > { %v19231_v0 = vcombine.low %v9965_v11, %v9968_v58  ;;  %v13854_v50 = vsel %vm23669_vm5, %v13852_v5, %v13853_v17  ;;  %v9974_v40 = vrot.slane %v19174_v57, 5  ;;  %v19217_v37 = vrot.slane %v19175_v13, 9  ;;  %v25966_v23 = vld [vmem:[%s23585_s15 + $0x50] sm:$0x1]  ;;  %v13745_v60 = vld [vmem:[#allocation2 + $0x70] sm:$0xf] }
 0x3a1   : > { %v19540_v24 = vcombine.low %v13851_v28, %v13854_v50  ;;  %v9972_v43 = vsel %vm23669_vm5, %v19216_v6, %v9971_v47  ;;  %v9973_v33 = vrot.slane %v9971_v47, 4  ;;  %v13861_v45 = vsel %vm23669_vm5, %v13859_v22, %v13860_v48  ;;  %v13746_v57 = vld [vmem:[#allocation2 + $0x74] sm:$0x1]  ;;  %v22866_v30 = vld [vmem:[#allocation13 + $0x190] sm:$0xff]   ;;  %v19184_v58 = vld [vmem:[%s23585_s15 + $0x54] sm:$0xe] }
 0x3a2   : > { %v9978_v10 = vrot.slane %v19176_v44, 5  ;;  %v9981_v9 = vrot.slane %v25939_v7, 5  ;;  %21439 = vmatpush3.bf16.msra.mxu0 %v22861_v56  ;;  %v19541_v12 = vcombine.low %v13858_v34, %v13861_v45  ;;  %v19526_v39 = vrot.slane %v13738_v25, 9  ;;  %v22988_v56 = vld [vmem:[#allocation13 + $0x180] sm:$0xff]   ;;  %v13747_v44 = vld [vmem:[#allocation2 + $0x78] sm:$0xe] }
 0x3a3   : > { %21407 = vmatmul.mubr.bf16.gmra.mrb[40].mxu0 %v19540_v24  ;;  %v9975_v15 = vsel %vm23669_vm5, %v9973_v33, %v9974_v40  ;;  %v13864_v46 = vrot.slane %v13739_v4, 5  ;;  %21440 = vmatprep.subr.bf16.mxu0 %v22862_v31  ;;  %v13867_v16 = vrot.slane %v13740_v51, 5  ;;  %v19527_v14 = vrot.slane %v13741_v35, 9  ;;  %v13748_v7 = vld [vmem:[#allocation2 + $0x7c] sm:$0xf]  ;;  %v22867_v28 = vld [vmem:[#allocation10 + $0xf8] sm:$0xff]  }
 0x3a4   : > { %21111 = vmatmul.mubr.bf16.vlgmr.msra.gmra.mrb[32].mxu1 %v19231_v0  ;;  %v19232_v53 = vcombine.low %v9972_v43, %v9975_v15  ;;  %v9979_v21 = vsel %vm23669_vm5, %v19217_v37, %v9978_v10  ;;  %v9980_v27 = vrot.slane %v9978_v10, 4  ;;  %21410 = vmatprep.mubr.bf16.mxu0 %v19541_v12  ;;  %v13871_v63 = vrot.slane %v13742_v19, 5  ;;  %v13749_v4 = vld [vmem:[#allocation2 + $0x80] sm:$0x1]  ;;  %v19185_v48 = vld [vmem:[%s23585_s15 + $0x58] sm:$0xf] }
 0x3a5   : > { %v13865_v8 = vsel %vm23669_vm5, %v19526_v39, %v13864_v46  ;;  %v13866_v32 = vrot.slane %v13864_v46, 4  ;;  %21143 = vmatpush3.bf16.msra.mxu1 %v22988_v56  ;;  %v13874_v42 = vrot.slane %v13743_v18, 5  ;;  %v19218_v62 = vrot.slane %v19178_v59, 9  ;;  %v25981_v6 = vld [vmem:[#allocation13 + $0x198] sm:$0xff]   ;;  %v19186_v24 = vld [vmem:[%s23585_s15 + $0x5c] sm:$0x1] }
 0x3a6   : > { %21114 = vmatprep.mubr.bf16.mxu1 %v19232_v53  ;;  %v9982_v1 = vsel %vm23669_vm5, %v9980_v27, %v9981_v9  ;;  %v9985_v52 = vrot.slane %v19179_v55, 5  ;;  %21441 = vmatpush3.bf16.msra.mxu0 %v22862_v31  ;;  %v13872_v17 = vsel %vm23669_vm5, %v19527_v14, %v13871_v63  ;;  %v13873_v13 = vrot.slane %v13871_v63, 4  ;;  %v25986_v50 = vld [vmem:[#allocation10 + $0x100] sm:$0xff]   ;;  %v19188_v55 = vld [vmem:[%s23585_s15 + $0x64] sm:$0xf] }
 0x3a7   : > { %v19233_v11 = vcombine.low %v9979_v21, %v9982_v1  ;;  %v13868_v54 = vsel %vm23669_vm5, %v13866_v32, %v13867_v16  ;;  %21442 = vmatprep.subr.bf16.mxu0 %v25953_v3  ;;  %21144 = vmatprep.subr.bf16.mxu1 %v22865_v41  ;;  %v9988_v25 = vrot.slane %v19180_v26, 5  ;;  %v19219_v51 = vrot.slane %v19181_v49, 9  ;;  %v19187_v59 = vld [vmem:[%s23585_s15 + $0x60] sm:$0xe]  ;;  %v25999_v45 = vld [vmem:[%s23585_s15 + $0x68] sm:$0x1] }
 0x3a8   : > { %v19542_v5 = vcombine.low %v13865_v8, %v13868_v54  ;;  %v9986_v2 = vsel %vm23669_vm5, %v19218_v62, %v9985_v52  ;;  %v9987_v38 = vrot.slane %v9985_v52, 4  ;;  %v13875_v47 = vsel %vm23669_vm5, %v13873_v13, %v13874_v42  ;;  %v13751_v12 = vld [vmem:[#allocation2 + $0x88] sm:$0xf]  ;;  %v13752_v53 = vld [vmem:[#allocation2 + $0x8c] sm:$0x1] }
 0x3a9   : > { %v9992_v31 = vrot.slane %v19182_v29, 5  ;;  %v9995_v0 = vrot.slane %v25966_v23, 5  ;;  %21145 = vmatpush3.bf16.msra.mxu1 %v22865_v41  ;;  %v19543_v34 = vcombine.low %v13872_v17, %v13875_v47  ;;  %v19528_v35 = vrot.slane %v13744_v20, 9  ;;  %v13750_v41 = vld [vmem:[#allocation2 + $0x84] sm:$0xe]  ;;  %v22870_v8 = vld [vmem:[#allocation13 + $0x1a0] sm:$0xff]  }
 0x3aa   : > { %v9989_v22 = vsel %vm23669_vm5, %v9987_v38, %v9988_v25  ;;  %v13878_v19 = vrot.slane %v13745_v60, 5  ;;  %21443 = vmatpush3.bf16.msra.mxu0 %v25953_v3  ;;  %21146 = vmatprep.subr.bf16.mxu1 %v22866_v30  ;;  %v13881_v18 = vrot.slane %v13746_v57, 5  ;;  %v19529_v10 = vrot.slane %v13747_v44, 9  ;;  %v13753_v29 = vld [vmem:[#allocation2 + $0x90] sm:$0xe] }
 0x3ab   : > { %21411 = vmatmul.mubr.bf16.gmra.mrb[44].mxu0 %v19542_v5  ;;  %v19234_v43 = vcombine.low %v9986_v2, %v9989_v22  ;;  %v25994_v33 = vsel %vm23669_vm5, %v19219_v51, %v9992_v31  ;;  %v9994_v40 = vrot.slane %v9992_v31, 4  ;;  %21444 = vmatprep.subr.bf16.mxu0 %v22867_v28  ;;  %v13885_v9 = vrot.slane %v13748_v7, 5  ;;  %v13754_v23 = vld [vmem:[#allocation2 + $0x94] sm:$0xf]  ;;  %v13755_v60 = vld [vmem:[#allocation2 + $0x98] sm:$0x1] }
 0x3ac   : > { %21115 = vmatmul.mubr.bf16.gmra.mrb[36].mxu1 %v19233_v11  ;;  %21414 = vmatprep.mubr.bf16.mxu0 %v19543_v34  ;;  %v13879_v37 = vsel %vm23669_vm5, %v19528_v35, %v13878_v19  ;;  %v13880_v3 = vrot.slane %v13878_v19, 4  ;;  %v13888_v39 = vrot.slane %v13749_v4, 5  ;;  %v19220_v46 = vrot.slane %v19184_v58, 9  ;;  %v19190_v56 = vld [vmem:[%s23585_s15 + $0x6c] sm:$0xe] }
 0x3ad   : > { %21118 = vmatprep.mubr.bf16.mxu1 %v19234_v43  ;;  %v9996_v15 = vsel %vm23669_vm5, %v9994_v40, %v9995_v0  ;;  %v9999_v26 = vrot.slane %v19185_v48, 5  ;;  %21147 = vmatpush3.bf16.msra.mxu1 %v22866_v30  ;;  %v13886_v16 = vsel %vm23669_vm5, %v19529_v10, %v13885_v9  ;;  %v13887_v49 = vrot.slane %v13885_v9, 4  ;;  %v19191_v1 = vld [vmem:[%s23585_s15 + $0x70] sm:$0xf]  ;;  %v22874_v30 = vld [vmem:[#allocation13 + $0x1a8] sm:$0xff]  }
 0x3ae   : > { %v19235_v21 = vcombine.low %v25994_v33, %v9996_v15  ;;  %v13882_v27 = vsel %vm23669_vm5, %v13880_v3, %v13881_v18  ;;  %21445 = vmatpush3.bf16.msra.mxu0 %v22867_v28  ;;  %21148 = vmatprep.subr.bf16.mxu1 %v25981_v6  ;;  %v10002_v20 = vrot.slane %v19186_v24, 5  ;;  %v19221_v62 = vrot.slane %v19187_v59, 9  ;;  %v19192_v44 = vld [vmem:[%s23585_s15 + $0x74] sm:$0x1]  ;;  %v19193_v38 = vld [vmem:[%s23585_s15 + $0x78] sm:$0xe] }
 0x3af   : > { %v19544_v32 = vcombine.low %v13879_v37, %v13882_v27  ;;  %v10000_v14 = vsel %vm23669_vm5, %v19220_v46, %v9999_v26  ;;  %v10001_v63 = vrot.slane %v9999_v26, 4  ;;  %21478 = vmatprep.subr.bf16.mxu0 %v25986_v50  ;;  %v13889_v42 = vsel %vm23669_vm5, %v13887_v49, %v13888_v39  ;;  %v19194_v25 = vld [vmem:[%s23585_s15 + $0x7c] sm:$0xf]  ;;  %v19195_v4 = vld [vmem:[%s23585_s15 + $0x80] sm:$0x1] }
 0x3b0   : > { %v10006_v52 = vrot.slane %v19188_v55, 5  ;;  %v10009_v57 = vrot.slane %v25999_v45, 5  ;;  %v19545_v11 = vcombine.low %v13886_v16, %v13889_v42  ;;  %v19530_v17 = vrot.slane %v13750_v41, 9  ;;  %v13756_v31 = vld [vmem:[#allocation2 + $0x9c] sm:$0xe] }
 0x3b1   : > { %v10003_v54 = vsel %vm23669_vm5, %v10001_v63, %v10002_v20  ;;  %v13892_v13 = vrot.slane %v13751_v12, 5  ;;  %21149 = vmatpush3.bf16.msra.mxu1 %v25981_v6  ;;  %v13895_v2 = vrot.slane %v13752_v53, 5  ;;  %v19531_v47 = vrot.slane %v13753_v29, 9  ;;  %v13757_v6 = vld [vmem:[#allocation2 + $0xa0] sm:$0xf] }
 0x3b2   : > { %v19236_v7 = vcombine.low %v10000_v14, %v10003_v54  ;;  %v26025_v28 = vsel %vm23669_vm5, %v19221_v62, %v10006_v52  ;;  %v10008_v5 = vrot.slane %v10006_v52, 4  ;;  %21150 = vmatprep.subr.bf16.mxu1 %v22870_v8  ;;  %v13899_v51 = vrot.slane %v13754_v23, 5  ;;  %v13758_v19 = vld [vmem:[#allocation2 + $0xa4] sm:$0x1]  ;;  %v13759_v18 = vld [vmem:[#allocation2 + $0xa8] sm:$0xe] }
 0x3b3   : > { %21415 = vmatmul.mubr.bf16.gmra.mrb[48].mxu0 %v19544_v32  ;;  %v13893_v58 = vsel %vm23669_vm5, %v19530_v17, %v13892_v13  ;;  %v13894_v48 = vrot.slane %v13892_v13, 4  ;;  %v13902_v34 = vrot.slane %v13755_v60, 5  ;;  %v19222_v22 = vrot.slane %v19190_v56, 9  ;;  %v13760_v59 = vld [vmem:[#allocation2 + $0xac] sm:$0xf]  ;;  %v22875_v55 = vld [vmem:[#allocation13 + $0x1b0] sm:$0xff]  }
 0x3b4   : > { %21119 = vmatmul.mubr.bf16.gmra.mrb[40].mxu1 %v19235_v21  ;;  %21418 = vmatprep.mubr.bf16.mxu0 %v19545_v11  ;;  %v10010_v0 = vsel %vm23669_vm5, %v10008_v5, %v10009_v57  ;;  %v10013_v35 = vrot.slane %v19191_v1, 5  ;;  %v13900_v33 = vsel %vm23669_vm5, %v19531_v47, %v13899_v51  ;;  %v13901_v40 = vrot.slane %v13899_v51, 4  ;;  %v13761_v9 = vld [vmem:[#allocation2 + $0xb0] sm:$0x1]  ;;  %v19196_v46 = vld [vmem:[%s23585_s15 + $0x84] sm:$0xe] }
 0x3b5   : > { %21122 = vmatprep.mubr.bf16.mxu1 %v19236_v7  ;;  %v19237_v24 = vcombine.low %v26025_v28, %v10010_v0  ;;  %v13896_v43 = vsel %vm23669_vm5, %v13894_v48, %v13895_v2  ;;  %21151 = vmatpush3.bf16.msra.mxu1 %v22870_v8  ;;  %v10016_v10 = vrot.slane %v19192_v44, 5  ;;  %v19223_v12 = vrot.slane %v19193_v38, 9  ;;  %v19197_v16 = vld [vmem:[%s23585_s15 + $0x88] sm:$0xf]  ;;  %v19198_v49 = vld [vmem:[%s23585_s15 + $0x8c] sm:$0x1] }
 0x3b6   : > { %v19546_v45 = vcombine.low %v13893_v58, %v13896_v43  ;;  %v10014_v37 = vsel %vm23669_vm5, %v19222_v22, %v10013_v35  ;;  %v10015_v3 = vrot.slane %v10013_v35, 4  ;;  %21152 = vmatprep.subr.bf16.mxu1 %v22874_v30  ;;  %v13903_v41 = vsel %vm23669_vm5, %v13901_v40, %v13902_v34  ;;  %v19199_v14 = vld [vmem:[%s23585_s15 + $0x90] sm:$0xe]  ;;  %v19200_v63 = vld [vmem:[%s23585_s15 + $0x94] sm:$0xf] }
 0x3b7   : > { %v10020_v15 = vrot.slane %v19194_v25, 5  ;;  %v10023_v39 = vrot.slane %v19195_v4, 5  ;;  %v19547_v26 = vcombine.low %v13900_v33, %v13903_v41  ;;  %v19532_v21 = vrot.slane %v13756_v31, 9  ;;  %v19201_v20 = vld [vmem:[%s23585_s15 + $0x98] sm:$0x1] }
 0x3b8   : > { %v10017_v53 = vsel %vm23669_vm5, %v10015_v3, %v10016_v10  ;;  %v13906_v27 = vrot.slane %v13757_v6, 5  ;;  %v13909_v32 = vrot.slane %v13758_v19, 5  ;;  %v19533_v1 = vrot.slane %v13759_v18, 9  ;;  %v13762_v62 = vld [vmem:[#allocation2 + $0xb4] sm:$0xe]  ;;  %v22879_v57 = vld [vmem:[#allocation13 + $0x1b8] sm:$0xff]  }
 0x3b9   : > { %v19238_v29 = vcombine.low %v10014_v37, %v10017_v53  ;;  %v26050_v23 = vsel %vm23669_vm5, %v19223_v12, %v10020_v15  ;;  %v10022_v8 = vrot.slane %v10020_v15, 4  ;;  %21153 = vmatpush3.bf16.msra.mxu1 %v22874_v30  ;;  %v13913_v42 = vrot.slane %v13760_v59, 5  ;;  %v13763_v52 = vld [vmem:[#allocation2 + $0xb8] sm:$0xf]  ;;  %v13764_v13 = vld [vmem:[#allocation2 + $0xbc] sm:$0x1] }
 0x3ba   : > { %v13907_v60 = vsel %vm23669_vm5, %v19532_v21, %v13906_v27  ;;  %v13908_v56 = vrot.slane %v13906_v27, 4  ;;  %21154 = vmatprep.subr.bf16.mxu1 %v22875_v55  ;;  %v13916_v54 = vrot.slane %v13761_v9, 5  ;;  %v19224_v17 = vrot.slane %v19196_v46, 9  ;;  %v19202_v2 = vld [vmem:[%s23585_s15 + $0x9c] sm:$0xe] }
 0x3bb   : > { %21419 = vmatmul.mubr.bf16.gmra.mrb[52].mxu0 %v19546_v45  ;;  %v10024_v11 = vsel %vm23669_vm5, %v10022_v8, %v10023_v39  ;;  %v10027_v30 = vrot.slane %v19197_v16, 5  ;;  %v13914_v28 = vsel %vm23669_vm5, %v19533_v1, %v13913_v42  ;;  %v13915_v5 = vrot.slane %v13913_v42, 4  ;;  %v19203_v38 = vld [vmem:[%s23585_s15 + $0xa0] sm:$0xf]  ;;  %v19204_v47 = vld [vmem:[%s23585_s15 + $0xa4] sm:$0x1] }
 0x3bc   : > { %21123 = vmatmul.mubr.bf16.gmra.mrb[44].mxu1 %v19237_v24  ;;  %21422 = vmatprep.mubr.bf16.mxu0 %v19547_v26  ;;  %v19239_v44 = vcombine.low %v26050_v23, %v10024_v11  ;;  %v13910_v7 = vsel %vm23669_vm5, %v13908_v56, %v13909_v32  ;;  %v10030_v48 = vrot.slane %v19198_v49, 5  ;;  %v19225_v31 = vrot.slane %v19199_v14, 9  ;;  %v19205_v34 = vld [vmem:[%s23585_s15 + $0xa8] sm:$0xe]  ;;  %v26072_v22 = vld [vmem:[#allocation13 + $0x1c0] sm:$0xff]  }
 0x3bd   : > { %21126 = vmatprep.mubr.bf16.mxu1 %v19238_v29  ;;  %v19548_v25 = vcombine.low %v13907_v60, %v13910_v7  ;;  %v10028_v4 = vsel %vm23669_vm5, %v19224_v17, %v10027_v30  ;;  %v10029_v58 = vrot.slane %v10027_v30, 4  ;;  %21155 = vmatpush3.bf16.msra.mxu1 %v22875_v55  ;;  %v13917_v51 = vsel %vm23669_vm5, %v13915_v5, %v13916_v54  ;;  %v19206_v33 = vld [vmem:[%s23585_s15 + $0xac] sm:$0xf]  ;;  %v19207_v40 = vld [vmem:[%s23585_s15 + $0xb0] sm:$0x1] }
 0x3be   : > { %v10034_v6 = vrot.slane %v19200_v63, 5  ;;  %v10037_v0 = vrot.slane %v19201_v20, 5  ;;  %21156 = vmatprep.subr.bf16.mxu1 %v22879_v57  ;;  %v19549_v35 = vcombine.low %v13914_v28, %v13917_v51  ;;  %v19534_v24 = vrot.slane %v13762_v62, 9  ;;  %v19208_v37 = vld [vmem:[%s23585_s15 + $0xb4] sm:$0xe] }
 0x3bf   : > { %v10031_v19 = vsel %vm23669_vm5, %v10029_v58, %v10030_v48  ;;  %v13920_v43 = vrot.slane %v13763_v52, 5  ;;  %v13923_v45 = vrot.slane %v13764_v13, 5  ;;  %v19209_v3 = vld [vmem:[%s23585_s15 + $0xb8] sm:$0xf]  ;;  %v19210_v10 = vld [vmem:[%s23585_s15 + $0xbc] sm:$0x1] }
 0x3c0   : > { %v19240_v18 = vcombine.low %v10028_v4, %v10031_v19  ;;  %v26080_v59 = vsel %vm23669_vm5, %v19225_v31, %v10034_v6  ;;  %v10036_v55 = vrot.slane %v10034_v6, 4  ;;  %v19226_v12 = vrot.slane %v19202_v2, 9  ;;  %v19211_v39 = vld [vmem:[%s23585_s15 + $0xc0] sm:$0xe]  ;;  %v19212_v46 = vld [vmem:[%s23585_s15 + $0xc4] sm:$0xf] }
 0x3c1   : > { %v13921_v9 = vsel %vm23669_vm5, %v19534_v24, %v13920_v43  ;;  %v13922_v41 = vrot.slane %v13920_v43, 4  ;;  %v10041_v15 = vrot.slane %v19203_v38, 5  ;;  %21157 = vmatpush3.bf16.msra.mxu1 %v22879_v57  ;;  %v10044_v53 = vrot.slane %v19204_v47, 5  ;;  %v19213_v16 = vld [vmem:[%s23585_s15 + $0xc8] sm:$0x1]  ;;  %v22868_v48 = vld [vmem:[#allocation2 + $0xc] sm:$0xff]  }
 0x3c2   : > { %v10038_v26 = vsel %vm23669_vm5, %v10036_v55, %v10037_v0  ;;  %v19227_v21 = vrot.slane %v19205_v34, 9  ;;  %v10048_v27 = vrot.slane %v19206_v33, 5  ;;  %21190 = vmatprep.subr.bf16.mxu1 %v26072_v22  ;;  %v14761_v32 = vld [vmem:[#allocation2 + $0xc] sm:$0xf]  ;;  %v10051_v60 = vrot.slane %v19207_v40, 5 }
 0x3c3   : > { %21423 = vmatmul.mubr.bf16.gmra.mrb[56].mxu0 %v19548_v25  ;;  %v19241_v49 = vcombine.low %v26080_v59, %v10038_v26  ;;  %v13924_v29 = vsel %vm23669_vm5, %v13922_v41, %v13923_v45  ;;  %v10042_v23 = vsel %vm23669_vm5, %v19226_v12, %v10041_v15  ;;  %v10043_v8 = vrot.slane %v10041_v15, 4  ;;  %v14762_v56 = vld [vmem:[#allocation2 + $0x10] sm:$0xf]  ;;  %v14763_v1 = vld [vmem:[#allocation2 + $0x14] sm:$0x1] }
 0x3c4   : > { %21127 = vmatmul.mubr.bf16.gmra.mrb[48].mxu1 %v19239_v44  ;;  %21426 = vmatprep.mubr.bf16.mxu0 %v19549_v35  ;;  %v19550_v14 = vcombine.low %v13921_v9, %v13924_v29  ;;  %v26100_v63 = vsel %vm23669_vm5, %v19227_v21, %v10048_v27  ;;  %v10050_v20 = vrot.slane %v10048_v27, 4  ;;  %v19228_v62 = vrot.slane %v19208_v37, 9  ;;  %v14764_v5 = vld [vmem:[#allocation2 + $0x18] sm:$0xf]  ;;  %v14765_v58 = vld [vmem:[#allocation2 + $0x1c] sm:$0xf] }
 0x3c5   : > { %21130 = vmatprep.mubr.bf16.mxu1 %v19240_v18  ;;  %v10045_v42 = vsel %vm23669_vm5, %v10043_v8, %v10044_v53  ;;  %v10055_v52 = vrot.slane %v19209_v3, 5  ;;  %v10058_v57 = vrot.slane %v19210_v10, 5  ;;  %v19229_v17 = vrot.slane %v19211_v39, 9  ;;  %v14766_v0 = vld [vmem:[#allocation2 + $0x20] sm:$0x1] }
 0x3c6   : > { %v19242_v11 = vcombine.low %v10042_v23, %v10045_v42  ;;  %v26106_v54 = vsel %vm23669_vm5, %v10050_v20, %v10051_v60  ;;  %v10062_v30 = vrot.slane %v19212_v46, 5  ;;  %v10065_v28 = vrot.slane %v19213_v16, 5  ;;  %v14767_v43 = vld [vmem:[#allocation2 + $0x24] sm:$0xf]  ;;  %v14768_v12 = vld [vmem:[#allocation2 + $0x28] sm:$0xf] }
 0x3c7   : > { %v19243_v13 = vcombine.low %v26100_v63, %v26106_v54  ;;  %v26112_v44 = vsel %vm23669_vm5, %v19228_v62, %v10055_v52  ;;  %v10057_v7 = vrot.slane %v10055_v52, 4  ;;  %v14810_v25 = vshrl.u32 %v14761_v32, 16  ;;  %v14769_v21 = vld [vmem:[#allocation2 + $0x2c] sm:$0x1]  ;;  %v14770_v20 = vld [vmem:[#allocation2 + $0x30] sm:$0xf] }
 0x3c8   : > { %v26116_v2 = vsel %vm23669_vm5, %v19229_v17, %v10062_v30  ;;  %v10064_v38 = vrot.slane %v10062_v30, 4  ;;  %v14813_v4 = vshll.u32 %v14761_v32, 16  ;;  %v14819_v51 = vshll.u32 %v14762_v56, 16  ;;  %v22871_v60 = vld [vmem:[#allocation2 + $0x18] sm:$0xff]   ;;  %v14771_v52 = vld [vmem:[#allocation2 + $0x34] sm:$0xf] }
 0x3c9   : > { %v26120_v47 = vsel %vm23669_vm5, %v10057_v7, %v10058_v57  ;;  %v14823_v31 = vshrl.u32 %v14762_v56, 16  ;;  %v14829_v6 = vshll.u32 %v14763_v1, 16  ;;  %v14812_v19 = vrot.slane %v14810_v25, 4  ;;  %v22873_v57 = vld [vmem:[#allocation2 + $0x24] sm:$0xff]   ;;  %v14774_v63 = vld [vmem:[#allocation2 + $0x40] sm:$0xf] }
 0x3ca   : > { %v19244_v34 = vcombine.low %v26112_v44, %v26120_v47  ;;  %v26126_v35 = vsel %vm23669_vm5, %v10064_v38, %v10065_v28  ;;  %v14815_v24 = vrot.slane %v14813_v4, 5  ;;  %v14821_v40 = vrot.slane %v14819_v51, 5  ;;  %v22883_v54 = vld [vmem:[#allocation10 + $0x110] sm:$0xff]  }
 0x3cb   : > { %21427 = vmatmul.mubr.bf16.gmra.mrb[60].mxu0 %v19550_v14  ;;  %v19245_v33 = vcombine.low %v26116_v2, %v26126_v35  ;;  %v14825_v18 = vrot.slane %v14823_v31, 4  ;;  %v14831_v59 = vrot.slane %v14829_v6, 5  ;;  %v14834_v45 = vshrl.u32 %v14764_v5, 16  ;;  %v14773_v31 = vld [vmem:[#allocation2 + $0x3c] sm:$0xf] }
 0x3cc   : > { %21131 = vmatmul.mubr.bf16.gmra.mrb[52].mxu1 %v19241_v49  ;;  %21446 = vmatprep.mubr.bf16.mxu0 %v22868_v48  ;;  %v14816_v55 = vor.u32 %v14815_v24, %v14812_v19  ;;  %v14837_v37 = vshll.u32 %v14764_v5, 16  ;;  %v14843_v3 = vshll.u32 %v14765_v58, 16  ;;  %v14847_v9 = vshrl.u32 %v14765_v58, 16  ;;  %v14772_v48 = vld [vmem:[#allocation2 + $0x38] sm:$0x1] }
 0x3cd   : > { %21134 = vmatprep.mubr.bf16.mxu1 %v19242_v11  ;;  %v14826_v10 = vor.u32 %v14825_v18, %v14821_v40  ;;  %v14853_v41 = vshll.u32 %v14766_v0, 16  ;;  %v14858_v15 = vshrl.u32 %v14767_v43, 16  ;;  %v14836_v46 = vrot.slane %v14834_v45, 4  ;;  %v22877_v11 = vld [vmem:[#allocation10 + $0x108] sm:$0xff]  }
 0x3ce   : > { %v14817_v39 = vrot.slane %v14816_v55, 4  ;;  %v14839_v26 = vrot.slane %v14837_v37, 5  ;;  %v14845_v53 = vrot.slane %v14843_v3, 5  ;;  %v14849_v16 = vrot.slane %v14847_v9, 4  ;;  %v14775_v3 = vld [vmem:[#allocation2 + $0x44] sm:$0x1] }
 0x3cf   : > { %v14827_v27 = vrot.slane %v14826_v10, 4  ;;  %v14855_v29 = vrot.slane %v14853_v41, 5  ;;  %v14860_v49 = vrot.slane %v14858_v15, 4  ;;  %v14861_v32 = vshll.u32 %v14767_v43, 16  ;;  %v19310_v41 = vld [vmem:[%s23585_s15 + $0x18] sm:$0xf] }
 0x3d0   : > { %v14822_v23 = vsel %vm23612_vm2, %v14817_v39, %v14821_v40  ;;  %v14840_v8 = vor.u32 %v14839_v26, %v14836_v46  ;;  %v14867_v14 = vshll.u32 %v14768_v12, 16  ;;  %v14850_v1 = vor.u32 %v14849_v16, %v14845_v53  ;;  %v22880_v15 = vld [vmem:[%s23585_s15 + $0x18] sm:$0xff]  }
 0x3d1   : > { %v14832_v56 = vsel %vm23612_vm2, %v14827_v27, %v14831_v59  ;;  %v14871_v42 = vshrl.u32 %v14768_v12, 16  ;;  %v14877_v62 = vshll.u32 %v14769_v21, 16  ;;  %v14863_v44 = vrot.slane %v14861_v32, 5  ;;  %v22876_v12 = vld [vmem:[#allocation2 + $0x30] sm:$0xff]   ;;  %v22878_v27 = vld [vmem:[#allocation2 + $0x3c] sm:$0xff]  }
 0x3d2   : > { %v26134_v17 = vcombine.low %v14822_v23, %v14832_v56  ;;  %v14841_v30 = vrot.slane %v14840_v8, 4  ;;  %v14869_v7 = vrot.slane %v14867_v14, 5  ;;  %v14851_v28 = vrot.slane %v14850_v1, 4  ;;  %v19311_v21 = vld [vmem:[%s23585_s15 + $0x1c] sm:$0xf]  ;;  %v22888_v16 = vld [vmem:[#allocation10 + $0x118] sm:$0xff]  }
 0x3d3   : > { %21447 = vmatmul.mubr.bf16.vlgmr.msra.gmra.mrb[32].mxu0 %v22871_v60  ;;  %v14873_v5 = vrot.slane %v14871_v42, 4  ;;  %v14879_v38 = vrot.slane %v14877_v62, 5  ;;  %v14882_v25 = vshrl.u32 %v14770_v20, 16  ;;  %v14864_v58 = vor.u32 %v14863_v44, %v14860_v49  ;;  %v19312_v42 = vld [vmem:[%s23585_s15 + $0x20] sm:$0x1]  ;;  %v22881_v44 = vld [vmem:[%s23585_s15 + $0x24] sm:$0xff]  }
 0x3d4   : > { %21135 = vmatmul.mubr.bf16.gmra.mrb[56].mxu1 %v19243_v13  ;;  %21450 = vmatprep.mubr.bf16.mxu0 %v22873_v57  ;;  %v14846_v4 = vsel %vm23612_vm2, %v14841_v30, %v14845_v53  ;;  %v14885_v47 = vshll.u32 %v14770_v20, 16  ;;  %v14891_v51 = vshll.u32 %v14771_v52, 16  ;;  %v14856_v6 = vsel %vm23612_vm2, %v14851_v28, %v14855_v29  ;;  %v19313_v57 = vld [vmem:[%s23585_s15 + $0x24] sm:$0xf] }
 0x3d5   : > { %21479 = vmatpush3.bf16.msra.mxu0 %v25986_v50  ;;  %21138 = vmatprep.mubr.bf16.mxu1 %v19244_v34  ;;  %v14874_v0 = vor.u32 %v14873_v5, %v14869_v7  ;;  %v14884_v19 = vrot.slane %v14882_v25, 4  ;;  %v14895_v24 = vshrl.u32 %v14771_v52, 16  ;;  %v26144_v13 = vcombine.low %v14846_v4, %v14856_v6  ;;  %v22882_v4 = vld [vmem:[#allocation2 + $0x48] sm:$0xff]  }
 0x3d6   : > { %21480 = vmatprep.subr.bf16.mxu0 %v22877_v11  ;;  %v14865_v43 = vrot.slane %v14864_v58, 4  ;;  %v14887_v40 = vrot.slane %v14885_v47, 5  ;;  %v14893_v18 = vrot.slane %v14891_v51, 5  ;;  %v14901_v50 = vshll.u32 %v14772_v48, 16  ;;  %v22885_v58 = vld [vmem:[%s23585_s15 + $0x30] sm:$0xff]  }
 0x3d7   : > { %v14875_v59 = vrot.slane %v14874_v0, 4  ;;  %v14897_v55 = vrot.slane %v14895_v24, 4  ;;  %v14906_v34 = vshrl.u32 %v14773_v31, 16  ;;  %v14909_v10 = vshll.u32 %v14773_v31, 16  ;;  %v19315_v31 = vld [vmem:[%s23585_s15 + $0x2c] sm:$0x1] }
 0x3d8   : > { %v14870_v45 = vsel %vm23612_vm2, %v14865_v43, %v14869_v7  ;;  %v14888_v37 = vor.u32 %v14887_v40, %v14884_v19  ;;  %v14915_v9 = vshll.u32 %v14774_v63, 16  ;;  %v14903_v26 = vrot.slane %v14901_v50, 5  ;;  %v22893_v7 = vld [vmem:[#allocation10 + $0x120] sm:$0xff]   ;;  %v22898_v50 = vld [vmem:[#allocation10 + $0x128] sm:$0xff]  }
 0x3d9   : > { %21481 = vmatpush3.bf16.msra.mxu0 %v22877_v11  ;;  %v14880_v39 = vsel %vm23612_vm2, %v14875_v59, %v14879_v38  ;;  %v14898_v46 = vor.u32 %v14897_v55, %v14893_v18  ;;  %v14908_v53 = vrot.slane %v14906_v34, 4  ;;  %v14911_v23 = vrot.slane %v14909_v10, 5  ;;  %v22884_v55 = vld [vmem:[#allocation2 + $0x54] sm:$0xff]  }
 0x3da   : > { %21482 = vmatprep.subr.bf16.mxu0 %v22883_v54  ;;  %v26153_v29 = vcombine.low %v14870_v45, %v14880_v39  ;;  %v14889_v49 = vrot.slane %v14888_v37, 4  ;;  %v14917_v8 = vrot.slane %v14915_v9, 5  ;;  %v14919_v14 = vshrl.u32 %v14774_v63, 16  ;;  %v22906_v10 = vld [vmem:[#allocation13 + $0x1c8] sm:$0xff]  }
 0x3db   : > { %21451 = vmatmul.mubr.bf16.gmra.mrb[36].mxu0 %v22876_v12  ;;  %v14899_v32 = vrot.slane %v14898_v46, 4  ;;  %v14925_v20 = vshll.u32 %v14775_v3, 16  ;;  %v10952_v60 = vshrl.u32 %v19310_v41, 16  ;;  %v14912_v1 = vor.u32 %v14911_v23, %v14908_v53 }
 0x3dc   : > { %21139 = vmatmul.mubr.bf16.gmra.mrb[60].mxu1 %v19245_v33  ;;  %21454 = vmatprep.mubr.bf16.mxu0 %v22878_v27  ;;  %v14894_v56 = vsel %vm23612_vm2, %v14889_v49, %v14893_v18  ;;  %v10955_v62 = vshll.u32 %v19310_v41, 16  ;;  %v10961_v52 = vshll.u32 %v19311_v21, 16  ;;  %v14921_v30 = vrot.slane %v14919_v14, 4  ;;  %v19314_v33 = vld [vmem:[%s23585_s15 + $0x28] sm:$0xf] }
 0x3dd   : > { %21158 = vmatprep.mubr.bf16.mxu1 %v22880_v15  ;;  %21483 = vmatpush3.bf16.msra.mxu0 %v22883_v54  ;;  %v14904_v11 = vsel %vm23612_vm2, %v14899_v32, %v14903_v26  ;;  %v14927_v2 = vrot.slane %v14925_v20, 5  ;;  %v10954_v35 = vrot.slane %v10952_v60, 4  ;;  %v14913_v5 = vrot.slane %v14912_v1, 4  ;;  %v14776_v54 = vld [vmem:[#allocation2 + $0x48] sm:$0xf]  ;;  %v22904_v14 = vld [vmem:[#allocation10 + $0x130] sm:$0xff]  }
 0x3de   : > { %21484 = vmatprep.subr.bf16.mxu0 %v22888_v16  ;;  %v26166_v28 = vcombine.low %v14894_v56, %v14904_v11  ;;  %v10957_v38 = vrot.slane %v10955_v62, 5  ;;  %v26168_v25 = vrot.slane %v10961_v52, 5  ;;  %v14922_v48 = vor.u32 %v14921_v30, %v14917_v8  ;;  %v14777_v15 = vld [vmem:[#allocation2 + $0x4c] sm:$0xf]  ;;  %v14778_v27 = vld [vmem:[#allocation2 + $0x50] sm:$0x1] }
 0x3df   : > { %v10965_v47 = vshrl.u32 %v19311_v21, 16  ;;  %v10971_v51 = vshll.u32 %v19312_v42, 16  ;;  %v10976_v6 = vshrl.u32 %v19313_v57, 16  ;;  %v14918_v0 = vsel %vm23612_vm2, %v14913_v5, %v14917_v8  ;;  %v22887_v42 = vld [vmem:[#allocation2 + $0x60] sm:$0xff]   ;;  %v14780_v30 = vld [vmem:[#allocation2 + $0x58] sm:$0xf] }
 0x3e0   : > { %v10958_v19 = vor.u32 %v10957_v38, %v10954_v35  ;;  %v10979_v24 = vshll.u32 %v19313_v57, 16  ;;  %v10985_v63 = vshll.u32 %v19314_v33, 16  ;;  %v14923_v43 = vrot.slane %v14922_v48, 4  ;;  %v22909_v62 = vld [vmem:[#allocation13 + $0x1d0] sm:$0xff]   ;;  %v22886_v35 = vld [vmem:[%s23585_s15 + $0x3c] sm:$0xff]  }
 0x3e1   : > { %21485 = vmatpush3.bf16.msra.mxu0 %v22888_v16  ;;  %v10967_v40 = vrot.slane %v10965_v47, 4  ;;  %v10973_v18 = vrot.slane %v10971_v51, 5  ;;  %v10978_v59 = vrot.slane %v10976_v6, 4  ;;  %v10989_v3 = vshrl.u32 %v19314_v33, 16  ;;  %v14779_v16 = vld [vmem:[#allocation2 + $0x54] sm:$0xf] }
 0x3e2   : > { %21486 = vmatprep.subr.bf16.mxu0 %v22893_v7  ;;  %v10959_v34 = vrot.slane %v10958_v19, 4  ;;  %v10981_v45 = vrot.slane %v10979_v24, 5  ;;  %v26174_v37 = vrot.slane %v10985_v63, 5  ;;  %v14928_v9 = vsel %vm23612_vm2, %v14923_v43, %v14927_v2  ;;  %v22889_v33 = vld [vmem:[#allocation2 + $0x6c] sm:$0xff]   ;;  %v22912_v6 = vld [vmem:[#allocation13 + $0x1d8] sm:$0xff]  }
 0x3e3   : > { %21455 = vmatmul.mubr.bf16.gmra.mrb[40].mxu0 %v22882_v4  ;;  %v10968_v41 = vor.u32 %v10967_v40, %v26168_v25  ;;  %v10995_v12 = vshll.u32 %v19315_v31, 16  ;;  %v14930_v39 = vshrl.u32 %v14776_v54, 16  ;;  %v26179_v46 = vcombine.low %v14918_v0, %v14928_v9  ;;  %v22911_v4 = vld [vmem:[#allocation10 + $0x138] sm:$0xff]  }
 0x3e4   : > { %21159 = vmatmul.mubr.bf16.vlgmr.msra.gmra.mrb[32].mxu1 %v22881_v44  ;;  %21458 = vmatprep.mubr.bf16.mxu0 %v22884_v55  ;;  %v10964_v26 = vsel %vm23612_vm2, %v10959_v34, %v26168_v25  ;;  %v10982_v53 = vor.u32 %v10981_v45, %v10978_v59  ;;  %v10991_v21 = vrot.slane %v10989_v3, 4  ;;  %v14933_v32 = vshll.u32 %v14776_v54, 16  ;;  %v22890_v44 = vld [vmem:[%s23585_s15 + $0x48] sm:$0xff]   ;;  %v19316_v31 = vld [vmem:[%s23585_s15 + $0x30] sm:$0xf] }
 0x3e5   : > { %21162 = vmatprep.mubr.bf16.mxu1 %v22885_v58  ;;  %21487 = vmatpush3.bf16.msra.mxu0 %v22893_v7  ;;  %v10969_v49 = vrot.slane %v10968_v41, 4  ;;  %v10997_v23 = vrot.slane %v10995_v12, 5  ;;  %v14932_v8 = vrot.slane %v14930_v39, 4  ;;  %v14939_v56 = vshll.u32 %v14777_v15, 16  ;;  %v14781_v25 = vld [vmem:[#allocation2 + $0x5c] sm:$0x1] }
 0x3e6   : > { %21488 = vmatprep.subr.bf16.mxu0 %v22898_v50  ;;  %21191 = vmatpush3.bf16.msra.mxu1 %v26072_v22  ;;  %v10983_v20 = vrot.slane %v10982_v53, 4  ;;  %v10992_v60 = vor.u32 %v10991_v21, %v26174_v37  ;;  %v14943_v1 = vshrl.u32 %v14777_v15, 16  ;;  %v14935_v57 = vrot.slane %v14933_v32, 5  ;;  %v19317_v54 = vld [vmem:[%s23585_s15 + $0x34] sm:$0xf] }
 0x3e7   : > { %21192 = vmatprep.subr.bf16.mxu1 %v22906_v10  ;;  %v10974_v52 = vsel %vm23612_vm2, %v10969_v49, %v10973_v18  ;;  %v14949_v11 = vshll.u32 %v14778_v27, 16  ;;  %v14954_v2 = vshrl.u32 %v14779_v16, 16  ;;  %v14941_v38 = vrot.slane %v14939_v56, 5  ;;  %v19318_v45 = vld [vmem:[%s23585_s15 + $0x38] sm:$0x1] }
 0x3e8   : > { %v26190_v22 = vcombine.low %v10964_v26, %v10974_v52  ;;  %v10988_v7 = vsel %vm23612_vm2, %v10983_v20, %v26174_v37  ;;  %v10993_v5 = vrot.slane %v10992_v60, 4  ;;  %v14936_v58 = vor.u32 %v14935_v57, %v14932_v8  ;;  %v26204_v12 = vld [vmem:[#allocation10 + $0x140] sm:$0xff]   ;;  %v22892_v20 = vld [vmem:[#allocation2 + $0x78] sm:$0xff]  }
 0x3e9   : > { %21489 = vmatpush3.bf16.msra.mxu0 %v22898_v50  ;;  %v14945_v48 = vrot.slane %v14943_v1, 4  ;;  %v14951_v47 = vrot.slane %v14949_v11, 5  ;;  %v14956_v51 = vrot.slane %v14954_v2, 4  ;;  %v14957_v19 = vshll.u32 %v14779_v16, 16  ;;  %v19319_v21 = vld [vmem:[%s23585_s15 + $0x3c] sm:$0xf] }
 0x3ea   : > { %21490 = vmatprep.subr.bf16.mxu0 %v22904_v14  ;;  %21193 = vmatpush3.bf16.msra.mxu1 %v22906_v10  ;;  %v10998_v0 = vsel %vm23612_vm2, %v10993_v5, %v10997_v23  ;;  %v14963_v24 = vshll.u32 %v14780_v30, 16  ;;  %v14967_v63 = vshrl.u32 %v14780_v30, 16  ;;  %v14937_v40 = vrot.slane %v14936_v58, 4  ;;  %v22915_v27 = vld [vmem:[#allocation13 + $0x1e0] sm:$0xff]   ;;  %v19321_v30 = vld [vmem:[%s23585_s15 + $0x44] sm:$0x1] }
 0x3eb   : > { %21459 = vmatmul.mubr.bf16.gmra.mrb[44].mxu0 %v22887_v42  ;;  %21194 = vmatprep.subr.bf16.mxu1 %v22909_v62  ;;  %v26199_v43 = vcombine.low %v10988_v7, %v10998_v0  ;;  %v14946_v18 = vor.u32 %v14945_v48, %v14941_v38  ;;  %v14973_v59 = vshll.u32 %v14781_v25, 16  ;;  %v14959_v55 = vrot.slane %v14957_v19, 5  ;;  %v19320_v32 = vld [vmem:[%s23585_s15 + $0x40] sm:$0xf] }
 0x3ec   : > { %21163 = vmatmul.mubr.bf16.gmra.mrb[36].mxu1 %v22886_v35  ;;  %21462 = vmatprep.mubr.bf16.mxu0 %v22889_v33  ;;  %v14965_v50 = vrot.slane %v14963_v24, 5  ;;  %v14969_v34 = vrot.slane %v14967_v63, 4  ;;  %v11000_v37 = vshrl.u32 %v19316_v31, 16  ;;  %v14942_v3 = vsel %vm23612_vm2, %v14937_v40, %v14941_v38  ;;  %v22894_v35 = vld [vmem:[#allocation2 + $0x84] sm:$0xff]   ;;  %v14782_v38 = vld [vmem:[#allocation2 + $0x60] sm:$0xf] }
 0x3ed   : > { %21166 = vmatprep.mubr.bf16.mxu1 %v22890_v44  ;;  %21491 = vmatpush3.bf16.msra.mxu0 %v22904_v14  ;;  %v14947_v10 = vrot.slane %v14946_v18, 4  ;;  %v14975_v9 = vrot.slane %v14973_v59, 5  ;;  %v11003_v41 = vshll.u32 %v19316_v31, 16  ;;  %v14960_v15 = vor.u32 %v14959_v55, %v14956_v51  ;;  %v22891_v14 = vld [vmem:[%s23585_s15 + $0x54] sm:$0xff]   ;;  %v22917_v25 = vld [vmem:[#allocation13 + $0x1e8] sm:$0xff]  }
 0x3ee   : > { %21492 = vmatprep.subr.bf16.mxu0 %v22911_v4  ;;  %21195 = vmatpush3.bf16.msra.mxu1 %v22909_v62  ;;  %v14970_v39 = vor.u32 %v14969_v34, %v14965_v50  ;;  %v11002_v26 = vrot.slane %v11000_v37, 4  ;;  %v11009_v53 = vshll.u32 %v19317_v54, 16  ;;  %v11013_v23 = vshrl.u32 %v19317_v54, 16  ;;  %v22895_v62 = vld [vmem:[%s23585_s15 + $0x60] sm:$0xff]   ;;  %v14783_v51 = vld [vmem:[#allocation2 + $0x64] sm:$0xf] }
 0x3ef   : > { %21196 = vmatprep.subr.bf16.mxu1 %v22912_v6  ;;  %v14952_v16 = vsel %vm23612_vm2, %v14947_v10, %v14951_v47  ;;  %v11005_v49 = vrot.slane %v11003_v41, 5  ;;  %v11019_v8 = vshll.u32 %v19318_v45, 16  ;;  %v14961_v56 = vrot.slane %v14960_v15, 4  ;;  %v14784_v24 = vld [vmem:[#allocation2 + $0x68] sm:$0x1]  ;;  %v22920_v37 = vld [vmem:[#allocation13 + $0x1f0] sm:$0xff]  }
 0x3f0   : > { %v26211_v60 = vcombine.low %v14942_v3, %v14952_v16  ;;  %v14971_v1 = vrot.slane %v14970_v39, 4  ;;  %v11011_v42 = vrot.slane %v11009_v53, 5  ;;  %v11015_v57 = vrot.slane %v11013_v23, 4  ;;  %v14785_v63 = vld [vmem:[#allocation2 + $0x6c] sm:$0xf]  ;;  %v22896_v39 = vld [vmem:[%s23585_s15 + $0x6c] sm:$0xff]  }
 0x3f1   : > { %21493 = vmatpush3.bf16.msra.mxu0 %v22911_v4  ;;  %v11006_v52 = vor.u32 %v11005_v49, %v11002_v26  ;;  %v11021_v11 = vrot.slane %v11019_v8, 5  ;;  %v11024_v2 = vshrl.u32 %v19319_v21, 16  ;;  %v14966_v33 = vsel %vm23612_vm2, %v14961_v56, %v14965_v50  ;;  %v14786_v15 = vld [vmem:[#allocation2 + $0x70] sm:$0xf] }
 0x3f2   : > { %21197 = vmatpush3.bf16.msra.mxu1 %v22912_v6  ;;  %21526 = vmatprep.subr.bf16.mxu0 %v26204_v12  ;;  %v14976_v44 = vsel %vm23612_vm2, %v14971_v1, %v14975_v9  ;;  %v11027_v7 = vshll.u32 %v19319_v21, 16  ;;  %v11033_v5 = vshll.u32 %v19320_v32, 16  ;;  %v11016_v48 = vor.u32 %v11015_v57, %v11011_v42  ;;  %v22897_v16 = vld [vmem:[#allocation2 + $0x90] sm:$0xff]   ;;  %v22922_v57 = vld [vmem:[#allocation13 + $0x1f8] sm:$0xff]  }
 0x3f3   : > { %21463 = vmatmul.mubr.bf16.gmra.mrb[48].mxu0 %v22892_v20  ;;  %21198 = vmatprep.subr.bf16.mxu1 %v22915_v27  ;;  %v26220_v4 = vcombine.low %v14966_v33, %v14976_v44  ;;  %v11007_v58 = vrot.slane %v11006_v52, 4  ;;  %v11026_v47 = vrot.slane %v11024_v2, 4  ;;  %v11037_v0 = vshrl.u32 %v19320_v32, 16  ;;  %v22900_v49 = vld [vmem:[%s23585_s15 + $0x78] sm:$0xff]   ;;  %v22899_v20 = vld [vmem:[#allocation2 + $0x9c] sm:$0xff]  }
 0x3f4   : > { %21167 = vmatmul.mubr.bf16.gmra.mrb[40].mxu1 %v22891_v14  ;;  %21466 = vmatprep.mubr.bf16.mxu0 %v22894_v35  ;;  %v11029_v31 = vrot.slane %v11027_v7, 5  ;;  %v11035_v6 = vrot.slane %v11033_v5, 5  ;;  %v11043_v19 = vshll.u32 %v19321_v30, 16  ;;  %v11017_v40 = vrot.slane %v11016_v48, 4  ;;  %v19322_v33 = vld [vmem:[%s23585_s15 + $0x48] sm:$0xf] }
 0x3f5   : > { %21170 = vmatprep.mubr.bf16.mxu1 %v22895_v62  ;;  %v11012_v54 = vsel %vm23612_vm2, %v11007_v58, %v11011_v42  ;;  %v14978_v18 = vshrl.u32 %v14782_v38, 16  ;;  %v14981_v59 = vshll.u32 %v14782_v38, 16  ;;  %v11039_v50 = vrot.slane %v11037_v0, 4  ;;  %v14787_v42 = vld [vmem:[#allocation2 + $0x74] sm:$0x1] }
 0x3f6   : > { %21199 = vmatpush3.bf16.msra.mxu1 %v22915_v27  ;;  %v11030_v55 = vor.u32 %v11029_v31, %v11026_v47  ;;  %v11045_v34 = vrot.slane %v11043_v19, 5  ;;  %v14987_v45 = vshll.u32 %v14783_v51, 16  ;;  %v11022_v3 = vsel %vm23612_vm2, %v11017_v40, %v11021_v11  ;;  %v19324_v31 = vld [vmem:[%s23585_s15 + $0x50] sm:$0x1] }
 0x3f7   : > { %21200 = vmatprep.subr.bf16.mxu1 %v22917_v25  ;;  %v14980_v10 = vrot.slane %v14978_v18, 4  ;;  %v14983_v9 = vrot.slane %v14981_v59, 5  ;;  %v14991_v41 = vshrl.u32 %v14783_v51, 16  ;;  %v26227_v26 = vcombine.low %v11012_v54, %v11022_v3  ;;  %v22903_v54 = vld [vmem:[#allocation2 + $0xa8] sm:$0xff]  }
 0x3f8   : > { %v11031_v53 = vrot.slane %v11030_v55, 4  ;;  %v11040_v21 = vor.u32 %v11039_v50, %v11035_v6  ;;  %v14989_v27 = vrot.slane %v14987_v45, 5  ;;  %v14997_v32 = vshll.u32 %v14784_v24, 16  ;;  %v26244_v50 = vld [vmem:[#allocation13 + $0x200] sm:$0xff]  }
 0x3f9   : > { %v14984_v23 = vor.u32 %v14983_v9, %v14980_v10  ;;  %v14993_v8 = vrot.slane %v14991_v41, 4  ;;  %v15002_v14 = vshrl.u32 %v14785_v63, 16  ;;  %v15005_v62 = vshll.u32 %v14785_v63, 16  ;;  %v22907_v45 = vld [vmem:[%s23585_s15 + $0x90] sm:$0xff]   ;;  %v19326_v41 = vld [vmem:[%s23585_s15 + $0x58] sm:$0xf] }
 0x3fa   : > { %21201 = vmatpush3.bf16.msra.mxu1 %v22917_v25  ;;  %v11036_v56 = vsel %vm23612_vm2, %v11031_v53, %v11035_v6  ;;  %v11041_v1 = vrot.slane %v11040_v21, 4  ;;  %v15011_v52 = vshll.u32 %v14786_v15, 16  ;;  %v14999_v2 = vrot.slane %v14997_v32, 5  ;;  %v19323_v25 = vld [vmem:[%s23585_s15 + $0x4c] sm:$0xf] }
 0x3fb   : > { %21467 = vmatmul.mubr.bf16.gmra.mrb[52].mxu0 %v22897_v16  ;;  %21202 = vmatprep.subr.bf16.mxu1 %v22920_v37  ;;  %v14985_v11 = vrot.slane %v14984_v23, 4  ;;  %v14994_v30 = vor.u32 %v14993_v8, %v14989_v27  ;;  %v15004_v35 = vrot.slane %v15002_v14, 4  ;;  %v15007_v7 = vrot.slane %v15005_v62, 5  ;;  %v19325_v6 = vld [vmem:[%s23585_s15 + $0x54] sm:$0xf]  ;;  %v22905_v16 = vld [vmem:[#allocation2 + $0xb4] sm:$0xff]  }
 0x3fc   : > { %21171 = vmatmul.mubr.bf16.gmra.mrb[44].mxu1 %v22896_v39  ;;  %21470 = vmatprep.mubr.bf16.mxu0 %v22899_v20  ;;  %v11046_v44 = vsel %vm23612_vm2, %v11041_v1, %v11045_v34  ;;  %v15013_v5 = vrot.slane %v15011_v52, 5  ;;  %v15015_v38 = vshrl.u32 %v14786_v15, 16  ;;  %v15021_v51 = vshll.u32 %v14787_v42, 16  ;;  %v22901_v34 = vld [vmem:[%s23585_s15 + $0x84] sm:$0xff]  }
 0x3fd   : > { %21174 = vmatprep.mubr.bf16.mxu1 %v22900_v49  ;;  %v26236_v58 = vcombine.low %v11036_v56, %v11046_v44  ;;  %v14990_v48 = vsel %vm23612_vm2, %v14985_v11, %v14989_v27  ;;  %v14995_v47 = vrot.slane %v14994_v30, 4  ;;  %v15008_v0 = vor.u32 %v15007_v7, %v15004_v35  ;;  %v19327_v27 = vld [vmem:[%s23585_s15 + $0x5c] sm:$0x1]  ;;  %v14788_v42 = vld [vmem:[#allocation2 + $0x78] sm:$0xf] }
 0x3fe   : > { %21203 = vmatpush3.bf16.msra.mxu1 %v22920_v37  ;;  %v15017_v19 = vrot.slane %v15015_v38, 4  ;;  %v11048_v24 = vshrl.u32 %v19322_v33, 16  ;;  %v11051_v63 = vshll.u32 %v19322_v33, 16  ;;  %v15023_v18 = vrot.slane %v15021_v51, 5  ;;  %v14789_v30 = vld [vmem:[#allocation2 + $0x7c] sm:$0xf] }
 0x3ff   : > { %21204 = vmatprep.subr.bf16.mxu1 %v22922_v57  ;;  %v15000_v40 = vsel %vm23612_vm2, %v14995_v47, %v14999_v2  ;;  %v11057_v59 = vshll.u32 %v19323_v25, 16  ;;  %v11061_v55 = vshrl.u32 %v19323_v25, 16  ;;  %v15009_v37 = vrot.slane %v15008_v0, 4  ;;  %v14790_v7 = vld [vmem:[#allocation2 + $0x80] sm:$0x1] }
 0x400   : > { %v26248_v3 = vcombine.low %v14990_v48, %v15000_v40  ;;  %v15018_v10 = vor.u32 %v15017_v19, %v15013_v5  ;;  %v11050_v9 = vrot.slane %v11048_v24, 4  ;;  %v11053_v15 = vrot.slane %v11051_v63, 5  ;;  %v14791_v0 = vld [vmem:[#allocation2 + $0x84] sm:$0xf]  ;;  %v22908_v19 = vld [vmem:[%s23585_s15 + $0x9c] sm:$0xff]  }
 0x401   : > { %v11059_v39 = vrot.slane %v11057_v59, 5  ;;  %v11063_v53 = vrot.slane %v11061_v55, 4  ;;  %v11067_v21 = vshll.u32 %v19324_v31, 16  ;;  %v15014_v49 = vsel %vm23612_vm2, %v15009_v37, %v15013_v5  ;;  %v22910_v59 = vld [vmem:[#allocation2 + $0xc0] sm:$0xff]  }
 0x402   : > { %21205 = vmatpush3.bf16.msra.mxu1 %v22922_v57  ;;  %v15019_v23 = vrot.slane %v15018_v10, 4  ;;  %v11072_v8 = vshrl.u32 %v19325_v6, 16  ;;  %v11075_v32 = vshll.u32 %v19325_v6, 16  ;;  %v11054_v14 = vor.u32 %v11053_v15, %v11050_v9  ;;  %v22913_v55 = vld [vmem:[%s23585_s15 + $0xa8] sm:$0xff]  }
 0x403   : > { %21471 = vmatmul.mubr.bf16.gmra.mrb[56].mxu0 %v22903_v54  ;;  %v11064_v20 = vor.u32 %v11063_v53, %v11059_v39  ;;  %v11069_v56 = vrot.slane %v11067_v21, 5  ;;  %v11081_v1 = vshll.u32 %v19326_v41, 16  ;;  %21238 = vmatprep.subr.bf16.mxu1 %v26244_v50  ;;  %v11085_v11 = vshrl.u32 %v19326_v41, 16 }
 0x404   : > { %21175 = vmatmul.mubr.bf16.gmra.mrb[48].mxu1 %v22901_v34  ;;  %21474 = vmatprep.mubr.bf16.mxu0 %v22905_v16  ;;  %v15024_v62 = vsel %vm23612_vm2, %v15019_v23, %v15023_v18  ;;  %v11074_v52 = vrot.slane %v11072_v8, 4  ;;  %v11077_v57 = vrot.slane %v11075_v32, 5  ;;  %v11055_v35 = vrot.slane %v11054_v14, 4  ;;  %v14792_v18 = vld [vmem:[#allocation2 + $0x88] sm:$0xf] }
 0x405   : > { %21178 = vmatprep.mubr.bf16.mxu1 %v22907_v45  ;;  %v26257_v2 = vcombine.low %v15014_v49, %v15024_v62  ;;  %v11065_v33 = vrot.slane %v11064_v20, 4  ;;  %v11083_v44 = vrot.slane %v11081_v1, 5  ;;  %v11087_v38 = vrot.slane %v11085_v11, 4  ;;  %v19328_v23 = vld [vmem:[%s23585_s15 + $0x60] sm:$0xf] }
 0x406   : > { %v11078_v5 = vor.u32 %v11077_v57, %v11074_v52  ;;  %v11091_v25 = vshll.u32 %v19327_v27, 16  ;;  %v15026_v48 = vshrl.u32 %v14788_v42, 16  ;;  %v11060_v47 = vsel %vm23612_vm2, %v11055_v35, %v11059_v39  ;;  %v14793_v39 = vld [vmem:[#allocation2 + $0x8c] sm:$0x1]  ;;  %v19329_v52 = vld [vmem:[%s23585_s15 + $0x64] sm:$0xf] }
 0x407   : > { %v11070_v51 = vsel %vm23612_vm2, %v11065_v33, %v11069_v56  ;;  %v15029_v31 = vshll.u32 %v14788_v42, 16  ;;  %v15035_v6 = vshll.u32 %v14789_v30, 16  ;;  %v11088_v54 = vor.u32 %v11087_v38, %v11083_v44  ;;  %v19331_v38 = vld [vmem:[%s23585_s15 + $0x6c] sm:$0xf] }
 0x408   : > { %v26264_v24 = vcombine.low %v11060_v47, %v11070_v51  ;;  %v11079_v63 = vrot.slane %v11078_v5, 4  ;;  %v11093_v40 = vrot.slane %v11091_v25, 5  ;;  %v15028_v34 = vrot.slane %v15026_v48, 4  ;;  %v22914_v25 = vld [vmem:[%s23585_s15 + $0xb4] sm:$0xff]  }
 0x409   : > { %v15031_v45 = vrot.slane %v15029_v31, 5  ;;  %v15037_v37 = vrot.slane %v15035_v6, 5  ;;  %v15039_v10 = vshrl.u32 %v14789_v30, 16  ;;  %v11089_v41 = vrot.slane %v11088_v54, 4  ;;  %v22918_v6 = vld [vmem:[%s23585_s15 + $0xc0] sm:$0xff]  }
 0x40a   : > { %v11084_v9 = vsel %vm23612_vm2, %v11079_v63, %v11083_v44  ;;  %v15045_v15 = vshll.u32 %v14790_v7, 16  ;;  %v15050_v53 = vshrl.u32 %v14791_v0, 16  ;;  %v15053_v16 = vshll.u32 %v14791_v0, 16 }
 0x40b   : > { %21475 = vmatmul.mubr.bf16.gmra.mrb[60].mxu0 %v22910_v59  ;;  %v15032_v21 = vor.u32 %v15031_v45, %v15028_v34  ;;  %v15041_v27 = vrot.slane %v15039_v10, 4  ;;  %v15059_v49 = vshll.u32 %v14792_v18, 16  ;;  %v11094_v8 = vsel %vm23612_vm2, %v11089_v41, %v11093_v40  ;;  %v19332_v40 = vld [vmem:[%s23585_s15 + $0x70] sm:$0xf] }
 0x40c   : > { %21179 = vmatmul.mubr.bf16.gmra.mrb[52].mxu1 %v22908_v19  ;;  %21494 = vmatprep.mubr.bf16.mxu0 %v26134_v17  ;;  %v15047_v32 = vrot.slane %v15045_v15, 5  ;;  %v15052_v14 = vrot.slane %v15050_v53, 4  ;;  %v15063_v20 = vshrl.u32 %v14792_v18, 16  ;;  %v26273_v56 = vcombine.low %v11084_v9, %v11094_v8  ;;  %v19330_v17 = vld [vmem:[%s23585_s15 + $0x68] sm:$0x1] }
 0x40d   : > { %21182 = vmatprep.mubr.bf16.mxu1 %v22913_v55  ;;  %v15033_v1 = vrot.slane %v15032_v21, 4  ;;  %v15042_v42 = vor.u32 %v15041_v27, %v15037_v37  ;;  %v15055_v62 = vrot.slane %v15053_v16, 5  ;;  %v15061_v57 = vrot.slane %v15059_v49, 5  ;;  %v22921_v18 = vld [vmem:[#allocation10 + $0x148] sm:$0xff]  }
 0x40e   : > { %v15065_v11 = vrot.slane %v15063_v20, 4  ;;  %v15069_v30 = vshll.u32 %v14793_v39, 16  ;;  %v11096_v35 = vshrl.u32 %v19328_v23, 16  ;;  %v11099_v5 = vshll.u32 %v19328_v23, 16  ;;  %v14794_v39 = vld [vmem:[#allocation2 + $0x90] sm:$0xf] }
 0x40f   : > { %v15038_v33 = vsel %vm23612_vm2, %v15033_v1, %v15037_v37  ;;  %v15043_v44 = vrot.slane %v15042_v42, 4  ;;  %v15056_v7 = vor.u32 %v15055_v62, %v15052_v14  ;;  %v11105_v31 = vshll.u32 %v19329_v52, 16  ;;  %v19333_v37 = vld [vmem:[%s23585_s15 + $0x74] sm:$0x1]  ;;  %v22923_v14 = vld [vmem:[#allocation10 + $0x150] sm:$0xff]  }
 0x410   : > { %v15066_v48 = vor.u32 %v15065_v11, %v15061_v57  ;;  %v15071_v47 = vrot.slane %v15069_v30, 5  ;;  %v11098_v51 = vrot.slane %v11096_v35, 4  ;;  %v11101_v63 = vrot.slane %v11099_v5, 5  ;;  %v22919_v30 = vld [vmem:[%s23585_s15 + $0xcc] sm:$0xff]  }
 0x411   : > { %v15048_v0 = vsel %vm23612_vm2, %v15043_v44, %v15047_v32  ;;  %v15057_v19 = vrot.slane %v15056_v7, 4  ;;  %v11109_v54 = vshrl.u32 %v19329_v52, 16  ;;  %v11107_v34 = vrot.slane %v11105_v31, 5  ;;  %v14795_v32 = vld [vmem:[#allocation2 + $0x94] sm:$0xf]  ;;  %v22924_v5 = vld [vmem:[#allocation10 + $0x158] sm:$0xff]  }
 0x412   : > { %v26285_v59 = vcombine.low %v15038_v33, %v15048_v0  ;;  %v15067_v55 = vrot.slane %v15066_v48, 4  ;;  %v11115_v45 = vshll.u32 %v19330_v17, 16  ;;  %v11102_v9 = vor.u32 %v11101_v63, %v11098_v51  ;;  %v14797_v7 = vld [vmem:[#allocation2 + $0x9c] sm:$0xf]  ;;  %v14798_v51 = vld [vmem:[#allocation2 + $0xa0] sm:$0xf] }
 0x413   : > { %21495 = vmatmul.mubr.bf16.vlgmr.msra.gmra.mrb[32].mxu0 %v26144_v13  ;;  %v15062_v10 = vsel %vm23612_vm2, %v15057_v19, %v15061_v57  ;;  %v11111_v41 = vrot.slane %v11109_v54, 4  ;;  %v11120_v15 = vshrl.u32 %v19331_v38, 16  ;;  %v11123_v27 = vshll.u32 %v19331_v38, 16  ;;  %v14796_v57 = vld [vmem:[#allocation2 + $0x98] sm:$0x1] }
 0x414   : > { %21183 = vmatmul.mubr.bf16.gmra.mrb[56].mxu1 %v22914_v25  ;;  %21498 = vmatprep.mubr.bf16.mxu0 %v26153_v29  ;;  %v15072_v53 = vsel %vm23612_vm2, %v15067_v55, %v15071_v47  ;;  %v11117_v21 = vrot.slane %v11115_v45, 5  ;;  %v11129_v16 = vshll.u32 %v19332_v40, 16  ;;  %v11103_v49 = vrot.slane %v11102_v9, 4  ;;  %v19334_v9 = vld [vmem:[%s23585_s15 + $0x78] sm:$0xf] }
 0x415   : > { %21527 = vmatpush3.bf16.msra.mxu0 %v26204_v12  ;;  %21186 = vmatprep.mubr.bf16.mxu1 %v22918_v6  ;;  %v26295_v13 = vcombine.low %v15062_v10, %v15072_v53  ;;  %v11112_v23 = vor.u32 %v11111_v41, %v11107_v34  ;;  %v11122_v8 = vrot.slane %v11120_v15, 4  ;;  %v11125_v20 = vrot.slane %v11123_v27, 5  ;;  %v19335_v53 = vld [vmem:[%s23585_s15 + $0x7c] sm:$0xf] }
 0x416   : > { %21528 = vmatprep.subr.bf16.mxu0 %v22921_v18  ;;  %v11131_v29 = vrot.slane %v11129_v16, 5  ;;  %v11133_v1 = vshrl.u32 %v19332_v40, 16  ;;  %v11139_v42 = vshll.u32 %v19333_v37, 16  ;;  %v11108_v62 = vsel %vm23612_vm2, %v11103_v49, %v11107_v34 }
 0x417   : > { %v11113_v52 = vrot.slane %v11112_v23, 4  ;;  %v15074_v12 = vshrl.u32 %v14794_v39, 16  ;;  %v15077_v11 = vshll.u32 %v14794_v39, 16  ;;  %v11126_v17 = vor.u32 %v11125_v20, %v11122_v8 }
 0x418   : > { %v11135_v35 = vrot.slane %v11133_v1, 4  ;;  %v11141_v33 = vrot.slane %v11139_v42, 5  ;;  %v15083_v44 = vshll.u32 %v14795_v32, 16  ;;  %v15087_v47 = vshrl.u32 %v14795_v32, 16 }
 0x419   : > { %21529 = vmatpush3.bf16.msra.mxu0 %v22921_v18  ;;  %v11118_v38 = vsel %vm23612_vm2, %v11113_v52, %v11117_v21  ;;  %v15076_v25 = vrot.slane %v15074_v12, 4  ;;  %v15079_v48 = vrot.slane %v15077_v11, 5  ;;  %v11127_v6 = vrot.slane %v11126_v17, 4  ;;  %v14799_v18 = vld [vmem:[#allocation2 + $0xa4] sm:$0x1]  ;;  %v22925_v21 = vld [vmem:[#allocation10 + $0x160] sm:$0xff]  }
 0x41a   : > { %21530 = vmatprep.subr.bf16.mxu0 %v22923_v14  ;;  %v26302_v31 = vcombine.low %v11108_v62, %v11118_v38  ;;  %v11136_v0 = vor.u32 %v11135_v35, %v11131_v29  ;;  %v15085_v19 = vrot.slane %v15083_v44, 5  ;;  %v15089_v54 = vrot.slane %v15087_v47, 4  ;;  %v19337_v62 = vld [vmem:[%s23585_s15 + $0x84] sm:$0xf]  ;;  %v19338_v17 = vld [vmem:[%s23585_s15 + $0x88] sm:$0xf] }
 0x41b   : > { %21499 = vmatmul.mubr.bf16.gmra.mrb[36].mxu0 %v26166_v28  ;;  %v15080_v63 = vor.u32 %v15079_v48, %v15076_v25  ;;  %v15093_v40 = vshll.u32 %v14796_v57, 16  ;;  %v15098_v55 = vshrl.u32 %v14797_v7, 16  ;;  %v11132_v34 = vsel %vm23612_vm2, %v11127_v6, %v11131_v29  ;;  %v22926_v57 = vld [vmem:[#allocation10 + $0x168] sm:$0xff]  }
 0x41c   : > { %21187 = vmatmul.mubr.bf16.gmra.mrb[60].mxu1 %v22919_v30  ;;  %21502 = vmatprep.mubr.bf16.mxu0 %v26179_v46  ;;  %v11137_v45 = vrot.slane %v11136_v0, 4  ;;  %v15101_v37 = vshll.u32 %v14797_v7, 16  ;;  %v15107_v10 = vshll.u32 %v14798_v51, 16  ;;  %v15090_v41 = vor.u32 %v15089_v54, %v15085_v19  ;;  %v22929_v47 = vld [vmem:[#allocation13 + $0x208] sm:$0xff]  }
 0x41d   : > { %21206 = vmatprep.mubr.bf16.mxu1 %v26190_v22  ;;  %21531 = vmatpush3.bf16.msra.mxu0 %v22923_v14  ;;  %v15081_v28 = vrot.slane %v15080_v63, 4  ;;  %v15095_v15 = vrot.slane %v15093_v40, 5  ;;  %v15100_v39 = vrot.slane %v15098_v55, 4  ;;  %v15111_v49 = vshrl.u32 %v14798_v51, 16  ;;  %v19336_v14 = vld [vmem:[%s23585_s15 + $0x80] sm:$0x1] }
 0x41e   : > { %21532 = vmatprep.subr.bf16.mxu0 %v22924_v5  ;;  %v11142_v46 = vsel %vm23612_vm2, %v11137_v45, %v11141_v33  ;;  %v15103_v27 = vrot.slane %v15101_v37, 5  ;;  %v15109_v16 = vrot.slane %v15107_v10, 5  ;;  %v15091_v8 = vrot.slane %v15090_v41, 4  ;;  %v19339_v40 = vld [vmem:[%s23585_s15 + $0x8c] sm:$0x1] }
 0x41f   : > { %v26313_v23 = vcombine.low %v11132_v34, %v11142_v46  ;;  %v15086_v22 = vsel %vm23612_vm2, %v15081_v28, %v15085_v19  ;;  %v15117_v32 = vshll.u32 %v14799_v18, 16  ;;  %v15113_v29 = vrot.slane %v15111_v49, 4  ;;  %v14800_v55 = vld [vmem:[#allocation2 + $0xa8] sm:$0xf]  ;;  %v14801_v37 = vld [vmem:[#allocation2 + $0xac] sm:$0xf] }
 0x420   : > { %v15104_v20 = vor.u32 %v15103_v27, %v15100_v39  ;;  %v11144_v1 = vshrl.u32 %v19334_v9, 16  ;;  %v11147_v42 = vshll.u32 %v19334_v9, 16  ;;  %v15096_v52 = vsel %vm23612_vm2, %v15091_v8, %v15095_v15  ;;  %v22928_v10 = vld [vmem:[#allocation10 + $0x170] sm:$0xff]   ;;  %v14802_v15 = vld [vmem:[#allocation2 + $0xb0] sm:$0x1] }
 0x421   : > { %21533 = vmatpush3.bf16.msra.mxu0 %v22924_v5  ;;  %v15119_v12 = vrot.slane %v15117_v32, 5  ;;  %v11153_v11 = vshll.u32 %v19335_v53, 16  ;;  %v11157_v30 = vshrl.u32 %v19335_v53, 16  ;;  %v26322_v35 = vcombine.low %v15086_v22, %v15096_v52  ;;  %v22930_v39 = vld [vmem:[#allocation13 + $0x210] sm:$0xff]   ;;  %v14803_v8 = vld [vmem:[#allocation2 + $0xb4] sm:$0xf] }
 0x422   : > { %21534 = vmatprep.subr.bf16.mxu0 %v22925_v21  ;;  %v15105_v33 = vrot.slane %v15104_v20, 4  ;;  %v15114_v44 = vor.u32 %v15113_v29, %v15109_v16  ;;  %v11146_v7 = vrot.slane %v11144_v1, 4  ;;  %v11149_v38 = vrot.slane %v11147_v42, 5  ;;  %v14804_v1 = vld [vmem:[#allocation2 + $0xb8] sm:$0xf]  ;;  %v22931_v42 = vld [vmem:[#allocation10 + $0x178] sm:$0xff]  }
 0x423   : > { %21503 = vmatmul.mubr.bf16.gmra.mrb[40].mxu0 %v26211_v60  ;;  %v11155_v25 = vrot.slane %v11153_v11, 5  ;;  %v11159_v5 = vrot.slane %v11157_v30, 4  ;;  %v11163_v48 = vshll.u32 %v19336_v14, 16  ;;  %v11168_v0 = vshrl.u32 %v19337_v62, 16  ;;  %v14805_v30 = vld [vmem:[#allocation2 + $0xbc] sm:$0x1] }
 0x424   : > { %21207 = vmatmul.mubr.bf16.vlgmr.msra.gmra.mrb[32].mxu1 %v26199_v43  ;;  %21506 = vmatprep.mubr.bf16.mxu0 %v26220_v4  ;;  %v15110_v51 = vsel %vm23612_vm2, %v15105_v33, %v15109_v16  ;;  %v15115_v6 = vrot.slane %v15114_v44, 4  ;;  %v11171_v19 = vshll.u32 %v19337_v62, 16  ;;  %v11150_v60 = vor.u32 %v11149_v38, %v11146_v7  ;;  %v22932_v62 = vld [vmem:[#allocation13 + $0x218] sm:$0xff]  }
 0x425   : > { %21210 = vmatprep.mubr.bf16.mxu1 %v26227_v26  ;;  %21535 = vmatpush3.bf16.msra.mxu0 %v22925_v21  ;;  %v11160_v63 = vor.u32 %v11159_v5, %v11155_v25  ;;  %v11165_v54 = vrot.slane %v11163_v48, 5  ;;  %v11177_v18 = vshll.u32 %v19338_v17, 16  ;;  %v11170_v4 = vrot.slane %v11168_v0, 4  ;;  %v19340_v48 = vld [vmem:[%s23585_s15 + $0x90] sm:$0xf] }
 0x426   : > { %21536 = vmatprep.subr.bf16.mxu0 %v22926_v57  ;;  %v15120_v43 = vsel %vm23612_vm2, %v15115_v6, %v15119_v12  ;;  %v11173_v34 = vrot.slane %v11171_v19, 5  ;;  %v11181_v45 = vshrl.u32 %v19338_v17, 16  ;;  %21239 = vmatpush3.bf16.msra.mxu1 %v26244_v50  ;;  %v11151_v26 = vrot.slane %v11150_v60, 4  ;;  %v22933_v6 = vld [vmem:[#allocation13 + $0x220] sm:$0xff]  }
 0x427   : > { %v26334_v9 = vcombine.low %v15110_v51, %v15120_v43  ;;  %v11161_v28 = vrot.slane %v11160_v63, 4  ;;  %v11179_v41 = vrot.slane %v11177_v18, 5  ;;  %21240 = vmatprep.subr.bf16.mxu1 %v22929_v47  ;;  %v11187_v46 = vshll.u32 %v19339_v40, 16  ;;  %v26351_v0 = vld [vmem:[#allocation10 + $0x180] sm:$0xff]  }
 0x428   : > { %v11174_v53 = vor.u32 %v11173_v34, %v11170_v4  ;;  %v11183_v21 = vrot.slane %v11181_v45, 4  ;;  %v15122_v27 = vshrl.u32 %v14800_v55, 16  ;;  %v11156_v16 = vsel %vm23612_vm2, %v11151_v26, %v11155_v25 }
 0x429   : > { %21537 = vmatpush3.bf16.msra.mxu0 %v22926_v57  ;;  %v11166_v49 = vsel %vm23612_vm2, %v11161_v28, %v11165_v54  ;;  %v15125_v50 = vshll.u32 %v14800_v55, 16  ;;  %v15131_v22 = vshll.u32 %v14801_v37, 16  ;;  %v11189_v29 = vrot.slane %v11187_v46, 5  ;;  %v19341_v54 = vld [vmem:[%s23585_s15 + $0x94] sm:$0xf] }
 0x42a   : > { %v26340_v32 = vcombine.low %v11156_v16, %v11166_v49  ;;  %v11175_v14 = vrot.slane %v11174_v53, 4  ;;  %v11184_v20 = vor.u32 %v11183_v21, %v11179_v41  ;;  %21538 = vmatprep.subr.bf16.mxu0 %v22928_v10  ;;  %21241 = vmatpush3.bf16.msra.mxu1 %v22929_v47  ;;  %v15124_v52 = vrot.slane %v15122_v27, 4  ;;  %v19344_v16 = vld [vmem:[%s23585_s15 + $0xa0] sm:$0xf] }
 0x42b   : > { %21507 = vmatmul.mubr.bf16.gmra.mrb[44].mxu0 %v26248_v3  ;;  %v15127_v57 = vrot.slane %v15125_v50, 5  ;;  %v15133_v12 = vrot.slane %v15131_v22, 5  ;;  %v15135_v11 = vshrl.u32 %v14801_v37, 16  ;;  %21242 = vmatprep.subr.bf16.mxu1 %v22930_v39  ;;  %v15141_v44 = vshll.u32 %v14802_v15, 16  ;;  %v19342_v37 = vld [vmem:[%s23585_s15 + $0x98] sm:$0x1] }
 0x42c   : > { %21211 = vmatmul.mubr.bf16.gmra.mrb[36].mxu1 %v26236_v58  ;;  %21510 = vmatprep.mubr.bf16.mxu0 %v26257_v2  ;;  %v11180_v17 = vsel %vm23612_vm2, %v11175_v14, %v11179_v41  ;;  %v11185_v33 = vrot.slane %v11184_v20, 4  ;;  %v15146_v7 = vshrl.u32 %v14803_v8, 16  ;;  %v15149_v25 = vshll.u32 %v14803_v8, 16  ;;  %v22935_v49 = vld [vmem:[#allocation13 + $0x228] sm:$0xff]  }
 0x42d   : > { %21214 = vmatprep.mubr.bf16.mxu1 %v26264_v24  ;;  %v15128_v3 = vor.u32 %v15127_v57, %v15124_v52  ;;  %v15137_v38 = vrot.slane %v15135_v11, 4  ;;  %v15155_v5 = vshll.u32 %v14804_v1, 16  ;;  %21539 = vmatpush3.bf16.msra.mxu0 %v22928_v10  ;;  %v15143_v47 = vrot.slane %v15141_v44, 5  ;;  %v14806_v57 = vld [vmem:[#allocation2 + $0xc0] sm:$0xf] }
 0x42e   : > { %v11190_v58 = vsel %vm23612_vm2, %v11185_v33, %v11189_v29  ;;  %v15148_v2 = vrot.slane %v15146_v7, 4  ;;  %v15159_v51 = vshrl.u32 %v14804_v1, 16  ;;  %21540 = vmatprep.subr.bf16.mxu0 %v22931_v42  ;;  %21243 = vmatpush3.bf16.msra.mxu1 %v22930_v39  ;;  %v15151_v63 = vrot.slane %v15149_v25, 5  ;;  %v19343_v39 = vld [vmem:[%s23585_s15 + $0x9c] sm:$0xf] }
 0x42f   : > { %v26353_v24 = vcombine.low %v11180_v17, %v11190_v58  ;;  %v15129_v19 = vrot.slane %v15128_v3, 4  ;;  %v15138_v60 = vor.u32 %v15137_v38, %v15133_v12  ;;  %21244 = vmatprep.subr.bf16.mxu1 %v22932_v62  ;;  %v15157_v40 = vrot.slane %v15155_v5, 5  ;;  %v19345_v1 = vld [vmem:[%s23585_s15 + $0xa4] sm:$0x1]  ;;  %v14807_v33 = vld [vmem:[#allocation2 + $0xc4] sm:$0xf] }
 0x430   : > { %v15161_v18 = vrot.slane %v15159_v51, 4  ;;  %v15165_v55 = vshll.u32 %v14805_v30, 16  ;;  %v11192_v43 = vshrl.u32 %v19340_v48, 16  ;;  %v15152_v45 = vor.u32 %v15151_v63, %v15148_v2  ;;  %v14808_v25 = vld [vmem:[#allocation2 + $0xc8] sm:$0x1] }
 0x431   : > { %v15134_v4 = vsel %vm23612_vm2, %v15129_v19, %v15133_v12  ;;  %v15139_v34 = vrot.slane %v15138_v60, 4  ;;  %v11195_v10 = vshll.u32 %v19340_v48, 16  ;;  %21541 = vmatpush3.bf16.msra.mxu0 %v22931_v42  ;;  %v11201_v15 = vshll.u32 %v19341_v54, 16  ;;  %v22936_v12 = vld [vmem:[#allocation13 + $0x230] sm:$0xff]   ;;  %v15579_v2 = vld [vmem:[#allocation2 + $0xc] sm:$0xe] }
 0x432   : > { %v15162_v26 = vor.u32 %v15161_v18, %v15157_v40  ;;  %v15167_v28 = vrot.slane %v15165_v55, 5  ;;  %v11194_v41 = vrot.slane %v11192_v43, 4  ;;  %21245 = vmatpush3.bf16.msra.mxu1 %v22932_v62  ;;  %21574 = vmatprep.subr.bf16.mxu0 %v26351_v0  ;;  %v15153_v21 = vrot.slane %v15152_v45, 4  ;;  %v15580_v63 = vld [vmem:[#allocation2 + $0x10] sm:$0xf] }
 0x433   : > { %21511 = vmatmul.mubr.bf16.gmra.mrb[48].mxu0 %v26285_v59  ;;  %v15144_v53 = vsel %vm23612_vm2, %v15139_v34, %v15143_v47  ;;  %v11197_v46 = vrot.slane %v11195_v10, 5  ;;  %v11205_v27 = vshrl.u32 %v19341_v54, 16  ;;  %21246 = vmatprep.subr.bf16.mxu1 %v22933_v6  ;;  %v11203_v8 = vrot.slane %v11201_v15, 5  ;;  %v15581_v43 = vld [vmem:[#allocation2 + $0x14] sm:$0x1] }
 0x434   : > { %21215 = vmatmul.mubr.bf16.gmra.mrb[40].mxu1 %v26273_v56  ;;  %21514 = vmatprep.mubr.bf16.mxu0 %v26295_v13  ;;  %v26367_v50 = vcombine.low %v15134_v4, %v15144_v53  ;;  %v15163_v22 = vrot.slane %v15162_v26, 4  ;;  %v11211_v14 = vshll.u32 %v19342_v37, 16  ;;  %v15158_v59 = vsel %vm23612_vm2, %v15153_v21, %v15157_v40  ;;  %v22938_v4 = vld [vmem:[#allocation13 + $0x238] sm:$0xff]   ;;  %v19346_v26 = vld [vmem:[%s23585_s15 + $0xa8] sm:$0xf] }
 0x435   : > { %21218 = vmatprep.mubr.bf16.mxu1 %v26302_v31  ;;  %v11198_v20 = vor.u32 %v11197_v46, %v11194_v41  ;;  %v11207_v29 = vrot.slane %v11205_v27, 4  ;;  %v11216_v42 = vshrl.u32 %v19343_v39, 16  ;;  %v11219_v52 = vshll.u32 %v19343_v39, 16 }
 0x436   : > { %v15168_v62 = vsel %vm23612_vm2, %v15163_v22, %v15167_v28  ;;  %v11213_v56 = vrot.slane %v11211_v14, 5  ;;  %v11225_v13 = vshll.u32 %v19344_v16, 16  ;;  %21247 = vmatpush3.bf16.msra.mxu1 %v22933_v6  ;;  %v11229_v3 = vshrl.u32 %v19344_v16, 16  ;;  %v19347_v16 = vld [vmem:[%s23585_s15 + $0xac] sm:$0xf] }
 0x437   : > { %v26375_v11 = vcombine.low %v15158_v59, %v15168_v62  ;;  %v11199_v30 = vrot.slane %v11198_v20, 4  ;;  %v11208_v31 = vor.u32 %v11207_v29, %v11203_v8  ;;  %v11218_v17 = vrot.slane %v11216_v42, 4  ;;  %21248 = vmatprep.subr.bf16.mxu1 %v22935_v49  ;;  %v19348_v14 = vld [vmem:[%s23585_s15 + $0xb0] sm:$0x1]  ;;  %v19349_v20 = vld [vmem:[%s23585_s15 + $0xb4] sm:$0xf] }
 0x438   : > { %v11221_v44 = vrot.slane %v11219_v52, 5  ;;  %v11227_v7 = vrot.slane %v11225_v13, 5  ;;  %v11235_v38 = vshll.u32 %v19345_v1, 16  ;;  %v15170_v58 = vshrl.u32 %v14806_v57, 16 }
 0x439   : > { %v11204_v5 = vsel %vm23612_vm2, %v11199_v30, %v11203_v8  ;;  %v11209_v48 = vrot.slane %v11208_v31, 4  ;;  %v15173_v47 = vshll.u32 %v14806_v57, 16  ;;  %v11231_v6 = vrot.slane %v11229_v3, 4 }
 0x43a   : > { %v11222_v51 = vor.u32 %v11221_v44, %v11218_v17  ;;  %v11237_v19 = vrot.slane %v11235_v38, 5  ;;  %v15179_v60 = vshll.u32 %v14807_v33, 16  ;;  %21249 = vmatpush3.bf16.msra.mxu1 %v22935_v49  ;;  %v15172_v40 = vrot.slane %v15170_v58, 4 }
 0x43b   : > { %21515 = vmatmul.mubr.bf16.gmra.mrb[52].mxu0 %v26322_v35  ;;  %v11214_v54 = vsel %vm23612_vm2, %v11209_v48, %v11213_v56  ;;  %v15175_v18 = vrot.slane %v15173_v47, 5  ;;  %v15183_v55 = vshrl.u32 %v14807_v33, 16  ;;  %21250 = vmatprep.subr.bf16.mxu1 %v22936_v12  ;;  %v11232_v37 = vor.u32 %v11231_v6, %v11227_v7  ;;  %v19350_v56 = vld [vmem:[%s23585_s15 + $0xb8] sm:$0xf]  ;;  %v19351_v33 = vld [vmem:[%s23585_s15 + $0xbc] sm:$0x1] }
 0x43c   : > { %21219 = vmatmul.mubr.bf16.gmra.mrb[44].mxu1 %v26313_v23  ;;  %21518 = vmatprep.mubr.bf16.mxu0 %v26334_v9  ;;  %v19368_v34 = vcombine.low %v11204_v5, %v11214_v54  ;;  %v11223_v45 = vrot.slane %v11222_v51, 4  ;;  %v15181_v10 = vrot.slane %v15179_v60, 5  ;;  %v15189_v41 = vshll.u32 %v14808_v25, 16  ;;  %v15582_v5 = vld [vmem:[#allocation2 + $0x18] sm:$0xe] }
 0x43d   : > { %21222 = vmatprep.mubr.bf16.mxu1 %v26340_v32  ;;  %v15176_v35 = vor.u32 %v15175_v18, %v15172_v40  ;;  %v15185_v28 = vrot.slane %v15183_v55, 4  ;;  %v19607_v15 = vrot.slane %v15579_v2, 9  ;;  %v11233_v23 = vrot.slane %v11232_v37, 4  ;;  %v15583_v48 = vld [vmem:[#allocation2 + $0x1c] sm:$0xf] }
 0x43e   : > { %v11228_v39 = vsel %vm23612_vm2, %v11223_v45, %v11227_v7  ;;  %v15677_v53 = vrot.slane %v15580_v63, 5  ;;  %v15680_v9 = vrot.slane %v15581_v43, 5  ;;  %21251 = vmatpush3.bf16.msra.mxu1 %v22936_v12  ;;  %v15191_v27 = vrot.slane %v15189_v41, 5  ;;  %v15584_v51 = vld [vmem:[#allocation2 + $0x20] sm:$0x1] }
 0x43f   : > { %v15177_v21 = vrot.slane %v15176_v35, 4  ;;  %v15186_v46 = vor.u32 %v15185_v28, %v15181_v10  ;;  %v11240_v49 = vshrl.u32 %v19346_v26, 16  ;;  %21252 = vmatprep.subr.bf16.mxu1 %v22938_v4  ;;  %v11238_v32 = vsel %vm23612_vm2, %v11233_v23, %v11237_v19  ;;  %v15585_v54 = vld [vmem:[#allocation2 + $0x24] sm:$0xe]  ;;  %v15586_v55 = vld [vmem:[#allocation2 + $0x28] sm:$0xf] }
 0x440   : > { %v26393_v22 = vsel %vm23669_vm5, %v19607_v15, %v15677_v53  ;;  %v15679_v8 = vrot.slane %v15677_v53, 4  ;;  %v11243_v59 = vshll.u32 %v19346_v26, 16  ;;  %v19369_v29 = vcombine.low %v11228_v39, %v11238_v32  ;;  %v15587_v37 = vld [vmem:[#allocation2 + $0x2c] sm:$0x1]  ;;  %v19352_v53 = vld [vmem:[%s23585_s15 + $0xc0] sm:$0xf] }
 0x441   : > { %v15182_v1 = vsel %vm23612_vm2, %v15177_v21, %v15181_v10  ;;  %v15187_v42 = vrot.slane %v15186_v46, 4  ;;  %v11242_v62 = vrot.slane %v11240_v49, 4  ;;  %v11249_v57 = vshll.u32 %v19347_v16, 16  ;;  %v19354_v49 = vld [vmem:[%s23585_s15 + $0xc8] sm:$0x1] }
 0x442   : > { %v15681_v52 = vsel %vm23669_vm5, %v15679_v8, %v15680_v9  ;;  %v11245_v13 = vrot.slane %v11243_v59, 5  ;;  %v11253_v12 = vshrl.u32 %v19347_v16, 16  ;;  %21253 = vmatpush3.bf16.msra.mxu1 %v22938_v4  ;;  %v11259_v17 = vshll.u32 %v19348_v14, 16  ;;  %v19353_v9 = vld [vmem:[%s23585_s15 + $0xc4] sm:$0xf] }
 0x443   : > { %21519 = vmatmul.mubr.bf16.gmra.mrb[56].mxu0 %v26367_v50  ;;  %v15192_v30 = vsel %vm23612_vm2, %v15187_v42, %v15191_v27  ;;  %v19623_v31 = vcombine.low %v26393_v22, %v15681_v52  ;;  %v11264_v44 = vshrl.u32 %v19349_v20, 16  ;;  %v11251_v38 = vrot.slane %v11249_v57, 5  ;;  %v19355_v59 = vld [vmem:[%s23585_s15 + $0xcc] sm:$0xf] }
 0x444   : > { %21223 = vmatmul.mubr.bf16.gmra.mrb[48].mxu1 %v26353_v24  ;;  %21522 = vmatprep.mubr.bf16.mxu0 %v26375_v11  ;;  %v19598_v7 = vcombine.low %v15182_v1, %v15192_v30  ;;  %v11246_v3 = vor.u32 %v11245_v13, %v11242_v62  ;;  %v11255_v25 = vrot.slane %v11253_v12, 4  ;;  %v11261_v50 = vrot.slane %v11259_v17, 5  ;;  %v19357_v12 = vld [vmem:[%s23585_s15 + $0xd4] sm:$0x1]  ;;  %v15588_v30 = vld [vmem:[#allocation2 + $0x30] sm:$0xe] }
 0x445   : > { %21226 = vmatprep.mubr.bf16.mxu1 %v19368_v34  ;;  %v11266_v58 = vrot.slane %v11264_v44, 4  ;;  %v11267_v47 = vshll.u32 %v19349_v20, 16  ;;  %v11273_v2 = vshll.u32 %v19350_v56, 16  ;;  %v11277_v60 = vshrl.u32 %v19350_v56, 16  ;;  %v19356_v56 = vld [vmem:[%s23585_s15 + $0xd0] sm:$0xf] }
 0x446   : > { %v11247_v6 = vrot.slane %v11246_v3, 4  ;;  %v11256_v19 = vor.u32 %v11255_v25, %v11251_v38  ;;  %v11283_v63 = vshll.u32 %v19351_v33, 16  ;;  %v19608_v11 = vrot.slane %v15582_v5, 9  ;;  %v15590_v3 = vld [vmem:[#allocation2 + $0x38] sm:$0x1] }
 0x447   : > { %v11269_v24 = vrot.slane %v11267_v47, 5  ;;  %v11275_v40 = vrot.slane %v11273_v2, 5  ;;  %v15684_v18 = vrot.slane %v15583_v48, 5  ;;  %v11279_v34 = vrot.slane %v11277_v60, 4 }
 0x448   : > { %v11252_v43 = vsel %vm23612_vm2, %v11247_v6, %v11251_v38  ;;  %v11257_v4 = vrot.slane %v11256_v19, 4  ;;  %v11285_v45 = vrot.slane %v11283_v63, 5  ;;  %v15687_v28 = vrot.slane %v15584_v51, 5  ;;  %v15592_v6 = vld [vmem:[#allocation2 + $0x40] sm:$0xf] }
 0x449   : > { %v11270_v10 = vor.u32 %v11269_v24, %v11266_v58  ;;  %v15685_v26 = vsel %vm23669_vm5, %v19608_v11, %v15684_v18  ;;  %v15686_v35 = vrot.slane %v15684_v18, 4  ;;  %v11280_v15 = vor.u32 %v11279_v34, %v11275_v40  ;;  %v22937_v24 = vld [vmem:[#allocation10 + $0x188] sm:$0xff]  }
 0x44a   : > { %v11262_v41 = vsel %vm23612_vm2, %v11257_v4, %v11261_v50  ;;  %v19609_v39 = vrot.slane %v15585_v54, 9  ;;  %v15691_v23 = vrot.slane %v15586_v55, 5  ;;  %v15694_v16 = vrot.slane %v15587_v37, 5  ;;  %v15591_v50 = vld [vmem:[#allocation2 + $0x3c] sm:$0xe] }
 0x44b   : > { %21523 = vmatmul.mubr.bf16.gmra.mrb[60].mxu0 %v19598_v7  ;;  %v19370_v21 = vcombine.low %v11252_v43, %v11262_v41  ;;  %v11271_v46 = vrot.slane %v11270_v10, 4  ;;  %v15688_v27 = vsel %vm23669_vm5, %v15686_v35, %v15687_v28  ;;  %v11281_v32 = vrot.slane %v11280_v15, 4  ;;  %v15589_v7 = vld [vmem:[#allocation2 + $0x34] sm:$0xf]  ;;  %v19382_v4 = vld [vmem:[%s23585_s15 + $0x18] sm:$0xe] }
 0x44c   : > { %21227 = vmatmul.mubr.bf16.gmra.mrb[52].mxu1 %v19369_v29  ;;  %21542 = vmatprep.mubr.bf16.mxu0 %v19623_v31  ;;  %v19624_v22 = vcombine.low %v15685_v26, %v15688_v27  ;;  %v15692_v8 = vsel %vm23669_vm5, %v19609_v39, %v15691_v23  ;;  %v15693_v14 = vrot.slane %v15691_v23, 4  ;;  %v11288_v1 = vshrl.u32 %v19352_v53, 16  ;;  %v19383_v26 = vld [vmem:[%s23585_s15 + $0x1c] sm:$0xf]  ;;  %v19384_v39 = vld [vmem:[%s23585_s15 + $0x20] sm:$0x1] }
 0x44d   : > { %21230 = vmatprep.mubr.bf16.mxu1 %v19370_v21  ;;  %v11276_v20 = vsel %vm23612_vm2, %v11271_v46, %v11275_v40  ;;  %v11291_v42 = vshll.u32 %v19352_v53, 16  ;;  %v11297_v62 = vshll.u32 %v19353_v9, 16  ;;  %v11286_v29 = vsel %vm23612_vm2, %v11281_v32, %v11285_v45  ;;  %v15593_v40 = vld [vmem:[#allocation2 + $0x44] sm:$0x1]  ;;  %v19385_v23 = vld [vmem:[%s23585_s15 + $0x24] sm:$0xe] }
 0x44e   : > { %v15695_v52 = vsel %vm23669_vm5, %v15693_v14, %v15694_v16  ;;  %v11301_v13 = vshrl.u32 %v19353_v9, 16  ;;  %v11307_v57 = vshll.u32 %v19354_v49, 16  ;;  %v19371_v31 = vcombine.low %v11276_v20, %v11286_v29  ;;  %v22939_v53 = vld [vmem:[#allocation10 + $0x190] sm:$0xff]  }
 0x44f   : > { %v19625_v17 = vcombine.low %v15692_v8, %v15695_v52  ;;  %v11290_v33 = vrot.slane %v11288_v1, 4  ;;  %v11293_v44 = vrot.slane %v11291_v42, 5  ;;  %v11299_v38 = vrot.slane %v11297_v62, 5  ;;  %v19387_v8 = vld [vmem:[%s23585_s15 + $0x2c] sm:$0x1] }
 0x450   : > { %v11303_v25 = vrot.slane %v11301_v13, 4  ;;  %v11309_v5 = vrot.slane %v11307_v57, 5  ;;  %v11312_v48 = vshrl.u32 %v19355_v59, 16  ;;  %v11315_v47 = vshll.u32 %v19355_v59, 16  ;;  %v15594_v42 = vld [vmem:[#allocation2 + $0x48] sm:$0xe] }
 0x451   : > { %v11294_v58 = vor.u32 %v11293_v44, %v11290_v33  ;;  %v11321_v2 = vshll.u32 %v19356_v56, 16  ;;  %v11325_v51 = vshrl.u32 %v19356_v56, 16  ;;  %v11331_v63 = vshll.u32 %v19357_v12, 16  ;;  %v15595_v62 = vld [vmem:[#allocation2 + $0x4c] sm:$0xf] }
 0x452   : > { %v11304_v19 = vor.u32 %v11303_v25, %v11299_v38  ;;  %v11314_v60 = vrot.slane %v11312_v48, 4  ;;  %v19610_v54 = vrot.slane %v15588_v30, 9  ;;  %v11317_v18 = vrot.slane %v11315_v47, 5  ;;  %v15596_v57 = vld [vmem:[#allocation2 + $0x50] sm:$0x1]  ;;  %v22940_v30 = vld [vmem:[#allocation10 + $0x198] sm:$0xff]  }
 0x453   : > { %21543 = vmatmul.mubr.bf16.vlgmr.msra.gmra.mrb[32].mxu0 %v19624_v22  ;;  %v11295_v11 = vrot.slane %v11294_v58, 4  ;;  %v11323_v55 = vrot.slane %v11321_v2, 5  ;;  %v11327_v43 = vrot.slane %v11325_v51, 4  ;;  %v11333_v45 = vrot.slane %v11331_v63, 5  ;;  %v15597_v12 = vld [vmem:[#allocation2 + $0x54] sm:$0xe] }
 0x454   : > { %21231 = vmatmul.mubr.bf16.gmra.mrb[56].mxu1 %v19371_v31  ;;  %21546 = vmatprep.mubr.bf16.mxu0 %v19625_v17  ;;  %v11305_v34 = vrot.slane %v11304_v19, 4  ;;  %v15698_v37 = vrot.slane %v15589_v7, 5  ;;  %v15701_v10 = vrot.slane %v15590_v3, 5  ;;  %v11318_v28 = vor.u32 %v11317_v18, %v11314_v60  ;;  %v15598_v7 = vld [vmem:[#allocation2 + $0x58] sm:$0xf]  ;;  %v22941_v60 = vld [vmem:[#allocation10 + $0x1a0] sm:$0xff]  }
 0x455   : > { %21575 = vmatpush3.bf16.msra.mxu0 %v26351_v0  ;;  %v11300_v35 = vsel %vm23612_vm2, %v11295_v11, %v11299_v38  ;;  %v11328_v41 = vor.u32 %v11327_v43, %v11323_v55  ;;  %v19611_v15 = vrot.slane %v15591_v50, 9  ;;  %v15705_v27 = vrot.slane %v15592_v6, 5  ;;  %v19386_v0 = vld [vmem:[%s23585_s15 + $0x28] sm:$0xf]  ;;  %v15599_v3 = vld [vmem:[#allocation2 + $0x5c] sm:$0x1] }
 0x456   : > { %v11310_v9 = vsel %vm23612_vm2, %v11305_v34, %v11309_v5  ;;  %v15699_v21 = vsel %vm23669_vm5, %v19610_v54, %v15698_v37  ;;  %v15700_v46 = vrot.slane %v15698_v37, 4  ;;  %21576 = vmatprep.subr.bf16.mxu0 %v22937_v24  ;;  %v11319_v49 = vrot.slane %v11318_v28, 4  ;;  %v19388_v50 = vld [vmem:[%s23585_s15 + $0x30] sm:$0xe]  ;;  %v19389_v58 = vld [vmem:[%s23585_s15 + $0x34] sm:$0xf] }
 0x457   : > { %v19372_v16 = vcombine.low %v11300_v35, %v11310_v9  ;;  %v11329_v32 = vrot.slane %v11328_v41, 4  ;;  %v15708_v22 = vrot.slane %v15593_v40, 5  ;;  %v15706_v59 = vsel %vm23669_vm5, %v19611_v15, %v15705_v27  ;;  %v19390_v19 = vld [vmem:[%s23585_s15 + $0x38] sm:$0x1]  ;;  %v19391_v11 = vld [vmem:[%s23585_s15 + $0x3c] sm:$0xe] }
 0x458   : > { %v15702_v14 = vsel %vm23669_vm5, %v15700_v46, %v15701_v10  ;;  %v15707_v20 = vrot.slane %v15705_v27, 4  ;;  %v19430_v1 = vrot.slane %v19382_v4, 9  ;;  %v11324_v56 = vsel %vm23612_vm2, %v11319_v49, %v11323_v55  ;;  %v19392_v18 = vld [vmem:[%s23585_s15 + $0x40] sm:$0xf]  ;;  %v19393_v55 = vld [vmem:[%s23585_s15 + $0x44] sm:$0x1] }
 0x459   : > { %21234 = vmatprep.mubr.bf16.mxu1 %v19372_v16  ;;  %v11334_v29 = vsel %vm23612_vm2, %v11329_v32, %v11333_v45  ;;  %v19626_v52 = vcombine.low %v15699_v21, %v15702_v14  ;;  %21577 = vmatpush3.bf16.msra.mxu0 %v22937_v24  ;;  %v11819_v13 = vrot.slane %v19383_v26, 5  ;;  %v11822_v33 = vrot.slane %v19384_v39, 5  ;;  %v15600_v37 = vld [vmem:[#allocation2 + $0x60] sm:$0xe]  ;;  %v15601_v41 = vld [vmem:[#allocation2 + $0x64] sm:$0xf] }
 0x45a   : > { %v19373_v31 = vcombine.low %v11324_v56, %v11334_v29  ;;  %v15709_v17 = vsel %vm23669_vm5, %v15707_v20, %v15708_v22  ;;  %v19431_v44 = vrot.slane %v19385_v23, 9  ;;  %21578 = vmatprep.subr.bf16.mxu0 %v22939_v53  ;;  %v11826_v48 = vrot.slane %v19386_v0, 5  ;;  %v15602_v9 = vld [vmem:[#allocation2 + $0x68] sm:$0x1]  ;;  %v15603_v21 = vld [vmem:[#allocation2 + $0x6c] sm:$0xe] }
 0x45b   : > { %21547 = vmatmul.mubr.bf16.gmra.mrb[36].mxu0 %v19626_v52  ;;  %v19627_v38 = vcombine.low %v15706_v59, %v15709_v17  ;;  %v11820_v25 = vsel %vm23669_vm5, %v19430_v1, %v11819_v13  ;;  %v11821_v5 = vrot.slane %v11819_v13, 4  ;;  %v11829_v47 = vrot.slane %v19387_v8, 5  ;;  %v15604_v49 = vld [vmem:[#allocation2 + $0x70] sm:$0xf]  ;;  %v15605_v32 = vld [vmem:[#allocation2 + $0x74] sm:$0x1] }
 0x45c   : > { %21235 = vmatmul.mubr.bf16.gmra.mrb[60].mxu1 %v19373_v31  ;;  %v19612_v2 = vrot.slane %v15594_v42, 9  ;;  %v15712_v51 = vrot.slane %v15595_v62, 5  ;;  %v15715_v6 = vrot.slane %v15596_v57, 5  ;;  %v11827_v54 = vsel %vm23669_vm5, %v19431_v44, %v11826_v48  ;;  %v19394_v20 = vld [vmem:[%s23585_s15 + $0x48] sm:$0xe] }
 0x45d   : > { %21550 = vmatprep.mubr.bf16.mxu0 %v19627_v38  ;;  %v11823_v63 = vsel %vm23669_vm5, %v11821_v5, %v11822_v33  ;;  %v11828_v24 = vrot.slane %v11826_v48, 4  ;;  %v19613_v40 = vrot.slane %v15597_v12, 9  ;;  %21579 = vmatpush3.bf16.msra.mxu0 %v22939_v53  ;;  %v15719_v45 = vrot.slane %v15598_v7, 5  ;;  %v22942_v1 = vld [vmem:[#allocation10 + $0x1a8] sm:$0xff]   ;;  %v19395_v52 = vld [vmem:[%s23585_s15 + $0x4c] sm:$0xf] }
 0x45e   : > { %v19446_v43 = vcombine.low %v11820_v25, %v11823_v63  ;;  %v15713_v4 = vsel %vm23669_vm5, %v19612_v2, %v15712_v51  ;;  %v15714_v34 = vrot.slane %v15712_v51, 4  ;;  %21580 = vmatprep.subr.bf16.mxu0 %v22940_v30  ;;  %v15722_v26 = vrot.slane %v15599_v3, 5  ;;  %v19396_v13 = vld [vmem:[%s23585_s15 + $0x50] sm:$0x1]  ;;  %v19397_v17 = vld [vmem:[%s23585_s15 + $0x54] sm:$0xe] }
 0x45f   : > { %v11830_v10 = vsel %vm23669_vm5, %v11828_v24, %v11829_v47  ;;  %v19432_v35 = vrot.slane %v19388_v50, 9  ;;  %v11833_v28 = vrot.slane %v19389_v58, 5  ;;  %v15720_v23 = vsel %vm23669_vm5, %v19613_v40, %v15719_v45  ;;  %v19398_v33 = vld [vmem:[%s23585_s15 + $0x58] sm:$0xf]  ;;  %v19399_v44 = vld [vmem:[%s23585_s15 + $0x5c] sm:$0x1] }
 0x460   : > { %21254 = vmatprep.mubr.bf16.mxu1 %v19446_v43  ;;  %v19447_v15 = vcombine.low %v11827_v54, %v11830_v10  ;;  %v15716_v39 = vsel %vm23669_vm5, %v15714_v34, %v15715_v6  ;;  %v15721_v53 = vrot.slane %v15719_v45, 4  ;;  %v11836_v16 = vrot.slane %v19390_v19, 5  ;;  %v15607_v5 = vld [vmem:[#allocation2 + $0x7c] sm:$0xf]  ;;  %v15606_v2 = vld [vmem:[#allocation2 + $0x78] sm:$0xe] }
 0x461   : > { %v19628_v46 = vcombine.low %v15713_v4, %v15716_v39  ;;  %v11834_v27 = vsel %vm23669_vm5, %v19432_v35, %v11833_v28  ;;  %v11835_v0 = vrot.slane %v11833_v28, 4  ;;  %21581 = vmatpush3.bf16.msra.mxu0 %v22940_v30  ;;  %v19433_v8 = vrot.slane %v19391_v11, 9  ;;  %v22943_v51 = vld [vmem:[#allocation10 + $0x1b0] sm:$0xff]   ;;  %v15610_v43 = vld [vmem:[#allocation2 + $0x88] sm:$0xf] }
 0x462   : > { %v15723_v22 = vsel %vm23669_vm5, %v15721_v53, %v15722_v26  ;;  %v11840_v14 = vrot.slane %v19392_v18, 5  ;;  %v11843_v59 = vrot.slane %v19393_v55, 5  ;;  %21582 = vmatprep.subr.bf16.mxu0 %v22941_v60  ;;  %v19614_v56 = vrot.slane %v15600_v37, 9  ;;  %v15609_v55 = vld [vmem:[#allocation2 + $0x84] sm:$0xe] }
 0x463   : > { %21551 = vmatmul.mubr.bf16.gmra.mrb[40].mxu0 %v19628_v46  ;;  %v19629_v42 = vcombine.low %v15720_v23, %v15723_v22  ;;  %v11837_v62 = vsel %vm23669_vm5, %v11835_v0, %v11836_v16  ;;  %v15726_v29 = vrot.slane %v15601_v41, 5  ;;  %v15729_v31 = vrot.slane %v15602_v9, 5  ;;  %v15611_v10 = vld [vmem:[#allocation2 + $0x8c] sm:$0x1]  ;;  %v19400_v26 = vld [vmem:[%s23585_s15 + $0x60] sm:$0xe] }
 0x464   : > { %21255 = vmatmul.mubr.bf16.vlgmr.msra.gmra.mrb[32].mxu1 %v19447_v15  ;;  %v19448_v57 = vcombine.low %v11834_v27, %v11837_v62  ;;  %v11841_v12 = vsel %vm23669_vm5, %v19433_v8, %v11840_v14  ;;  %v11842_v30 = vrot.slane %v11840_v14, 4  ;;  %v19615_v38 = vrot.slane %v15603_v21, 9  ;;  %v19401_v15 = vld [vmem:[%s23585_s15 + $0x64] sm:$0xf]  ;;  %v19402_v39 = vld [vmem:[%s23585_s15 + $0x68] sm:$0x1] }
 0x465   : > { %21554 = vmatprep.mubr.bf16.mxu0 %v19629_v42  ;;  %v15727_v7 = vsel %vm23669_vm5, %v19614_v56, %v15726_v29  ;;  %v15728_v3 = vrot.slane %v15726_v29, 4  ;;  %v15733_v25 = vrot.slane %v15604_v49, 5  ;;  %21583 = vmatpush3.bf16.msra.mxu0 %v22941_v60  ;;  %v15736_v50 = vrot.slane %v15605_v32, 5  ;;  %v15608_v60 = vld [vmem:[#allocation2 + $0x80] sm:$0x1]  ;;  %v22944_v23 = vld [vmem:[#allocation10 + $0x1b8] sm:$0xff]  }
 0x466   : > { %21258 = vmatprep.mubr.bf16.mxu1 %v19448_v57  ;;  %v11844_v48 = vsel %vm23669_vm5, %v11842_v30, %v11843_v59  ;;  %v19434_v58 = vrot.slane %v19394_v20, 9  ;;  %v11847_v47 = vrot.slane %v19395_v52, 5  ;;  %21584 = vmatprep.subr.bf16.mxu0 %v22942_v1  ;;  %v11850_v18 = vrot.slane %v19396_v13, 5  ;;  %v19403_v46 = vld [vmem:[%s23585_s15 + $0x6c] sm:$0xe]  ;;  %v26512_v42 = vld [vmem:[#allocation10 + $0x1c0] sm:$0xff]  }
 0x467   : > { %v19449_v6 = vcombine.low %v11841_v12, %v11844_v48  ;;  %v15730_v19 = vsel %vm23669_vm5, %v15728_v3, %v15729_v31  ;;  %v15734_v63 = vsel %vm23669_vm5, %v19615_v38, %v15733_v25  ;;  %v15735_v54 = vrot.slane %v15733_v25, 4  ;;  %v19404_v27 = vld [vmem:[%s23585_s15 + $0x70] sm:$0xf]  ;;  %v19405_v22 = vld [vmem:[%s23585_s15 + $0x74] sm:$0x1] }
 0x468   : > { %v19630_v24 = vcombine.low %v15727_v7, %v15730_v19  ;;  %v11848_v40 = vsel %vm23669_vm5, %v19434_v58, %v11847_v47  ;;  %v11849_v11 = vrot.slane %v11847_v47, 4  ;;  %v19435_v34 = vrot.slane %v19397_v17, 9  ;;  %v15613_v8 = vld [vmem:[#allocation2 + $0x94] sm:$0xf]  ;;  %v15612_v13 = vld [vmem:[#allocation2 + $0x90] sm:$0xe] }
 0x469   : > { %v15737_v4 = vsel %vm23669_vm5, %v15735_v54, %v15736_v50  ;;  %v11854_v45 = vrot.slane %v19398_v33, 5  ;;  %v11857_v37 = vrot.slane %v19399_v44, 5  ;;  %21585 = vmatpush3.bf16.msra.mxu0 %v22942_v1  ;;  %v15740_v41 = vrot.slane %v15607_v5, 5  ;;  %v26518_v57 = vld [vmem:[#allocation2 + $0xa0] sm:$0xf] }
 0x46a   : > { %v19631_v35 = vcombine.low %v15734_v63, %v15737_v4  ;;  %v11851_v28 = vsel %vm23669_vm5, %v11849_v11, %v11850_v18  ;;  %21586 = vmatprep.subr.bf16.mxu0 %v22943_v51  ;;  %v19616_v21 = vrot.slane %v15606_v2, 9  ;;  %v15743_v49 = vrot.slane %v15608_v60, 5  ;;  %v15614_v33 = vld [vmem:[#allocation2 + $0x98] sm:$0x1]  ;;  %v15617_v25 = vld [vmem:[#allocation2 + $0xa4] sm:$0x1] }
 0x46b   : > { %21555 = vmatmul.mubr.bf16.gmra.mrb[44].mxu0 %v19630_v24  ;;  %v19450_v53 = vcombine.low %v11848_v40, %v11851_v28  ;;  %v11856_v9 = vrot.slane %v11854_v45, 4  ;;  %v11855_v0 = vsel %vm23669_vm5, %v19435_v34, %v11854_v45  ;;  %v15742_v16 = vrot.slane %v15740_v41, 4  ;;  %v19406_v5 = vld [vmem:[%s23585_s15 + $0x78] sm:$0xe]  ;;  %v19407_v2 = vld [vmem:[%s23585_s15 + $0x7c] sm:$0xf] }
 0x46c   : > { %21259 = vmatmul.mubr.bf16.gmra.mrb[36].mxu1 %v19449_v6  ;;  %21558 = vmatprep.mubr.bf16.mxu0 %v19631_v35  ;;  %v15747_v32 = vrot.slane %v15610_v43, 5  ;;  %v19617_v59 = vrot.slane %v15609_v55, 9  ;;  %v19436_v20 = vrot.slane %v19400_v26, 9  ;;  %v11861_v1 = vrot.slane %v19401_v15, 5  ;;  %v15615_v54 = vld [vmem:[#allocation2 + $0x9c] sm:$0xe] }
 0x46d   : > { %21262 = vmatprep.mubr.bf16.mxu1 %v19450_v53  ;;  %v11858_v14 = vsel %vm23669_vm5, %v11856_v9, %v11857_v37  ;;  %21587 = vmatpush3.bf16.msra.mxu0 %v22943_v51  ;;  %v15741_v62 = vsel %vm23669_vm5, %v19616_v21, %v15740_v41  ;;  %v15744_v56 = vsel %vm23669_vm5, %v15742_v16, %v15743_v49  ;;  %v15750_v52 = vrot.slane %v15611_v10, 5  ;;  %v19408_v51 = vld [vmem:[%s23585_s15 + $0x80] sm:$0x1]  ;;  %v19409_v60 = vld [vmem:[%s23585_s15 + $0x84] sm:$0xe] }
 0x46e   : > { %v15749_v29 = vrot.slane %v15747_v32, 4  ;;  %21588 = vmatprep.subr.bf16.mxu0 %v22944_v23  ;;  %v19451_v12 = vcombine.low %v11855_v0, %v11858_v14  ;;  %v11862_v30 = vsel %vm23669_vm5, %v19436_v20, %v11861_v1  ;;  %v11863_v31 = vrot.slane %v11861_v1, 4  ;;  %v19410_v24 = vld [vmem:[%s23585_s15 + $0x88] sm:$0xf]  ;;  %v19411_v55 = vld [vmem:[%s23585_s15 + $0x8c] sm:$0x1] }
 0x46f   : > { %v11864_v17 = vrot.slane %v19402_v39, 5  ;;  %v15748_v44 = vsel %vm23669_vm5, %v19617_v59, %v15747_v32  ;;  %v19437_v3 = vrot.slane %v19403_v46, 9  ;;  %v11868_v38 = vrot.slane %v19404_v27, 5  ;;  %v26536_v43 = vld [vmem:[#allocation2 + $0xac] sm:$0xf] }
 0x470   : > { %v15751_v7 = vsel %vm23669_vm5, %v15749_v29, %v15750_v52  ;;  %v19632_v48 = vcombine.low %v15741_v62, %v15744_v56  ;;  %v11871_v58 = vrot.slane %v19405_v22, 5  ;;  %v15754_v47 = vrot.slane %v15613_v8, 5  ;;  %v26544_v41 = vld [vmem:[#allocation2 + $0xb8] sm:$0xf]  ;;  %v15618_v9 = vld [vmem:[#allocation2 + $0xa8] sm:$0xe] }
 0x471   : > { %v11865_v50 = vsel %vm23669_vm5, %v11863_v31, %v11864_v17  ;;  %21589 = vmatpush3.bf16.msra.mxu0 %v22944_v23  ;;  %v19633_v6 = vcombine.low %v15748_v44, %v15751_v7  ;;  %v11870_v63 = vrot.slane %v11868_v38, 4  ;;  %v19618_v40 = vrot.slane %v15612_v13, 9  ;;  %v15620_v21 = vld [vmem:[#allocation2 + $0xb0] sm:$0x1]  ;;  %v19412_v46 = vld [vmem:[%s23585_s15 + $0x90] sm:$0xe] }
 0x472   : > { %v19452_v19 = vcombine.low %v11862_v30, %v11865_v50  ;;  %21622 = vmatprep.subr.bf16.mxu0 %v26512_v42  ;;  %v15756_v11 = vrot.slane %v15754_v47, 4  ;;  %v15761_v18 = vrot.slane %v26518_v57, 5  ;;  %v11869_v4 = vsel %vm23669_vm5, %v19437_v3, %v11868_v38  ;;  %v19413_v27 = vld [vmem:[%s23585_s15 + $0x94] sm:$0xf]  ;;  %v15623_v22 = vld [vmem:[#allocation2 + $0xbc] sm:$0x1] }
 0x473   : > { %21559 = vmatmul.mubr.bf16.gmra.mrb[48].mxu0 %v19632_v48  ;;  %v15757_v34 = vrot.slane %v15614_v33, 5  ;;  %v19438_v45 = vrot.slane %v19406_v5, 9  ;;  %v11875_v37 = vrot.slane %v19407_v2, 5  ;;  %v11872_v10 = vsel %vm23669_vm5, %v11870_v63, %v11871_v58  ;;  %v19414_v1 = vld [vmem:[%s23585_s15 + $0x98] sm:$0x1] }
 0x474   : > { %21263 = vmatmul.mubr.bf16.gmra.mrb[40].mxu1 %v19451_v12  ;;  %21562 = vmatprep.mubr.bf16.mxu0 %v19633_v6  ;;  %v15755_v26 = vsel %vm23669_vm5, %v19618_v40, %v15754_v47  ;;  %v15763_v35 = vrot.slane %v15761_v18, 4  ;;  %v15764_v28 = vrot.slane %v15617_v25, 5  ;;  %v11878_v53 = vrot.slane %v19408_v51, 5  ;;  %v15621_v13 = vld [vmem:[#allocation2 + $0xb4] sm:$0xe] }
 0x475   : > { %21266 = vmatprep.mubr.bf16.mxu1 %v19452_v19  ;;  %v15758_v15 = vsel %vm23669_vm5, %v15756_v11, %v15757_v34  ;;  %v11876_v39 = vsel %vm23669_vm5, %v19438_v45, %v11875_v37  ;;  %v11877_v23 = vrot.slane %v11875_v37, 4  ;;  %v19619_v0 = vrot.slane %v15615_v54, 9  ;;  %v19416_v57 = vld [vmem:[%s23585_s15 + $0xa0] sm:$0xf]  ;;  %v26562_v17 = vld [vmem:[#allocation2 + $0xc4] sm:$0xf] }
 0x476   : > { %v15765_v16 = vsel %vm23669_vm5, %v15763_v35, %v15764_v28  ;;  %v19439_v49 = vrot.slane %v19409_v60, 9  ;;  %v11882_v32 = vrot.slane %v19410_v24, 5  ;;  %v19453_v8 = vcombine.low %v11869_v4, %v11872_v10  ;;  %v19415_v38 = vld [vmem:[%s23585_s15 + $0x9c] sm:$0xe]  ;;  %v19417_v25 = vld [vmem:[%s23585_s15 + $0xa4] sm:$0x1] }
 0x477   : > { %v11879_v14 = vsel %vm23669_vm5, %v11877_v23, %v11878_v53  ;;  %v11885_v59 = vrot.slane %v19411_v55, 5  ;;  %v15768_v20 = vrot.slane %v26536_v43, 5  ;;  %v19634_v62 = vcombine.low %v15755_v26, %v15758_v15  ;;  %v19419_v47 = vld [vmem:[%s23585_s15 + $0xac] sm:$0xf]  ;;  %v19418_v19 = vld [vmem:[%s23585_s15 + $0xa8] sm:$0xe] }
 0x478   : > { %v15762_v56 = vsel %vm23669_vm5, %v19619_v0, %v15761_v18  ;;  %v19454_v29 = vcombine.low %v11876_v39, %v11879_v14  ;;  %v11884_v52 = vrot.slane %v11882_v32, 4  ;;  %v15775_v31 = vrot.slane %v26544_v41, 5  ;;  %v19420_v63 = vld [vmem:[%s23585_s15 + $0xb0] sm:$0x1]  ;;  %v19422_v11 = vld [vmem:[%s23585_s15 + $0xb8] sm:$0xf] }
 0x479   : > { %v19635_v12 = vcombine.low %v15762_v56, %v15765_v16  ;;  %v15770_v30 = vrot.slane %v15768_v20, 4  ;;  %v19620_v33 = vrot.slane %v15618_v9, 9  ;;  %v15771_v44 = vrot.slane %v15620_v21, 5  ;;  %v15624_v4 = vld [vmem:[#allocation2 + $0xc0] sm:$0xe] }
 0x47a   : > { %v19440_v7 = vrot.slane %v19412_v46, 9  ;;  %v11889_v3 = vrot.slane %v19413_v27, 5  ;;  %v11883_v5 = vsel %vm23669_vm5, %v19439_v49, %v11882_v32  ;;  %v11886_v48 = vsel %vm23669_vm5, %v11884_v52, %v11885_v59  ;;  %v15626_v34 = vld [vmem:[#allocation2 + $0xc8] sm:$0x1]  ;;  %v19421_v28 = vld [vmem:[%s23585_s15 + $0xb4] sm:$0xe] }
 0x47b   : > { %21563 = vmatmul.mubr.bf16.gmra.mrb[52].mxu0 %v19634_v62  ;;  %v15777_v50 = vrot.slane %v15775_v31, 4  ;;  %v15778_v58 = vrot.slane %v15623_v22, 5  ;;  %v15772_v2 = vsel %vm23669_vm5, %v15770_v30, %v15771_v44  ;;  %v11892_v6 = vrot.slane %v19414_v1, 5  ;;  %v19425_v53 = vld [vmem:[%s23585_s15 + $0xc4] sm:$0xf] }
 0x47c   : > { %21267 = vmatmul.mubr.bf16.gmra.mrb[44].mxu1 %v19453_v8  ;;  %21566 = vmatprep.mubr.bf16.mxu0 %v19635_v12  ;;  %v11891_v51 = vrot.slane %v11889_v3, 4  ;;  %v19621_v54 = vrot.slane %v15621_v13, 9  ;;  %v11890_v24 = vsel %vm23669_vm5, %v19440_v7, %v11889_v3  ;;  %v11896_v40 = vrot.slane %v19416_v57, 5  ;;  %v19423_v27 = vld [vmem:[%s23585_s15 + $0xbc] sm:$0x1] }
 0x47d   : > { %21270 = vmatprep.mubr.bf16.mxu1 %v19454_v29  ;;  %v15779_v60 = vsel %vm23669_vm5, %v15777_v50, %v15778_v58  ;;  %v19455_v18 = vcombine.low %v11883_v5, %v11886_v48  ;;  %v15769_v55 = vsel %vm23669_vm5, %v19620_v33, %v15768_v20  ;;  %v15782_v45 = vrot.slane %v26562_v17, 5  ;;  %v19424_v16 = vld [vmem:[%s23585_s15 + $0xc0] sm:$0xe]  ;;  %v19426_v20 = vld [vmem:[%s23585_s15 + $0xc8] sm:$0x1] }
 0x47e   : > { %v11893_v43 = vsel %vm23669_vm5, %v11891_v51, %v11892_v6  ;;  %v19636_v37 = vcombine.low %v15769_v55, %v15772_v2  ;;  %v15776_v10 = vsel %vm23669_vm5, %v19621_v54, %v15775_v31  ;;  %v19441_v26 = vrot.slane %v19415_v38, 9  ;;  %v22945_v31 = vld [vmem:[#allocation2 + $0x18] sm:$0xff]   ;;  %v19428_v44 = vld [vmem:[%s23585_s15 + $0xd0] sm:$0xf] }
 0x47f   : > { %v11899_v35 = vrot.slane %v19417_v25, 5  ;;  %v19637_v41 = vcombine.low %v15776_v10, %v15779_v60  ;;  %v19456_v15 = vcombine.low %v11890_v24, %v11893_v43  ;;  %v11898_v39 = vrot.slane %v11896_v40, 4  ;;  %v19427_v58 = vld [vmem:[%s23585_s15 + $0xcc] sm:$0xe]  ;;  %v22948_v60 = vld [vmem:[#allocation2 + $0x30] sm:$0xff]  }
 0x480   : > { %v11903_v23 = vrot.slane %v19419_v47, 5  ;;  %v15784_v9 = vrot.slane %v15782_v45, 4  ;;  %v19442_v21 = vrot.slane %v19418_v19, 9  ;;  %v11906_v46 = vrot.slane %v19420_v63, 5  ;;  %v19429_v47 = vld [vmem:[%s23585_s15 + $0xd4] sm:$0x1] }
 0x481   : > { %v11910_v0 = vrot.slane %v19422_v11, 5  ;;  %v19622_v32 = vrot.slane %v15624_v4, 9  ;;  %v15785_v22 = vrot.slane %v15626_v34, 5  ;;  %v11897_v8 = vsel %vm23669_vm5, %v19441_v26, %v11896_v40  ;;  %v22946_v51 = vld [vmem:[#allocation2 + $0x24] sm:$0xff]   ;;  %v22950_v24 = vld [vmem:[#allocation10 + $0x1c8] sm:$0xff]   ;;  %v22949_v43 = vld [vmem:[#allocation2 + $0x3c] sm:$0xff]  }
 0x482   : > { %v11905_v49 = vrot.slane %v11903_v23, 4  ;;  %v11900_v14 = vsel %vm23669_vm5, %v11898_v39, %v11899_v35  ;;  %v19443_v59 = vrot.slane %v19421_v28, 9  ;;  %v11917_v1 = vrot.slane %v19425_v53, 5  ;;  %v22951_v4 = vld [vmem:[#allocation2 + $0x48] sm:$0xff]   ;;  %v22962_v10 = vld [vmem:[#allocation10 + $0x1e8] sm:$0xff]   ;;  %v22965_v26 = vld [vmem:[#allocation10 + $0x1f0] sm:$0xff]  }
 0x483   : > { %21567 = vmatmul.mubr.bf16.gmra.mrb[56].mxu0 %v19636_v37  ;;  %v15786_v62 = vsel %vm23669_vm5, %v15784_v9, %v15785_v22  ;;  %v11904_v56 = vsel %vm23669_vm5, %v19442_v21, %v11903_v23  ;;  %v11912_v52 = vrot.slane %v11910_v0, 4  ;;  %v11913_v13 = vrot.slane %v19423_v27, 5  ;;  %v22956_v34 = vld [vmem:[#allocation10 + $0x1d8] sm:$0xff]   ;;  %v22955_v35 = vld [vmem:[#allocation2 + $0x6c] sm:$0xff]   ;;  %v22957_v28 = vld [vmem:[#allocation2 + $0x78] sm:$0xff]  }
 0x484   : > { %21271 = vmatmul.mubr.bf16.gmra.mrb[48].mxu1 %v19455_v18  ;;  %21570 = vmatprep.mubr.bf16.mxu0 %v19637_v41  ;;  %v11907_v29 = vsel %vm23669_vm5, %v11905_v49, %v11906_v46  ;;  %v19444_v57 = vrot.slane %v19424_v16, 9  ;;  %v19457_v12 = vcombine.low %v11897_v8, %v11900_v14  ;;  %v15783_v30 = vsel %vm23669_vm5, %v19622_v32, %v15782_v45  ;;  %v22953_v18 = vld [vmem:[#allocation10 + $0x1d0] sm:$0xff]   ;;  %v22968_v41 = vld [vmem:[#allocation10 + $0x1f8] sm:$0xff]   ;;  %v22960_v9 = vld [vmem:[#allocation2 + $0x90] sm:$0xff]  }
 0x485   : > { %21274 = vmatprep.mubr.bf16.mxu1 %v19456_v15  ;;  %v11919_v17 = vrot.slane %v11917_v1, 4  ;;  %v11920_v33 = vrot.slane %v19426_v20, 5  ;;  %v19638_v7 = vcombine.low %v15783_v30, %v15786_v62  ;;  %v19458_v3 = vcombine.low %v11904_v56, %v11907_v29  ;;  %v22952_v45 = vld [vmem:[#allocation2 + $0x54] sm:$0xff]   ;;  %v22954_v37 = vld [vmem:[#allocation2 + $0x60] sm:$0xff]   ;;  %v26620_v15 = vld [vmem:[#allocation10 + $0x200] sm:$0xff]  }
 0x486   : > { %v11911_v38 = vsel %vm23669_vm5, %v19443_v59, %v11910_v0  ;;  %v11914_v25 = vsel %vm23669_vm5, %v11912_v52, %v11913_v13  ;;  %v11924_v5 = vrot.slane %v19428_v44, 5  ;;  %v11918_v48 = vsel %vm23669_vm5, %v19444_v57, %v11917_v1  ;;  %v16624_v39 = vld [vmem:[#allocation2 + $0x18] sm:$0xf]  ;;  %v22958_v23 = vld [vmem:[#allocation2 + $0x84] sm:$0xff]   ;;  %v16625_v53 = vld [vmem:[#allocation2 + $0x1c] sm:$0xf] }
 0x487   : > { %v11921_v50 = vsel %vm23669_vm5, %v11919_v17, %v11920_v33  ;;  %v19459_v2 = vcombine.low %v11911_v38, %v11914_v25  ;;  %v19445_v19 = vrot.slane %v19427_v58, 9  ;;  %v11927_v54 = vrot.slane %v19429_v47, 5  ;;  %v16627_v16 = vld [vmem:[#allocation2 + $0x24] sm:$0xf]  ;;  %v16628_v22 = vld [vmem:[#allocation2 + $0x28] sm:$0xf] }
 0x488   : > { %v19460_v6 = vcombine.low %v11918_v48, %v11921_v50  ;;  %v11926_v63 = vrot.slane %v11924_v5, 4  ;;  %v16673_v21 = vshrl.u32 %v16624_v39, 16  ;;  %v16676_v46 = vshll.u32 %v16624_v39, 16  ;;  %v22963_v8 = vld [vmem:[#allocation2 + $0xa8] sm:$0xff]   ;;  %v16631_v62 = vld [vmem:[#allocation2 + $0x34] sm:$0xf] }
 0x489   : > { %v11925_v40 = vsel %vm23669_vm5, %v19445_v19, %v11924_v5  ;;  %v16682_v27 = vshll.u32 %v16625_v53, 16  ;;  %v16686_v0 = vshrl.u32 %v16625_v53, 16  ;;  %v16697_v20 = vshrl.u32 %v16627_v16, 16  ;;  %v22961_v56 = vld [vmem:[#allocation2 + $0x9c] sm:$0xff]   ;;  %v16629_v30 = vld [vmem:[#allocation2 + $0x2c] sm:$0x1] }
 0x48a   : > { %v11928_v11 = vsel %vm23669_vm5, %v11926_v63, %v11927_v54  ;;  %v16675_v49 = vrot.slane %v16673_v21, 4  ;;  %v16678_v32 = vrot.slane %v16676_v46, 5  ;;  %v16700_v1 = vshll.u32 %v16627_v16, 16  ;;  %v16626_v29 = vld [vmem:[#allocation2 + $0x20] sm:$0x1]  ;;  %v22964_v19 = vld [vmem:[#allocation2 + $0xb4] sm:$0xff]  }
 0x48b   : > { %21571 = vmatmul.mubr.bf16.gmra.mrb[60].mxu0 %v19638_v7  ;;  %v19461_v55 = vcombine.low %v11925_v40, %v11928_v11  ;;  %v26623_v14 = vrot.slane %v16682_v27, 5  ;;  %v16688_v59 = vrot.slane %v16686_v0, 4  ;;  %v16706_v13 = vshll.u32 %v16628_v22, 16  ;;  %v16636_v39 = vld [vmem:[#allocation2 + $0x48] sm:$0xf]  ;;  %v22967_v16 = vld [vmem:[#allocation2 + $0xcc] sm:$0xff]  }
 0x48c   : > { %21275 = vmatmul.mubr.bf16.gmra.mrb[52].mxu1 %v19457_v12  ;;  %21590 = vmatprep.mubr.bf16.mxu0 %v22945_v31  ;;  %v16679_v52 = vor.u32 %v16678_v32, %v16675_v49  ;;  %v16710_v57 = vshrl.u32 %v16628_v22, 16  ;;  %v16630_v12 = vld [vmem:[#allocation2 + $0x30] sm:$0xf]  ;;  %v16730_v31 = vshll.u32 %v16631_v62, 16  ;;  %v16734_v17 = vshrl.u32 %v16631_v62, 16 }
 0x48d   : > { %21278 = vmatprep.mubr.bf16.mxu1 %v19458_v3  ;;  %v16689_v33 = vor.u32 %v16688_v59, %v26623_v14  ;;  %v16692_v44 = vshll.u32 %v16626_v29, 16  ;;  %v16699_v7 = vrot.slane %v16697_v20, 4  ;;  %v16702_v3 = vrot.slane %v16700_v1, 5  ;;  %v16639_v46 = vld [vmem:[#allocation2 + $0x54] sm:$0xf] }
 0x48e   : > { %v16721_v38 = vshrl.u32 %v16630_v12, 16  ;;  %v16724_v25 = vshll.u32 %v16630_v12, 16  ;;  %v16680_v5 = vrot.slane %v16679_v52, 4  ;;  %v26626_v48 = vrot.slane %v16706_v13, 5  ;;  %v16635_v59 = vld [vmem:[#allocation2 + $0x44] sm:$0x1] }
 0x48f   : > { %v16712_v50 = vrot.slane %v16710_v57, 4  ;;  %v16716_v58 = vshll.u32 %v16629_v30, 16  ;;  %v26628_v47 = vrot.slane %v16730_v31, 5  ;;  %v16690_v63 = vrot.slane %v16689_v33, 4 }
 0x490   : > { %v16694_v54 = vrot.slane %v16692_v44, 5  ;;  %v16723_v40 = vrot.slane %v16721_v38, 4  ;;  %v16726_v11 = vrot.slane %v16724_v25, 5  ;;  %v16769_v1 = vshrl.u32 %v16636_v39, 16 }
 0x491   : > { %v16772_v62 = vshll.u32 %v16636_v39, 16  ;;  %v16793_v52 = vshrl.u32 %v16639_v46, 16  ;;  %v16796_v13 = vshll.u32 %v16639_v46, 16  ;;  %v22970_v39 = vld [vmem:[#allocation10 + $0x208] sm:$0xff]  }
 0x493   : > { %21591 = vmatmul.mubr.bf16.vlgmr.msra.gmra.mrb[32].mxu0 %v22946_v51  ;;  %v16633_v51 = vld [vmem:[#allocation2 + $0x3c] sm:$0xf] }
 0x494   : > { %21279 = vmatmul.mubr.bf16.gmra.mrb[56].mxu1 %v19459_v2  ;;  %21594 = vmatprep.mubr.bf16.mxu0 %v22948_v60  ;;  %v16736_v2 = vrot.slane %v16734_v17, 4  ;;  %v16703_v60 = vor.u32 %v16702_v3, %v16699_v7  ;;  %v16764_v7 = vshll.u32 %v16635_v59, 16  ;;  %v16642_v3 = vld [vmem:[#allocation2 + $0x60] sm:$0xf]  ;;  %v16648_v59 = vld [vmem:[#allocation2 + $0x78] sm:$0xf] }
 0x495   : > { %21623 = vmatpush3.bf16.msra.mxu0 %v26512_v42  ;;  %21282 = vmatprep.mubr.bf16.mxu1 %v19460_v6  ;;  %v22959_v42 = vld [vmem:[#allocation10 + $0x1e0] sm:$0xff]   ;;  %v16634_v6 = vld [vmem:[#allocation2 + $0x40] sm:$0xf] }
 0x496   : > { %21624 = vmatprep.subr.bf16.mxu0 %v22950_v24 }
 0x499   : > { %21625 = vmatpush3.bf16.msra.mxu0 %v22950_v24  ;;  %v16632_v24 = vld [vmem:[#allocation2 + $0x38] sm:$0x1] }
 0x49a   : > { %21626 = vmatprep.subr.bf16.mxu0 %v22953_v18  ;;  %v16740_v21 = vshll.u32 %v16632_v24, 16 }
 0x49b   : > { %21595 = vmatmul.mubr.bf16.gmra.mrb[36].mxu0 %v22949_v43  ;;  %v16713_v43 = vor.u32 %v16712_v50, %v26626_v48  ;;  %v16771_v50 = vrot.slane %v16769_v1, 4 }
 0x49c   : > { %21283 = vmatmul.mubr.bf16.gmra.mrb[60].mxu1 %v19461_v55  ;;  %21598 = vmatprep.mubr.bf16.mxu0 %v22951_v4  ;;  %v22966_v55 = vld [vmem:[#allocation2 + $0xc0] sm:$0xff]   ;;  %v16745_v4 = vshrl.u32 %v16633_v51, 16  ;;  %v16742_v12 = vrot.slane %v16740_v21, 5 }
 0x49d   : > { %21627 = vmatpush3.bf16.msra.mxu0 %v22953_v18  ;;  %v16637_v18 = vld [vmem:[#allocation2 + $0x4c] sm:$0xf]  ;;  %v16714_v49 = vrot.slane %v16713_v43, 4 }
 0x49e   : > { %21628 = vmatprep.subr.bf16.mxu0 %v22956_v34  ;;  %v16782_v53 = vshrl.u32 %v16637_v18, 16  ;;  %v16747_v32 = vrot.slane %v16745_v4, 4  ;;  %v16645_v4 = vld [vmem:[#allocation2 + $0x6c] sm:$0xf] }
 0x49f   : > { %v16841_v21 = vshrl.u32 %v16645_v4, 16 }
 0x4a0   : > { %v16784_v29 = vrot.slane %v16782_v53, 4 }
 0x4a1   : > { %21629 = vmatpush3.bf16.msra.mxu0 %v22956_v34  ;;  %v16748_v34 = vshll.u32 %v16633_v51, 16 }
 0x4a2   : > { %21630 = vmatprep.subr.bf16.mxu0 %v22959_v42 }
 0x4a3   : > { %21599 = vmatmul.mubr.bf16.gmra.mrb[40].mxu0 %v22952_v45  ;;  %v16640_v45 = vld [vmem:[#allocation2 + $0x58] sm:$0xf]  ;;  %v16750_v22 = vrot.slane %v16748_v34, 5 }
 0x4a4   : > { %21602 = vmatprep.mubr.bf16.mxu0 %v22954_v37  ;;  %v16685_v37 = vsel %vm23612_vm2, %v16680_v5, %v26623_v14  ;;  %v16802_v27 = vshll.u32 %v16640_v45, 16  ;;  %v16806_v0 = vshrl.u32 %v16640_v45, 16  ;;  %v16638_v5 = vld [vmem:[#allocation2 + $0x50] sm:$0x1] }
 0x4a5   : > { %21631 = vmatpush3.bf16.msra.mxu0 %v22959_v42  ;;  %v16754_v42 = vshll.u32 %v16634_v6, 16  ;;  %v16751_v44 = vor.u32 %v16750_v22, %v16747_v32  ;;  %v16788_v43 = vshll.u32 %v16638_v5, 16 }
 0x4a6   : > { %21632 = vmatprep.subr.bf16.mxu0 %v22962_v10  ;;  %v26641_v30 = vrot.slane %v16802_v27, 5  ;;  %v16808_v31 = vrot.slane %v16806_v0, 4  ;;  %v16644_v27 = vld [vmem:[#allocation2 + $0x68] sm:$0x1] }
 0x4a7   : > { %v16790_v46 = vrot.slane %v16788_v43, 5 }
 0x4a8   : > { %v16809_v24 = vor.u32 %v16808_v31, %v26641_v30  ;;  %v16843_v31 = vrot.slane %v16841_v21, 4 }
 0x4a9   : > { %21633 = vmatpush3.bf16.msra.mxu0 %v22962_v10  ;;  %v16718_v10 = vrot.slane %v16716_v58, 5  ;;  %v16774_v58 = vrot.slane %v16772_v62, 5 }
 0x4aa   : > { %21634 = vmatprep.subr.bf16.mxu0 %v22965_v26 }
 0x4ab   : > { %21603 = vmatmul.mubr.bf16.gmra.mrb[44].mxu0 %v22955_v35  ;;  %v16758_v35 = vshrl.u32 %v16634_v6, 16  ;;  %v16719_v17 = vsel %vm23612_vm2, %v16714_v49, %v16718_v10  ;;  %v16641_v6 = vld [vmem:[#allocation2 + $0x5c] sm:$0x1]  ;;  %v16646_v10 = vld [vmem:[#allocation2 + $0x70] sm:$0xf] }
 0x4ac   : > { %21606 = vmatprep.mubr.bf16.mxu0 %v22957_v28  ;;  %v16695_v28 = vsel %vm23612_vm2, %v16690_v63, %v16694_v54  ;;  %v16798_v63 = vrot.slane %v16796_v13, 5  ;;  %v16643_v54 = vld [vmem:[#allocation2 + $0x64] sm:$0xf]  ;;  %v16850_v0 = vshll.u32 %v16646_v10, 16  ;;  %v22971_v13 = vld [vmem:[#allocation10 + $0x210] sm:$0xff]  }
 0x4ad   : > { %21635 = vmatpush3.bf16.msra.mxu0 %v22965_v26  ;;  %v16737_v26 = vor.u32 %v16736_v2, %v26628_v47  ;;  %v16760_v20 = vrot.slane %v16758_v35, 4  ;;  %v19671_v57 = vcombine.low %v16685_v37, %v16695_v28  ;;  %v16826_v45 = vshll.u32 %v16643_v54, 16 }
 0x4ae   : > { %21636 = vmatprep.subr.bf16.mxu0 %v22968_v41  ;;  %v16830_v37 = vshrl.u32 %v16643_v54, 16  ;;  %v16775_v35 = vor.u32 %v16774_v58, %v16771_v50 }
 0x4af   : > { %v16738_v14 = vrot.slane %v16737_v26, 4  ;;  %v26659_v32 = vrot.slane %v16826_v45, 5 }
 0x4b0   : > { %v16832_v22 = vrot.slane %v16830_v37, 4  ;;  %v16776_v1 = vrot.slane %v16775_v35, 4  ;;  %v22973_v35 = vld [vmem:[#allocation10 + $0x220] sm:$0xff]  }
 0x4b1   : > { %21637 = vmatpush3.bf16.msra.mxu0 %v22968_v41  ;;  %v16704_v41 = vrot.slane %v16703_v60, 4  ;;  %v16743_v25 = vsel %vm23612_vm2, %v16738_v14, %v16742_v12  ;;  %v16844_v14 = vshll.u32 %v16645_v4, 16  ;;  %v16836_v12 = vshll.u32 %v16644_v27, 16 }
 0x4b2   : > { %21670 = vmatprep.subr.bf16.mxu0 %v26620_v15 }
 0x4b3   : > { %21607 = vmatmul.mubr.bf16.gmra.mrb[48].mxu0 %v22958_v23  ;;  %v16778_v23 = vshll.u32 %v16637_v18, 16  ;;  %v16709_v38 = vsel %vm23612_vm2, %v16704_v41, %v26626_v48  ;;  %v16820_v48 = vshll.u32 %v16642_v3, 16  ;;  %v16752_v18 = vrot.slane %v16751_v44, 4 }
 0x4b4   : > { %21610 = vmatprep.mubr.bf16.mxu0 %v22960_v9  ;;  %v16727_v9 = vor.u32 %v16726_v11, %v16723_v40  ;;  %v19672_v60 = vcombine.low %v16709_v38, %v16719_v17  ;;  %v16817_v40 = vshrl.u32 %v16642_v3, 16  ;;  %v26668_v17 = vrot.slane %v16850_v0, 5  ;;  %v16647_v3 = vld [vmem:[#allocation2 + $0x74] sm:$0x1] }
 0x4b5   : > { %v16868_v44 = vshll.u32 %v16648_v59, 16  ;;  %v16846_v38 = vrot.slane %v16844_v14, 5 }
 0x4b6   : > { %v16728_v33 = vrot.slane %v16727_v9, 4  ;;  %v16819_v53 = vrot.slane %v16817_v40, 4  ;;  %v16822_v9 = vrot.slane %v16820_v48, 5  ;;  %v16654_v40 = vld [vmem:[#allocation2 + $0x90] sm:$0xf] }
 0x4b7   : > { %v16847_v4 = vor.u32 %v16846_v38, %v16843_v31 }
 0x4b8   : > { %v16733_v11 = vsel %vm23612_vm2, %v16728_v33, %v26628_v47  ;;  %v16865_v33 = vshrl.u32 %v16648_v59, 16 }
 0x4b9   : > { %v19673_v34 = vcombine.low %v16733_v11, %v16743_v25  ;;  %v16860_v11 = vshll.u32 %v16647_v3, 16  ;;  %v16848_v27 = vrot.slane %v16847_v4, 4  ;;  %v16656_v3 = vld [vmem:[#allocation2 + $0x98] sm:$0x1]  ;;  %v22976_v4 = vld [vmem:[#allocation10 + $0x238] sm:$0xff]  }
 0x4bb   : > { %21611 = vmatmul.mubr.bf16.gmra.mrb[52].mxu0 %v22961_v56  ;;  %v26639_v56 = vrot.slane %v16778_v23, 5  ;;  %v16810_v23 = vrot.slane %v16809_v24, 4  ;;  %v16652_v24 = vld [vmem:[#allocation2 + $0x88] sm:$0xf]  ;;  %v16862_v21 = vrot.slane %v16860_v11, 5 }
 0x4bc   : > { %21614 = vmatprep.mubr.bf16.mxu0 %v22963_v8  ;;  %v26637_v8 = vrot.slane %v16754_v42, 5  ;;  %v16812_v42 = vshll.u32 %v16641_v6, 16  ;;  %v16651_v6 = vld [vmem:[#allocation2 + $0x84] sm:$0xf] }
 0x4bd   : > { %v16785_v51 = vor.u32 %v16784_v29, %v26639_v56  ;;  %v16649_v29 = vld [vmem:[#allocation2 + $0x7c] sm:$0xf]  ;;  %v16781_v58 = vsel %vm23612_vm2, %v16776_v1, %v26639_v56  ;;  %v16655_v56 = vld [vmem:[#allocation2 + $0x94] sm:$0xf]  ;;  %v16889_v45 = vshrl.u32 %v16651_v6, 16  ;;  %v16892_v37 = vshll.u32 %v16651_v6, 16 }
 0x4be   : > { %v16761_v2 = vor.u32 %v16760_v20, %v26637_v8  ;;  %v16757_v47 = vsel %vm23612_vm2, %v16752_v18, %v26637_v8  ;;  %v16814_v49 = vrot.slane %v16812_v42, 5  ;;  %v16874_v25 = vshll.u32 %v16649_v29, 16  ;;  %v16650_v42 = vld [vmem:[#allocation2 + $0x80] sm:$0x1] }
 0x4bf   : > { %v16786_v28 = vrot.slane %v16785_v51, 4  ;;  %v16878_v5 = vshrl.u32 %v16649_v29, 16  ;;  %v22972_v51 = vld [vmem:[#allocation10 + $0x218] sm:$0xff]   ;;  %v16867_v18 = vrot.slane %v16865_v33, 4  ;;  %v16657_v29 = vld [vmem:[#allocation2 + $0x9c] sm:$0xf] }
 0x4c0   : > { %v16762_v26 = vrot.slane %v16761_v2, 4  ;;  %v16658_v33 = vld [vmem:[#allocation2 + $0xa0] sm:$0xf]  ;;  %v16937_v38 = vshrl.u32 %v16657_v29, 16 }
 0x4c1   : > { %v16791_v8 = vsel %vm23612_vm2, %v16786_v28, %v16790_v46  ;;  %v16913_v28 = vshrl.u32 %v16654_v40, 16  ;;  %v22975_v6 = vld [vmem:[#allocation10 + $0x230] sm:$0xff]  }
 0x4c3   : > { %21615 = vmatmul.mubr.bf16.gmra.mrb[56].mxu0 %v22964_v19  ;;  %v16795_v19 = vrot.slane %v16793_v52, 4  ;;  %v16815_v52 = vsel %vm23612_vm2, %v16810_v23, %v16814_v49  ;;  %v16926_v23 = vshrl.u32 %v16655_v56, 16  ;;  %v16891_v49 = vrot.slane %v16889_v45, 4  ;;  %v16659_v45 = vld [vmem:[#allocation2 + $0xa4] sm:$0x1] }
 0x4c4   : > { %21618 = vmatprep.mubr.bf16.mxu0 %v22966_v55  ;;  %v16766_v55 = vrot.slane %v16764_v7, 5  ;;  %v16833_v7 = vor.u32 %v16832_v22, %v26659_v32  ;;  %v16894_v22 = vrot.slane %v16892_v37, 5  ;;  %v16915_v1 = vrot.slane %v16913_v28, 4 }
 0x4c5   : > { %v16799_v41 = vor.u32 %v16798_v63, %v16795_v19  ;;  %v19675_v19 = vcombine.low %v16781_v58, %v16791_v8 }
 0x4c6   : > { %v16767_v20 = vsel %vm23612_vm2, %v16762_v26, %v16766_v55  ;;  %v16870_v55 = vrot.slane %v16868_v44, 5  ;;  %v16834_v43 = vrot.slane %v16833_v7, 4  ;;  %v16902_v26 = vshrl.u32 %v16652_v24, 16 }
 0x4c7   : > { %v16800_v62 = vrot.slane %v16799_v41, 4  ;;  %v19674_v50 = vcombine.low %v16757_v47, %v16767_v20  ;;  %v16916_v41 = vshll.u32 %v16654_v40, 16  ;;  %v22974_v20 = vld [vmem:[#allocation10 + $0x228] sm:$0xff]   ;;  %v16895_v44 = vor.u32 %v16894_v22, %v16891_v49  ;;  %v16662_v22 = vld [vmem:[#allocation2 + $0xb0] sm:$0x1] }
 0x4c8   : > { %v16871_v47 = vor.u32 %v16870_v55, %v16867_v18  ;;  %v16904_v59 = vrot.slane %v16902_v26, 4  ;;  %v16932_v40 = vshll.u32 %v16656_v3, 16  ;;  %v16980_v3 = vshll.u32 %v16662_v22, 16 }
 0x4c9   : > { %v16805_v2 = vsel %vm23612_vm2, %v16800_v62, %v26641_v30  ;;  %v16880_v30 = vrot.slane %v16878_v5, 4  ;;  %v16928_v62 = vrot.slane %v16926_v23, 4  ;;  %v16661_v5 = vld [vmem:[#allocation2 + $0xac] sm:$0xf]  ;;  %v16896_v18 = vrot.slane %v16895_v44, 4 }
 0x4ca   : > { %v19676_v63 = vcombine.low %v16805_v2, %v16815_v52  ;;  %v16974_v11 = vshrl.u32 %v16661_v5, 16  ;;  %v16669_v44 = vld [vmem:[#allocation2 + $0xcc] sm:$0xf] }
 0x4cb   : > { %21619 = vmatmul.mubr.bf16.gmra.mrb[60].mxu0 %v22967_v16  ;;  %v16854_v16 = vshrl.u32 %v16646_v10, 16  ;;  %v16898_v10 = vshll.u32 %v16652_v24, 16 }
 0x4cc   : > { %21638 = vmatprep.mubr.bf16.mxu0 %v19671_v57  ;;  %v16823_v57 = vor.u32 %v16822_v9, %v16819_v53 }
 0x4cd   : > { %v26686_v14 = vrot.slane %v16898_v10, 5 }
 0x4ce   : > { %v16824_v54 = vrot.slane %v16823_v57, 4  ;;  %v16872_v57 = vrot.slane %v16871_v47, 4 }
 0x4cf   : > { %v16905_v7 = vor.u32 %v16904_v59, %v26686_v14 }
 0x4d0   : > { %v16829_v53 = vsel %vm23612_vm2, %v16824_v54, %v26659_v32  ;;  %v16918_v32 = vrot.slane %v16916_v41, 5  ;;  %v16950_v54 = vshrl.u32 %v16658_v33, 16  ;;  %v16663_v41 = vld [vmem:[#allocation2 + $0xb4] sm:$0xf] }
 0x4d1   : > { %v16906_v55 = vrot.slane %v16905_v7, 4 }
 0x4d2   : > { %v16919_v2 = vor.u32 %v16918_v32, %v16915_v1  ;;  %v16952_v28 = vrot.slane %v16950_v54, 4  ;;  %v16985_v1 = vshrl.u32 %v16663_v41, 16  ;;  %v16665_v54 = vld [vmem:[#allocation2 + $0xbc] sm:$0x1] }
 0x4d3   : > { %21639 = vmatmul.mubr.bf16.vlgmr.msra.gmra.mrb[32].mxu0 %v19672_v60  ;;  %v16838_v60 = vrot.slane %v16836_v12, 5  ;;  %v16853_v12 = vsel %vm23612_vm2, %v16848_v27, %v26668_v17  ;;  %v16956_v27 = vshll.u32 %v16659_v45, 16 }
 0x4d4   : > { %21642 = vmatprep.mubr.bf16.mxu0 %v19673_v34  ;;  %21671 = vmatpush3.bf16.msra.mxu0 %v26620_v15  ;;  %v16856_v15 = vrot.slane %v16854_v16, 4  ;;  %v26678_v34 = vrot.slane %v16874_v25, 5  ;;  %v16884_v16 = vshll.u32 %v16650_v42, 16  ;;  %v16940_v25 = vshll.u32 %v16657_v29, 16  ;;  %v16666_v29 = vld [vmem:[#allocation2 + $0xc0] sm:$0xf] }
 0x4d5   : > { %21672 = vmatprep.subr.bf16.mxu0 %v22970_v39  ;;  %v16839_v46 = vsel %vm23612_vm2, %v16834_v43, %v16838_v60  ;;  %v16660_v60 = vld [vmem:[#allocation2 + $0xa8] sm:$0xf] }
 0x4d6   : > { %v16857_v48 = vor.u32 %v16856_v15, %v26668_v17  ;;  %v16881_v0 = vor.u32 %v16880_v30, %v26678_v34  ;;  %v19677_v52 = vcombine.low %v16829_v53, %v16839_v46  ;;  %v16653_v15 = vld [vmem:[#allocation2 + $0x8c] sm:$0x1]  ;;  %v16886_v58 = vrot.slane %v16884_v16, 5 }
 0x4d7   : > { %v16877_v17 = vsel %vm23612_vm2, %v16872_v57, %v26678_v34  ;;  %v16942_v43 = vrot.slane %v16940_v25, 5  ;;  %v16920_v30 = vrot.slane %v16919_v2, 4  ;;  %v16961_v34 = vshrl.u32 %v16660_v60, 16 }
 0x4d8   : > { %21673 = vmatpush3.bf16.msra.mxu0 %v22970_v39  ;;  %v16922_v39 = vshll.u32 %v16655_v56, 16  ;;  %v16858_v9 = vrot.slane %v16857_v48, 4  ;;  %v16882_v31 = vrot.slane %v16881_v0, 4  ;;  %v16970_v48 = vshll.u32 %v16661_v5, 16  ;;  %v16667_v0 = vld [vmem:[#allocation2 + $0xc4] sm:$0xf] }
 0x4d9   : > { %21674 = vmatprep.subr.bf16.mxu0 %v22971_v13  ;;  %v16939_v56 = vrot.slane %v16937_v38, 4  ;;  %v16964_v37 = vshll.u32 %v16660_v60, 16  ;;  %v16976_v53 = vrot.slane %v16974_v11, 4  ;;  %v16963_v59 = vrot.slane %v16961_v34, 4  ;;  %v16670_v5 = vld [vmem:[#allocation2 + $0xd0] sm:$0xf] }
 0x4da   : > { %v26688_v8 = vrot.slane %v16922_v39, 5  ;;  %v16887_v24 = vsel %vm23612_vm2, %v16882_v31, %v16886_v58  ;;  %v16934_v39 = vrot.slane %v16932_v40, 5  ;;  %v26704_v23 = vrot.slane %v16970_v48, 5 }
 0x4db   : > { %21643 = vmatmul.mubr.bf16.gmra.mrb[36].mxu0 %v19674_v50  ;;  %v19679_v10 = vcombine.low %v16877_v17, %v16887_v24  ;;  %v16943_v46 = vor.u32 %v16942_v43, %v16939_v56  ;;  %v17018_v57 = vshll.u32 %v16667_v0, 16  ;;  %v17009_v38 = vshrl.u32 %v16666_v29, 16 }
 0x4dc   : > { %21646 = vmatprep.mubr.bf16.mxu0 %v19675_v19  ;;  %21675 = vmatpush3.bf16.msra.mxu0 %v22971_v13  ;;  %v16863_v13 = vsel %vm23612_vm2, %v16858_v9, %v16862_v21  ;;  %v16908_v19 = vshll.u32 %v16653_v15, 16  ;;  %v16664_v9 = vld [vmem:[#allocation2 + $0xb8] sm:$0xf]  ;;  %v16901_v21 = vsel %vm23612_vm2, %v16896_v18, %v26686_v14  ;;  %v16925_v16 = vsel %vm23612_vm2, %v16920_v30, %v26688_v8 }
 0x4dd   : > { %21676 = vmatprep.subr.bf16.mxu0 %v22972_v51  ;;  %v19678_v50 = vcombine.low %v16853_v12, %v16863_v13  ;;  %v16994_v32 = vshll.u32 %v16664_v9, 16  ;;  %v16988_v13 = vshll.u32 %v16663_v41, 16  ;;  %v17022_v12 = vshrl.u32 %v16667_v0, 16 }
 0x4de   : > { %v16910_v26 = vrot.slane %v16908_v19, 5  ;;  %v16944_v15 = vrot.slane %v16943_v46, 4  ;;  %v17012_v25 = vshll.u32 %v16666_v29, 16  ;;  %v16987_v58 = vrot.slane %v16985_v1, 4 }
 0x4df   : > { %v16996_v2 = vrot.slane %v16994_v32, 5  ;;  %v16990_v17 = vrot.slane %v16988_v13, 5  ;;  %v17020_v19 = vrot.slane %v17018_v57, 5  ;;  %v17033_v60 = vshrl.u32 %v16669_v44, 16 }
 0x4e0   : > { %21677 = vmatpush3.bf16.msra.mxu0 %v22972_v51  ;;  %v16929_v51 = vor.u32 %v16928_v62, %v26688_v8  ;;  %v16911_v47 = vsel %vm23612_vm2, %v16906_v55, %v16910_v26  ;;  %v16998_v62 = vshrl.u32 %v16664_v9, 16  ;;  %v17036_v24 = vshll.u32 %v16669_v44, 16 }
 0x4e1   : > { %21678 = vmatprep.subr.bf16.mxu0 %v22973_v35  ;;  %v19680_v31 = vcombine.low %v16901_v21, %v16911_v47  ;;  %v17042_v40 = vshll.u32 %v16670_v5, 16  ;;  %v17046_v48 = vshrl.u32 %v16670_v5, 16  ;;  %v16982_v18 = vrot.slane %v16980_v3, 5  ;;  %v16671_v47 = vld [vmem:[#allocation2 + $0xd4] sm:$0x1] }
 0x4e2   : > { %v16930_v42 = vrot.slane %v16929_v51, 4  ;;  %v17000_v51 = vrot.slane %v16998_v62, 4  ;;  %v17011_v55 = vrot.slane %v17009_v38, 4  ;;  %v17014_v56 = vrot.slane %v17012_v25, 5  ;;  %v17442_v25 = vld [vmem:[#allocation2 + $0x18] sm:$0xe] }
 0x4e3   : > { %21647 = vmatmul.mubr.bf16.gmra.mrb[40].mxu0 %v19676_v63  ;;  %v16946_v63 = vshll.u32 %v16658_v33, 16  ;;  %v16958_v33 = vrot.slane %v16956_v27, 5  ;;  %v16991_v34 = vor.u32 %v16990_v17, %v16987_v58  ;;  %v17035_v26 = vrot.slane %v17033_v60, 4  ;;  %v17449_v5 = vld [vmem:[#allocation2 + $0x34] sm:$0xf] }
 0x4e4   : > { %21650 = vmatprep.mubr.bf16.mxu0 %v19677_v52  ;;  %21679 = vmatpush3.bf16.msra.mxu0 %v22973_v35  ;;  %v16935_v49 = vsel %vm23612_vm2, %v16930_v42, %v16934_v39  ;;  %v16977_v52 = vor.u32 %v16976_v53, %v26704_v23  ;;  %v17001_v30 = vor.u32 %v17000_v51, %v16996_v2  ;;  %v16668_v42 = vld [vmem:[#allocation2 + $0xc8] sm:$0x1]  ;;  %v17044_v41 = vrot.slane %v17042_v40, 5 }
 0x4e5   : > { %21680 = vmatprep.subr.bf16.mxu0 %v22974_v20  ;;  %v26702_v35 = vrot.slane %v16946_v63, 5  ;;  %v19681_v8 = vcombine.low %v16925_v16, %v16935_v49  ;;  %v17024_v63 = vrot.slane %v17022_v12, 4  ;;  %v17048_v39 = vrot.slane %v17046_v48, 4  ;;  %v17452_v48 = vld [vmem:[#allocation2 + $0x40] sm:$0xf] }
 0x4e6   : > { %v17015_v9 = vor.u32 %v17014_v56, %v17011_v55  ;;  %v17028_v21 = vshll.u32 %v16668_v42, 16  ;;  %v17002_v27 = vrot.slane %v17001_v30, 4  ;;  %v16992_v49 = vrot.slane %v16991_v34, 4  ;;  %v17455_v55 = vld [vmem:[#allocation2 + $0x4c] sm:$0xf] }
 0x4e7   : > { %v16953_v14 = vor.u32 %v16952_v28, %v26702_v35  ;;  %v16949_v43 = vsel %vm23612_vm2, %v16944_v15, %v26702_v35  ;;  %v17038_v28 = vrot.slane %v17036_v24, 5  ;;  %v19695_v51 = vrot.slane %v17442_v25, 9  ;;  %v17450_v24 = vld [vmem:[#allocation2 + $0x38] sm:$0x1] }
 0x4e8   : > { %21681 = vmatpush3.bf16.msra.mxu0 %v22974_v20  ;;  %v16966_v20 = vrot.slane %v16964_v37, 5  ;;  %v17004_v37 = vshll.u32 %v16665_v54, 16  ;;  %v17016_v1 = vrot.slane %v17015_v9, 4  ;;  %v17030_v32 = vrot.slane %v17028_v21, 5  ;;  %v17458_v21 = vld [vmem:[#allocation2 + $0x58] sm:$0xf] }
 0x4e9   : > { %21682 = vmatprep.subr.bf16.mxu0 %v22975_v6  ;;  %v17039_v22 = vor.u32 %v17038_v28, %v17035_v26  ;;  %v17554_v17 = vrot.slane %v17449_v5, 5  ;;  %v17557_v56 = vrot.slane %v17450_v24, 5  ;;  %v17561_v30 = vrot.slane %v17452_v48, 5  ;;  %v17453_v28 = vld [vmem:[#allocation2 + $0x44] sm:$0x1] }
 0x4ea   : > { %v16967_v7 = vor.u32 %v16966_v20, %v16963_v59  ;;  %v17006_v0 = vrot.slane %v17004_v37, 5  ;;  %v17049_v59 = vor.u32 %v17048_v39, %v17044_v41  ;;  %v17052_v20 = vshll.u32 %v16671_v47, 16  ;;  %v17470_v24 = vld [vmem:[#allocation2 + $0x88] sm:$0xf]  ;;  %v17473_v48 = vld [vmem:[#allocation2 + $0x94] sm:$0xf] }
 0x4eb   : > { %21651 = vmatmul.mubr.bf16.gmra.mrb[44].mxu0 %v19678_v50  ;;  %v16954_v50 = vrot.slane %v16953_v14, 4  ;;  %v17443_v14 = vld [vmem:[#allocation2 + $0x1c] sm:$0xf]  ;;  %v17040_v13 = vrot.slane %v17039_v22, 4  ;;  %v17556_v40 = vrot.slane %v17554_v17, 4  ;;  %v17568_v34 = vrot.slane %v17455_v55, 5 }
 0x4ec   : > { %21654 = vmatprep.mubr.bf16.mxu0 %v19679_v10  ;;  %21683 = vmatpush3.bf16.msra.mxu0 %v22975_v6  ;;  %v16978_v6 = vrot.slane %v16977_v52, 4  ;;  %v16968_v11 = vrot.slane %v16967_v7, 4  ;;  %v17025_v10 = vor.u32 %v17024_v63, %v17020_v19  ;;  %v17007_v62 = vsel %vm23612_vm2, %v17002_v27, %v17006_v0  ;;  %v17446_v7 = vld [vmem:[#allocation2 + $0x28] sm:$0xf]  ;;  %v17447_v63 = vld [vmem:[#allocation2 + $0x2c] sm:$0x1] }
 0x4ed   : > { %21684 = vmatprep.subr.bf16.mxu0 %v22976_v4  ;;  %v17540_v29 = vrot.slane %v17443_v14, 5  ;;  %v16997_v52 = vsel %vm23612_vm2, %v16992_v49, %v16996_v2  ;;  %v17050_v57 = vrot.slane %v17049_v59, 4  ;;  %v17054_v12 = vrot.slane %v17052_v20, 5  ;;  %v17461_v27 = vld [vmem:[#allocation2 + $0x64] sm:$0xf] }
 0x4ee   : > { %v16983_v45 = vsel %vm23612_vm2, %v16978_v6, %v16982_v18  ;;  %v16973_v35 = vsel %vm23612_vm2, %v16968_v11, %v26704_v23  ;;  %v17026_v16 = vrot.slane %v17025_v10, 4  ;;  %v17045_v3 = vsel %vm23612_vm2, %v17040_v13, %v17044_v41  ;;  %v17448_v18 = vld [vmem:[#allocation2 + $0x30] sm:$0xe]  ;;  %v17462_v13 = vld [vmem:[#allocation2 + $0x68] sm:$0x1] }
 0x4ef   : > { %v19683_v46 = vcombine.low %v16973_v35, %v16983_v45  ;;  %v17542_v44 = vrot.slane %v17540_v29, 4  ;;  %v17055_v38 = vsel %vm23612_vm2, %v17050_v57, %v17054_v12  ;;  %v17547_v58 = vrot.slane %v17446_v7, 5  ;;  %v17451_v35 = vld [vmem:[#allocation2 + $0x3c] sm:$0xe]  ;;  %v17457_v57 = vld [vmem:[#allocation2 + $0x54] sm:$0xe] }
 0x4f0   : > { %21685 = vmatpush3.bf16.msra.mxu0 %v22976_v4  ;;  %v16959_v4 = vsel %vm23612_vm2, %v16954_v50, %v16958_v33  ;;  %v17031_v23 = vsel %vm23612_vm2, %v17026_v16, %v17030_v32  ;;  %v17444_v33 = vld [vmem:[#allocation2 + $0x20] sm:$0x1]  ;;  %v19686_v2 = vcombine.low %v17045_v3, %v17055_v38  ;;  %v17550_v11 = vrot.slane %v17447_v63, 5 }
 0x4f1   : > { %v19682_v53 = vcombine.low %v16949_v43, %v16959_v4  ;;  %v17543_v50 = vrot.slane %v17444_v33, 5  ;;  %v17549_v60 = vrot.slane %v17547_v58, 4  ;;  %v19696_v43 = vrot.slane %v17445_v36, 9  ;;  %v17467_v33 = vld [vmem:[#allocation2 + $0x7c] sm:$0xf] }
 0x4f2   : > { %v19697_v42 = vrot.slane %v17448_v18, 9  ;;  %v17558_v45 = vsel %vm23669_vm5, %v17556_v40, %v17557_v56  ;;  %v17563_v39 = vrot.slane %v17561_v30, 4  ;;  %v17570_v9 = vrot.slane %v17568_v34, 4  ;;  %v17468_v63 = vld [vmem:[#allocation2 + $0x80] sm:$0x1] }
 0x4f3   : > { %21655 = vmatmul.mubr.bf16.gmra.mrb[48].mxu0 %v19680_v31  ;;  %v19684_v31 = vcombine.low %v16997_v52, %v17007_v62  ;;  %v17544_v6 = vsel %vm23669_vm5, %v17542_v44, %v17543_v50  ;;  %v17551_v4 = vsel %vm23669_vm5, %v17549_v60, %v17550_v11  ;;  %v17548_v37 = vsel %vm23669_vm5, %v19696_v43, %v17547_v58  ;;  %v17466_v40 = vld [vmem:[#allocation2 + $0x78] sm:$0xe] }
 0x4f4   : > { %21658 = vmatprep.mubr.bf16.mxu0 %v19681_v8  ;;  %v17021_v8 = vsel %vm23612_vm2, %v17016_v1, %v17020_v19  ;;  %v17541_v19 = vsel %vm23669_vm5, %v19695_v51, %v17540_v29  ;;  %v19712_v10 = vcombine.low %v17548_v37, %v17551_v4  ;;  %v17555_v26 = vsel %vm23669_vm5, %v19697_v42, %v17554_v17  ;;  %v17471_v37 = vld [vmem:[#allocation2 + $0x8c] sm:$0x1] }
 0x4f5   : > { %v19685_v15 = vcombine.low %v17021_v8, %v17031_v23  ;;  %v19711_v54 = vcombine.low %v17541_v19, %v17544_v6  ;;  %v19713_v41 = vcombine.low %v17555_v26, %v17558_v45  ;;  %v17564_v47 = vrot.slane %v17453_v28, 5  ;;  %v17459_v23 = vld [vmem:[#allocation2 + $0x5c] sm:$0x1]  ;;  %v17465_v6 = vld [vmem:[#allocation2 + $0x74] sm:$0x1] }
 0x4f6   : > { %v19698_v16 = vrot.slane %v17451_v35, 9  ;;  %v17575_v22 = vrot.slane %v17458_v21, 5  ;;  %v17582_v14 = vrot.slane %v17461_v27, 5  ;;  %v17578_v8 = vrot.slane %v17459_v23, 5  ;;  %v17474_v28 = vld [vmem:[#allocation2 + $0x98] sm:$0x1] }
 0x4f7   : > { %v17565_v49 = vsel %vm23669_vm5, %v17563_v39, %v17564_v47  ;;  %v17585_v44 = vrot.slane %v17462_v13, 5  ;;  %v19700_v7 = vrot.slane %v17457_v57, 9  ;;  %v17596_v50 = vrot.slane %v17467_v33, 5  ;;  %v17479_v21 = vld [vmem:[#allocation2 + $0xac] sm:$0xf] }
 0x4f8   : > { %v17562_v1 = vsel %vm23669_vm5, %v19698_v16, %v17561_v30  ;;  %v17577_v52 = vrot.slane %v17575_v22, 4  ;;  %v17584_v12 = vrot.slane %v17582_v14, 4  ;;  %v17592_v36 = vrot.slane %v17465_v6, 5  ;;  %v17480_v23 = vld [vmem:[#allocation2 + $0xb0] sm:$0x1] }
 0x4f9   : > { %v19714_v32 = vcombine.low %v17562_v1, %v17565_v49  ;;  %v17576_v58 = vsel %vm23669_vm5, %v19700_v7, %v17575_v22  ;;  %v17598_v60 = vrot.slane %v17596_v50, 4  ;;  %v17599_v11 = vrot.slane %v17468_v63, 5  ;;  %v17477_v1 = vld [vmem:[#allocation2 + $0xa4] sm:$0x1]  ;;  %v17482_v13 = vld [vmem:[#allocation2 + $0xb8] sm:$0xf] }
 0x4fa   : > { %v17579_v3 = vsel %vm23669_vm5, %v17577_v52, %v17578_v8  ;;  %v17586_v5 = vsel %vm23669_vm5, %v17584_v12, %v17585_v44  ;;  %v17603_v56 = vrot.slane %v17470_v24, 5  ;;  %v19703_v43 = vrot.slane %v17466_v40, 9  ;;  %v17478_v12 = vld [vmem:[#allocation2 + $0xa8] sm:$0xe]  ;;  %v17483_v6 = vld [vmem:[#allocation2 + $0xbc] sm:$0x1] }
 0x4fb   : > { %21659 = vmatmul.mubr.bf16.gmra.mrb[52].mxu0 %v19682_v53  ;;  %v17456_v53 = vld [vmem:[#allocation2 + $0x50] sm:$0x1]  ;;  %v17600_v4 = vsel %vm23669_vm5, %v17598_v60, %v17599_v11  ;;  %v17610_v30 = vrot.slane %v17473_v48, 5  ;;  %v17606_v35 = vrot.slane %v17471_v37, 5  ;;  %v17613_v47 = vrot.slane %v17474_v28, 5 }
 0x4fc   : > { %21662 = vmatprep.mubr.bf16.mxu0 %v19683_v46  ;;  %v17454_v46 = vld [vmem:[#allocation2 + $0x48] sm:$0xe]  ;;  %v17571_v0 = vrot.slane %v17456_v53, 5  ;;  %v17605_v26 = vrot.slane %v17603_v56, 4  ;;  %v17476_v53 = vld [vmem:[#allocation2 + $0xa0] sm:$0xf] }
 0x4fd   : > { %v19699_v59 = vrot.slane %v17454_v46, 9  ;;  %v17612_v39 = vrot.slane %v17610_v30, 4  ;;  %v17624_v22 = vrot.slane %v17479_v21, 5  ;;  %v17620_v57 = vrot.slane %v17477_v1, 5  ;;  %v17486_v60 = vld [vmem:[#allocation2 + $0xc8] sm:$0x1] }
 0x4fe   : > { %v17572_v20 = vsel %vm23669_vm5, %v17570_v9, %v17571_v0  ;;  %v17472_v9 = vld [vmem:[#allocation2 + $0x90] sm:$0xe]  ;;  %v17607_v27 = vsel %vm23669_vm5, %v17605_v26, %v17606_v35  ;;  %v17617_v0 = vrot.slane %v17476_v53, 5  ;;  %v17627_v8 = vrot.slane %v17480_v23, 5  ;;  %v17481_v24 = vld [vmem:[#allocation2 + $0xb4] sm:$0xe] }
 0x4ff   : > { %v17569_v62 = vsel %vm23669_vm5, %v19699_v59, %v17568_v34  ;;  %v17597_v34 = vsel %vm23669_vm5, %v19703_v43, %v17596_v50  ;;  %v19705_v16 = vrot.slane %v17472_v9, 9  ;;  %v17614_v49 = vsel %vm23669_vm5, %v17612_v39, %v17613_v47  ;;  %v17484_v48 = vld [vmem:[#allocation2 + $0xc0] sm:$0xe] }
 0x500   : > { %v19715_v29 = vcombine.low %v17569_v62, %v17572_v20  ;;  %v17619_v62 = vrot.slane %v17617_v0, 4  ;;  %v17626_v52 = vrot.slane %v17624_v22, 4  ;;  %v17631_v44 = vrot.slane %v17482_v13, 5 }
 0x501   : > { %v17634_v40 = vrot.slane %v17483_v6, 5  ;;  %v19708_v43 = vrot.slane %v17481_v24, 9 }
 0x502   : > { %v17621_v33 = vsel %vm23669_vm5, %v17619_v62, %v17620_v57 }
 0x503   : > { %21663 = vmatmul.mubr.bf16.gmra.mrb[56].mxu0 %v19684_v31  ;;  %v17464_v31 = vld [vmem:[#allocation2 + $0x70] sm:$0xf]  ;;  %v17632_v37 = vsel %vm23669_vm5, %v19708_v43, %v17631_v44 }
 0x504   : > { %21666 = vmatprep.mubr.bf16.mxu0 %v19685_v15  ;;  %v17460_v15 = vld [vmem:[#allocation2 + $0x60] sm:$0xe]  ;;  %v17589_v38 = vrot.slane %v17464_v31, 5  ;;  %v17485_v31 = vld [vmem:[#allocation2 + $0xc4] sm:$0xf] }
 0x505   : > { %v19701_v25 = vrot.slane %v17460_v15, 9 }
 0x506   : > { %v17591_v19 = vrot.slane %v17589_v38, 4 }
 0x507   : > { %v17583_v51 = vsel %vm23669_vm5, %v19701_v25, %v17582_v14  ;;  %v17611_v14 = vsel %vm23669_vm5, %v19705_v16, %v17610_v30  ;;  %v17638_v25 = vrot.slane %v17485_v31, 5 }
 0x508   : > { %v19717_v17 = vcombine.low %v17583_v51, %v17586_v5  ;;  %v17593_v55 = vsel %vm23669_vm5, %v17591_v19, %v17592_v36 }
 0x509   : > { %v17640_v36 = vrot.slane %v17638_v25, 4 }
 0x50b   : > { %21667 = vmatmul.mubr.bf16.gmra.mrb[60].mxu0 %v19686_v2  ;;  %v19716_v2 = vcombine.low %v17576_v58, %v17579_v3  ;;  %v19707_v3 = vrot.slane %v17478_v12, 9 }
 0x50c   : > { %21686 = vmatprep.mubr.bf16.mxu0 %v19711_v54  ;;  %v17463_v54 = vld [vmem:[#allocation2 + $0x6c] sm:$0xe] }
 0x50d   : > { %v19702_v18 = vrot.slane %v17463_v54, 9  ;;  %v17625_v51 = vsel %vm23669_vm5, %v19707_v3, %v17624_v22  ;;  %v17633_v54 = vrot.slane %v17631_v44, 4 }
 0x50f   : > { %v17590_v42 = vsel %vm23669_vm5, %v19702_v18, %v17589_v38  ;;  %v17628_v38 = vsel %vm23669_vm5, %v17626_v52, %v17627_v8  ;;  %v17641_v18 = vrot.slane %v17486_v60, 5 }
 0x510   : > { %v19718_v45 = vcombine.low %v17590_v42, %v17593_v55  ;;  %v19723_v63 = vcombine.low %v17625_v51, %v17628_v38  ;;  %v17487_v55 = vld [vmem:[#allocation2 + $0xcc] sm:$0xe]  ;;  %v19709_v42 = vrot.slane %v17484_v48, 9  ;;  %v26868_v38 = vld [vmem:[#allocation12] ss:$0 sm:$0xff] }
 0x512   : > { %v17639_v53 = vsel %vm23669_vm5, %v19709_v42, %v17638_v25  ;;  %v26870_v25 = vld [vmem:[#allocation15] ss:$0 sm:$0xff] }
 0x513   : > { %21687 = vmatmul.mubr.bf16.vlgmr.msra.gmra.mrb[32].mxu0 %v19712_v10  ;;  %v19719_v10 = vcombine.low %v17597_v34, %v17600_v4  ;;  %v17635_v4 = vsel %vm23669_vm5, %v17633_v54, %v17634_v40 }
 0x514   : > { %21690 = vmatprep.mubr.bf16.mxu0 %v19713_v41  ;;  %v17469_v41 = vld [vmem:[#allocation2 + $0x84] sm:$0xe]  ;;  %v19724_v39 = vcombine.low %v17632_v37, %v17635_v4 }
 0x515   : > { %v19704_v46 = vrot.slane %v17469_v41, 9 }
 0x517   : > { %v17604_v59 = vsel %vm23669_vm5, %v19704_v46, %v17603_v56  ;;  %v17489_v56 = vld [vmem:[#allocation2 + $0xd4] sm:$0x1] }
 0x518   : > { %v19720_v20 = vcombine.low %v17604_v59, %v17607_v27  ;;  %v17648_v28 = vrot.slane %v17489_v56, 5 }
 0x51b   : > { %21691 = vmatmul.mubr.bf16.gmra.mrb[36].mxu0 %v19714_v32  ;;  %v19721_v32 = vcombine.low %v17611_v14, %v17614_v49 }
 0x51c   : > { %21694 = vmatprep.mubr.bf16.mxu0 %v19715_v29  ;;  %v17475_v29 = vld [vmem:[#allocation2 + $0x9c] sm:$0xe] }
 0x51d   : > { %v19706_v15 = vrot.slane %v17475_v29, 9 }
 0x51f   : > { %v17618_v50 = vsel %vm23669_vm5, %v19706_v15, %v17617_v0 }
 0x523   : > { %21695 = vmatmul.mubr.bf16.gmra.mrb[40].mxu0 %v19716_v2  ;;  %v19722_v2 = vcombine.low %v17618_v50, %v17621_v33 }
 0x524   : > { %21698 = vmatprep.mubr.bf16.mxu0 %v19717_v17  ;;  %v17488_v17 = vld [vmem:[#allocation2 + $0xd0] sm:$0xf] }
 0x525   : > { %v17645_v11 = vrot.slane %v17488_v17, 5 }
 0x527   : > { %v17647_v26 = vrot.slane %v17645_v11, 4 }
 0x529   : > { %v17649_v47 = vsel %vm23669_vm5, %v17647_v26, %v17648_v28 }
 0x52b   : > { %21699 = vmatmul.mubr.bf16.gmra.mrb[44].mxu0 %v19718_v45  ;;  %v17642_v45 = vsel %vm23669_vm5, %v17640_v36, %v17641_v18 }
 0x52c   : > { %21702 = vmatprep.mubr.bf16.mxu0 %v19719_v10  ;;  %v19710_v10 = vrot.slane %v17487_v55, 9  ;;  %v19725_v9 = vcombine.low %v17639_v53, %v17642_v45 }
 0x52e   : > { %v17646_v21 = vsel %vm23669_vm5, %v19710_v10, %v17645_v11 }
 0x52f   : > { %v19726_v27 = vcombine.low %v17646_v21, %v17649_v47 }
 0x533   : > { %21703 = vmatmul.mubr.bf16.gmra.mrb[48].mxu0 %v19720_v20 }
 0x534   : > { %21706 = vmatprep.mubr.bf16.mxu0 %v19721_v32 }
 0x537   : > { %v26786_v7 = vpop.f32.mrb[32].mxu1 }
 0x538   : > { %v26790_v5 = vpop.f32.mrb[33].mxu1 }
 0x539   : > { %v26794_v58 = vpop.f32.mrb[34].mxu1  ;;  %v12354_v36 = vadd.f32 %v26870_v25, %v26790_v5 }
 0x53a   : > { %v26798_v19 = vpop.f32.mrb[35].mxu1  ;;  %v12357_v11 = vadd.f32 %v26794_v58, %v26870_v25 }
 0x53b   : > { %21707 = vmatmul.mubr.bf16.gmra.mrb[52].mxu0 %v19722_v2  ;;  %v12355_v56 = vadd.f32 %v26870_v25, %v26798_v19 }
 0x53c   : > { %21710 = vmatprep.mubr.bf16.mxu0 %v19723_v63  ;;  %v12356_v63 = vadd.f32 %v26786_v7, %v26870_v25 }
 0x53f   : > { %v26802_v30 = vpop.f32.mrb[36].mxu1 }
 0x540   : > { %v26806_v34 = vpop.f32.mrb[37].mxu1  ;;  %v12360_v10 = vadd.f32 %v26802_v30, %v26870_v25 }
 0x541   : > { %v26810_v41 = vpop.f32.mrb[38].mxu1  ;;  %v12358_v53 = vadd.f32 %v26870_v25, %v26806_v34 }
 0x542   : > { %v26814_v35 = vpop.f32.mrb[39].mxu1  ;;  %v12361_v47 = vadd.f32 %v26810_v41, %v26870_v25 }
 0x543   : > { %21711 = vmatmul.mubr.bf16.gmra.mrb[56].mxu0 %v19724_v39  ;;  %v12359_v30 = vadd.f32 %v26870_v25, %v26814_v35 }
 0x544   : > { %21714 = vmatprep.mubr.bf16.mxu0 %v19725_v9 }
 0x547   : > { %v26820_v46 = vpop.f32.mrb[40].mxu1 }
 0x548   : > { %v26822_v0 = vpop.f32.mrb[41].mxu1  ;;  %v12364_v35 = vadd.f32 %v26820_v46, %v26870_v25 }
 0x549   : > { %v26824_v16 = vpop.f32.mrb[42].mxu1 }
 0x54a   : > { %v26826_v49 = vpop.f32.mrb[43].mxu1 }
 0x54b   : > { %21715 = vmatmul.mubr.bf16.gmra.mrb[60].mxu0 %v19726_v27  ;;  %v12363_v46 = vadd.f32 %v26870_v25, %v26826_v49 }
 0x54f   : > { %v26828_v22 = vpop.f32.mrb[44].mxu1 }
 0x550   : > { %v26830_v59 = vpop.f32.mrb[45].mxu1  ;;  %v12368_v49 = vadd.f32 %v26828_v22, %v26870_v25 }
 0x551   : > { %v26832_v20 = vpop.f32.mrb[46].mxu1 }
 0x552   : > { %v26834_v14 = vpop.f32.mrb[47].mxu1 }
 0x553   : > { %v12367_v22 = vadd.f32 %v26870_v25, %v26834_v14 }
 0x557   : > { %v26836_v61 = vpop.f32.mrb[48].mxu1 }
 0x558   : > { %v26838_v1 = vpop.f32.mrb[49].mxu1  ;;  %v12372_v14 = vadd.f32 %v26836_v61, %v26870_v25 }
 0x559   : > { %v26840_v32 = vpop.f32.mrb[50].mxu1 }
 0x55a   : > { %v26842_v62 = vpop.f32.mrb[51].mxu1 }
 0x55b   : > { %v12371_v61 = vadd.f32 %v26870_v25, %v26842_v62 }
 0x55f   : > { %v26844_v23 = vpop.f32.mrb[52].mxu1 }
 0x560   : > { %v26846_v29 = vpop.f32.mrb[53].mxu1  ;;  %v12376_v62 = vadd.f32 %v26844_v23, %v26870_v25 }
 0x561   : > { %v26848_v52 = vpop.f32.mrb[54].mxu1 }
 0x562   : > { %v26850_v13 = vpop.f32.mrb[55].mxu1 }
 0x563   : > { %v12375_v23 = vadd.f32 %v26870_v25, %v26850_v13 }
 0x567   : > { %v26852_v57 = vpop.f32.mrb[56].mxu1 }
 0x568   : > { %v26854_v12 = vpop.f32.mrb[57].mxu1  ;;  %v12380_v13 = vadd.f32 %v26852_v57, %v26870_v25 }
 0x569   : > { %v26856_v31 = vpop.f32.mrb[58].mxu1 }
 0x56a   : > { %v26858_v8 = vpop.f32.mrb[59].mxu1 }
 0x56b   : > { %v12379_v57 = vadd.f32 %v26870_v25, %v26858_v8 }
 0x56f   : > { %v26860_v15 = vpop.f32.mrb[60].mxu1 }
 0x570   : > { %v26862_v33 = vpop.f32.mrb[61].mxu1  ;;  %v12384_v8 = vadd.f32 %v26860_v15, %v26870_v25 }
 0x571   : > { %v26864_v44 = vpop.f32.mrb[62].mxu1 }
 0x572   : > { %v26866_v3 = vpop.f32.mrb[63].mxu1 }
 0x5e6   : > { %v21688_v50 = vpop.f32.mrb[32].mxu0 }
 0x5e7   : > { %v18077_v2 = vadd.f32 %v21688_v50, %v26868_v38  ;;  %v17845_v51 = vpop.f32.mrb[33].mxu0 }
 0x5e8   : > { %v18075_v6 = vadd.f32 %v26868_v38, %v17845_v51  ;;  %v21689_v17 = vpop.f32.mrb[34].mxu0 }
 0x5e9   : > { %v18109_v54 = vmax.f32 %v18077_v2, 0.0  ;;  %v18078_v60 = vadd.f32 %v21689_v17, %v26868_v38  ;;  %v17848_v24 = vpop.f32.mrb[35].mxu0 }
 0x5ea   : > { %v18107_v40 = vmax.f32 %v18075_v6, 0.0  ;;  %v18076_v48 = vadd.f32 %v26868_v38, %v17848_v24 }
 0x5eb   : > { %v18173_v18 = vadd.f32 %v18109_v54, %v12356_v63  ;;  %v18110_v55 = vmax.f32 %v18078_v60, 0.0 }
 0x5ec   : > { %v18171_v43 = vadd.f32 %v18107_v40, %v12354_v36  ;;  %v18108_v7 = vmax.f32 %v18076_v48, 0.0  ;;  %v12362_v48 = vadd.f32 %v26870_v25, %v26822_v0 }
 0x5ed   : > { %18205 = vst [vmem:[%s26885_s18 + $0x10] sm:$0xff] %v18173_v18  ;;  %v18174_v5 = vadd.f32 %v18110_v55, %v12357_v11  ;;  %v12365_v55 = vadd.f32 %v26824_v16, %v26870_v25 }
 0x5ee   : > { %18203 = vst [vmem:[%s26885_s18] sm:$0xff] %v18171_v43  ;;  %v18172_v4 = vadd.f32 %v18108_v7, %v12355_v56  ;;  %v21692_v42 = vpop.f32.mrb[36].mxu0 }
 0x5ef   : > { %18206 = vst [vmem:[%s26885_s18 + $0x18] sm:$0xff] %v18174_v5  ;;  %v18081_v58 = vadd.f32 %v21692_v42, %v26868_v38  ;;  %v17861_v45 = vpop.f32.mrb[37].mxu0 }
 0x5f0   : > { %18204 = vst [vmem:[%s26885_s18 + $0x8] sm:$0xff] %v18172_v4  ;;  %v18079_v19 = vadd.f32 %v26868_v38, %v17861_v45  ;;  %v21693_v37 = vpop.f32.mrb[38].mxu0 }
 0x5f1   : > { %v18113_v26 = vmax.f32 %v18081_v58, 0.0  ;;  %v18082_v28 = vadd.f32 %v21693_v37, %v26868_v38  ;;  %v17864_v39 = vpop.f32.mrb[39].mxu0 }
 0x5f2   : > { %v18111_v9 = vmax.f32 %v18079_v19, 0.0  ;;  %v18080_v21 = vadd.f32 %v26868_v38, %v17864_v39 }
 0x5f3   : > { %v18177_v27 = vadd.f32 %v18113_v26, %v12360_v10  ;;  %v18114_v50 = vmax.f32 %v18082_v28, 0.0  ;;  %v12366_v28 = vadd.f32 %v26870_v25, %v26830_v59 }
 0x5f4   : > { %v18175_v2 = vadd.f32 %v18111_v9, %v12358_v53  ;;  %v18112_v51 = vmax.f32 %v18080_v21, 0.0  ;;  %v12369_v9 = vadd.f32 %v26832_v20, %v26870_v25 }
 0x5f5   : > { %18209 = vst [vmem:[%s26885_s18 + $0x30] sm:$0xff] %v18177_v27  ;;  %v18178_v6 = vadd.f32 %v18114_v50, %v12361_v47 }
 0x5f6   : > { %18207 = vst [vmem:[%s26885_s18 + $0x20] sm:$0xff] %v18175_v2  ;;  %v18176_v17 = vadd.f32 %v18112_v51, %v12359_v30  ;;  %v21696_v63 = vpop.f32.mrb[40].mxu0 }
 0x5f7   : > { %18210 = vst [vmem:[%s26885_s18 + $0x38] sm:$0xff] %v18178_v6  ;;  %v18085_v34 = vadd.f32 %v21696_v63, %v26868_v38  ;;  %v17877_v54 = vpop.f32.mrb[41].mxu0 }
 0x5f8   : > { %18208 = vst [vmem:[%s26885_s18 + $0x28] sm:$0xff] %v18176_v17  ;;  %v18083_v41 = vadd.f32 %v26868_v38, %v17877_v54  ;;  %v21697_v60 = vpop.f32.mrb[42].mxu0 }
 0x5f9   : > { %v18117_v24 = vmax.f32 %v18085_v34, 0.0  ;;  %v18086_v36 = vadd.f32 %v21697_v60, %v26868_v38  ;;  %v17880_v40 = vpop.f32.mrb[43].mxu0 }
 0x5fa   : > { %v18115_v11 = vmax.f32 %v18083_v41, 0.0  ;;  %v18084_v18 = vadd.f32 %v26868_v38, %v17880_v40  ;;  %v12370_v41 = vadd.f32 %v26870_v25, %v26838_v1 }
 0x5fb   : > { %v18181_v56 = vadd.f32 %v18117_v24, %v12364_v35  ;;  %v18118_v43 = vmax.f32 %v18086_v36, 0.0  ;;  %v12373_v24 = vadd.f32 %v26840_v32, %v26870_v25 }
 0x5fc   : > { %v18179_v7 = vadd.f32 %v18115_v11, %v12362_v48  ;;  %v18116_v5 = vmax.f32 %v18084_v18, 0.0 }
 0x5fd   : > { %18213 = vst [vmem:[%s26885_s18 + $0x50] sm:$0xff] %v18181_v56  ;;  %v18182_v4 = vadd.f32 %v18118_v43, %v12365_v55 }
 0x5fe   : > { %18211 = vst [vmem:[%s26885_s18 + $0x40] sm:$0xff] %v18179_v7  ;;  %v18180_v42 = vadd.f32 %v18116_v5, %v12363_v46  ;;  %v21700_v58 = vpop.f32.mrb[44].mxu0 }
 0x5ff   : > { %18214 = vst [vmem:[%s26885_s18 + $0x58] sm:$0xff] %v18182_v4  ;;  %v18089_v0 = vadd.f32 %v21700_v58, %v26868_v38  ;;  %v17893_v45 = vpop.f32.mrb[45].mxu0 }
 0x600   : > { %18212 = vst [vmem:[%s26885_s18 + $0x48] sm:$0xff] %v18180_v42  ;;  %v18087_v16 = vadd.f32 %v26868_v38, %v17893_v45  ;;  %v21701_v19 = vpop.f32.mrb[46].mxu0  ;;  %v12374_v42 = vadd.f32 %v26870_v25, %v26846_v29  ;;  %v12377_v45 = vadd.f32 %v26848_v52, %v26870_v25 }
 0x601   : > { %v18121_v37 = vmax.f32 %v18089_v0, 0.0  ;;  %v18090_v10 = vadd.f32 %v21701_v19, %v26868_v38  ;;  %v17896_v26 = vpop.f32.mrb[47].mxu0 }
 0x602   : > { %v18119_v39 = vmax.f32 %v18087_v16, 0.0  ;;  %v18088_v53 = vadd.f32 %v26868_v38, %v17896_v26 }
 0x603   : > { %v18185_v21 = vadd.f32 %v18121_v37, %v12368_v49  ;;  %v18122_v47 = vmax.f32 %v18090_v10, 0.0 }
 0x604   : > { %v18183_v27 = vadd.f32 %v18119_v39, %v12366_v28  ;;  %v18120_v50 = vmax.f32 %v18088_v53, 0.0 }
 0x605   : > { %18217 = vst [vmem:[%s26885_s18 + $0x70] sm:$0xff] %v18185_v21  ;;  %v18186_v30 = vadd.f32 %v18122_v47, %v12369_v9 }
 0x606   : > { %18215 = vst [vmem:[%s26885_s18 + $0x60] sm:$0xff] %v18183_v27  ;;  %v18184_v2 = vadd.f32 %v18120_v50, %v12367_v22  ;;  %v21704_v51 = vpop.f32.mrb[48].mxu0  ;;  %v12378_v22 = vadd.f32 %v26870_v25, %v26854_v12 }
 0x607   : > { %18218 = vst [vmem:[%s26885_s18 + $0x78] sm:$0xff] %v18186_v30  ;;  %v18093_v59 = vadd.f32 %v21704_v51, %v26868_v38  ;;  %v17909_v6 = vpop.f32.mrb[49].mxu0  ;;  %v12381_v30 = vadd.f32 %v26856_v31, %v26870_v25 }
 0x608   : > { %18216 = vst [vmem:[%s26885_s18 + $0x68] sm:$0xff] %v18184_v2  ;;  %v18091_v20 = vadd.f32 %v26868_v38, %v17909_v6  ;;  %v21705_v17 = vpop.f32.mrb[50].mxu0 }
 0x609   : > { %v18125_v63 = vmax.f32 %v18093_v59, 0.0  ;;  %v18094_v34 = vadd.f32 %v21705_v17, %v26868_v38  ;;  %v17912_v54 = vpop.f32.mrb[51].mxu0 }
 0x60a   : > { %v18123_v60 = vmax.f32 %v18091_v20, 0.0  ;;  %v18092_v35 = vadd.f32 %v26868_v38, %v17912_v54 }
 0x60b   : > { %v18189_v36 = vadd.f32 %v18125_v63, %v12372_v14  ;;  %v18126_v40 = vmax.f32 %v18094_v34, 0.0 }
 0x60c   : > { %v18187_v48 = vadd.f32 %v18123_v60, %v12370_v41  ;;  %v18124_v11 = vmax.f32 %v18092_v35, 0.0  ;;  %v12382_v35 = vadd.f32 %v26870_v25, %v26862_v33 }
 0x60d   : > { %18221 = vst [vmem:[%s26885_s18 + $0x90] sm:$0xff] %v18189_v36  ;;  %v18190_v18 = vadd.f32 %v18126_v40, %v12373_v24  ;;  %v12385_v40 = vadd.f32 %v26864_v44, %v26870_v25 }
 0x60e   : > { %18219 = vst [vmem:[%s26885_s18 + $0x80] sm:$0xff] %v18187_v48  ;;  %v18188_v55 = vadd.f32 %v18124_v11, %v12371_v61  ;;  %v21708_v56 = vpop.f32.mrb[52].mxu0  ;;  %v12383_v48 = vadd.f32 %v26870_v25, %v26866_v3 }
 0x60f   : > { %18222 = vst [vmem:[%s26885_s18 + $0x98] sm:$0xff] %v18190_v18  ;;  %v18097_v1 = vadd.f32 %v21708_v56, %v26868_v38  ;;  %v17925_v43 = vpop.f32.mrb[53].mxu0 }
 0x610   : > { %18220 = vst [vmem:[%s26885_s18 + $0x88] sm:$0xff] %v18188_v55  ;;  %v18095_v32 = vadd.f32 %v26868_v38, %v17925_v43  ;;  %v21709_v46 = vpop.f32.mrb[54].mxu0 }
 0x611   : > { %v18129_v7 = vmax.f32 %v18097_v1, 0.0  ;;  %v18098_v5 = vadd.f32 %v21709_v46, %v26868_v38  ;;  %v17928_v4 = vpop.f32.mrb[55].mxu0 }
 0x612   : > { %v18127_v58 = vmax.f32 %v18095_v32, 0.0  ;;  %v18096_v0 = vadd.f32 %v26868_v38, %v17928_v4 }
 0x613   : > { %v18193_v16 = vadd.f32 %v18129_v7, %v12376_v62  ;;  %v18130_v19 = vmax.f32 %v18098_v5, 0.0 }
 0x614   : > { %v18191_v49 = vadd.f32 %v18127_v58, %v12374_v42  ;;  %v18128_v37 = vmax.f32 %v18096_v0, 0.0 }
 0x615   : > { %18225 = vst [vmem:[%s26885_s18 + $0xb0] sm:$0xff] %v18193_v16  ;;  %v18194_v10 = vadd.f32 %v18130_v19, %v12377_v45 }
 0x616   : > { %18223 = vst [vmem:[%s26885_s18 + $0xa0] sm:$0xff] %v18191_v49  ;;  %v18192_v26 = vadd.f32 %v18128_v37, %v12375_v23  ;;  %v21712_v28 = vpop.f32.mrb[56].mxu0 }
 0x617   : > { %18226 = vst [vmem:[%s26885_s18 + $0xb8] sm:$0xff] %v18194_v10  ;;  %v18101_v29 = vadd.f32 %v21712_v28, %v26868_v38  ;;  %v17941_v39 = vpop.f32.mrb[57].mxu0 }
 0x618   : > { %18224 = vst [vmem:[%s26885_s18 + $0xa8] sm:$0xff] %v18192_v26  ;;  %v18099_v52 = vadd.f32 %v26868_v38, %v17941_v39  ;;  %v21713_v53 = vpop.f32.mrb[58].mxu0 }
 0x619   : > { %v18133_v9 = vmax.f32 %v18101_v29, 0.0  ;;  %v18102_v21 = vadd.f32 %v21713_v53, %v26868_v38  ;;  %v17944_v47 = vpop.f32.mrb[59].mxu0 }
 0x61a   : > { %v18131_v27 = vmax.f32 %v18099_v52, 0.0  ;;  %v18100_v50 = vadd.f32 %v26868_v38, %v17944_v47 }
 0x61b   : > { %v18197_v2 = vadd.f32 %v18133_v9, %v12380_v13  ;;  %v18134_v51 = vmax.f32 %v18102_v21, 0.0 }
 0x61c   : > { %v18195_v59 = vadd.f32 %v18131_v27, %v12378_v22  ;;  %v18132_v6 = vmax.f32 %v18100_v50, 0.0 }
 0x61d   : > { %18229 = vst [vmem:[%s26885_s18 + $0xd0] sm:$0xff] %v18197_v2  ;;  %v18198_v20 = vadd.f32 %v18134_v51, %v12381_v30 }
 0x61e   : > { %18227 = vst [vmem:[%s26885_s18 + $0xc0] sm:$0xff] %v18195_v59  ;;  %v18196_v17 = vadd.f32 %v18132_v6, %v12379_v57  ;;  %v21716_v12 = vpop.f32.mrb[60].mxu0 }
 0x61f   : > { %18230 = vst [vmem:[%s26885_s18 + $0xd8] sm:$0xff] %v18198_v20  ;;  %v18105_v14 = vadd.f32 %v21716_v12, %v26868_v38  ;;  %v17957_v63 = vpop.f32.mrb[61].mxu0 }
 0x620   : > { %18228 = vst [vmem:[%s26885_s18 + $0xc8] sm:$0xff] %v18196_v17  ;;  %v18103_v31 = vadd.f32 %v26868_v38, %v17957_v63  ;;  %v21717_v34 = vpop.f32.mrb[62].mxu0 }
 0x621   : > { %v18137_v54 = vmax.f32 %v18105_v14, 0.0  ;;  %v18106_v41 = vadd.f32 %v21717_v34, %v26868_v38  ;;  %v17960_v60 = vpop.f32.mrb[63].mxu0 }
 0x622   : > { %v18135_v24 = vmax.f32 %v18103_v31, 0.0  ;;  %v18104_v36 = vadd.f32 %v26868_v38, %v17960_v60 }
 0x623   : > { %v18201_v15 = vadd.f32 %v18137_v54, %v12384_v8  ;;  %v18138_v61 = vmax.f32 %v18106_v41, 0.0 }
 0x624   : > { %v18199_v11 = vadd.f32 %v18135_v24, %v12382_v35  ;;  %v18136_v18 = vmax.f32 %v18104_v36, 0.0 }
 0x625   : > { %18233 = vst [vmem:[%s26885_s18 + $0xf0] sm:$0xff] %v18201_v15  ;;  %v18202_v33 = vadd.f32 %v18138_v61, %v12385_v40 }
 0x626   : > { %18231 = vst [vmem:[%s26885_s18 + $0xe0] sm:$0xff] %v18199_v11  ;;  %v18200_v44 = vadd.f32 %v18136_v18, %v12383_v48 }
 0x627   : > { %18234 = vst [vmem:[%s26885_s18 + $0xf8] sm:$0xff] %v18202_v33 }
 0x628   : > { %18232 = vst [vmem:[%s26885_s18 + $0xe8] sm:$0xff] %v18200_v44 }
 0x629   : > { %23200 = shalt.err (!%p23197_p8)
}
 0x62a   : > { %s23201_s9 = scalar_lea.hbm %s27005_s21, 4096  ;;  %s23205_s8 = scalar_lea.hbm %s27061_s7, 8192 }
 0x62b   : > { %p23202_p4 = scmp.ne.s32.totalorder %s27005_s21, %s23201_s9  ;;  %p23206_p0 = scmp.lt.u32.totalorder %s27005_s21, %s27061_s7 }
 0x62c   : > { %p23207_p6 = scmp.lt.u32.totalorder %s23205_s8, %s23201_s9  ;;  %p23209_p5 = scmp.lt.u32.totalorder %s23201_s9, %s27005_s21 }
 0x62d   : > { %p23203_p10 = pnand %p23202_p4, %p27162_p9 }
 0x62e   : > { %p23208_p7 = por %p23207_p6, %p23206_p0 }
 0x62f   : > { %p23204_p11 = pneg %p23203_p10 }
 0x630   : > { %p23210_p12 = por %p23209_p5, %p23208_p7 }
 0x632   : > { %p23211_p13 = pnand %p23210_p12, %p23204_p11 }
 0x634   : > { %23214 = shalt.err (!%p23211_p13)
}
 0x635   : > { %s23278_s12 = smov 128   ;;  %s23279_s16 = smov 8  }
 0x636   : > { %22531 = dma.vmem_to_hbm [thread:$0]  (%p27162_p9), %s27007_s22, 4096, %s27005_s21, %s18236_s30, %s23278_s12, %s23278_s12, %s23279_s16  }
 0x637 PF: > { %s18264_s19 = sand.u32 1, %s23253_s24   ;;  %p27163_p1 = scmp.ne.s32.totalorder %s27084_s10, 0 }
 0x638   : > { %p27164_p3 = scmp.ge.s32.totalorder %s23265_s27, 2  ;;  %s18265_s1 = scalar_lea.sflag [#allocation6], %s18264_s19 }
 0x63a   : > { %p22557_p2 = pnand %p27164_p3, %p27163_p1 }
 0x63c   : > { %23248 = dma.done.wait (!%p22557_p2), %s18265_s1, 4096  }
 0x63d   : > { %23250 = vsyncadd (!%p22557_p2), %s18265_s1, 4294963200  ;;  %p23_p8 = scmp.ge.s32.totalorder %s23505_s11, 4   ;;  %s27165_s24 = smov %s23257_s25 }
 0x63e   : > { %s27166_s25 = smov %s23261_s26  ;;  %s27167_s26 = smov %s23516_s17 }
 0x63f   : > { %s27168_s27 = smov %s23505_s11  ;;  %25 = sbr.rel (!%p23_p8) target bundleno = 10 (0xa), region = 145 }
 0x646   :  { %18270 = vsyncpa [#allocation5], 1 }
 0x647   :  { %18272 = vsyncpa [#allocation5 + $0x1], 1 }
 0x648   :  { %18273 = vsyncpa [#allocation8], 1 }
 0x649   :  { %18274 = vsyncpa [#allocation11], 1 }
 0x64a   :  { %18275 = vsyncpa [#allocation14], 1 }
 0x64b   :  { %18276 = vsyncpa [#allocation6], 1 }
 0x64c   :  { %18278 = vsyncpa [#allocation6 + $0x1], 1 }

</bundles_post_ra>
